<compile_context>
chip_gen: v5e
topology: v5e:2x2
jax: 0.10.0
libtpu: 0.0.40
codegen_flags: <defaults>
</compile_context>

<pallas_src>
import functools

import jax
import jax.numpy as jnp
from jax.experimental import pallas as pl
from jax.experimental.pallas import tpu as pltpu


def block_attention_kernel(xm_ref, xt_ref, xb_ref, wqkv_ref, wdw_ref, wo_ref,
                           o_ref, *, heads, dim_head, ps, scale, dw_dtype):
    R, W, C = xm_ref.shape                       # band rows, width, channels
    C3 = 3 * C
    dh = dim_head
    nwr, nwc = R // ps, W // ps                  # windows per band (rows/cols)
    nwin = nwr * nwc

    r = pl.program_id(1)
    last = pl.num_programs(1) - 1

    # ---- assemble the 1-row-haloed band (zero halo at the image border) ----
    top = jnp.where(r > 0, xt_ref[...], 0)
    bot = jnp.where(r < last, xb_ref[...], 0)
    xh = jnp.concatenate([top, xm_ref[...], bot], axis=0)       # (R+2, W, C) bf16

    # ---- 1x1 qkv conv: bf16 operands on the MXU, f32 accumulation ----------
    hq = jnp.dot(xh.reshape((R + 2) * W, C), wqkv_ref[...],
                 preferred_element_type=jnp.float32)
    hq = hq.reshape(R + 2, W, C3).astype(dw_dtype)

    # ---- depthwise 3x3, stride 1, zero pad 1 (no bias) ---------------------
    # dy taps: aligned leading-dim slices of the haloed stack.
    # dx taps: two roll-along-W copies + broadcasted-iota edge mask (no padded
    # (H+2, W+2) copy and no per-tap misaligned slices).
    col = jax.lax.broadcasted_iota(jnp.int32, (1, W, 1), 1)
    hq_l = jnp.where(col > 0, jnp.roll(hq, 1, axis=1), 0)       # col x-1 at x
    hq_r = jnp.where(col < W - 1, jnp.roll(hq, -1, axis=1), 0)  # col x+1 at x

    wdw = wdw_ref[...].astype(dw_dtype)                         # (9, 3C)
    taps = [wdw[t].reshape(1, 1, C3) for t in range(9)]         # hoisted
    acc = jnp.zeros((R, W, C3), dw_dtype)
    for dy in range(3):
        acc = (acc
               + hq_l[dy:dy + R] * taps[3 * dy + 0]
               + hq[dy:dy + R] * taps[3 * dy + 1]
               + hq_r[dy:dy + R] * taps[3 * dy + 2])
    acc = acc.astype(jnp.float32)

    q = acc[:, :, 0 * C:1 * C] * scale
    k = acc[:, :, 1 * C:2 * C]
    v = acc[:, :, 2 * C:3 * C]

    # ---- ps x ps window multi-head attention, batched over all windows -----
    def to_windows(t):                           # (R, W, dh) -> (nwin, ps*ps, dh)
        t = t.reshape(nwr, ps, nwc, ps, dh)
        t = jnp.transpose(t, (0, 2, 1, 3, 4))    # leading-dims-only permute
        return t.reshape(nwin, ps * ps, dh)

    qws, kws, vws = [], [], []
    for h in range(heads):                       # heads is small; layout only
        c0 = h * dh
        qws.append(to_windows(q[:, :, c0:c0 + dh]))
        kws.append(to_windows(k[:, :, c0:c0 + dh]))
        vws.append(to_windows(v[:, :, c0:c0 + dh]))
    qw = jnp.concatenate(qws, axis=0)            # (heads*nwin, ps*ps, dh)
    kw = jnp.concatenate(kws, axis=0)
    vw = jnp.concatenate(vws, axis=0)

    sim = jnp.einsum('bid,bjd->bij', qw, kw,
                     preferred_element_type=jnp.float32)
    m = jnp.max(sim, axis=-1, keepdims=True)
    e = jnp.exp(sim - m)
    s = jnp.sum(e, axis=-1, keepdims=True)
    attn = e * pl.reciprocal(s, approx=True)     # softmax; dropout p=0 == id
    ow = jnp.einsum('bij,bjd->bid', attn, vw,
                    preferred_element_type=jnp.float32)

    outs = []
    for h in range(heads):                       # inverse window regroup
        t = ow[h * nwin:(h + 1) * nwin]
        t = t.reshape(nwr, nwc, ps, ps, dh)
        t = jnp.transpose(t, (0, 2, 1, 3, 4))    # (nwr, ps, nwc, ps, dh)
        outs.append(t.reshape(R, W, dh))
    att = jnp.concatenate(outs, axis=-1)         # (R, W, C)

    # ---- 1x1 output projection: bf16 operands, f32 accumulation ------------
    out = jnp.dot(att.reshape(R * W, C).astype(jnp.bfloat16), wo_ref[...],
                  preferred_element_type=jnp.float32)
    o_ref[...] = out.reshape(R, W, C).astype(o_ref.dtype)


def _pick_band_windows(nwh, ps, width):
    """Window-rows per band: divides nwh, keeps the band VMEM-friendly, and
    prefers >= 2 bands so v7x's two TensorCores get parallel work at B=1."""
    target_rows = max(ps, min(64, 4096 // max(1, width)))
    best = nwh                        # fallback: single band == full image
    for d in range(1, nwh):           # proper divisors -> at least 2 bands
        if nwh % d == 0 and d * ps <= target_rows:
            best = d
    return best


def block_attention(x_nchw, params, *, dim_head=32, window_size=4,
                    band_windows=None, dw_compute_dtype=jnp.float32):
    """x_nchw: (B, C, H, W) float32 (PyTorch layout). Returns (B, C, H, W) f32.

    dw_compute_dtype=jnp.bfloat16 enables the v6e/v7x bf16-VPU depthwise-tap
    option from the perf review; keep float32 on v5e / tight accuracy budgets.
    """
    B, C, H, W = x_nchw.shape
    assert C % dim_head == 0, "dim must be divisible by dim_head"
    ps = window_size
    assert H % ps == 0 and W % ps == 0
    heads = C // dim_head
    scale = dim_head ** -0.5
    C3 = 3 * C
    nwh = H // ps
    if band_windows is None:
        band_windows = _pick_band_windows(nwh, ps, W)
    assert nwh % band_windows == 0
    band = band_windows * ps
    nbands = nwh // band_windows

    # NHWC + bf16 activations / projection weights (f32 accumulate in-kernel).
    x = jnp.transpose(x_nchw, (0, 2, 3, 1)).astype(jnp.bfloat16)
    wqkv = params["wqkv"].astype(jnp.bfloat16)                 # (C, 3C)
    wdw = params["wdw"].astype(jnp.float32)                    # (9, 3C) taps
    wo = params["wo"].astype(jnp.bfloat16)                     # (C, C)

    kernel = functools.partial(block_attention_kernel, heads=heads,
                               dim_head=dim_head, ps=ps, scale=scale,
                               dw_dtype=dw_compute_dtype)

    # advisory cost for XLA's scheduler
    nwin_total = (H // ps) * (W // ps)
    flops = B * (2 * (H + 2 * nbands) * W * C * C3
                 + 18 * H * W * C3
                 + 4 * nwin_total * heads * (ps * ps) * (ps * ps) * dim_head
                 + 2 * H * W * C * C)
    transc = B * nwin_total * heads * (ps * ps) * (ps * ps)
    bytes_acc = (x.size * 2 + 2 * B * nbands * W * C * 2
                 + B * H * W * C * 4
                 + wqkv.size * 2 + wdw.size * 4 + wo.size * 2)

    # explicit scoped-VMEM limit (review: do not rely on the 16/32 MiB default)
    bpix = (band + 2) * W
    est = (3 * bpix * C3 * 4                  # hq + two shifted copies
           + 2 * band * W * C3 * 4            # acc (+ q/k/v views)
           + 14 * band * W * C * 4            # window copies, sim/attn, merge, out
           + 6 * bpix * C * 2                 # x band + halo blocks (buffered)
           + 4 * (C * C3 + 9 * C3 + C * C) * 4
           + 4 * band * W * C * 4)            # output block (double buffered)
    vmem_limit = int(min(64 * 2 ** 20, max(32 * 2 ** 20, 2 * est)))

    def build(single_buffer_weights):
        wkw = dict(pipeline_mode=pl.Buffered(1)) if single_buffer_weights else {}
        in_specs = [
            # current band of `band` rows
            pl.BlockSpec((None, band, W, C), lambda b, r: (b, r, 0, 0)),
            # 1-row top / bottom halo (clamped at the border; zeroed in-kernel)
            pl.BlockSpec((None, 1, W, C),
                         lambda b, r: (b, jnp.maximum(r * band - 1, 0), 0, 0)),
            pl.BlockSpec((None, 1, W, C),
                         lambda b, r: (b, jnp.minimum((r + 1) * band, H - 1), 0, 0)),
            # weights: block never changes across the grid
            pl.BlockSpec((C, C3), lambda b, r: (0, 0), **wkw),
            pl.BlockSpec((9, C3), lambda b, r: (0, 0), **wkw),
            pl.BlockSpec((C, C), lambda b, r: (0, 0), **wkw),
        ]
        return pl.pallas_call(
            kernel,
            out_shape=jax.ShapeDtypeStruct((B, H, W, C), jnp.float32),
            grid=(B, nbands),
            in_specs=in_specs,
            out_specs=pl.BlockSpec((None, band, W, C), lambda b, r: (b, r, 0, 0)),
            compiler_params=pltpu.CompilerParams(
                dimension_semantics=("parallel", "parallel"),
                vmem_limit_bytes=vmem_limit),
            cost_estimate=pl.CostEstimate(flops=int(flops),
                                          transcendentals=int(transc),
                                          bytes_accessed=int(bytes_acc)),
        )

    try:
        out = build(True)(x, x, x, wqkv, wdw, wo)
    except Exception:
        # pl.Buffered single-buffering not available for top-level pallas_call
        # specs on this JAX version -> default double buffering (weights ~40KB).
        out = build(False)(x, x, x, wqkv, wdw, wo)

    return jnp.transpose(out, (0, 3, 1, 2))                    # -> NCHW


def init_params(key, dim):
    """Weights matching nn.Conv2d(bias=False) layers, stored matmul-ready."""
    C3 = 3 * dim
    k1, k2, k3 = jax.random.split(key, 3)
    s1 = 1.0 / (dim ** 0.5)
    sdw = 1.0 / 3.0
    u = jax.random.uniform
    return dict(
        wqkv=u(k1, (dim, C3), jnp.float32, -s1, s1),   # [in, out] of 1x1 qkv conv
        wdw=u(k2, (9, C3), jnp.float32, -sdw, sdw),    # [tap(dy*3+dx), channel]
        wo=u(k3, (dim, dim), jnp.float32, -s1, s1),    # [in, out] of 1x1 to_out
    )


def reference_nchw(x_nchw, p, *, dim_head=32, window_size=4):
    """Pure-JAX f32 reference of the same forward (NCHW in / NCHW out)."""
    hp = jax.lax.Precision.HIGHEST
    x = jnp.transpose(x_nchw, (0, 2, 3, 1))
    B, H, W, C = x.shape
    heads = C // dim_head
    ps = window_size
    scale = dim_head ** -0.5
    C3 = 3 * C

    qkv = jnp.einsum("bhwc,cd->bhwd", x, p["wqkv"], precision=hp)
    qkvp = jnp.pad(qkv, ((0, 0), (1, 1), (1, 1), (0, 0)))
    acc = jnp.zeros((B, H, W, C3), jnp.float32)
    for dy in range(3):
        for dx in range(3):
            acc = acc + qkvp[:, dy:dy + H, dx:dx + W, :] * p["wdw"][dy * 3 + dx]
    q, k, v = acc[..., :C], acc[..., C:2 * C], acc[..., 2 * C:]

    def win(t):  # 'b (h d) (x w1) (y w2) -> (b x y) h (w1 w2) d' (unflattened)
        t = t.reshape(B, H // ps, ps, W // ps, ps, heads, dim_head)
        t = t.transpose(0, 1, 3, 5, 2, 4, 6)
        return t.reshape(B, H // ps, W // ps, heads, ps * ps, dim_head)

    qw, kw, vw = win(q) * scale, win(k), win(v)
    sim = jnp.einsum("...id,...jd->...ij", qw, kw, precision=hp)
    attn = jax.nn.softmax(sim, axis=-1)
    ow = jnp.einsum("...ij,...jd->...id", attn, vw, precision=hp)
    ow = ow.reshape(B, H // ps, W // ps, heads, ps, ps, dim_head)
    ow = ow.transpose(0, 1, 4, 2, 5, 3, 6).reshape(B, H, W, C)
    out = jnp.einsum("bhwc,cd->bhwd", ow, p["wo"], precision=hp)
    return jnp.transpose(out, (0, 3, 1, 2))


if __name__ == "__main__":
    key = jax.random.PRNGKey(0)
    kx, kp = jax.random.split(key)

    # dim divisible by dim_head (32); spatial divisible by the window size.
    B, C, H, W = 2, 64, 16, 16
    dim_head, window_size = 32, 4

    x = jax.random.normal(kx, (B, C, H, W), jnp.float32)      # NCHW input
    params = init_params(kp, C)

    out = jax.block_until_ready(
        block_attention(x, params, dim_head=dim_head, window_size=window_size))
    ref = jax.block_until_ready(
        reference_nchw(x, params, dim_head=dim_head, window_size=window_size))

    assert out.shape == (B, C, H, W), out.shape
    max_err = float(jnp.max(jnp.abs(out - ref)))
    assert jnp.allclose(out, ref, rtol=1e-2, atol=1e-2), max_err
    print("KERNEL_OK")
</pallas_src>

<mosaic_0001>
module attributes {stable_mosaic.version = 11 : i64} {
  func.func @block_attention_kernel(%arg0: i32, %arg1: i32, %arg2: memref<1x8x16x64xbf16, #tpu.memory_space<vmem>>, %arg3: memref<1x1x16x64xbf16, #tpu.memory_space<vmem>>, %arg4: memref<1x1x16x64xbf16, #tpu.memory_space<vmem>>, %arg5: memref<64x192xbf16, #tpu.memory_space<vmem>>, %arg6: memref<9x192xf32, #tpu.memory_space<vmem>>, %arg7: memref<64x64xbf16, #tpu.memory_space<vmem>>, %arg8: memref<1x8x16x64xf32, #tpu.memory_space<vmem>>) attributes {dimension_semantics = [#tpu.dimension_semantics<parallel>, #tpu.dimension_semantics<parallel>], iteration_bounds = array<i64: 2, 2>, scalar_prefetch = 0 : i64, scratch_operands = 0 : i64, tpu.core_type = #tpu.core_type<tc>, window_params = [{transform_indices = @transform_0, window_bounds = array<i64: 1, 8, 16, 64>}, {transform_indices = @transform_1, window_bounds = array<i64: 1, 1, 16, 64>}, {transform_indices = @transform_2, window_bounds = array<i64: 1, 1, 16, 64>}, {pipeline_mode = #tpu.pipeline_mode<synchronous>, transform_indices = @transform_3, window_bounds = array<i64: 64, 192>}, {pipeline_mode = #tpu.pipeline_mode<synchronous>, transform_indices = @transform_4, window_bounds = array<i64: 9, 192>}, {pipeline_mode = #tpu.pipeline_mode<synchronous>, transform_indices = @transform_5, window_bounds = array<i64: 64, 64>}, {transform_indices = @transform_6, window_bounds = array<i64: 1, 8, 16, 64>}]} {
    %c0_i32 = arith.constant 0 : i32
    %0 = arith.cmpi sgt, %arg1, %c0_i32 : i32
    %c0 = arith.constant 0 : index
    %c0_0 = arith.constant 0 : index
    %c0_1 = arith.constant 0 : index
    %c0_2 = arith.constant 0 : index
    %1 = vector.load %arg3[%c0, %c0_0, %c0_1, %c0_2] : memref<1x1x16x64xbf16, #tpu.memory_space<vmem>>, vector<1x1x16x64xbf16>
    %2 = vector.shape_cast %1 : vector<1x1x16x64xbf16> to vector<1x16x64xbf16>
    %c0_i32_3 = arith.constant 0 : i32
    %3 = arith.sitofp %c0_i32_3 : i32 to bf16
    %4 = vector.broadcast %3 : bf16 to vector<1x16x64xbf16>
    %5 = arith.select %0, %2, %4 : vector<1x16x64xbf16>
    %c1_i32 = arith.constant 1 : i32
    %6 = arith.cmpi slt, %arg1, %c1_i32 : i32
    %c0_4 = arith.constant 0 : index
    %c0_5 = arith.constant 0 : index
    %c0_6 = arith.constant 0 : index
    %c0_7 = arith.constant 0 : index
    %7 = vector.load %arg4[%c0_4, %c0_5, %c0_6, %c0_7] : memref<1x1x16x64xbf16, #tpu.memory_space<vmem>>, vector<1x1x16x64xbf16>
    %8 = vector.shape_cast %7 : vector<1x1x16x64xbf16> to vector<1x16x64xbf16>
    %c0_i32_8 = arith.constant 0 : i32
    %9 = arith.sitofp %c0_i32_8 : i32 to bf16
    %10 = vector.broadcast %9 : bf16 to vector<1x16x64xbf16>
    %11 = arith.select %6, %8, %10 : vector<1x16x64xbf16>
    %c0_9 = arith.constant 0 : index
    %c0_10 = arith.constant 0 : index
    %c0_11 = arith.constant 0 : index
    %c0_12 = arith.constant 0 : index
    %12 = vector.load %arg2[%c0_9, %c0_10, %c0_11, %c0_12] : memref<1x8x16x64xbf16, #tpu.memory_space<vmem>>, vector<1x8x16x64xbf16>
    %13 = vector.shape_cast %12 : vector<1x8x16x64xbf16> to vector<8x16x64xbf16>
    %14 = tpu.concatenate %5, %13, %11 in 0 : vector<1x16x64xbf16>, vector<8x16x64xbf16>, vector<1x16x64xbf16> -> vector<10x16x64xbf16>
    %15 = vector.shape_cast %14 : vector<10x16x64xbf16> to vector<160x64xbf16>
    %c0_13 = arith.constant 0 : index
    %c0_14 = arith.constant 0 : index
    %16 = vector.load %arg5[%c0_13, %c0_14] : memref<64x192xbf16, #tpu.memory_space<vmem>>, vector<64x192xbf16>
    %cst = arith.constant dense<0.000000e+00> : vector<160x192xf32>
    %17 = tpu.matmul %15, %16, %cst {dimension_numbers = #tpu.dot_dimension_numbers<[1], [0], [0], [1], [0, 0, 1, 1], [], []>} : vector<160x64xbf16>, vector<64x192xbf16>, vector<160x192xf32> -> vector<160x192xf32>
    %18 = vector.shape_cast %17 : vector<160x192xf32> to vector<10x16x192xf32>
    %19 = tpu.iota {dimensions = array<i32: 1>} : vector<1x16x1xi32>
    %c0_i32_15 = arith.constant 0 : i32
    %20 = vector.broadcast %c0_i32_15 : i32 to vector<1x16x1xi32>
    %21 = arith.cmpi sgt, %19, %20 : vector<1x16x1xi32>
    %22 = vector.extract_strided_slice %18 {offsets = [0, 15, 0], sizes = [10, 1, 192], strides = [1, 1, 1]} : vector<10x16x192xf32> to vector<10x1x192xf32>
    %23 = vector.extract_strided_slice %18 {offsets = [0, 0, 0], sizes = [10, 15, 192], strides = [1, 1, 1]} : vector<10x16x192xf32> to vector<10x15x192xf32>
    %24 = tpu.concatenate %22, %23 in 1 : vector<10x1x192xf32>, vector<10x15x192xf32> -> vector<10x16x192xf32>
    %c0_i32_16 = arith.constant 0 : i32
    %25 = arith.sitofp %c0_i32_16 : i32 to f32
    %26 = vector.shape_cast %21 : vector<1x16x1xi1> to vector<1x16x1xi1>
    %27 = vector.broadcast %26 : vector<1x16x1xi1> to vector<10x16x192xi1>
    %28 = vector.broadcast %25 : f32 to vector<10x16x192xf32>
    %29 = arith.select %27, %24, %28 : vector<10x16x192xi1>, vector<10x16x192xf32>
    %c15_i32 = arith.constant 15 : i32
    %30 = vector.broadcast %c15_i32 : i32 to vector<1x16x1xi32>
    %31 = arith.cmpi slt, %19, %30 : vector<1x16x1xi32>
    %32 = vector.extract_strided_slice %18 {offsets = [0, 1, 0], sizes = [10, 15, 192], strides = [1, 1, 1]} : vector<10x16x192xf32> to vector<10x15x192xf32>
    %33 = vector.extract_strided_slice %18 {offsets = [0, 0, 0], sizes = [10, 1, 192], strides = [1, 1, 1]} : vector<10x16x192xf32> to vector<10x1x192xf32>
    %34 = tpu.concatenate %32, %33 in 1 : vector<10x15x192xf32>, vector<10x1x192xf32> -> vector<10x16x192xf32>
    %c0_i32_17 = arith.constant 0 : i32
    %35 = arith.sitofp %c0_i32_17 : i32 to f32
    %36 = vector.shape_cast %31 : vector<1x16x1xi1> to vector<1x16x1xi1>
    %37 = vector.broadcast %36 : vector<1x16x1xi1> to vector<10x16x192xi1>
    %38 = vector.broadcast %35 : f32 to vector<10x16x192xf32>
    %39 = arith.select %37, %34, %38 : vector<10x16x192xi1>, vector<10x16x192xf32>
    %c0_18 = arith.constant 0 : index
    %c0_19 = arith.constant 0 : index
    %40 = vector.load %arg6[%c0_18, %c0_19] : memref<9x192xf32, #tpu.memory_space<vmem>>, vector<9x192xf32>
    %41 = vector.extract_strided_slice %40 {offsets = [0, 0], sizes = [1, 192], strides = [1, 1]} : vector<9x192xf32> to vector<1x192xf32>
    %42 = vector.shape_cast %41 : vector<1x192xf32> to vector<192xf32>
    %43 = vector.shape_cast %42 : vector<192xf32> to vector<1x1x192xf32>
    %44 = vector.extract_strided_slice %40 {offsets = [1, 0], sizes = [1, 192], strides = [1, 1]} : vector<9x192xf32> to vector<1x192xf32>
    %45 = vector.shape_cast %44 : vector<1x192xf32> to vector<192xf32>
    %46 = vector.shape_cast %45 : vector<192xf32> to vector<1x1x192xf32>
    %47 = vector.extract_strided_slice %40 {offsets = [2, 0], sizes = [1, 192], strides = [1, 1]} : vector<9x192xf32> to vector<1x192xf32>
    %48 = vector.shape_cast %47 : vector<1x192xf32> to vector<192xf32>
    %49 = vector.shape_cast %48 : vector<192xf32> to vector<1x1x192xf32>
    %50 = vector.extract_strided_slice %40 {offsets = [3, 0], sizes = [1, 192], strides = [1, 1]} : vector<9x192xf32> to vector<1x192xf32>
    %51 = vector.shape_cast %50 : vector<1x192xf32> to vector<192xf32>
    %52 = vector.shape_cast %51 : vector<192xf32> to vector<1x1x192xf32>
    %53 = vector.extract_strided_slice %40 {offsets = [4, 0], sizes = [1, 192], strides = [1, 1]} : vector<9x192xf32> to vector<1x192xf32>
    %54 = vector.shape_cast %53 : vector<1x192xf32> to vector<192xf32>
    %55 = vector.shape_cast %54 : vector<192xf32> to vector<1x1x192xf32>
    %56 = vector.extract_strided_slice %40 {offsets = [5, 0], sizes = [1, 192], strides = [1, 1]} : vector<9x192xf32> to vector<1x192xf32>
    %57 = vector.shape_cast %56 : vector<1x192xf32> to vector<192xf32>
    %58 = vector.shape_cast %57 : vector<192xf32> to vector<1x1x192xf32>
    %59 = vector.extract_strided_slice %40 {offsets = [6, 0], sizes = [1, 192], strides = [1, 1]} : vector<9x192xf32> to vector<1x192xf32>
    %60 = vector.shape_cast %59 : vector<1x192xf32> to vector<192xf32>
    %61 = vector.shape_cast %60 : vector<192xf32> to vector<1x1x192xf32>
    %62 = vector.extract_strided_slice %40 {offsets = [7, 0], sizes = [1, 192], strides = [1, 1]} : vector<9x192xf32> to vector<1x192xf32>
    %63 = vector.shape_cast %62 : vector<1x192xf32> to vector<192xf32>
    %64 = vector.shape_cast %63 : vector<192xf32> to vector<1x1x192xf32>
    %65 = vector.extract_strided_slice %40 {offsets = [8, 0], sizes = [1, 192], strides = [1, 1]} : vector<9x192xf32> to vector<1x192xf32>
    %66 = vector.shape_cast %65 : vector<1x192xf32> to vector<192xf32>
    %67 = vector.shape_cast %66 : vector<192xf32> to vector<1x1x192xf32>
    %cst_20 = arith.constant 0.000000e+00 : f32
    %68 = vector.broadcast %cst_20 : f32 to vector<8x16x192xf32>
    %69 = vector.extract_strided_slice %29 {offsets = [0, 0, 0], sizes = [8, 16, 192], strides = [1, 1, 1]} : vector<10x16x192xf32> to vector<8x16x192xf32>
    %70 = vector.broadcast %43 : vector<1x1x192xf32> to vector<8x16x192xf32>
    %71 = arith.mulf %69, %70 : vector<8x16x192xf32>
    %72 = arith.addf %68, %71 : vector<8x16x192xf32>
    %73 = vector.extract_strided_slice %18 {offsets = [0, 0, 0], sizes = [8, 16, 192], strides = [1, 1, 1]} : vector<10x16x192xf32> to vector<8x16x192xf32>
    %74 = vector.broadcast %46 : vector<1x1x192xf32> to vector<8x16x192xf32>
    %75 = arith.mulf %73, %74 : vector<8x16x192xf32>
    %76 = arith.addf %72, %75 : vector<8x16x192xf32>
    %77 = vector.extract_strided_slice %39 {offsets = [0, 0, 0], sizes = [8, 16, 192], strides = [1, 1, 1]} : vector<10x16x192xf32> to vector<8x16x192xf32>
    %78 = vector.broadcast %49 : vector<1x1x192xf32> to vector<8x16x192xf32>
    %79 = arith.mulf %77, %78 : vector<8x16x192xf32>
    %80 = arith.addf %76, %79 : vector<8x16x192xf32>
    %81 = vector.extract_strided_slice %29 {offsets = [1, 0, 0], sizes = [8, 16, 192], strides = [1, 1, 1]} : vector<10x16x192xf32> to vector<8x16x192xf32>
    %82 = vector.broadcast %52 : vector<1x1x192xf32> to vector<8x16x192xf32>
    %83 = arith.mulf %81, %82 : vector<8x16x192xf32>
    %84 = arith.addf %80, %83 : vector<8x16x192xf32>
    %85 = vector.extract_strided_slice %18 {offsets = [1, 0, 0], sizes = [8, 16, 192], strides = [1, 1, 1]} : vector<10x16x192xf32> to vector<8x16x192xf32>
    %86 = vector.broadcast %55 : vector<1x1x192xf32> to vector<8x16x192xf32>
    %87 = arith.mulf %85, %86 : vector<8x16x192xf32>
    %88 = arith.addf %84, %87 : vector<8x16x192xf32>
    %89 = vector.extract_strided_slice %39 {offsets = [1, 0, 0], sizes = [8, 16, 192], strides = [1, 1, 1]} : vector<10x16x192xf32> to vector<8x16x192xf32>
    %90 = vector.broadcast %58 : vector<1x1x192xf32> to vector<8x16x192xf32>
    %91 = arith.mulf %89, %90 : vector<8x16x192xf32>
    %92 = arith.addf %88, %91 : vector<8x16x192xf32>
    %93 = vector.extract_strided_slice %29 {offsets = [2, 0, 0], sizes = [8, 16, 192], strides = [1, 1, 1]} : vector<10x16x192xf32> to vector<8x16x192xf32>
    %94 = vector.broadcast %61 : vector<1x1x192xf32> to vector<8x16x192xf32>
    %95 = arith.mulf %93, %94 : vector<8x16x192xf32>
    %96 = arith.addf %92, %95 : vector<8x16x192xf32>
    %97 = vector.extract_strided_slice %18 {offsets = [2, 0, 0], sizes = [8, 16, 192], strides = [1, 1, 1]} : vector<10x16x192xf32> to vector<8x16x192xf32>
    %98 = vector.broadcast %64 : vector<1x1x192xf32> to vector<8x16x192xf32>
    %99 = arith.mulf %97, %98 : vector<8x16x192xf32>
    %100 = arith.addf %96, %99 : vector<8x16x192xf32>
    %101 = vector.extract_strided_slice %39 {offsets = [2, 0, 0], sizes = [8, 16, 192], strides = [1, 1, 1]} : vector<10x16x192xf32> to vector<8x16x192xf32>
    %102 = vector.broadcast %67 : vector<1x1x192xf32> to vector<8x16x192xf32>
    %103 = arith.mulf %101, %102 : vector<8x16x192xf32>
    %104 = arith.addf %100, %103 : vector<8x16x192xf32>
    %105 = vector.extract_strided_slice %104 {offsets = [0, 0, 0], sizes = [8, 16, 64], strides = [1, 1, 1]} : vector<8x16x192xf32> to vector<8x16x64xf32>
    %cst_21 = arith.constant 0.176776692 : f32
    %106 = vector.broadcast %cst_21 : f32 to vector<8x16x64xf32>
    %107 = arith.mulf %105, %106 : vector<8x16x64xf32>
    %108 = vector.extract_strided_slice %104 {offsets = [0, 0, 64], sizes = [8, 16, 64], strides = [1, 1, 1]} : vector<8x16x192xf32> to vector<8x16x64xf32>
    %109 = vector.extract_strided_slice %104 {offsets = [0, 0, 128], sizes = [8, 16, 64], strides = [1, 1, 1]} : vector<8x16x192xf32> to vector<8x16x64xf32>
    %110 = vector.extract_strided_slice %107 {offsets = [0, 0, 0], sizes = [8, 16, 32], strides = [1, 1, 1]} : vector<8x16x64xf32> to vector<8x16x32xf32>
    %111 = vector.shape_cast %110 : vector<8x16x32xf32> to vector<2x4x4x4x32xf32>
    %112 = tpu.transpose %111, [0, 2, 1, 3, 4] : vector<2x4x4x4x32xf32> -> vector<2x4x4x4x32xf32>
    %113 = vector.shape_cast %112 : vector<2x4x4x4x32xf32> to vector<8x16x32xf32>
    %114 = vector.extract_strided_slice %108 {offsets = [0, 0, 0], sizes = [8, 16, 32], strides = [1, 1, 1]} : vector<8x16x64xf32> to vector<8x16x32xf32>
    %115 = vector.shape_cast %114 : vector<8x16x32xf32> to vector<2x4x4x4x32xf32>
    %116 = tpu.transpose %115, [0, 2, 1, 3, 4] : vector<2x4x4x4x32xf32> -> vector<2x4x4x4x32xf32>
    %117 = vector.shape_cast %116 : vector<2x4x4x4x32xf32> to vector<8x16x32xf32>
    %118 = vector.extract_strided_slice %109 {offsets = [0, 0, 0], sizes = [8, 16, 32], strides = [1, 1, 1]} : vector<8x16x64xf32> to vector<8x16x32xf32>
    %119 = vector.shape_cast %118 : vector<8x16x32xf32> to vector<2x4x4x4x32xf32>
    %120 = tpu.transpose %119, [0, 2, 1, 3, 4] : vector<2x4x4x4x32xf32> -> vector<2x4x4x4x32xf32>
    %121 = vector.shape_cast %120 : vector<2x4x4x4x32xf32> to vector<8x16x32xf32>
    %122 = vector.extract_strided_slice %107 {offsets = [0, 0, 32], sizes = [8, 16, 32], strides = [1, 1, 1]} : vector<8x16x64xf32> to vector<8x16x32xf32>
    %123 = vector.shape_cast %122 : vector<8x16x32xf32> to vector<2x4x4x4x32xf32>
    %124 = tpu.transpose %123, [0, 2, 1, 3, 4] : vector<2x4x4x4x32xf32> -> vector<2x4x4x4x32xf32>
    %125 = vector.shape_cast %124 : vector<2x4x4x4x32xf32> to vector<8x16x32xf32>
    %126 = vector.extract_strided_slice %108 {offsets = [0, 0, 32], sizes = [8, 16, 32], strides = [1, 1, 1]} : vector<8x16x64xf32> to vector<8x16x32xf32>
    %127 = vector.shape_cast %126 : vector<8x16x32xf32> to vector<2x4x4x4x32xf32>
    %128 = tpu.transpose %127, [0, 2, 1, 3, 4] : vector<2x4x4x4x32xf32> -> vector<2x4x4x4x32xf32>
    %129 = vector.shape_cast %128 : vector<2x4x4x4x32xf32> to vector<8x16x32xf32>
    %130 = vector.extract_strided_slice %109 {offsets = [0, 0, 32], sizes = [8, 16, 32], strides = [1, 1, 1]} : vector<8x16x64xf32> to vector<8x16x32xf32>
    %131 = vector.shape_cast %130 : vector<8x16x32xf32> to vector<2x4x4x4x32xf32>
    %132 = tpu.transpose %131, [0, 2, 1, 3, 4] : vector<2x4x4x4x32xf32> -> vector<2x4x4x4x32xf32>
    %133 = vector.shape_cast %132 : vector<2x4x4x4x32xf32> to vector<8x16x32xf32>
    %134 = tpu.concatenate %113, %125 in 0 : vector<8x16x32xf32>, vector<8x16x32xf32> -> vector<16x16x32xf32>
    %135 = tpu.concatenate %117, %129 in 0 : vector<8x16x32xf32>, vector<8x16x32xf32> -> vector<16x16x32xf32>
    %136 = tpu.concatenate %121, %133 in 0 : vector<8x16x32xf32>, vector<8x16x32xf32> -> vector<16x16x32xf32>
    "tpu.trace_start"() <{level = 10 : i32, message = "bid,bjd->bij"}> : () -> ()
    %cst_22 = arith.constant dense<0.000000e+00> : vector<16x16x16xf32>
    %137 = tpu.matmul %134, %135, %cst_22 {dimension_numbers = #tpu.dot_dimension_numbers<[2], [2], [1], [1], [0, 0, 0, 1, 1, 1], [0], [0]>} : vector<16x16x32xf32>, vector<16x16x32xf32>, vector<16x16x16xf32> -> vector<16x16x16xf32>
    "tpu.trace_stop"() : () -> ()
    %cst_23 = arith.constant dense<0xFF800000> : vector<16x16xf32>
    %138 = vector.multi_reduction <maximumf>, %137, %cst_23 [2] : vector<16x16x16xf32> to vector<16x16xf32>
    %139 = vector.shape_cast %138 : vector<16x16xf32> to vector<16x16x1xf32>
    %140 = vector.broadcast %139 : vector<16x16x1xf32> to vector<16x16x16xf32>
    %141 = arith.subf %137, %140 : vector<16x16x16xf32>
    %142 = math.exp %141 : vector<16x16x16xf32>
    %cst_24 = arith.constant dense<0.000000e+00> : vector<16x16xf32>
    %143 = vector.multi_reduction <add>, %142, %cst_24 [2] : vector<16x16x16xf32> to vector<16x16xf32>
    %144 = vector.shape_cast %143 : vector<16x16xf32> to vector<16x16x1xf32>
    %145 = tpu.reciprocal %144 {approx = true} : vector<16x16x1xf32> -> vector<16x16x1xf32>
    %146 = vector.broadcast %145 : vector<16x16x1xf32> to vector<16x16x16xf32>
    %147 = arith.mulf %142, %146 : vector<16x16x16xf32>
    "tpu.trace_start"() <{level = 10 : i32, message = "bij,bjd->bid"}> : () -> ()
    %cst_25 = arith.constant dense<0.000000e+00> : vector<16x16x32xf32>
    %148 = tpu.matmul %147, %136, %cst_25 {dimension_numbers = #tpu.dot_dimension_numbers<[2], [1], [1], [2], [0, 0, 0, 1, 1, 2], [0], [0]>} : vector<16x16x16xf32>, vector<16x16x32xf32>, vector<16x16x32xf32> -> vector<16x16x32xf32>
    "tpu.trace_stop"() : () -> ()
    %149 = vector.extract_strided_slice %148 {offsets = [0, 0, 0], sizes = [8, 16, 32], strides = [1, 1, 1]} : vector<16x16x32xf32> to vector<8x16x32xf32>
    %150 = vector.shape_cast %149 : vector<8x16x32xf32> to vector<2x4x4x4x32xf32>
    %151 = tpu.transpose %150, [0, 2, 1, 3, 4] : vector<2x4x4x4x32xf32> -> vector<2x4x4x4x32xf32>
    %152 = vector.shape_cast %151 : vector<2x4x4x4x32xf32> to vector<8x16x32xf32>
    %153 = vector.extract_strided_slice %148 {offsets = [8, 0, 0], sizes = [8, 16, 32], strides = [1, 1, 1]} : vector<16x16x32xf32> to vector<8x16x32xf32>
    %154 = vector.shape_cast %153 : vector<8x16x32xf32> to vector<2x4x4x4x32xf32>
    %155 = tpu.transpose %154, [0, 2, 1, 3, 4] : vector<2x4x4x4x32xf32> -> vector<2x4x4x4x32xf32>
    %156 = vector.shape_cast %155 : vector<2x4x4x4x32xf32> to vector<8x16x32xf32>
    %157 = tpu.concatenate %152, %156 in 2 : vector<8x16x32xf32>, vector<8x16x32xf32> -> vector<8x16x64xf32>
    %158 = vector.shape_cast %157 : vector<8x16x64xf32> to vector<128x64xf32>
    %159 = arith.truncf %158 : vector<128x64xf32> to vector<128x64xbf16>
    %c0_26 = arith.constant 0 : index
    %c0_27 = arith.constant 0 : index
    %160 = vector.load %arg7[%c0_26, %c0_27] : memref<64x64xbf16, #tpu.memory_space<vmem>>, vector<64x64xbf16>
    %cst_28 = arith.constant dense<0.000000e+00> : vector<128x64xf32>
    %161 = tpu.matmul %159, %160, %cst_28 {dimension_numbers = #tpu.dot_dimension_numbers<[1], [0], [0], [1], [0, 0, 1, 1], [], []>} : vector<128x64xbf16>, vector<64x64xbf16>, vector<128x64xf32> -> vector<128x64xf32>
    %162 = vector.shape_cast %161 : vector<128x64xf32> to vector<8x16x64xf32>
    %c0_29 = arith.constant 0 : index
    %c0_30 = arith.constant 0 : index
    %c0_31 = arith.constant 0 : index
    %c0_32 = arith.constant 0 : index
    %163 = vector.load %arg8[%c0_29, %c0_30, %c0_31, %c0_32] : memref<1x8x16x64xf32, #tpu.memory_space<vmem>>, vector<1x8x16x64xf32>
    %164 = vector.shape_cast %163 : vector<1x8x16x64xf32> to vector<8x16x64xf32>
    %165 = vector.shape_cast %162 : vector<8x16x64xf32> to vector<1x8x16x64xf32>
    tpu.vector_store %arg8[%c0_29, %c0_30, %c0_31, %c0_32], %165 {strides = array<i32>} : memref<1x8x16x64xf32, #tpu.memory_space<vmem>>, vector<1x8x16x64xf32>,
    return
  }
  func.func @transform_0(%arg0: i32, %arg1: i32) -> (i32, i32, i32, i32) {
    %c0_i32 = arith.constant 0 : i32
    %c0_i32_0 = arith.constant 0 : i32
    %c0_i32_1 = arith.constant 0 : i32
    return %arg0, %arg1, %c0_i32, %c0_i32_0 : i32, i32, i32, i32
  }
  func.func @transform_1(%arg0: i32, %arg1: i32) -> (i32, i32, i32, i32) {
    %c8_i32 = arith.constant 8 : i32
    %0 = arith.muli %arg1, %c8_i32 : i32
    %c1_i32 = arith.constant 1 : i32
    %1 = arith.subi %0, %c1_i32 : i32
    %c0_i32 = arith.constant 0 : i32
    %2 = arith.maxsi %1, %c0_i32 : i32
    %c0_i32_0 = arith.constant 0 : i32
    %c0_i32_1 = arith.constant 0 : i32
    %c0_i32_2 = arith.constant 0 : i32
    return %arg0, %2, %c0_i32_0, %c0_i32_1 : i32, i32, i32, i32
  }
  func.func @transform_2(%arg0: i32, %arg1: i32) -> (i32, i32, i32, i32) {
    %c1_i32 = arith.constant 1 : i32
    %0 = arith.addi %arg1, %c1_i32 : i32
    %c8_i32 = arith.constant 8 : i32
    %1 = arith.muli %0, %c8_i32 : i32
    %c15_i32 = arith.constant 15 : i32
    %2 = arith.minsi %1, %c15_i32 : i32
    %c0_i32 = arith.constant 0 : i32
    %c0_i32_0 = arith.constant 0 : i32
    %c0_i32_1 = arith.constant 0 : i32
    return %arg0, %2, %c0_i32, %c0_i32_0 : i32, i32, i32, i32
  }
  func.func @transform_3(%arg0: i32, %arg1: i32) -> (i32, i32) {
    %c0_i32 = arith.constant 0 : i32
    %c0_i32_0 = arith.constant 0 : i32
    %c0_i32_1 = arith.constant 0 : i32
    return %c0_i32, %c0_i32_0 : i32, i32
  }
  func.func @transform_4(%arg0: i32, %arg1: i32) -> (i32, i32) {
    %c0_i32 = arith.constant 0 : i32
    %c0_i32_0 = arith.constant 0 : i32
    %c0_i32_1 = arith.constant 0 : i32
    return %c0_i32, %c0_i32_0 : i32, i32
  }
  func.func @transform_5(%arg0: i32, %arg1: i32) -> (i32, i32) {
    %c0_i32 = arith.constant 0 : i32
    %c0_i32_0 = arith.constant 0 : i32
    %c0_i32_1 = arith.constant 0 : i32
    return %c0_i32, %c0_i32_0 : i32, i32
  }
  func.func @transform_6(%arg0: i32, %arg1: i32) -> (i32, i32, i32, i32) {
    %c0_i32 = arith.constant 0 : i32
    %c0_i32_0 = arith.constant 0 : i32
    %c0_i32_1 = arith.constant 0 : i32
    return %arg0, %arg1, %c0_i32, %c0_i32_0 : i32, i32, i32, i32
  }
}

module attributes {stable_mosaic.version = 11 : i64} {
  func.func @block_attention_kernel(%arg0: i32, %arg1: i32, %arg2: memref<1x8x16x64xbf16, #tpu.memory_space<vmem>>, %arg3: memref<1x1x16x64xbf16, #tpu.memory_space<vmem>>, %arg4: memref<1x1x16x64xbf16, #tpu.memory_space<vmem>>, %arg5: memref<64x192xbf16, #tpu.memory_space<vmem>>, %arg6: memref<9x192xf32, #tpu.memory_space<vmem>>, %arg7: memref<64x64xbf16, #tpu.memory_space<vmem>>, %arg8: memref<1x8x16x64xf32, #tpu.memory_space<vmem>>) attributes {dimension_semantics = [#tpu.dimension_semantics<parallel>, #tpu.dimension_semantics<parallel>], iteration_bounds = array<i64: 2, 2>, scalar_prefetch = 0 : i64, scratch_operands = 0 : i64, tpu.core_type = #tpu.core_type<tc>, window_params = [{transform_indices = @transform_0, window_bounds = array<i64: 1, 8, 16, 64>}, {transform_indices = @transform_1, window_bounds = array<i64: 1, 1, 16, 64>}, {transform_indices = @transform_2, window_bounds = array<i64: 1, 1, 16, 64>}, {pipeline_mode = #tpu.pipeline_mode<synchronous>, transform_indices = @transform_3, window_bounds = array<i64: 64, 192>}, {pipeline_mode = #tpu.pipeline_mode<synchronous>, transform_indices = @transform_4, window_bounds = array<i64: 9, 192>}, {pipeline_mode = #tpu.pipeline_mode<synchronous>, transform_indices = @transform_5, window_bounds = array<i64: 64, 64>}, {transform_indices = @transform_6, window_bounds = array<i64: 1, 8, 16, 64>}]} {
    %c0_i32 = arith.constant 0 : i32
    %0 = arith.cmpi sgt, %arg1, %c0_i32 : i32
    %c0 = arith.constant 0 : index
    %c0_0 = arith.constant 0 : index
    %c0_1 = arith.constant 0 : index
    %c0_2 = arith.constant 0 : index
    %1 = vector.load %arg3[%c0, %c0_0, %c0_1, %c0_2] : memref<1x1x16x64xbf16, #tpu.memory_space<vmem>>, vector<1x1x16x64xbf16>
    %2 = vector.shape_cast %1 : vector<1x1x16x64xbf16> to vector<1x16x64xbf16>
    %c0_i32_3 = arith.constant 0 : i32
    %3 = arith.sitofp %c0_i32_3 : i32 to bf16
    %4 = vector.broadcast %3 : bf16 to vector<1x16x64xbf16>
    %5 = arith.select %0, %2, %4 : vector<1x16x64xbf16>
    %c1_i32 = arith.constant 1 : i32
    %6 = arith.cmpi slt, %arg1, %c1_i32 : i32
    %c0_4 = arith.constant 0 : index
    %c0_5 = arith.constant 0 : index
    %c0_6 = arith.constant 0 : index
    %c0_7 = arith.constant 0 : index
    %7 = vector.load %arg4[%c0_4, %c0_5, %c0_6, %c0_7] : memref<1x1x16x64xbf16, #tpu.memory_space<vmem>>, vector<1x1x16x64xbf16>
    %8 = vector.shape_cast %7 : vector<1x1x16x64xbf16> to vector<1x16x64xbf16>
    %c0_i32_8 = arith.constant 0 : i32
    %9 = arith.sitofp %c0_i32_8 : i32 to bf16
    %10 = vector.broadcast %9 : bf16 to vector<1x16x64xbf16>
    %11 = arith.select %6, %8, %10 : vector<1x16x64xbf16>
    %c0_9 = arith.constant 0 : index
    %c0_10 = arith.constant 0 : index
    %c0_11 = arith.constant 0 : index
    %c0_12 = arith.constant 0 : index
    %12 = vector.load %arg2[%c0_9, %c0_10, %c0_11, %c0_12] : memref<1x8x16x64xbf16, #tpu.memory_space<vmem>>, vector<1x8x16x64xbf16>
    %13 = vector.shape_cast %12 : vector<1x8x16x64xbf16> to vector<8x16x64xbf16>
    %14 = tpu.concatenate %5, %13, %11 in 0 : vector<1x16x64xbf16>, vector<8x16x64xbf16>, vector<1x16x64xbf16> -> vector<10x16x64xbf16>
    %15 = vector.shape_cast %14 : vector<10x16x64xbf16> to vector<160x64xbf16>
    %c0_13 = arith.constant 0 : index
    %c0_14 = arith.constant 0 : index
    %16 = vector.load %arg5[%c0_13, %c0_14] : memref<64x192xbf16, #tpu.memory_space<vmem>>, vector<64x192xbf16>
    %cst = arith.constant dense<0.000000e+00> : vector<160x192xf32>
    %17 = tpu.matmul %15, %16, %cst {dimension_numbers = #tpu.dot_dimension_numbers<[1], [0], [0], [1], [0, 0, 1, 1], [], []>} : vector<160x64xbf16>, vector<64x192xbf16>, vector<160x192xf32> -> vector<160x192xf32>
    %18 = vector.shape_cast %17 : vector<160x192xf32> to vector<10x16x192xf32>
    %19 = tpu.iota {dimensions = array<i32: 1>} : vector<1x16x1xi32>
    %c0_i32_15 = arith.constant 0 : i32
    %20 = vector.broadcast %c0_i32_15 : i32 to vector<1x16x1xi32>
    %21 = arith.cmpi sgt, %19, %20 : vector<1x16x1xi32>
    %22 = vector.extract_strided_slice %18 {offsets = [0, 15, 0], sizes = [10, 1, 192], strides = [1, 1, 1]} : vector<10x16x192xf32> to vector<10x1x192xf32>
    %23 = vector.extract_strided_slice %18 {offsets = [0, 0, 0], sizes = [10, 15, 192], strides = [1, 1, 1]} : vector<10x16x192xf32> to vector<10x15x192xf32>
    %24 = tpu.concatenate %22, %23 in 1 : vector<10x1x192xf32>, vector<10x15x192xf32> -> vector<10x16x192xf32>
    %c0_i32_16 = arith.constant 0 : i32
    %25 = arith.sitofp %c0_i32_16 : i32 to f32
    %26 = vector.shape_cast %21 : vector<1x16x1xi1> to vector<1x16x1xi1>
    %27 = vector.broadcast %26 : vector<1x16x1xi1> to vector<10x16x192xi1>
    %28 = vector.broadcast %25 : f32 to vector<10x16x192xf32>
    %29 = arith.select %27, %24, %28 : vector<10x16x192xi1>, vector<10x16x192xf32>
    %c15_i32 = arith.constant 15 : i32
    %30 = vector.broadcast %c15_i32 : i32 to vector<1x16x1xi32>
    %31 = arith.cmpi slt, %19, %30 : vector<1x16x1xi32>
    %32 = vector.extract_strided_slice %18 {offsets = [0, 1, 0], sizes = [10, 15, 192], strides = [1, 1, 1]} : vector<10x16x192xf32> to vector<10x15x192xf32>
    %33 = vector.extract_strided_slice %18 {offsets = [0, 0, 0], sizes = [10, 1, 192], strides = [1, 1, 1]} : vector<10x16x192xf32> to vector<10x1x192xf32>
    %34 = tpu.concatenate %32, %33 in 1 : vector<10x15x192xf32>, vector<10x1x192xf32> -> vector<10x16x192xf32>
    %c0_i32_17 = arith.constant 0 : i32
    %35 = arith.sitofp %c0_i32_17 : i32 to f32
    %36 = vector.shape_cast %31 : vector<1x16x1xi1> to vector<1x16x1xi1>
    %37 = vector.broadcast %36 : vector<1x16x1xi1> to vector<10x16x192xi1>
    %38 = vector.broadcast %35 : f32 to vector<10x16x192xf32>
    %39 = arith.select %37, %34, %38 : vector<10x16x192xi1>, vector<10x16x192xf32>
    %c0_18 = arith.constant 0 : index
    %c0_19 = arith.constant 0 : index
    %40 = vector.load %arg6[%c0_18, %c0_19] : memref<9x192xf32, #tpu.memory_space<vmem>>, vector<9x192xf32>
    %41 = vector.extract_strided_slice %40 {offsets = [0, 0], sizes = [1, 192], strides = [1, 1]} : vector<9x192xf32> to vector<1x192xf32>
    %42 = vector.shape_cast %41 : vector<1x192xf32> to vector<192xf32>
    %43 = vector.shape_cast %42 : vector<192xf32> to vector<1x1x192xf32>
    %44 = vector.extract_strided_slice %40 {offsets = [1, 0], sizes = [1, 192], strides = [1, 1]} : vector<9x192xf32> to vector<1x192xf32>
    %45 = vector.shape_cast %44 : vector<1x192xf32> to vector<192xf32>
    %46 = vector.shape_cast %45 : vector<192xf32> to vector<1x1x192xf32>
    %47 = vector.extract_strided_slice %40 {offsets = [2, 0], sizes = [1, 192], strides = [1, 1]} : vector<9x192xf32> to vector<1x192xf32>
    %48 = vector.shape_cast %47 : vector<1x192xf32> to vector<192xf32>
    %49 = vector.shape_cast %48 : vector<192xf32> to vector<1x1x192xf32>
    %50 = vector.extract_strided_slice %40 {offsets = [3, 0], sizes = [1, 192], strides = [1, 1]} : vector<9x192xf32> to vector<1x192xf32>
    %51 = vector.shape_cast %50 : vector<1x192xf32> to vector<192xf32>
    %52 = vector.shape_cast %51 : vector<192xf32> to vector<1x1x192xf32>
    %53 = vector.extract_strided_slice %40 {offsets = [4, 0], sizes = [1, 192], strides = [1, 1]} : vector<9x192xf32> to vector<1x192xf32>
    %54 = vector.shape_cast %53 : vector<1x192xf32> to vector<192xf32>
    %55 = vector.shape_cast %54 : vector<192xf32> to vector<1x1x192xf32>
    %56 = vector.extract_strided_slice %40 {offsets = [5, 0], sizes = [1, 192], strides = [1, 1]} : vector<9x192xf32> to vector<1x192xf32>
    %57 = vector.shape_cast %56 : vector<1x192xf32> to vector<192xf32>
    %58 = vector.shape_cast %57 : vector<192xf32> to vector<1x1x192xf32>
    %59 = vector.extract_strided_slice %40 {offsets = [6, 0], sizes = [1, 192], strides = [1, 1]} : vector<9x192xf32> to vector<1x192xf32>
    %60 = vector.shape_cast %59 : vector<1x192xf32> to vector<192xf32>
    %61 = vector.shape_cast %60 : vector<192xf32> to vector<1x1x192xf32>
    %62 = vector.extract_strided_slice %40 {offsets = [7, 0], sizes = [1, 192], strides = [1, 1]} : vector<9x192xf32> to vector<1x192xf32>
    %63 = vector.shape_cast %62 : vector<1x192xf32> to vector<192xf32>
    %64 = vector.shape_cast %63 : vector<192xf32> to vector<1x1x192xf32>
    %65 = vector.extract_strided_slice %40 {offsets = [8, 0], sizes = [1, 192], strides = [1, 1]} : vector<9x192xf32> to vector<1x192xf32>
    %66 = vector.shape_cast %65 : vector<1x192xf32> to vector<192xf32>
    %67 = vector.shape_cast %66 : vector<192xf32> to vector<1x1x192xf32>
    %cst_20 = arith.constant 0.000000e+00 : f32
    %68 = vector.broadcast %cst_20 : f32 to vector<8x16x192xf32>
    %69 = vector.extract_strided_slice %29 {offsets = [0, 0, 0], sizes = [8, 16, 192], strides = [1, 1, 1]} : vector<10x16x192xf32> to vector<8x16x192xf32>
    %70 = vector.broadcast %43 : vector<1x1x192xf32> to vector<8x16x192xf32>
    %71 = arith.mulf %69, %70 : vector<8x16x192xf32>
    %72 = arith.addf %68, %71 : vector<8x16x192xf32>
    %73 = vector.extract_strided_slice %18 {offsets = [0, 0, 0], sizes = [8, 16, 192], strides = [1, 1, 1]} : vector<10x16x192xf32> to vector<8x16x192xf32>
    %74 = vector.broadcast %46 : vector<1x1x192xf32> to vector<8x16x192xf32>
    %75 = arith.mulf %73, %74 : vector<8x16x192xf32>
    %76 = arith.addf %72, %75 : vector<8x16x192xf32>
    %77 = vector.extract_strided_slice %39 {offsets = [0, 0, 0], sizes = [8, 16, 192], strides = [1, 1, 1]} : vector<10x16x192xf32> to vector<8x16x192xf32>
    %78 = vector.broadcast %49 : vector<1x1x192xf32> to vector<8x16x192xf32>
    %79 = arith.mulf %77, %78 : vector<8x16x192xf32>
    %80 = arith.addf %76, %79 : vector<8x16x192xf32>
    %81 = vector.extract_strided_slice %29 {offsets = [1, 0, 0], sizes = [8, 16, 192], strides = [1, 1, 1]} : vector<10x16x192xf32> to vector<8x16x192xf32>
    %82 = vector.broadcast %52 : vector<1x1x192xf32> to vector<8x16x192xf32>
    %83 = arith.mulf %81, %82 : vector<8x16x192xf32>
    %84 = arith.addf %80, %83 : vector<8x16x192xf32>
    %85 = vector.extract_strided_slice %18 {offsets = [1, 0, 0], sizes = [8, 16, 192], strides = [1, 1, 1]} : vector<10x16x192xf32> to vector<8x16x192xf32>
    %86 = vector.broadcast %55 : vector<1x1x192xf32> to vector<8x16x192xf32>
    %87 = arith.mulf %85, %86 : vector<8x16x192xf32>
    %88 = arith.addf %84, %87 : vector<8x16x192xf32>
    %89 = vector.extract_strided_slice %39 {offsets = [1, 0, 0], sizes = [8, 16, 192], strides = [1, 1, 1]} : vector<10x16x192xf32> to vector<8x16x192xf32>
    %90 = vector.broadcast %58 : vector<1x1x192xf32> to vector<8x16x192xf32>
    %91 = arith.mulf %89, %90 : vector<8x16x192xf32>
    %92 = arith.addf %88, %91 : vector<8x16x192xf32>
    %93 = vector.extract_strided_slice %29 {offsets = [2, 0, 0], sizes = [8, 16, 192], strides = [1, 1, 1]} : vector<10x16x192xf32> to vector<8x16x192xf32>
    %94 = vector.broadcast %61 : vector<1x1x192xf32> to vector<8x16x192xf32>
    %95 = arith.mulf %93, %94 : vector<8x16x192xf32>
    %96 = arith.addf %92, %95 : vector<8x16x192xf32>
    %97 = vector.extract_strided_slice %18 {offsets = [2, 0, 0], sizes = [8, 16, 192], strides = [1, 1, 1]} : vector<10x16x192xf32> to vector<8x16x192xf32>
    %98 = vector.broadcast %64 : vector<1x1x192xf32> to vector<8x16x192xf32>
    %99 = arith.mulf %97, %98 : vector<8x16x192xf32>
    %100 = arith.addf %96, %99 : vector<8x16x192xf32>
    %101 = vector.extract_strided_slice %39 {offsets = [2, 0, 0], sizes = [8, 16, 192], strides = [1, 1, 1]} : vector<10x16x192xf32> to vector<8x16x192xf32>
    %102 = vector.broadcast %67 : vector<1x1x192xf32> to vector<8x16x192xf32>
    %103 = arith.mulf %101, %102 : vector<8x16x192xf32>
    %104 = arith.addf %100, %103 : vector<8x16x192xf32>
    %105 = vector.extract_strided_slice %104 {offsets = [0, 0, 0], sizes = [8, 16, 64], strides = [1, 1, 1]} : vector<8x16x192xf32> to vector<8x16x64xf32>
    %cst_21 = arith.constant 0.176776692 : f32
    %106 = vector.broadcast %cst_21 : f32 to vector<8x16x64xf32>
    %107 = arith.mulf %105, %106 : vector<8x16x64xf32>
    %108 = vector.extract_strided_slice %104 {offsets = [0, 0, 64], sizes = [8, 16, 64], strides = [1, 1, 1]} : vector<8x16x192xf32> to vector<8x16x64xf32>
    %109 = vector.extract_strided_slice %104 {offsets = [0, 0, 128], sizes = [8, 16, 64], strides = [1, 1, 1]} : vector<8x16x192xf32> to vector<8x16x64xf32>
    %110 = vector.extract_strided_slice %107 {offsets = [0, 0, 0], sizes = [8, 16, 32], strides = [1, 1, 1]} : vector<8x16x64xf32> to vector<8x16x32xf32>
    %111 = vector.shape_cast %110 : vector<8x16x32xf32> to vector<2x4x4x4x32xf32>
    %112 = tpu.transpose %111, [0, 2, 1, 3, 4] : vector<2x4x4x4x32xf32> -> vector<2x4x4x4x32xf32>
    %113 = vector.shape_cast %112 : vector<2x4x4x4x32xf32> to vector<8x16x32xf32>
    %114 = vector.extract_strided_slice %108 {offsets = [0, 0, 0], sizes = [8, 16, 32], strides = [1, 1, 1]} : vector<8x16x64xf32> to vector<8x16x32xf32>
    %115 = vector.shape_cast %114 : vector<8x16x32xf32> to vector<2x4x4x4x32xf32>
    %116 = tpu.transpose %115, [0, 2, 1, 3, 4] : vector<2x4x4x4x32xf32> -> vector<2x4x4x4x32xf32>
    %117 = vector.shape_cast %116 : vector<2x4x4x4x32xf32> to vector<8x16x32xf32>
    %118 = vector.extract_strided_slice %109 {offsets = [0, 0, 0], sizes = [8, 16, 32], strides = [1, 1, 1]} : vector<8x16x64xf32> to vector<8x16x32xf32>
    %119 = vector.shape_cast %118 : vector<8x16x32xf32> to vector<2x4x4x4x32xf32>
    %120 = tpu.transpose %119, [0, 2, 1, 3, 4] : vector<2x4x4x4x32xf32> -> vector<2x4x4x4x32xf32>
    %121 = vector.shape_cast %120 : vector<2x4x4x4x32xf32> to vector<8x16x32xf32>
    %122 = vector.extract_strided_slice %107 {offsets = [0, 0, 32], sizes = [8, 16, 32], strides = [1, 1, 1]} : vector<8x16x64xf32> to vector<8x16x32xf32>
    %123 = vector.shape_cast %122 : vector<8x16x32xf32> to vector<2x4x4x4x32xf32>
    %124 = tpu.transpose %123, [0, 2, 1, 3, 4] : vector<2x4x4x4x32xf32> -> vector<2x4x4x4x32xf32>
    %125 = vector.shape_cast %124 : vector<2x4x4x4x32xf32> to vector<8x16x32xf32>
    %126 = vector.extract_strided_slice %108 {offsets = [0, 0, 32], sizes = [8, 16, 32], strides = [1, 1, 1]} : vector<8x16x64xf32> to vector<8x16x32xf32>
    %127 = vector.shape_cast %126 : vector<8x16x32xf32> to vector<2x4x4x4x32xf32>
    %128 = tpu.transpose %127, [0, 2, 1, 3, 4] : vector<2x4x4x4x32xf32> -> vector<2x4x4x4x32xf32>
    %129 = vector.shape_cast %128 : vector<2x4x4x4x32xf32> to vector<8x16x32xf32>
    %130 = vector.extract_strided_slice %109 {offsets = [0, 0, 32], sizes = [8, 16, 32], strides = [1, 1, 1]} : vector<8x16x64xf32> to vector<8x16x32xf32>
    %131 = vector.shape_cast %130 : vector<8x16x32xf32> to vector<2x4x4x4x32xf32>
    %132 = tpu.transpose %131, [0, 2, 1, 3, 4] : vector<2x4x4x4x32xf32> -> vector<2x4x4x4x32xf32>
    %133 = vector.shape_cast %132 : vector<2x4x4x4x32xf32> to vector<8x16x32xf32>
    %134 = tpu.concatenate %113, %125 in 0 : vector<8x16x32xf32>, vector<8x16x32xf32> -> vector<16x16x32xf32>
    %135 = tpu.concatenate %117, %129 in 0 : vector<8x16x32xf32>, vector<8x16x32xf32> -> vector<16x16x32xf32>
    %136 = tpu.concatenate %121, %133 in 0 : vector<8x16x32xf32>, vector<8x16x32xf32> -> vector<16x16x32xf32>
    "tpu.trace_start"() <{level = 10 : i32, message = "bid,bjd->bij"}> : () -> ()
    %cst_22 = arith.constant dense<0.000000e+00> : vector<16x16x16xf32>
    %137 = tpu.matmul %134, %135, %cst_22 {dimension_numbers = #tpu.dot_dimension_numbers<[2], [2], [1], [1], [0, 0, 0, 1, 1, 1], [0], [0]>} : vector<16x16x32xf32>, vector<16x16x32xf32>, vector<16x16x16xf32> -> vector<16x16x16xf32>
    "tpu.trace_stop"() : () -> ()
    %cst_23 = arith.constant dense<0xFF800000> : vector<16x16xf32>
    %138 = vector.multi_reduction <maximumf>, %137, %cst_23 [2] : vector<16x16x16xf32> to vector<16x16xf32>
    %139 = vector.shape_cast %138 : vector<16x16xf32> to vector<16x16x1xf32>
    %140 = vector.broadcast %139 : vector<16x16x1xf32> to vector<16x16x16xf32>
    %141 = arith.subf %137, %140 : vector<16x16x16xf32>
    %142 = math.exp %141 : vector<16x16x16xf32>
    %cst_24 = arith.constant dense<0.000000e+00> : vector<16x16xf32>
    %143 = vector.multi_reduction <add>, %142, %cst_24 [2] : vector<16x16x16xf32> to vector<16x16xf32>
    %144 = vector.shape_cast %143 : vector<16x16xf32> to vector<16x16x1xf32>
    %145 = tpu.reciprocal %144 {approx = true} : vector<16x16x1xf32> -> vector<16x16x1xf32>
    %146 = vector.broadcast %145 : vector<16x16x1xf32> to vector<16x16x16xf32>
    %147 = arith.mulf %142, %146 : vector<16x16x16xf32>
    "tpu.trace_start"() <{level = 10 : i32, message = "bij,bjd->bid"}> : () -> ()
    %cst_25 = arith.constant dense<0.000000e+00> : vector<16x16x32xf32>
    %148 = tpu.matmul %147, %136, %cst_25 {dimension_numbers = #tpu.dot_dimension_numbers<[2], [1], [1], [2], [0, 0, 0, 1, 1, 2], [0], [0]>} : vector<16x16x16xf32>, vector<16x16x32xf32>, vector<16x16x32xf32> -> vector<16x16x32xf32>
    "tpu.trace_stop"() : () -> ()
    %149 = vector.extract_strided_slice %148 {offsets = [0, 0, 0], sizes = [8, 16, 32], strides = [1, 1, 1]} : vector<16x16x32xf32> to vector<8x16x32xf32>
    %150 = vector.shape_cast %149 : vector<8x16x32xf32> to vector<2x4x4x4x32xf32>
    %151 = tpu.transpose %150, [0, 2, 1, 3, 4] : vector<2x4x4x4x32xf32> -> vector<2x4x4x4x32xf32>
    %152 = vector.shape_cast %151 : vector<2x4x4x4x32xf32> to vector<8x16x32xf32>
    %153 = vector.extract_strided_slice %148 {offsets = [8, 0, 0], sizes = [8, 16, 32], strides = [1, 1, 1]} : vector<16x16x32xf32> to vector<8x16x32xf32>
    %154 = vector.shape_cast %153 : vector<8x16x32xf32> to vector<2x4x4x4x32xf32>
    %155 = tpu.transpose %154, [0, 2, 1, 3, 4] : vector<2x4x4x4x32xf32> -> vector<2x4x4x4x32xf32>
    %156 = vector.shape_cast %155 : vector<2x4x4x4x32xf32> to vector<8x16x32xf32>
    %157 = tpu.concatenate %152, %156 in 2 : vector<8x16x32xf32>, vector<8x16x32xf32> -> vector<8x16x64xf32>
    %158 = vector.shape_cast %157 : vector<8x16x64xf32> to vector<128x64xf32>
    %159 = arith.truncf %158 : vector<128x64xf32> to vector<128x64xbf16>
    %c0_26 = arith.constant 0 : index
    %c0_27 = arith.constant 0 : index
    %160 = vector.load %arg7[%c0_26, %c0_27] : memref<64x64xbf16, #tpu.memory_space<vmem>>, vector<64x64xbf16>
    %cst_28 = arith.constant dense<0.000000e+00> : vector<128x64xf32>
    %161 = tpu.matmul %159, %160, %cst_28 {dimension_numbers = #tpu.dot_dimension_numbers<[1], [0], [0], [1], [0, 0, 1, 1], [], []>} : vector<128x64xbf16>, vector<64x64xbf16>, vector<128x64xf32> -> vector<128x64xf32>
    %162 = vector.shape_cast %161 : vector<128x64xf32> to vector<8x16x64xf32>
    %c0_29 = arith.constant 0 : index
    %c0_30 = arith.constant 0 : index
    %c0_31 = arith.constant 0 : index
    %c0_32 = arith.constant 0 : index
    %163 = vector.load %arg8[%c0_29, %c0_30, %c0_31, %c0_32] : memref<1x8x16x64xf32, #tpu.memory_space<vmem>>, vector<1x8x16x64xf32>
    %164 = vector.shape_cast %163 : vector<1x8x16x64xf32> to vector<8x16x64xf32>
    %165 = vector.shape_cast %162 : vector<8x16x64xf32> to vector<1x8x16x64xf32>
    tpu.vector_store %arg8[%c0_29, %c0_30, %c0_31, %c0_32], %165 {strides = array<i32>} : memref<1x8x16x64xf32, #tpu.memory_space<vmem>>, vector<1x8x16x64xf32>,
    return
  }
  func.func @transform_0(%arg0: i32, %arg1: i32) -> (i32, i32, i32, i32) {
    %c0_i32 = arith.constant 0 : i32
    %c0_i32_0 = arith.constant 0 : i32
    %c0_i32_1 = arith.constant 0 : i32
    return %arg0, %arg1, %c0_i32, %c0_i32_0 : i32, i32, i32, i32
  }
  func.func @transform_1(%arg0: i32, %arg1: i32) -> (i32, i32, i32, i32) {
    %c8_i32 = arith.constant 8 : i32
    %0 = arith.muli %arg1, %c8_i32 : i32
    %c1_i32 = arith.constant 1 : i32
    %1 = arith.subi %0, %c1_i32 : i32
    %c0_i32 = arith.constant 0 : i32
    %2 = arith.maxsi %1, %c0_i32 : i32
    %c0_i32_0 = arith.constant 0 : i32
    %c0_i32_1 = arith.constant 0 : i32
    %c0_i32_2 = arith.constant 0 : i32
    return %arg0, %2, %c0_i32_0, %c0_i32_1 : i32, i32, i32, i32
  }
  func.func @transform_2(%arg0: i32, %arg1: i32) -> (i32, i32, i32, i32) {
    %c1_i32 = arith.constant 1 : i32
    %0 = arith.addi %arg1, %c1_i32 : i32
    %c8_i32 = arith.constant 8 : i32
    %1 = arith.muli %0, %c8_i32 : i32
    %c15_i32 = arith.constant 15 : i32
    %2 = arith.minsi %1, %c15_i32 : i32
    %c0_i32 = arith.constant 0 : i32
    %c0_i32_0 = arith.constant 0 : i32
    %c0_i32_1 = arith.constant 0 : i32
    return %arg0, %2, %c0_i32, %c0_i32_0 : i32, i32, i32, i32
  }
  func.func @transform_3(%arg0: i32, %arg1: i32) -> (i32, i32) {
    %c0_i32 = arith.constant 0 : i32
    %c0_i32_0 = arith.constant 0 : i32
    %c0_i32_1 = arith.constant 0 : i32
    return %c0_i32, %c0_i32_0 : i32, i32
  }
  func.func @transform_4(%arg0: i32, %arg1: i32) -> (i32, i32) {
    %c0_i32 = arith.constant 0 : i32
    %c0_i32_0 = arith.constant 0 : i32
    %c0_i32_1 = arith.constant 0 : i32
    return %c0_i32, %c0_i32_0 : i32, i32
  }
  func.func @transform_5(%arg0: i32, %arg1: i32) -> (i32, i32) {
    %c0_i32 = arith.constant 0 : i32
    %c0_i32_0 = arith.constant 0 : i32
    %c0_i32_1 = arith.constant 0 : i32
    return %c0_i32, %c0_i32_0 : i32, i32
  }
  func.func @transform_6(%arg0: i32, %arg1: i32) -> (i32, i32, i32, i32) {
    %c0_i32 = arith.constant 0 : i32
    %c0_i32_0 = arith.constant 0 : i32
    %c0_i32_1 = arith.constant 0 : i32
    return %arg0, %arg1, %c0_i32, %c0_i32_0 : i32, i32, i32, i32
  }
}

</mosaic_0001>

<bundles_post_ra>
// kernel: tpu_custom_call.1
= control target key start
LH: loop header
LB: loop body
LE: loop exit
PB: predicated region body
PF: predicated region fallthrough
CT: control target
= control target key end

     0   :  { %s8756_s0 = inlined_call_operand.hbm [shape: bf16[2,16,16,64], index: 0, kind: input, shape index: {}]   ;;  %s8757_s1 = inlined_call_operand.hbm [shape: bf16[2,16,16,64], index: 1, kind: input, shape index: {}]   ;;  %s8758_s2 = inlined_call_operand.hbm [shape: bf16[2,16,16,64], index: 2, kind: input, shape index: {}]   ;;  %s8759_s3 = inlined_call_operand.hbm [shape: bf16[64,192], index: 3, kind: input, shape index: {}]   ;;  %s8760_s4 = inlined_call_operand.hbm [shape: f32[9,192], index: 4, kind: input, shape index: {}]   ;;  %s8761_s5 = inlined_call_operand.hbm [shape: bf16[64,64], index: 5, kind: input, shape index: {}]   ;;  %s8762_s6 = inlined_call_operand.hbm [shape: f32[2,16,16,64], index: 6, kind: output, shape index: {}]  }
   0x1   :  { %8918 = sst [smem:[#allocation87_spill]] %s8756_s0 }
   0x2   :  { %8919 = sst [smem:[#allocation88_spill]] %s8757_s1 }
   0x3   :  { %8920 = sst [smem:[#allocation89_spill]] %s8758_s2 }
   0x4   :  { %8921 = sst [smem:[#allocation90_spill]] %s8759_s3 }
   0x5   :  { %8922 = sst [smem:[#allocation91_spill]] %s8760_s4 }
   0x6   :  { %8923 = sst [smem:[#allocation92_spill]] %s8761_s5 }
   0x7   :  { %8924 = sst [smem:[#allocation93_spill]] %s8762_s6 }
   0x8   :  { %11 = vsyncpa [#allocation3], 0 }
   0x9   :  { %13 = vsyncpa [#allocation3 + $0x1], 0 }
   0xa   :  { %14 = vsyncpa [#allocation6], 0 }
   0xb   :  { %16 = vsyncpa [#allocation6 + $0x1], 0 }
   0xc   :  { %17 = vsyncpa [#allocation9], 0 }
   0xd   :  { %18 = vsyncpa [#allocation12], 0 }
   0xe   :  { %19 = vsyncpa [#allocation4], 0 }
   0xf   :  { %21 = vsyncpa [#allocation4 + $0x1], 0  ;;  %s5503_s21 = smov 0   ;;  %s5505_s22 = smov 0  }
  0x10   :  { %s5507_s23 = smov 0   ;;  %s5509_s24 = smov 0  }
  0x11   :  { %s5511_s25 = smov 0   ;;  %s5513_s26 = smov 0  }
  0x12   :  { %s5515_s27 = smov 0   ;;  %s5517_s28 = smov 0  }
  0x13   :  { %s5519_s29 = smov 0   ;;  %s5521_s30 = smov 0  }
  0x14   :  { %s5523_s7 = smov 0   ;;  %s5525_s8 = smov 0  }
  0x15   :  { %s5527_s9 = smov 0   ;;  %s5529_s10 = smov 0  }
  0x16 LB: > { %8925 = sst [smem:[#allocation20_spill]] %s5400_s21  ;;  %s5574_s11 = sadd.s32 4294967295, %s5452_s10   ;;  %s5452_s10 = sphi %s5529_s10, %s27_s10   ;;  %s5448_s9 = sphi %s5527_s9, %s9281_s9   ;;  %s5444_s8 = sphi %s5525_s8, %s9272_s8   ;;  %s5440_s7 = sphi %s5523_s7, %s9280_s7   ;;  %s5436_s30 = sphi %s5521_s30, %s9270_s30   ;;  %s5432_s29 = sphi %s5519_s29, %s9279_s29   ;;  %s5428_s28 = sphi %s5517_s28, %s9278_s28   ;;  %s5424_s27 = sphi %s5515_s27, %s9277_s27   ;;  %s5420_s26 = sphi %s5513_s26, %s9268_s26   ;;  %s5416_s25 = sphi %s5511_s25, %s9267_s25   ;;  %s5412_s24 = sphi %s5509_s24, %s9266_s24   ;;  %s5408_s23 = sphi %s5507_s23, %s9276_s23   ;;  %s5404_s22 = sphi %s5505_s22, %s9275_s22   ;;  %s5400_s21 = sphi %s5503_s21, %s9265_s21  }
  0x17   : > { %8926 = sst [smem:[#allocation21_spill]] %s5404_s22  ;;  %p4483_p0 = scmp.ge.s32.totalorder %s5452_s10, 1 }
  0x18   : > { %8927 = sst [smem:[#allocation22_spill]] %s5416_s25  ;;  %p62_p1 = scmp.eq.s32.totalorder %s5574_s11, 0 }
  0x19   : > { %8928 = sst [smem:[#allocation23_spill]] %s5420_s26  ;;  %p235_p2 = scmp.lt.s32.totalorder %s5452_s10, 5 }
  0x1a   : > { %8929 = sst [smem:[#allocation24_spill]] %s5436_s30  ;;  %s5454_s16 = smov [#allocation8]  }
  0x1b   : > { %8930 = sst [smem:[#allocation25_spill]] %s5440_s7  ;;  %p5582_p3 = pnand %p4483_p0, %p235_p2 }
  0x1c   : > { %8931 = sst [smem:[#allocation26_spill]] %s5444_s8  ;;  %s248_s17 = sshll.u32 %s5454_s16, 4  ;;  %s249_s17 = int_to_ptr.vmem [resolvable:$true] %s248_s17 }
  0x1d   : > { %8932 = sst [smem:[#allocation27_spill]] %s5448_s9  ;;  %p4779_p4 = pneg %p5582_p3 }
  0x1e   : > { %s8933_s3 = sld [smem:[#allocation90_spill]]  ;;  %s5455_s19 = smov 128  }
  0x1f   : > { %s8934_s15 = scalar_select %p5582_p3, 1, 0 }
  0x20   : > { %p5590_p5 = pnand %p4779_p4, %p62_p1  ;;  %s5456_s20 = smov 8  }
  0x21   : > { %8935 = sst [smem:[#allocation28_spill]] %s8934_s15  ;;  %s36_s12 = sadd.s32 1, %s5444_s8 }
  0x22   : > { %p37_p6 = scmp.ge.s32.totalorder %s36_s12, 2  ;;  %s39_s13 = sadd.s32 1, %s5448_s9 }
  0x23   : > { %p56_p7 = scmp.eq.s32.totalorder %s5452_s10, 0  ;;  %p91_p12 = scmp.ne.s32.totalorder %s5420_s26, %s5416_s25 }
  0x24   : > { %s246_s14 = sshll.u32 %s8933_s3, 4  ;;  %s4477_s3 = sshll.u32 %s5444_s8, 3  ;;  %s247_s14 = int_to_ptr.hbm [resolvable:$true] %s246_s14 }
  0x25   : > { %4782 = dma.hbm_to_vmem [thread:$0]  (!%p5590_p5), %s247_s14, 1024, %s249_s17, [#allocation9], %s5455_s19, %s5455_s19, %s5456_s20  }
  0x26   : > { %s9283_s12 = smov (%p37_p6, %s36_s12), 0  ;;  %s9285_s13 = smov (!%p37_p6, %s39_s13), %s5448_s9 }
  0x27   : > { %8937 = sst [smem:[#allocation29_spill]] %s9283_s12  ;;  %s44_s16 = ssub.s32 %s5444_s8, %s9283_s12 }
  0x28   : > { %s4478_s6 = sadd.s32 4294967295, %s4477_s3  ;;  %p41_p8 = scmp.ge.s32.totalorder %s9285_s13, 2 }
  0x29   : > { %p73_p9 = scmp.gt.s32.totalorder %s4478_s6, 0  ;;  %s4479_s14 = sshll.u32 %s9283_s12, 3 }
  0x2a   : > { %s84_s17 = sadd.s32 1, %s5420_s26  ;;  %s9287_s13 = smov (%p41_p8, %s9285_s13), 0 }
  0x2b   : > { %8938 = sst [smem:[#allocation30_spill]] %s9287_s13  ;;  %s9289_s6 = smov (!%p73_p9, %s4478_s6), 0 }
  0x2c   : > { %s5611_s19 = ssub.s32 %s5448_s9, %s9287_s13  ;;  %s4480_s20 = sadd.s32 4294967295, %s4479_s14 }
  0x2d   : > { %8939 = sst [smem:[#allocation31_spill]] %s5611_s19  ;;  %s5614_s7 = sor.u32 %s44_s16, %s5611_s19 }
  0x2e   : > { %p77_p10 = scmp.gt.s32.totalorder %s4480_s20, 0  ;;  %p46_p11 = scmp.eq.s32.totalorder %s5614_s7, 0 }
  0x2f   : > { %p5621_p13 = por %p91_p12, %p56_p7  ;;  %p97_p0 = scmp.ne.s32.totalorder %s5416_s25, %s5412_s24 }
  0x30   : > { %s9291_s20 = smov (!%p77_p10, %s4480_s20), 0  ;;  %s5627_s30 = sadd.s32 8, %s4477_s3 }
  0x31   : > { %s80_s13 = ssub.s32 %s9289_s6, %s9291_s20  ;;  %p5632_p2 = por %p97_p0, %p62_p1 }
  0x32   : > { %s81_s16 = sor.u32 %s80_s13, %s5611_s19  ;;  %p109_p6 = scmp.lt.s32.totalorder %s5627_s30, 15 }
  0x33   : > { %s8941_s15 = scalar_select %p5632_p2, 1, 0 }
  0x34   : > { %p82_p4 = scmp.eq.s32.totalorder %s81_s16, 0  ;;  %s5637_s2 = sadd.s32 8, %s4479_s14 }
  0x35   : > { %8942 = sst [smem:[#allocation32_spill]] %s8941_s15  ;;  %p8782_p9 = scmp.lt.s32.totalorder %s5452_s10, 4 }
  0x36   : > { %8943 = sst [smem:[#allocation33_spill]] %s5637_s2  ;;  %s5645_s3 = sshll.u32 %s5448_s9, 5 }
  0x37   : > { %s5640_s0 = scalar_select %p82_p4, %s5420_s26, %s84_s17  }
  0x38   : > { %s315_s24 = sand.u32 1, %s5452_s10   ;;  %s317_s13 = sand.u32 1, %s5420_s26  }
  0x39   : > { %8944 = sst [smem:[#allocation34_spill]] %s5640_s0  ;;  %s4493_s20 = sshll.u32 %s317_s13, 3 }
  0x3a   : > { %s4496_s25 = sshll.u32 %s9289_s6, 1  ;;  %s319_s15 = scalar_lea.vmem [#allocation5], %s4493_s20 }
  0x3b   : > { %s328_s19 = sadd.s32 %s4496_s25, %s5645_s3  ;;  %s333_s16 = sshll.u32 %s319_s15, 4  ;;  %s334_s16 = int_to_ptr.vmem [resolvable:$true] %s333_s16 }
  0x3c   : > { %s4498_s21 = sshll.u32 %s328_s19, 2  ;;  %s8945_s1 = sld [smem:[#allocation88_spill]] }
  0x3d   : > { %p4793_p10 = pnand %p8782_p9, %p5621_p13  ;;  %s8946_s4 = sld [smem:[#allocation91_spill]] }
  0x3e   : > { %s5660_s6 = scalar_lea.sflag [#allocation6], %s315_s24  ;;  %s8777_s25 = smov 64  }
  0x3f   : > { %s8779_s15 = smov 4   ;;  %s5459_s0 = smov [#allocation10]  }
  0x40   : > { %s262_s2 = sshll.u32 %s5459_s0, 4  ;;  %s5461_s22 = smov 16   ;;  %s263_s2 = int_to_ptr.vmem [resolvable:$true] %s262_s2 }
  0x41   : > { %s8947_s5 = sld [smem:[#allocation92_spill]]  ;;  %s5462_s24 = smov [#allocation11]  }
  0x42   : > { %s330_s17 = scalar_lea.hbm %s8945_s1, %s4498_s21  ;;  %s5460_s21 = smov 256  }
  0x43   : > { %s331_s9 = sshll.u32 %s330_s17, 4  ;;  %s260_s26 = sshll.u32 %s8946_s4, 4  ;;  %s332_s9 = int_to_ptr.hbm [resolvable:$true] %s331_s9  ;;  %s261_s26 = int_to_ptr.hbm [resolvable:$true] %s260_s26 }
  0x44   : > { %4795 = dma.hbm_to_vmem [thread:$0]  (!%p4793_p10), %s332_s9, 128, %s334_s16, %s5660_s6, %s8777_s25, %s8777_s25, %s8779_s15  }
  0x45   : > { %4785 = dma.hbm_to_vmem [thread:$0]  (!%p5590_p5), %s261_s26, 512, %s263_s2, [#allocation9], %s5460_s21, %s5460_s21, %s5461_s22  }
  0x46   : > { %s276_s13 = sshll.u32 %s5462_s24, 4  ;;  %s4476_s20 = sadd.s32 4294967294, %s5452_s10   ;;  %s277_s13 = int_to_ptr.vmem [resolvable:$true] %s276_s13 }
  0x47   : > { %s274_s9 = sshll.u32 %s8947_s5, 4  ;;  %s48_s16 = sadd.s32 1, %s5432_s29  ;;  %s275_s9 = int_to_ptr.hbm [resolvable:$true] %s274_s9 }
  0x48   : > { %4788 = dma.hbm_to_vmem [thread:$0]  (!%p5590_p5), %s275_s9, 512, %s277_s13, [#allocation12], %s8777_s25, %s8777_s25, %s8779_s15  }
  0x49   : > { %p55_p12 = scmp.ne.s32.totalorder %s5432_s29, %s5428_s28  ;;  %p61_p0 = scmp.ne.s32.totalorder %s5428_s28, %s5424_s27 }
  0x4a   : > { %s5683_s26 = scalar_select %p46_p11, %s5432_s29, %s48_s16  }
  0x4b   : > { %p5687_p13 = por %p56_p7, %p55_p12  ;;  %p222_p4 = scmp.eq.s32.totalorder %s5574_s11, 3 }
  0x4c   : > { %8948 = sst [smem:[#allocation35_spill]] %s5683_s26  ;;  %p228_p10 = scmp.eq.s32.totalorder %s4476_s20, 3 }
  0x4d   : > { %p5696_p8 = por %p62_p1, %p61_p0  ;;  %s290_s17 = sand.u32 1, %s5432_s29  }
  0x4e   : > { %p5701_p5 = por %p222_p4, %p55_p12  ;;  %p5705_p11 = por %p228_p10, %p61_p0 }
  0x4f   : > { %s8953_s2 = sld [smem:[#allocation33_spill]]  ;;  %s4488_s21 = sshll.u32 %s290_s17, 6 }
  0x50   : > { %s8954_s22 = sld [smem:[#allocation21_spill]]  ;;  %s4727_s12 = sshll.u32 %s5444_s8, 4 }
  0x51   : > { %s8955_s19 = sld [smem:[#allocation20_spill]]  ;;  %s300_s9 = sadd.s32 %s4727_s12, %s5645_s3 }
  0x52   : > { %s294_s24 = scalar_lea.vmem [#allocation2], %s4488_s21  ;;  %s8956_s20 = sld [smem:[#allocation31_spill]] }
  0x53   : > { %s305_s13 = sshll.u32 %s294_s24, 4  ;;  %s4492_s16 = sshll.u32 %s300_s9, 2  ;;  %s306_s13 = int_to_ptr.vmem [resolvable:$true] %s305_s13 }
  0x54   : > { %s8957_s1 = sld [smem:[#allocation87_spill]]  ;;  %p4790_p12 = pnand %p8782_p9, %p5687_p13 }
  0x55   : > { %s291_s8 = scalar_lea.sflag [#allocation3], %s290_s17  ;;  %s8958_s12 = smov 4  }
  0x56   : > { %s8959_s21 = smov 64   ;;  %s120_s9 = sadd.s32 1, %s5408_s23 }
  0x57   : > { %s9293_s30 = smov (!%p109_p6, %s5627_s30), 15  ;;  %p8960_p0 = scmp.lt.s32.totalorder %s8953_s2, 15 }
  0x58   : > { %p127_p4 = scmp.ne.s32.totalorder %s5408_s23, %s8954_s22  ;;  %p133_p10 = scmp.ne.s32.totalorder %s8954_s22, %s8955_s19 }
  0x59   : > { %s9295_s2 = smov (!%p8960_p0, %s8953_s2), 15  ;;  %s345_s25 = sand.u32 1, %s5408_s23  }
  0x5a   : > { %s302_s4 = scalar_lea.hbm %s8957_s1, %s4492_s16  ;;  %s116_s1 = ssub.s32 %s9293_s30, %s9295_s2 }
  0x5b   : > { %s303_s5 = sshll.u32 %s302_s4, 4  ;;  %s117_s15 = sor.u32 %s116_s1, %s8956_s20  ;;  %s304_s5 = int_to_ptr.hbm [resolvable:$true] %s303_s5 }
  0x5c   : > { %4792 = dma.hbm_to_vmem [thread:$0]  (!%p4790_p12), %s304_s5, 1024, %s306_s13, %s291_s8, %s8959_s21, %s8959_s21, %s8958_s12  }
  0x5d   : > { %p5736_p13 = por %p127_p4, %p56_p7  ;;  %p118_p9 = scmp.eq.s32.totalorder %s117_s15, 0 }
  0x5e   : > { %p5742_p12 = por %p133_p10, %p62_p1  ;;  %s4499_s8 = sshll.u32 %s345_s25, 3 }
  0x5f   : > { %s4501_s14 = sshll.u32 %s9293_s30, 1  ;;  %s347_s19 = scalar_lea.vmem [#allocation7], %s4499_s8 }
  0x60   : > { %s5747_s17 = scalar_select %p118_p9, %s5408_s23, %s120_s9  }
  0x61   : > { %s356_s2 = sadd.s32 %s4501_s14, %s5645_s3  ;;  %s361_s24 = sshll.u32 %s347_s19, 4  ;;  %s362_s24 = int_to_ptr.vmem [resolvable:$true] %s361_s24 }
  0x62   : > { %s4503_s22 = sshll.u32 %s356_s2, 2  ;;  %s8963_s16 = sld [smem:[#allocation89_spill]] }
  0x63   : > { %p8964_p7 = scmp.lt.s32.totalorder %s5452_s10, 4 }
  0x65   : > { %p4796_p6 = pnand %p8964_p7, %p5736_p13 }
  0x66   : > { %373 = sbr.rel (%p5582_p3) target bundleno = 1802 (0x70a), region = 44 }
  0x68   : > { %s358_s1 = scalar_lea.hbm %s8963_s16, %s4503_s22 }
  0x69   : > { %s359_s26 = sshll.u32 %s358_s1, 4  ;;  %s360_s26 = int_to_ptr.hbm [resolvable:$true] %s359_s26 }
  0x6a   : > { %4798 = dma.hbm_to_vmem [thread:$0]  (!%p4796_p6), %s360_s26, 128, %s362_s24, %s5660_s6, %s8959_s21, %s8959_s21, %s8958_s12  }
  0x6b   : > { %s5764_s3 = sand.u32 1, %s5428_s28  }
  0x6c   : > { %s4505_s9 = sshll.u32 %s5764_s3, 6  ;;  %s376_s25 = scalar_lea.sflag [#allocation3], %s5764_s3 }
  0x6d   : > { %s5768_s15 = scalar_lea.vmem [#allocation2], %s4505_s9 }
  0x6e   : > { %5375 = dma.done.wait (%p5696_p8), %s376_s25, 1024  }
  0x6f   : > { %5377 = vsyncadd (%p5696_p8), %s376_s25, 4294966272  ;;  %s8966_s6 = sld [smem:[#allocation22_spill]]  ;;  %s385_s12 = sand.u32 1, %s5574_s11  }
  0x70   : > { %s386_s8 = scalar_lea.sflag [#allocation6], %s385_s12 }
  0x75   : > { %s387_s21 = sand.u32 1, %s8966_s6  }
  0x76   : > { %s5776_s4 = sshll.u32 %s387_s21, 3 }
  0x77   : > { %s389_s14 = scalar_lea.vmem [#allocation5], %s5776_s4 }
  0x78   : > { %5379 = dma.done.wait (%p5632_p2), %s386_s8, 128  }
  0x79   : > { %5381 = vsyncadd (%p5632_p2), %s386_s8, 4294967168  ;;  %s8968_s2 = sld [smem:[#allocation21_spill]] }
  0x7f   : > { %s397_s22 = sand.u32 1, %s8968_s2  }
  0x80   : > { %s5784_s18 = sshll.u32 %s397_s22, 3 }
  0x81   : > { %s399_s19 = scalar_lea.vmem [#allocation7], %s5784_s18 }
  0x82   : > { %5383 = dma.done.wait (%p5742_p12), %s386_s8, 128  }
  0x83   : > { %5385 = vsyncadd (%p5742_p12), %s386_s8, 4294967168 }
  0x84   : > { %5387 = dma.done.wait (%p62_p1), [#allocation9], 1536  }
  0x85   : > { %5389 = vsyncadd (%p62_p1), [#allocation9], 4294965760 }
  0x86   : > { %5391 = dma.done.wait (%p62_p1), [#allocation12], 512  }
  0x87   : > { %5393 = vsyncadd (%p62_p1), [#allocation12], 4294966784  ;;  %s8969_s24 = sld [smem:[#allocation24_spill]]  ;;  %v4570_v0 = vld [vmem:[#allocation8 + $0x30] sm:$0xf]  ;;  %vm595_vm1 = vcmask 523264   ;;  %v744_v52 = vlaneseq }
  0x88   : > { %v4745_v1 = vld [vmem:[#allocation8 + $0x34] sm:$0xf0]  ;;  %v4744_v2 = vld [vmem:[#allocation8 + $0x34] sm:$0xf]  ;;  %v4572_v5 = vld [vmem:[#allocation8 + $0x38] sm:$0xf0] }
  0x89   : > { %v4571_v4 = vor.u32 %v4745_v1, %v4570_v0  ;;  %v4562_v6 = vld [vmem:[#allocation8 + $0x20] sm:$0xf]  ;;  %v4743_v7 = vld [vmem:[#allocation8 + $0x24] sm:$0xf0]  ;;  %v4575_v8 = vor.u32 %v4744_v2, %v4572_v5  ;;  %v4742_v9 = vld [vmem:[#allocation8 + $0x24] sm:$0xf] }
  0x8a   : > { %v4564_v10 = vld [vmem:[#allocation8 + $0x28] sm:$0xf0]  ;;  %v4563_v11 = vor.u32 %v4743_v7, %v4562_v6  ;;  %v4554_v14 = vld [vmem:[#allocation8 + $0x10] sm:$0xf]  ;;  %v4741_v15 = vld [vmem:[#allocation8 + $0x14] sm:$0xf0] }
  0x8b   : > { %630 = vmatpush.bf16.msra.mxu0 %v4571_v4  ;;  %689 = vmatpush.bf16.msra.mxu1 %v4575_v8  ;;  %v4567_v13 = vor.u32 %v4742_v9, %v4564_v10  ;;  %v4740_v16 = vld [vmem:[#allocation8 + $0x14] sm:$0xf]  ;;  %v4556_v17 = vld [vmem:[#allocation8 + $0x18] sm:$0xf0]  ;;  %v466_v18 = vld [vmem:[%s389_s14] sm:$0xf]  ;;  %v4555_v20 = vor.u32 %v4741_v15, %v4554_v14 }
  0x8c   : > { %v467_v19 = vld [vmem:[%s389_s14 + $0x4] sm:$0xf]  ;;  %v4559_v23 = vor.u32 %v4740_v16, %v4556_v17  ;;  %v4546_v24 = vld [vmem:[#allocation8] sm:$0xf]  ;;  %v4739_v25 = vld [vmem:[#allocation8 + $0x4] sm:$0xf0] }
  0x8d   : > { %p465_p3 = scmp.gt.s32.totalorder %s8969_s24, 0  ;;  %v4738_v26 = vld [vmem:[#allocation8 + $0x4] sm:$0xf]  ;;  %v4548_v27 = vld [vmem:[#allocation8 + $0x8] sm:$0xf0]  ;;  %v4547_v30 = vor.u32 %v4739_v25, %v4546_v24  ;;  %v4732_v35 = vld [vmem:[%s5768_s15 + $0x10] sm:$0xff] }
  0x8e   : > { %v4551_v31 = vor.u32 %v4738_v26, %v4548_v27  ;;  %v4730_v33 = vld [vmem:[%s5768_s15] sm:$0xff]  ;;  %v4731_v34 = vld [vmem:[%s5768_s15 + $0x8] sm:$0xff]  ;;  %v4733_v36 = vld [vmem:[%s5768_s15 + $0x18] sm:$0xff]  ;;  %p473_p1 = scmp.lt.s32.totalorder %s8969_s24, 1  ;;  %v5851_v54 = vshrl.u32 %v744_v52, 7  ;;  %vm829_vm3 = vcmask 1040384  }
  0x8f   : > { %s468_s13 = scalar_select %p465_p3, 1, 0  ;;  %631 = vmatpush.bf16.msra.mxu0 %v4563_v11  ;;  %690 = vmatpush.bf16.msra.mxu1 %v4567_v13  ;;  %v4734_v37 = vld [vmem:[%s5768_s15 + $0x20] sm:$0xff]  ;;  %v4735_v38 = vld [vmem:[%s5768_s15 + $0x28] sm:$0xff]  ;;  %v4736_v39 = vld [vmem:[%s5768_s15 + $0x30] sm:$0xff]  ;;  %vm976_vm4 = vcmask 1046528  }
  0x90   : > { %s476_s11 = scalar_select %p473_p1, 1, 0  ;;  %v4737_v40 = vld [vmem:[%s5768_s15 + $0x38] sm:$0xff]  ;;  %v5862_v60 = vadd.s32 8, %v5851_v54  ;;  %v5866_v62 = vld [vmem:[#allocation10 + $0x8] sm:$0xff]  ;;  %v5879_v4 = vld [vmem:[#allocation10] sm:$0xff] }
  0x91   : > { %v469_v3 = vstv %s468_s13  ;;  %v474_v44 = vld [vmem:[%s399_s19] sm:$0xf]  ;;  %v475_v45 = vld [vmem:[%s399_s19 + $0x4] sm:$0xf]  ;;  %v5870_v0 = vperm.slane %v5866_v62, 0  ;;  %v5882_v5 = vperm.slane %v5866_v62, 1 }
  0x92   : > { %vm5800_vm0 = vcmp.eq.s32.totalorder %v469_v3, 1  ;;  %v477_v43 = vstv %s476_s11  ;;  %vm975_vm5 = vcmp.lt.s32.totalorder %v5862_v60, 15  ;;  %vm747_vm6 = vcmp.gt.s32.totalorder %v5851_v54, 0  ;;  %s5463_s5 = smov 96   ;;  %s5464_s20 = smov 64  }
  0x93   : > { %v471_v21 = vsel %vm5800_vm0, %v466_v18, 0  ;;  %v472_v22 = vsel %vm5800_vm0, %v467_v19, 0  ;;  %632 = vmatpush.bf16.msra.mxu0 %v4555_v20  ;;  %691 = vmatpush.bf16.msra.mxu1 %v4559_v23  ;;  %vm478_vm2 = vcmp.eq.s32.totalorder %v477_v43, 1  ;;  %8972 = vst [vmem:[#allocation36_spill] sm:$0xff] %v5870_v0  ;;  %v5895_v9 = vperm.slane %v5879_v4, 0  ;;  %s5465_s16 = smov 32  }
  0x94   : > { %v525_v28 = vunpack.c.l.b16 %v471_v21  ;;  %v526_v29 = vunpack.c.l.b16 %v472_v22  ;;  %v479_v47 = vsel %vm478_vm2, %v474_v44, 0  ;;  %v480_v48 = vsel %vm478_vm2, %v475_v45, 0  ;;  %8973 = vst [vmem:[#allocation37_spill] sm:$0xff] %v5882_v5  ;;  %s4511_s1 = sshll.u32 %s5764_s3, 7  ;;  %s9262_s9 = sld [smem:[#allocation25_spill]] }
  0x95   : > { %v543_v50 = vunpack.c.l.b16 %v479_v47  ;;  %v544_v51 = vunpack.c.l.b16 %v480_v48  ;;  %8974 = vst [vmem:[#allocation38_spill] sm:$0xff] %v5895_v9  ;;  %v5903_v14 = vperm.slane %v5866_v62, 2  ;;  %v5911_v19 = vperm.slane %v5879_v4, 1  ;;  %s8653_s30 = scalar_lea.vmem [#allocation13], %s4511_s1  ;;  %s4750_s25 = sshll.u32 %s8969_s24, 4 }
  0x96   : > { %v545_v32 = vpack.c.b16 %v526_v29, %v525_v28  ;;  %v5914_v20 = vperm.slane %v5879_v4, 2  ;;  %v5923_v25 = vperm.slane %v5879_v4, 3  ;;  %v5926_v26 = vperm.slane %v5866_v62, 3  ;;  %s9263_s4 = sld [smem:[#allocation93_spill]]  ;;  %s4304_s14 = sshll.u32 %s8653_s30, 4  ;;  %s4305_s14 = int_to_ptr.vmem [resolvable:$true] %s4304_s14 }
  0x97   : > { %633 = vmatpush.bf16.msra.mxu0 %v4547_v30  ;;  %692 = vmatpush.bf16.msra.mxu1 %v4551_v31  ;;  %v554_v53 = vpack.c.b16 %v544_v51, %v543_v50  ;;  %8975 = vst [vmem:[#allocation39_spill] sm:$0xff] %v5903_v14  ;;  %vm2085_vm7 = vcmask 261120   ;;  %vm2912_vm8 = vcmask 130048   ;;  %s4289_s22 = scalar_lea.sflag [#allocation4], %s5764_s3 }
  0x98   : > { %8976 = vst [vmem:[#allocation40_spill] sm:$0xff] %v5911_v19 }
  0x99   : > { %8977 = vst [vmem:[#allocation41_spill] sm:$0xff] %v5914_v20 }
  0x9a   : > { %4576 = vmatmul.msk.bf16.vlgmr.msra.gmra.mxu0 %vm595_vm1, %v545_v32  ;;  %4586 = vmatmul.msk.bf16.vlgmr.msra.gmra.mxu1 %vm595_vm1, %v545_v32  ;;  %8978 = vst [vmem:[#allocation42_spill] sm:$0xff] %v5923_v25  ;;  %s4719_s15 = sshll.u32 %s9262_s9, 5 }
  0x9b   : > { %s4301_s6 = sadd.s32 %s4750_s25, %s4719_s15 }
  0x9c   : > { %s4720_s26 = sshll.u32 %s4301_s6, 3  ;;  %s5310_s11 = scalar_lea.hbm %s9263_s4, 512 }
  0x9d   : > { %s4303_s8 = scalar_lea.hbm %s9263_s4, %s4720_s26 }
  0x9e   : > { %s4306_s2 = sshll.u32 %s4303_s8, 4  ;;  %s4307_s2 = int_to_ptr.hbm [resolvable:$true] %s4306_s2 }
  0x9f   : > { %s5304_s18 = sshra.s32 %s4307_s2, 4  ;;  %s5305_s18 = int_to_ptr.hbm [resolvable:$true] %s5304_s18 }
  0xa0   : > { %s5306_s19 = scalar_lea.hbm %s5305_s18, 128  ;;  %p5311_p0 = scmp.lt.s32.totalorder %s5305_s18, %s9263_s4 }
  0xa1   : > { %p5307_p2 = scmp.ne.s32.totalorder %s5305_s18, %s5306_s19  ;;  %p5312_p4 = scmp.lt.s32.totalorder %s5310_s11, %s5306_s19 }
  0xa3   : > { %p5308_p8 = pnand %p5307_p2, %p5701_p5  ;;  %p5313_p10 = por %p5312_p4, %p5311_p0 }
  0xa5   : > { %p5309_p9 = pneg %p5308_p8 }
  0xa7   : > { %p5314_p13 = pnand %p5313_p10, %p5309_p9 }
  0xaa   : > { %4577 = vmatmul.msk.bf16.gmra.mxu0 %vm595_vm1, %v4730_v33  ;;  %4587 = vmatmul.msk.bf16.gmra.mxu1 %vm595_vm1, %v4730_v33 }
  0xba   : > { %4578 = vmatmul.msk.bf16.gmra.mxu0 %vm595_vm1, %v4731_v34  ;;  %4588 = vmatmul.msk.bf16.gmra.mxu1 %vm595_vm1, %v4731_v34 }
  0xca   : > { %4579 = vmatmul.msk.bf16.gmra.mxu0 %vm595_vm1, %v4732_v35  ;;  %4589 = vmatmul.msk.bf16.gmra.mxu1 %vm595_vm1, %v4732_v35 }
  0xda   : > { %4580 = vmatmul.msk.bf16.gmra.mxu0 %vm595_vm1, %v4733_v36  ;;  %4590 = vmatmul.msk.bf16.gmra.mxu1 %vm595_vm1, %v4733_v36 }
  0xea   : > { %4581 = vmatmul.msk.bf16.gmra.mxu0 %vm595_vm1, %v4734_v37  ;;  %4591 = vmatmul.msk.bf16.gmra.mxu1 %vm595_vm1, %v4734_v37 }
  0xfa   : > { %4582 = vmatmul.msk.bf16.gmra.mxu0 %vm595_vm1, %v4735_v38  ;;  %4592 = vmatmul.msk.bf16.gmra.mxu1 %vm595_vm1, %v4735_v38 }
 0x10a   : > { %4583 = vmatmul.msk.bf16.gmra.mxu0 %vm595_vm1, %v4736_v39  ;;  %4593 = vmatmul.msk.bf16.gmra.mxu1 %vm595_vm1, %v4736_v39 }
 0x117   : > { %v5837_v41 = vpop.f32.mrf.mxu0  ;;  %v5839_v42 = vpop.f32.mrf.mxu1 }
 0x118   : > { %v831_v57 = vrot.slane %v5839_v42, 7  ;;  %v8789_v59 = vrot.slane %v5839_v42, 1  ;;  %v830_v3 = vrot.slane %v5837_v41, 7  ;;  %v977_v8 = vrot.slane %v5837_v41, 1 }
 0x119   : > { %v1233_v45 = vmul.f32 %v5911_v19, %v5837_v41  ;;  %v5970_v41 = vperm.slane %v5879_v4, 4 }
 0x11a   : > { %4584 = vmatmul.msk.bf16.gmra.mxu0 %vm595_vm1, %v4737_v40  ;;  %4594 = vmatmul.msk.bf16.gmra.mxu1 %vm595_vm1, %v4737_v40  ;;  %v5951_v40 = vperm.slane %v5866_v62, 4 }
 0x11b   : > { %8980 = vst [vmem:[#allocation44_spill] sm:$0xff] %v5970_v41 }
 0x11c   : > { %8979 = vst [vmem:[#allocation43_spill] sm:$0xff] %v5951_v40 }
 0x11f   : > { %v5847_v46 = vpop.f32.mrf.mxu0  ;;  %v5849_v49 = vpop.f32.mrf.mxu1 }
 0x120   : > { %v770_v58 = vrot.slane %v5849_v49, 7  ;;  %v8790_v61 = vrot.slane %v5849_v49, 1  ;;  %v769_v63 = vrot.slane %v5847_v46, 7  ;;  %v978_v1 = vrot.slane %v5847_v46, 1 }
 0x121   : > { %v1236_v21 = vmul.f32 %v5882_v5, %v5849_v49  ;;  %v1235_v31 = vmul.f32 %v5911_v19, %v5847_v46 }
 0x122   : > { %v833_v2 = vsel %vm829_vm3, %v831_v57, %v770_v58  ;;  %v1098_v6 = vsel %vm976_vm4, %v8790_v61, %v8789_v59  ;;  %v832_v11 = vsel %vm829_vm3, %v830_v3, %v769_v63  ;;  %v910_v12 = vsel %vm829_vm3, %v769_v63, %v830_v3 }
 0x123   : > { %v1170_v13 = vmul.f32 %v5870_v0, %v833_v2  ;;  %v1097_v15 = vsel %vm976_vm4, %v978_v1, %v977_v8  ;;  %v1124_v16 = vsel %vm975_vm5, %v1098_v6, 0.0  ;;  %v934_v23 = vsel %vm747_vm6, %v910_v12, 0.0 }
 0x124   : > { %v1169_v24 = vmul.f32 %v5895_v9, %v832_v11  ;;  %v1123_v27 = vsel %vm975_vm5, %v1097_v15, 0.0  ;;  %v1302_v29 = vmul.f32 %v5903_v14, %v1124_v16  ;;  %v1167_v35 = vmul.f32 %v5895_v9, %v934_v23 }
 0x125   : > { %v1268_v28 = vadd.f32 %v1236_v21, %v1170_v13  ;;  %v1301_v39 = vmul.f32 %v5914_v20, %v1123_v27  ;;  %v979_v48 = vsel %vm976_vm4, %v977_v8, %v978_v1  ;;  %v5980_v8 = vperm.slane %v5866_v62, 5 }
 0x126   : > { %v1267_v38 = vadd.f32 %v1235_v31, %v1169_v24  ;;  %v1299_v11 = vmul.f32 %v5914_v20, %v979_v48  ;;  %v911_v12 = vsel %vm829_vm3, %v770_v58, %v831_v57  ;;  %v5989_v13 = vperm.slane %v5879_v4, 5 }
 0x127   : > { %v5853_v55 = vpop.f32.mrf.mxu0  ;;  %v5855_v56 = vpop.f32.mrf.mxu1  ;;  %v1334_v46 = vadd.f32 %v1302_v29, %v1268_v28  ;;  %8981 = vst [vmem:[#allocation45_spill] sm:$0xff] %v5980_v8  ;;  %v6003_v58 = vperm.slane %v5866_v62, 7 }
 0x128   : > { %v835_v17 = vrot.slane %v5855_v56, 7  ;;  %v834_v30 = vrot.slane %v5853_v55, 7  ;;  %v8785_v32 = vrot.slane %v5855_v56, 1  ;;  %v1333_v2 = vadd.f32 %v1301_v39, %v1267_v38 }
 0x129   : > { %v983_v3 = vrot.slane %v5853_v55, 1  ;;  %8982 = vst [vmem:[#allocation46_spill] sm:$0xff] %v6003_v58  ;;  %v6013_v38 = vperm.slane %v5866_v62, 6 }
 0x12a   : > { %4585 = vmatmul.msk.bf16.gmra.mxu0 %vm595_vm1, %v554_v53  ;;  %4595 = vmatmul.msk.bf16.gmra.mxu1 %vm595_vm1, %v554_v53  ;;  %v1265_v53 = vadd.f32 %v1233_v45, %v1167_v35 }
 0x12b   : > { %8983 = vst [vmem:[#allocation47_spill] sm:$0xff] %v6013_v38 }
 0x12c   : > { %v1331_v24 = vadd.f32 %v1299_v11, %v1265_v53 }
 0x12f   : > { %v5890_v7 = vpop.f32.mrf.mxu0  ;;  %v5897_v10 = vpop.f32.mrf.mxu1 }
 0x130   : > { %v772_v18 = vrot.slane %v5897_v10, 7  ;;  %v771_v22 = vrot.slane %v5890_v7, 7  ;;  %v8786_v34 = vrot.slane %v5897_v10, 1  ;;  %v984_v50 = vrot.slane %v5890_v7, 1 }
 0x131   : > { %v1434_v6 = vmul.f32 %v5951_v40, %v5897_v10  ;;  %v1433_v29 = vmul.f32 %v5970_v41, %v5890_v7 }
 0x132   : > { %v5940_v33 = vsel %vm829_vm3, %v835_v17, %v772_v18  ;;  %v5945_v36 = vsel %vm829_vm3, %v834_v30, %v771_v22  ;;  %v912_v43 = vsel %vm829_vm3, %v771_v22, %v834_v30  ;;  %v1100_v52 = vsel %vm976_vm4, %v8786_v34, %v8785_v32 }
 0x133   : > { %v1368_v47 = vmul.f32 %v5926_v26, %v5940_v33  ;;  %v1367_v51 = vmul.f32 %v5923_v25, %v5945_v36  ;;  %v5974_v63 = vsel %vm747_vm6, %v912_v43, 0.0  ;;  %v5993_v15 = vsel %vm975_vm5, %v1100_v52, 0.0 }
 0x134   : > { %v1099_v16 = vsel %vm976_vm4, %v984_v50, %v983_v3  ;;  %v1365_v21 = vmul.f32 %v5923_v25, %v5974_v63  ;;  %v1500_v35 = vmul.f32 %v5980_v8, %v5993_v15  ;;  %v935_v32 = vsel %vm747_vm6, %v911_v12, 0.0 }
 0x135   : > { %v1400_v1 = vadd.f32 %v1368_v47, %v1334_v46  ;;  %v1399_v22 = vadd.f32 %v1367_v51, %v1333_v2  ;;  %v6017_v39 = vsel %vm975_vm5, %v1099_v16, 0.0  ;;  %v6022_v46 = vperm.slane %v5879_v4, 6 }
 0x136   : > { %v1397_v47 = vadd.f32 %v1365_v21, %v1331_v24 }
 0x137   : > { %v5947_v37 = vpop.f32.mrf.mxu0  ;;  %v5954_v44 = vpop.f32.mrf.mxu1  ;;  %v1466_v23 = vadd.f32 %v1434_v6, %v1400_v1  ;;  %v1465_v48 = vadd.f32 %v1433_v29, %v1399_v22  ;;  %v1431_v22 = vmul.f32 %v5970_v41, %v5853_v55  ;;  %v6055_v29 = vld [vmem:[#allocation10 + $0x18] ss:$0 sm:$0xff] }
 0x138   : > { %v8788_v27 = vrot.slane %v5954_v44, 7  ;;  %v8783_v28 = vrot.slane %v5954_v44, 1  ;;  %v838_v51 = vrot.slane %v5947_v37, 7  ;;  %v989_v24 = vrot.slane %v5947_v37, 1 }
 0x139   : > { %v1532_v52 = vadd.f32 %v1500_v35, %v1466_v23  ;;  %v985_v23 = vsel %vm976_vm4, %v983_v3, %v984_v50  ;;  %v1499_v35 = vmul.f32 %v5989_v13, %v6017_v39 }
 0x13a   : > { %v1497_v12 = vmul.f32 %v5989_v13, %v985_v23 }
 0x13b   : > { %v1531_v3 = vadd.f32 %v1499_v35, %v1465_v48  ;;  %v6081_v48 = vld [vmem:[#allocation10 + $0x10] ss:$0 sm:$0xff] }
 0x13f   : > { %v6000_v57 = vpop.f32.mrf.mxu0  ;;  %v6008_v31 = vpop.f32.mrf.mxu1 }
 0x140   : > { %v773_v30 = vrot.slane %v6000_v57, 7  ;;  %v8787_v43 = vrot.slane %v6008_v31, 7  ;;  %v8784_v45 = vrot.slane %v6008_v31, 1  ;;  %v990_v53 = vrot.slane %v6000_v57, 1 }
 0x141   : > { %v1244_v62 = vmul.f32 %v5882_v5, %v6008_v31  ;;  %v1632_v61 = vmul.f32 %v6003_v58, %v6008_v31 }
 0x142   : > { %v6033_v1 = vsel %vm829_vm3, %v8788_v27, %v8787_v43  ;;  %v1102_v2 = vsel %vm976_vm4, %v8784_v45, %v8783_v28  ;;  %v6041_v6 = vsel %vm829_vm3, %v838_v51, %v773_v30  ;;  %v1101_v43 = vsel %vm976_vm4, %v990_v53, %v989_v24 }
 0x143   : > { %v6045_v11 = vsel %vm975_vm5, %v1102_v2, 0.0  ;;  %v1566_v16 = vmul.f32 %v6013_v38, %v6033_v1  ;;  %v1178_v21 = vmul.f32 %v5870_v0, %v6033_v1  ;;  %v1565_v50 = vmul.f32 %v6022_v46, %v6041_v6 }
 0x144   : > { %8984 = vst [vmem:[#allocation48_spill] sm:$0xff] %v6045_v11  ;;  %v1310_v2 = vmul.f32 %v5903_v14, %v6045_v11  ;;  %v914_v27 = vsel %vm829_vm3, %v773_v30, %v838_v51  ;;  %v6087_v35 = vsel %vm975_vm5, %v1101_v43, 0.0 }
 0x145   : > { %v1598_v28 = vadd.f32 %v1566_v16, %v1532_v52  ;;  %v1276_v45 = vadd.f32 %v1244_v62, %v1178_v21  ;;  %v1463_v52 = vadd.f32 %v1431_v22, %v1397_v47  ;;  %v1234_v62 = vmul.f32 %v5882_v5, %v5839_v42 }
 0x146   : > { %v6077_v16 = vperm.slane %v5879_v4, 7  ;;  %v1698_v21 = vmul.f32 %v6055_v29, %v6045_v11  ;;  %v1597_v47 = vadd.f32 %v1565_v50, %v1531_v3  ;;  %v1168_v22 = vmul.f32 %v5870_v0, %v935_v32 }
 0x147   : > { %v6063_v34 = vpop.f32.mrf.mxu0  ;;  %v6069_v59 = vpop.f32.mrf.mxu1  ;;  %v1664_v30 = vadd.f32 %v1632_v61, %v1598_v28  ;;  %v6083_v51 = vadd.f32 %v1310_v2, %v1276_v45  ;;  %v913_v4 = vsel %vm829_vm3, %v772_v18, %v835_v17  ;;  %v6099_v61 = vsel %vm747_vm6, %v914_v27, 0.0 }
 0x148   : > { %8985 = vst [vmem:[#allocation49_spill] sm:$0xff] %v6063_v34  ;;  %v1631_v11 = vmul.f32 %v6077_v16, %v6000_v57  ;;  %v1171_v28 = vmul.f32 %v5895_v9, %v5974_v63  ;;  %v1529_v45 = vadd.f32 %v1497_v12, %v1463_v52  ;;  %v1563_v32 = vmul.f32 %v6022_v46, %v6099_v61 }
 0x149   : > { %8986 = vst [vmem:[#allocation50_spill] sm:$0xff] %v6083_v51  ;;  %v6103_v43 = vadd.f32 %v1698_v21, %v1664_v30  ;;  %v8988_v2 = vrot.slane %v5849_v49, 1  ;;  %v8989_v17 = vrot.slane %v5839_v42, 1  ;;  %v1697_v27 = vmul.f32 %v6081_v48, %v6087_v35 }
 0x14a   : > { %v1663_v50 = vadd.f32 %v1631_v11, %v1597_v47  ;;  %v6115_v3 = vsel %vm976_vm4, %v989_v24, %v990_v53  ;;  %v1237_v63 = vmul.f32 %v5911_v19, %v5853_v55  ;;  %v939_v52 = vsel %vm747_vm6, %v913_v4, 0.0 }
 0x14b   : > { %8987 = vst [vmem:[#allocation51_spill] sm:$0xff] %v6103_v43  ;;  %v982_v18 = vsel %vm976_vm4, %v8989_v17, %v8988_v2  ;;  %v1629_v49 = vmul.f32 %v6077_v16, %v5947_v37  ;;  %2015 = vrot.lane.b32.xlu2 %v6103_v43, %s5463_s5  ;;  %v1595_v42 = vadd.f32 %v1563_v32, %v1529_v45 }
 0x14c   : > { %v1173_v11 = vmul.f32 %v5895_v9, %v5945_v36  ;;  %v6127_v12 = vadd.f32 %v1697_v27, %v1663_v50  ;;  %v1266_v24 = vadd.f32 %v1234_v62, %v1168_v22  ;;  %v1269_v55 = vadd.f32 %v1237_v63, %v1171_v28 }
 0x14d   : > { %v1661_v21 = vadd.f32 %v1629_v49, %v1595_v42  ;;  %v1695_v30 = vmul.f32 %v6081_v48, %v6115_v3  ;;  %v1300_v4 = vmul.f32 %v5903_v14, %v982_v18  ;;  %v1239_v45 = vmul.f32 %v5911_v19, %v5890_v7 }
 0x14e   : > { %8990 = vst [vmem:[#allocation52_spill] sm:$0xff] %v6127_v12  ;;  %v1303_v32 = vmul.f32 %v5914_v20, %v985_v23  ;;  %v1366_v36 = vmul.f32 %v5926_v26, %v939_v52  ;;  %1951 = vrot.lane.b32.xlu1 %v6127_v12, %s5463_s5  ;;  %v8794_v62 = vrot.slane %v6063_v34, 7  ;;  %v1369_v28 = vmul.f32 %v5923_v25, %v6099_v61 }
 0x14f   : > { %v6129_v53 = vpop.f32.mrf.mxu0  ;;  %v6133_v47 = vpop.f32.mrf.mxu1  ;;  %v6143_v22 = vadd.f32 %v1695_v30, %v1661_v21  ;;  %v1271_v17 = vadd.f32 %v1239_v45, %v1173_v11  ;;  %v1305_v7 = vmul.f32 %v5914_v20, %v6017_v39  ;;  %v1332_v18 = vadd.f32 %v1300_v4, %v1266_v24 }
 0x150   : > { %8991 = vst [vmem:[#allocation53_spill] sm:$0xff] %v6129_v53  ;;  %v8796_v2 = vrot.slane %v6129_v53, 7  ;;  %v1335_v23 = vadd.f32 %v1303_v32, %v1269_v55  ;;  %v8793_v50 = vrot.slane %v6069_v59, 7  ;;  %v1238_v27 = vmul.f32 %v5882_v5, %v5855_v56 }
 0x151   : > { %1935 = vrot.lane.b32.xlu0 %v6143_v22, %s5463_s5  ;;  %v1174_v63 = vmul.f32 %v5870_v0, %v5940_v33  ;;  %v8992_v49 = vrot.slane %v5954_v44, 7  ;;  %v8993_v42 = vrot.slane %v6008_v31, 7  ;;  %v8792_v55 = vrot.slane %v6133_v47, 7 }
 0x152   : > { %v1401_v39 = vadd.f32 %v1369_v28, %v1335_v23  ;;  %v916_v24 = vsel %vm829_vm3, %v8796_v2, %v8794_v62  ;;  %v1398_v21 = vadd.f32 %v1366_v36, %v1332_v18  ;;  %v1432_v30 = vmul.f32 %v5951_v40, %v5855_v56 }
 0x153   : > { %v915_v11 = vsel %vm829_vm3, %v8993_v42, %v8992_v49  ;;  %v1337_v33 = vadd.f32 %v1305_v7, %v1271_v17  ;;  %v1240_v4 = vmul.f32 %v5882_v5, %v5897_v10  ;;  %v8994_v45 = vrot.slane %v5897_v10, 1 }
 0x154   : > { %v8995_v32 = vrot.slane %v5855_v56, 1  ;;  %v1172_v23 = vmul.f32 %v5870_v0, %v939_v52  ;;  %v1435_v49 = vmul.f32 %v5970_v41, %v5947_v37  ;;  %v6185_v36 = vsel %vm829_vm3, %v8793_v50, %v8792_v55 }
 0x155   : > { %v6189_v17 = vsel %vm747_vm6, %v915_v11, 0.0  ;;  %v6193_v56 = vsel %vm747_vm6, %v916_v24, 0.0  ;;  %v1182_v10 = vmul.f32 %v5870_v0, %v6185_v36  ;;  %v1248_v52 = vmul.f32 %v5882_v5, %v6133_v47 }
 0x156   : > { %v988_v28 = vsel %vm976_vm4, %v8995_v32, %v8994_v45  ;;  %8996 = vst [vmem:[#allocation54_spill] sm:$0xff] %v6193_v56  ;;  %v8795_v7 = vrot.slane %v6143_v22, 4  ;;  %v1272_v42 = vadd.f32 %v1240_v4, %v1174_v63  ;;  %v1467_v45 = vadd.f32 %v1435_v49, %v1401_v39 }
 0x157   : > { %v6200_v18 = vpop.f32.mrf.mxu1  ;;  %v1464_v32 = vadd.f32 %v1432_v30, %v1398_v21  ;;  %v1498_v11 = vmul.f32 %v5980_v8, %v988_v28  ;;  %v1306_v55 = vmul.f32 %v5903_v14, %v5993_v15  ;;  %v995_v24 = vrot.slane %v6063_v34, 1 }
 0x158   : > { %v1501_v50 = vmul.f32 %v5989_v13, %v6115_v3  ;;  %v6208_v62 = vadd.f32 %v1248_v52, %v1182_v10  ;;  %1943 = vrot.lane.b32.xlu2 %v8795_v7, %s5463_s5  ;;  %v996_v63 = vrot.slane %v6129_v53, 1  ;;  %v1567_v39 = vmul.f32 %v6022_v46, %v6193_v56 }
 0x159   : > { %v1530_v21 = vadd.f32 %v1498_v11, %v1464_v32  ;;  %v1564_v15 = vmul.f32 %v6013_v38, %v6189_v17  ;;  %v1371_v30 = vmul.f32 %v5923_v25, %v6041_v6  ;;  %v8998_v4 = vrot.slane %v6008_v31, 1 }
 0x15a   : > { %8997 = vst [vmem:[#allocation55_spill] sm:$0xff] %v6208_v62  ;;  %v8999_v49 = vrot.slane %v5954_v44, 1  ;;  %v1630_v52 = vmul.f32 %v6003_v58, %v5954_v44  ;;  %v6230_v7 = vmul.f32 0.17677669, %v6127_v12  ;;  %v1633_v32 = vmul.f32 %v6077_v16, %v6063_v34 }
 0x15b   : > { %v1533_v11 = vadd.f32 %v1501_v50, %v1467_v45  ;;  %v6235_v2 = vsel %vm976_vm4, %v995_v24, %v996_v63  ;;  %v1596_v43 = vadd.f32 %v1564_v15, %v1530_v21  ;;  %v6237_v51 = vadd.f32 %v1238_v27, %v1172_v23 }
 0x15c   : > { %v6225_v10 = vsel %vm976_vm4, %v8999_v49, %v8998_v4  ;;  %v6239_v62 = vadd.f32 %v1306_v55, %v1272_v42  ;;  %v1241_v4 = vmul.f32 %v5911_v19, %v5947_v37  ;;  %v1177_v49 = vmul.f32 %v5895_v9, %v6041_v6  ;;  %1887 = vrot.lane.b32.xlu0 %v6230_v7, %s5463_s5  ;;  %v6256_v42 = vpop.f32.mrf.mxu0 }
 0x15d   : > { %v1662_v58 = vadd.f32 %v1630_v52, %v1596_v43  ;;  %v1696_v50 = vmul.f32 %v6055_v29, %v6225_v10  ;;  %v6250_v45 = vmul.f32 0.17677669, %v6143_v22  ;;  %v1599_v27 = vadd.f32 %v1567_v39, %v1533_v11 }
 0x15e   : > { %v1243_v55 = vmul.f32 %v5911_v19, %v6000_v57  ;;  %v1403_v23 = vadd.f32 %v1371_v30, %v1337_v33  ;;  %v1175_v37 = vmul.f32 %v5895_v9, %v6099_v61  ;;  %v1699_v6 = vmul.f32 %v6081_v48, %v6235_v2  ;;  %v9001_v9 = vld [vmem:[#allocation48_spill] sm:$0xff] }
 0x15f   : > { %v6262_v43 = vmul.f32 %v5951_v40, %v5954_v44  ;;  %v1304_v21 = vmul.f32 %v5903_v14, %v988_v28  ;;  %v6265_v15 = vadd.f32 %v1696_v50, %v1662_v58  ;;  %2063 = vst [vmem:[#allocation1] ss:$2 sm:$0xff] %v6250_v45  ;;  %v1665_v39 = vadd.f32 %v1633_v32, %v1599_v27  ;;  %v6276_v11 = vpop.f32.mrf.mxu1 }
 0x160   : > { %v1275_v33 = vadd.f32 %v1243_v55, %v1177_v49  ;;  %v1437_v61 = vmul.f32 %v5970_v41, %v6000_v57  ;;  %v6272_v30 = vmul.f32 %v5951_v40, %v6008_v31  ;;  %v1372_v52 = vmul.f32 %v5926_v26, %v6033_v1 }
 0x161   : > { %9000 = vst [vmem:[#allocation56_spill] sm:$0xff] %v6265_v15  ;;  %v6280_v58 = vmul.f32 %v5980_v8, %v9001_v9  ;;  %1999 = vrot.lane.b32.xlu1 %v6265_v15, %s5463_s5  ;;  %v8803_v57 = vrot.slane %v6265_v15, 4  ;;  %v6286_v32 = vadd.f32 %v1699_v6, %v1665_v39  ;;  %v1309_v49 = vmul.f32 %v5914_v20, %v6087_v35 }
 0x162   : > { %v1469_v31 = vadd.f32 %v1437_v61, %v1403_v23  ;;  %v1273_v1 = vadd.f32 %v1241_v4, %v1175_v37  ;;  %v8806_v50 = vrot.slane %v6127_v12, 4  ;;  %v6293_v9 = vmul.f32 %v5970_v41, %v6063_v34 }
 0x163   : > { %v1503_v27 = vmul.f32 %v5989_v13, %v6087_v35  ;;  %2007 = vrot.lane.b32.xlu2 %v8803_v57, %s5463_s5  ;;  %v6301_v55 = vmul.f32 0.17677669, %v6286_v32  ;;  %v998_v4 = vrot.slane %v6069_v59, 1  ;;  %v1307_v37 = vmul.f32 %v5914_v20, %v6115_v3 }
 0x164   : > { %v9002_v6 = vrot.slane %v6129_v53, 7  ;;  %v9003_v39 = vrot.slane %v6063_v34, 7  ;;  %1959 = vrot.lane.b32.xlu0 %v8806_v50, %s5463_s5  ;;  %v1252_v61 = vmul.f32 %v5882_v5, %v6276_v11  ;;  %v1103_v57 = vsel %vm976_vm4, %v996_v63, %v995_v24 }
 0x165   : > { %v9005_v28 = vrot.slane %v6069_v59, 7  ;;  %v9006_v3 = vrot.slane %v6133_v47, 7  ;;  %v999_v15 = vrot.slane %v6133_v47, 1  ;;  %2065 = vst [vmem:[#allocation1 + $0x1] ss:$2 sm:$0xff] %v6301_v55  ;;  %v1246_v24 = vmul.f32 %v5882_v5, %v6069_v59 }
 0x166   : > { %v6312_v35 = vsel %vm829_vm3, %v9003_v39, %v9002_v6  ;;  %v9007_v6 = vrot.slane %v6276_v11, 7  ;;  %v9008_v39 = vrot.slane %v6200_v18, 7  ;;  %v1339_v63 = vadd.f32 %v1307_v37, %v1273_v1 }
 0x167   : > { %9004 = vst [vmem:[#allocation48_spill] sm:$0xff] %v6312_v35  ;;  %v917_v23 = vsel %vm829_vm3, %v9006_v3, %v9005_v28  ;;  %v1341_v12 = vadd.f32 %v1309_v49, %v1275_v33  ;;  %v1441_v28 = vmul.f32 %v5970_v41, %v6129_v53  ;;  %v1635_v3 = vmul.f32 %v6077_v16, %v6129_v53  ;;  %v6350_v49 = vpop.f32.mrf.mxu0 }
 0x168   : > { %v6332_v50 = vsel %vm829_vm3, %v9008_v39, %v9007_v6  ;;  %v1535_v19 = vadd.f32 %v1503_v27, %v1469_v31  ;;  %v1569_v34 = vmul.f32 %v6022_v46, %v6312_v35  ;;  %v6346_v6 = vsel %vm975_vm5, %v1103_v57, 0.0 }
 0x169   : > { %9009 = vst [vmem:[#allocation57_spill] sm:$0xff] %v6332_v50  ;;  %v1186_v20 = vmul.f32 %v5870_v0, %v6332_v50  ;;  %v1370_v33 = vmul.f32 %v5926_v26, %v6189_v17  ;;  %v6356_v37 = vsel %vm747_vm6, %v917_v23, 0.0  ;;  %1871 = vrot.lane.b32.xlu1 %v6250_v45, %s5463_s5  ;;  %v8825_v27 = vrot.slane %v6230_v7, 4 }
 0x16a   : > { %v1601_v31 = vadd.f32 %v1569_v34, %v1535_v19  ;;  %v6362_v57 = vsel %vm976_vm4, %v998_v4, %v999_v15  ;;  %v1180_v39 = vmul.f32 %v5870_v0, %v6356_v37  ;;  %v1502_v23 = vmul.f32 %v5980_v8, %v6225_v10 }
 0x16b   : > { %v6352_v1 = vadd.f32 %v1252_v61, %v1186_v20  ;;  %v1373_v20 = vmul.f32 %v5923_v25, %v6193_v56  ;;  %v1375_v61 = vmul.f32 %v5923_v25, %v6312_v35  ;;  %v1336_v41 = vadd.f32 %v1304_v21, %v6237_v51  ;;  %1895 = vrot.lane.b32.xlu2 %v8825_v27, %s5463_s5 }
 0x16c   : > { %v846_v19 = vrot.slane %v6256_v42, 7  ;;  %v777_v34 = vrot.slane %v6350_v49, 7  ;;  %v1312_v53 = vmul.f32 %v5903_v14, %v6362_v57  ;;  %v6380_v50 = vld.sshfl [vmem:[#allocation1] sm:$0xff pattern:$0x75316420]  ;;  %v1701_v25 = vmul.f32 %v6081_v48, %v6346_v6 }
 0x16d   : > { %9010 = vst [vmem:[#allocation58_spill] sm:$0xff] %v6352_v1  ;;  %v1278_v1 = vadd.f32 %v1246_v24, %v1180_v39  ;;  %v1402_v35 = vadd.f32 %v1370_v33, %v1336_v41  ;;  %v1104_v51 = vsel %vm976_vm4, %v999_v15, %v998_v4  ;;  %v1404_v21 = vadd.f32 %v1372_v52, %v6239_v62 }
 0x16e   : > { %9011 = vst [vmem:[#allocation59_spill] sm:$0xff] %v6380_v50  ;;  %v1667_v56 = vadd.f32 %v1635_v3, %v1601_v31  ;;  %v1568_v24 = vmul.f32 %v6013_v38, %v6356_v37  ;;  %v6393_v39 = vsel %vm975_vm5, %v1104_v51, 0.0  ;;  %v1407_v52 = vadd.f32 %v1375_v61, %v1341_v12  ;;  %v9012_v31 = vld [vmem:[#allocation55_spill] sm:$0xff]  ;;  %v9014_v61 = vld [vmem:[#allocation46_spill] sm:$0xff] }
 0x16f   : > { %2072 = vst [vmem:[#allocation1] ss:$2 sm:$0xff] %v6143_v22  ;;  %v6387_v8 = vadd.f32 %v1312_v53, %v1278_v1  ;;  %v1468_v41 = vadd.f32 %v6262_v43, %v1402_v35  ;;  %v1314_v15 = vmul.f32 %v5903_v14, %v6393_v39  ;;  %v1470_v62 = vadd.f32 %v6272_v30, %v1404_v21 }
 0x170   : > { %2074 = vst [vmem:[#allocation1 + $0x1] ss:$2 sm:$0xff] %v6286_v32  ;;  %v1570_v53 = vmul.f32 %v6013_v38, %v6185_v36  ;;  %v1505_v4 = vmul.f32 %v5989_v13, %v6235_v2  ;;  %v918_v3 = vsel %vm829_vm3, %v777_v34, %v846_v19  ;;  %v1791_v33 = vrot.slane %v6250_v45, 4 }
 0x171   : > { %v1534_v1 = vadd.f32 %v1502_v23, %v1468_v41  ;;  %v6407_v51 = vadd.f32 %v1314_v15, %v9012_v31  ;;  %v1536_v43 = vadd.f32 %v6280_v58, %v1470_v62  ;;  %v1405_v35 = vadd.f32 %v1373_v20, %v1339_v63 }
 0x172   : > { %v1507_v30 = vmul.f32 %v5989_v13, %v6346_v6  ;;  %v6413_v21 = vsel %vm829_vm3, %v846_v19, %v777_v34  ;;  %1879 = vrot.lane.b32.xlu1 %v1791_v33, %s5463_s5  ;;  %v6416_v12 = vadd.f32 %v1701_v25, %v1667_v56  ;;  %v1634_v45 = vmul.f32 %v9014_v61, %v6069_v59 }
 0x173   : > { %9013 = vst [vmem:[#allocation55_spill] sm:$0xff] %v6407_v51  ;;  %v1600_v23 = vadd.f32 %v1568_v24, %v1534_v1  ;;  %v1602_v41 = vadd.f32 %v1570_v53, %v1536_v43  ;;  %v1636_v15 = vmul.f32 %v9014_v61, %v6133_v47  ;;  %v1471_v58 = vadd.f32 %v6293_v9, %v1405_v35 }
 0x174   : > { %v1473_v63 = vadd.f32 %v1441_v28, %v1407_v52  ;;  %v1001_v20 = vrot.slane %v6256_v42, 1  ;;  %v6426_v19 = vsel %vm747_vm6, %v918_v3, 0.0  ;;  %v1002_v25 = vrot.slane %v6350_v49, 1  ;;  %1953 = vrot.lane.b32.xlu2 %v6416_v12, %s5463_s5 }
 0x175   : > { %v1176_v56 = vmul.f32 %v5870_v0, %v6189_v17  ;;  %v1666_v34 = vadd.f32 %v1634_v45, %v1600_v23  ;;  %v1700_v24 = vmul.f32 %v6055_v29, %v6362_v57  ;;  %v1668_v9 = vadd.f32 %v1636_v15, %v1602_v41 }
 0x176   : > { %v9015_v28 = vrot.slane %v6200_v18, 7  ;;  %v9016_v62 = vrot.slane %v6276_v11, 7  ;;  %v1793_v52 = vrot.slane %v6301_v55, 4  ;;  %v1702_v1 = vmul.f32 %v6055_v29, %v6393_v39 }
 0x177   : > { %v6441_v3 = vld.sshfl [vmem:[#allocation1] sm:$0xff pattern:$0x75316420]  ;;  %v1573_v17 = vmul.f32 %v6022_v46, %v6413_v21  ;;  %v1637_v31 = vmul.f32 %v6077_v16, %v6256_v42  ;;  %v6449_v43 = vadd.f32 %v1700_v24, %v1666_v34  ;;  %v1537_v35 = vadd.f32 %v1505_v4, %v1471_v58  ;;  %v6466_v34 = vpop.f32.mrf.mxu0 }
 0x178   : > { %v919_v53 = vsel %vm829_vm3, %v9016_v62, %v9015_v28  ;;  %2117 = vst [vmem:[#allocation1] ss:$2 sm:$0xff] %v1791_v33  ;;  %v1571_v45 = vmul.f32 %v6022_v46, %v6426_v19  ;;  %v1242_v23 = vmul.f32 %v5882_v5, %v5954_v44  ;;  %v1539_v41 = vadd.f32 %v1507_v30, %v1473_v63  ;;  %v6468_v44 = vpop.f32.mrf.mxu1 }
 0x179   : > { %9017 = vst [vmem:[#allocation60_spill] sm:$0xff] %v6449_v43  ;;  %v1105_v15 = vsel %vm976_vm4, %v1002_v25, %v1001_v20  ;;  %v6456_v28 = vadd.f32 %v1702_v1, %v1668_v9  ;;  %2001 = vrot.lane.b32.xlu0 %v6449_v43, %s5463_s5  ;;  %v6462_v33 = vsel %vm747_vm6, %v919_v53, 0.0  ;;  %v1639_v58 = vmul.f32 %v6077_v16, %v6350_v49 }
 0x17a   : > { %2119 = vst [vmem:[#allocation1 + $0x1] ss:$2 sm:$0xff] %v1793_v52  ;;  %v1603_v62 = vadd.f32 %v1571_v45, %v1537_v35  ;;  %v1274_v4 = vadd.f32 %v1242_v23, %v1176_v56  ;;  %v1605_v30 = vadd.f32 %v1573_v17, %v1539_v41  ;;  %v6473_v63 = vsel %vm976_vm4, %v1001_v20, %v1002_v25 }
 0x17b   : > { %9018 = vst [vmem:[#allocation61_spill] sm:$0xff] %v6456_v28  ;;  %2017 = vrot.lane.b32.xlu1 %v6456_v28, %s5463_s5  ;;  %v6477_v24 = vsel %vm975_vm5, %v1105_v15, 0.0  ;;  %v1703_v56 = vmul.f32 %v6081_v48, %v6473_v63  ;;  %v1308_v53 = vmul.f32 %v5903_v14, %v6225_v10  ;;  %v1374_v1 = vmul.f32 %v5926_v26, %v6356_v37 }
 0x17c   : > { %v1669_v9 = vadd.f32 %v1637_v31, %v1603_v62  ;;  %1881 = vrot.lane.b32.xlu2 %v1793_v52, %s5463_s5  ;;  %v1378_v20 = vmul.f32 %v5926_v26, %v6462_v33  ;;  %v1444_v31 = vmul.f32 %v5951_v40, %v6200_v18  ;;  %v1671_v35 = vadd.f32 %v1639_v58, %v1605_v30 }
 0x17d   : > { %v1340_v17 = vadd.f32 %v1308_v53, %v1274_v4  ;;  %v1705_v45 = vmul.f32 %v6081_v48, %v6477_v24  ;;  %v1825_v10 = vrot.slane %v6286_v32, 4  ;;  %v9021_v52 = vrot.slane %v6143_v22, 4 }
 0x17e   : > { %v6488_v25 = vadd.f32 %v1703_v56, %v1669_v9  ;;  %v1410_v15 = vadd.f32 %v1378_v20, %v6387_v8  ;;  %v1376_v62 = vmul.f32 %v5926_v26, %v6185_v36  ;;  %v1440_v4 = vmul.f32 %v5951_v40, %v6069_v59  ;;  %v9025_v9 = vld [vmem:[#allocation50_spill] sm:$0xff]  ;;  %v9026_v59 = vld [vmem:[#allocation45_spill] sm:$0xff] }
 0x17f   : > { %v1406_v41 = vadd.f32 %v1374_v1, %v1340_v17  ;;  %v6508_v58 = vpop.f32.mrf.mxu0  ;;  %v6514_v22 = vadd.f32 %v1705_v45, %v1671_v35  ;;  %v1506_v53 = vmul.f32 %v9026_v59, %v6362_v57  ;;  %v1442_v17 = vmul.f32 %v5951_v40, %v6133_v47 }
 0x180   : > { %9019 = vst [vmem:[#allocation62_spill] sm:$0xff] %v6488_v25  ;;  %v6498_v37 = vmul.f32 0.17677669, %v6488_v25  ;;  %v6510_v30 = vpop.f32.mrf.mxu1  ;;  %v6517_v8 = vadd.f32 %v1444_v31, %v1410_v15  ;;  %v1408_v56 = vadd.f32 %v1376_v62, %v9025_v9  ;;  %v1004_v31 = vrot.slane %v6200_v18, 1  ;;  %v9029_v15 = vld [vmem:[#allocation40_spill] sm:$0xff]  ;;  %v9031_v9 = vld [vmem:[#allocation38_spill] sm:$0xff] }
 0x181   : > { %v6495_v23 = vld.sshfl [vmem:[#allocation1] sm:$0xff pattern:$0x75316420]  ;;  %1945 = vrot.lane.b32.xlu0 %v1825_v10, %s5463_s5  ;;  %9022 = vst [vmem:[#allocation64_spill] sm:$0xff] %v6510_v30  ;;  %v1472_v36 = vadd.f32 %v1440_v4, %v1406_v41  ;;  %v8829_v20 = vrot.slane %v6510_v30, 7  ;;  %v8826_v35 = vrot.slane %v6449_v43, 4  ;;  %v1256_v50 = vmul.f32 %v5882_v5, %v6510_v30 }
 0x182   : > { %9020 = vst [vmem:[#allocation63_spill] sm:$0xff] %v6495_v23  ;;  %v1005_v45 = vrot.slane %v6276_v11, 1  ;;  %v9028_v41 = vld [vmem:[#allocation49_spill] sm:$0xff]  ;;  %v9030_v4 = vld [vmem:[#allocation54_spill] sm:$0xff]  ;;  %v1474_v1 = vadd.f32 %v1442_v17, %v1408_v56  ;;  %v9032_v47 = vrot.slane %v6468_v44, 7  ;;  %v1638_v56 = vmul.f32 %v9014_v61, %v6200_v18 }
 0x183   : > { %2126 = vst [vmem:[#allocation1] ss:$2 sm:$0xff] %v9021_v52  ;;  %1937 = vrot.lane.b32.xlu1 %v6286_v32, %s5463_s5  ;;  %v1572_v32 = vmul.f32 %v6013_v38, %v6462_v33  ;;  %v1538_v52 = vadd.f32 %v1506_v53, %v1472_v36  ;;  %v1245_v62 = vmul.f32 %v9029_v15, %v9028_v41  ;;  %v9035_v43 = vld [vmem:[#allocation57_spill] sm:$0xff] }
 0x184   : > { %2128 = vst [vmem:[#allocation1 + $0x1] ss:$2 sm:$0xff] %v1825_v10  ;;  %1955 = vrot.lane.b32.xlu2 %v6514_v22, %s5463_s5  ;;  %v6534_v10 = vmul.f32 0.17677669, %v6416_v12  ;;  %v1179_v27 = vmul.f32 %v9031_v9, %v9030_v4  ;;  %v6552_v36 = vsel %vm829_vm3, %v9032_v47, %v8829_v20  ;;  %v1508_v17 = vmul.f32 %v9026_v59, %v6393_v39  ;;  %v9037_v23 = vld [vmem:[#allocation53_spill] sm:$0xff] }
 0x185   : > { %9023 = vst [vmem:[#allocation65_spill] sm:$0xff] %v6514_v22  ;;  %v1604_v41 = vadd.f32 %v1572_v32, %v1538_v52  ;;  %v1190_v4 = vmul.f32 %v5870_v0, %v6552_v36  ;;  %v1574_v47 = vmul.f32 %v6013_v38, %v9035_v43  ;;  %v6569_v20 = vsel %vm976_vm4, %v1004_v31, %v1005_v45  ;;  %v9036_v32 = vld [vmem:[#allocation48_spill] sm:$0xff] }
 0x186   : > { %2067 = vst [vmem:[#allocation1 + $0x10] ss:$2 sm:$0xff] %v6498_v37  ;;  %v1181_v52 = vmul.f32 %v9031_v9, %v9036_v32  ;;  %v1247_v39 = vmul.f32 %v9029_v15, %v9037_v23  ;;  %v1106_v28 = vsel %vm976_vm4, %v1005_v45, %v1004_v31  ;;  %v1540_v51 = vadd.f32 %v1508_v17, %v1474_v1  ;;  %v9040_v31 = vld [vmem:[#allocation42_spill] sm:$0xff] }
 0x187   : > { %9024 = vst [vmem:[#allocation66_spill] sm:$0xff] %v6517_v8  ;;  %v1277_v8 = vadd.f32 %v1245_v62, %v1179_v27  ;;  %v6584_v32 = vadd.f32 %v1256_v50, %v1190_v4  ;;  %v1670_v59 = vadd.f32 %v1638_v56, %v1604_v41  ;;  %v1704_v23 = vmul.f32 %v6055_v29, %v6569_v20  ;;  %v9042_v56 = vld [vmem:[#allocation52_spill] sm:$0xff] }
 0x188   : > { %9033 = vst [vmem:[#allocation49_spill] sm:$0xff] %v6552_v36  ;;  %v6554_v53 = vpop.f32.mrf.mxu1  ;;  %v1250_v36 = vmul.f32 %v5882_v5, %v6200_v18  ;;  %v1794_v30 = vrot.slane %v6534_v10, 4  ;;  %v1606_v27 = vadd.f32 %v1574_v47, %v1540_v51  ;;  %v1279_v1 = vadd.f32 %v1247_v39, %v1181_v52 }
 0x189   : > { %2009 = vrot.lane.b32.xlu0 %v8826_v35, %s5463_s5  ;;  %9034 = vst [vmem:[#allocation54_spill] sm:$0xff] %v6554_v53  ;;  %v6562_v35 = vpop.f32.mrf.mxu0  ;;  %v1184_v50 = vmul.f32 %v5870_v0, %v6462_v33  ;;  %v1377_v45 = vmul.f32 %v9040_v31, %v6426_v19  ;;  %v8841_v51 = vrot.slane %v6416_v12, 4  ;;  %v9044_v33 = vld [vmem:[#allocation58_spill] sm:$0xff]  ;;  %v6615_v52 = vadd.f32 %v1704_v23, %v1670_v59 }
 0x18a   : > { %9039 = vst [vmem:[#allocation38_spill] sm:$0xff] %v6584_v32  ;;  %v1183_v59 = vmul.f32 %v9031_v9, %v6426_v19  ;;  %v8844_v19 = vrot.slane %v6554_v53, 1  ;;  %v9055_v32 = vrot.slane %v6508_v58, 7 }
 0x18b   : > { %v6536_v57 = vld.sshfl [vmem:[#allocation1] sm:$0xff pattern:$0x75316420]  ;;  %1889 = vrot.lane.b32.xlu1 %v6534_v10, %s5463_s5  ;;  %v1282_v47 = vadd.f32 %v1250_v36, %v1184_v50  ;;  %9045 = vst [vmem:[#allocation53_spill] sm:$0xff] %v6615_v52  ;;  %v1185_v50 = vmul.f32 %v9031_v9, %v6413_v21 }
 0x18c   : > { %9027 = vst [vmem:[#allocation50_spill] sm:$0xff] %v6536_v57  ;;  %1939 = vrot.lane.b32.xlu2 %v6488_v25, %s5463_s5  ;;  %v9038_v57 = vld [vmem:[#allocation41_spill] sm:$0xff]  ;;  %v6591_v25 = vsel %vm975_vm5, %v1106_v28, 0.0 }
 0x18d   : > { %2170 = vst [vmem:[#allocation1] ss:$2 sm:$0xff] %v6230_v7  ;;  %v1311_v38 = vmul.f32 %v9038_v57, %v6235_v2  ;;  %v1640_v2 = vmul.f32 %v9014_v61, %v6276_v11  ;;  %v1318_v18 = vmul.f32 %v5903_v14, %v6591_v25  ;;  %v1313_v41 = vmul.f32 %v9038_v57, %v6346_v6 }
 0x18e   : > { %2172 = vst [vmem:[#allocation1 + $0x1] ss:$2 sm:$0xff] %v6534_v10  ;;  %v1706_v6 = vmul.f32 %v6055_v29, %v6591_v25  ;;  %v1249_v10 = vmul.f32 %v9029_v15, %v6256_v42  ;;  %v8845_v29 = vrot.slane %v6554_v53, 7  ;;  %v8858_v53 = vrot.slane %v6562_v35, 7 }
 0x18f   : > { %v6613_v4 = vadd.f32 %v1318_v18, %v9044_v33  ;;  %v1343_v39 = vadd.f32 %v1311_v38, %v1277_v8  ;;  %v1672_v28 = vadd.f32 %v1640_v2, %v1606_v27  ;;  %v9046_v18 = vld [vmem:[#allocation44_spill] sm:$0xff]  ;;  %v9047_v38 = vrot.slane %v6466_v34, 7 }
 0x190   : > { %v6610_v17 = vpop.f32.mrf.mxu1  ;;  %v1443_v33 = vmul.f32 %v9046_v18, %v6256_v42  ;;  %v9048_v8 = vrot.slane %v6508_v58, 7  ;;  %v1379_v42 = vmul.f32 %v9040_v31, %v6413_v21 }
 0x191   : > { %1897 = vrot.lane.b32.xlu0 %v1794_v30, %s5463_s5  ;;  %9043 = vst [vmem:[#allocation48_spill] sm:$0xff] %v6610_v17  ;;  %v6637_v23 = vpop.f32.mrf.mxu0  ;;  %v8843_v27 = vrot.slane %v6610_v17, 7  ;;  %v1409_v2 = vadd.f32 %v1377_v45, %v1343_v39  ;;  %v6646_v61 = vadd.f32 %v1706_v6, %v1672_v28  ;;  %v1281_v45 = vadd.f32 %v1249_v10, %v1183_v59 }
 0x192   : > { %v920_v36 = vsel %vm829_vm3, %v9048_v8, %v9047_v38  ;;  %9049 = vst [vmem:[#allocation41_spill] sm:$0xff] %v6637_v23  ;;  %v1445_v38 = vmul.f32 %v9046_v18, %v6350_v49  ;;  %v1315_v39 = vmul.f32 %v9038_v57, %v6473_v63  ;;  %v1007_v6 = vrot.slane %v6466_v34, 1 }
 0x193   : > { %1961 = vrot.lane.b32.xlu1 %v8841_v51, %s5463_s5  ;;  %v1345_v51 = vadd.f32 %v1313_v41, %v1279_v1  ;;  %9050 = vst [vmem:[#allocation52_spill] sm:$0xff] %v6646_v61  ;;  %v6652_v8 = vsel %vm747_vm6, %v920_v36, 0.0  ;;  %v6663_v1 = vsel %vm829_vm3, %v8845_v29, %v8843_v27  ;;  %v1475_v10 = vadd.f32 %v1443_v33, %v1409_v2 }
 0x194   : > { %2003 = vrot.lane.b32.xlu2 %v6615_v52, %s5463_s5  ;;  %v9052_v21 = vrot.slane %v6610_v17, 1  ;;  %v1260_v36 = vmul.f32 %v5882_v5, %v6610_v17  ;;  %v1008_v27 = vrot.slane %v6508_v58, 1  ;;  %v1316_v33 = vmul.f32 %v5903_v14, %v6569_v20 }
 0x195   : > { %v6601_v62 = vld.sshfl [vmem:[#allocation1] sm:$0xff pattern:$0x75316420]  ;;  %v1411_v28 = vadd.f32 %v1379_v42, %v1345_v51  ;;  %v1575_v2 = vmul.f32 %v6022_v46, %v6652_v8  ;;  %v1194_v42 = vmul.f32 %v5870_v0, %v6663_v1  ;;  %v8854_v17 = vrot.slane %v6646_v61, 4 }
 0x196   : > { %9041 = vst [vmem:[#allocation57_spill] sm:$0xff] %v6601_v62  ;;  %v1251_v62 = vmul.f32 %v9029_v15, %v6350_v49  ;;  %v1509_v49 = vmul.f32 %v5989_v13, %v6473_v63  ;;  %v1110_v59 = vsel %vm976_vm4, %v9052_v21, %v8844_v19  ;;  %v9053_v63 = vrot.slane %v6230_v7, 4 }
 0x197   : > { %2179 = vst [vmem:[#allocation1] ss:$2 sm:$0xff] %v9042_v56  ;;  %v6684_v51 = vsel %vm975_vm5, %v1110_v59, 0.0  ;;  %v1381_v7 = vmul.f32 %v9040_v31, %v6652_v8  ;;  %v1347_v59 = vadd.f32 %v1315_v39, %v1281_v45  ;;  %v1477_v29 = vadd.f32 %v1445_v38, %v1411_v28 }
 0x198   : > { %2181 = vst [vmem:[#allocation1 + $0x1] ss:$2 sm:$0xff] %v6416_v12  ;;  %v1326_v21 = vmul.f32 %v5903_v14, %v6684_v51  ;;  %v1541_v19 = vadd.f32 %v1509_v49, %v1475_v10  ;;  %v1292_v45 = vadd.f32 %v1260_v36, %v1194_v42  ;;  %v1447_v39 = vmul.f32 %v9046_v18, %v6466_v34 }
 0x199   : > { %2019 = vrot.lane.b32.xlu0 %v6646_v61, %s5463_s5  ;;  %9054 = vst [vmem:[#allocation67_spill] sm:$0xff] %v6684_v51  ;;  %v6711_v51 = vpop.f32.mrf.mxu0  ;;  %v6713_v0 = vadd.f32 %v1316_v33, %v1282_v47  ;;  %v9056_v49 = vrot.slane %v6466_v34, 7  ;;  %v1413_v28 = vadd.f32 %v1381_v7, %v1347_v59  ;;  %v6729_v47 = vmul.f32 0.17677669, %v6514_v22 }
 0x19a   : > { %v6721_v10 = vadd.f32 %v1326_v21, %v1292_v45  ;;  %v1283_v33 = vadd.f32 %v1251_v62, %v1185_v50  ;;  %v9059_v59 = vrot.slane %v9042_v56, 4  ;;  %v8855_v45 = vrot.slane %v6498_v37, 4 }
 0x19b   : > { %1873 = vrot.lane.b32.xlu1 %v6301_v55, %s5463_s5  ;;  %v1511_v55 = vmul.f32 %v5989_v13, %v6477_v24  ;;  %v852_v38 = vsel %vm829_vm3, %v9056_v49, %v9055_v32  ;;  %v1479_v50 = vadd.f32 %v1447_v39, %v1413_v28  ;;  %v9060_v56 = vrot.slane %v6416_v12, 4 }
 0x19c   : > { %2081 = vrot.lane.b32.xlu2 %v6441_v3, %s5464_s20  ;;  %v1607_v3 = vadd.f32 %v1575_v2, %v1541_v19  ;;  %9057 = vst [vmem:[#allocation68_spill] sm:$0xff] %v6721_v10  ;;  %v1317_v2 = vmul.f32 %v9038_v57, %v6477_v24  ;;  %v1577_v21 = vmul.f32 %v6022_v46, %v852_v38 }
 0x19d   : > { %v1543_v7 = vadd.f32 %v1511_v55, %v1477_v29  ;;  %v1107_v24 = vsel %vm976_vm4, %v1008_v27, %v1007_v6  ;;  %v8857_v29 = vrot.slane %v6562_v35, 1  ;;  %v6761_v49 = vmul.f32 %v5951_v40, %v6276_v11 }
 0x19e   : > { %v1643_v28 = vmul.f32 %v6077_v16, %v6508_v58  ;;  %v1143_v12 = vsel %vm975_vm5, %v1107_v24, 0.0  ;;  %v1645_v24 = vmul.f32 %v6077_v16, %v6562_v35 }
 0x19f   : > { %v6669_v41 = vld.sshfl [vmem:[#allocation1] sm:$0xff pattern:$0x75316420]  ;;  %v1609_v39 = vadd.f32 %v1577_v21, %v1543_v7  ;;  %v8862_v21 = vrot.slane %v6514_v22, 4  ;;  %v1255_v22 = vmul.f32 %v9029_v15, %v6508_v58 }
 0x1a0   : > { %9051 = vst [vmem:[#allocation58_spill] sm:$0xff] %v6669_v41  ;;  %v8859_v41 = vrot.slane %v6637_v23, 7 }
 0x1a1   : > { %2223 = vst [vmem:[#allocation1] ss:$2 sm:$0xff] %v9053_v63  ;;  %v1641_v63 = vmul.f32 %v6077_v16, %v6466_v34  ;;  %2027 = vrot.lane.b32.xlu0 %v8854_v17, %s5463_s5  ;;  %v6786_v7 = vpop.f32.mrf.mxu0 }
 0x1a2   : > { %2225 = vst [vmem:[#allocation1 + $0x1] ss:$2 sm:$0xff] %v1794_v30  ;;  %v6705_v30 = vsel %vm976_vm4, %v1007_v6, %v1008_v27  ;;  %v922_v32 = vsel %vm829_vm3, %v8859_v41, %v8858_v53  ;;  %v1349_v27 = vadd.f32 %v1317_v2, %v1283_v33  ;;  %v1380_v6 = vmul.f32 %v5926_v26, %v9035_v43  ;;  %v9062_v33 = vld [vmem:[#allocation64_spill] sm:$0xff] }
 0x1a3   : > { %v1707_v36 = vmul.f32 %v6081_v48, %v6705_v30  ;;  %v1673_v19 = vadd.f32 %v1641_v63, %v1607_v3  ;;  %1891 = vrot.lane.b32.xlu1 %v6729_v47, %s5463_s5  ;;  %v1513_v62 = vmul.f32 %v5989_v13, %v6705_v30  ;;  %v6754_v55 = vsel %vm747_vm6, %v922_v32, 0.0 }
 0x1a4   : > { %v8856_v3 = vrot.slane %v6637_v23, 1  ;;  %1883 = vrot.lane.b32.xlu2 %v8855_v45, %s5463_s5  ;;  %v1010_v32 = vrot.slane %v6468_v44, 1  ;;  %v1011_v2 = vrot.slane %v9062_v33, 1  ;;  %v9066_v45 = vld [vmem:[#allocation62_spill] sm:$0xff]  ;;  %v1383_v53 = vmul.f32 %v9040_v31, %v852_v38 }
 0x1a5   : > { %v6745_v63 = vadd.f32 %v1707_v36, %v1673_v19  ;;  %v1579_v36 = vmul.f32 %v6022_v46, %v6754_v55  ;;  %v1545_v19 = vadd.f32 %v1513_v62, %v1479_v50  ;;  %v9064_v62 = vrot.slane %v9062_v33, 7 }
 0x1a6   : > { %v6784_v43 = vsel %vm976_vm4, %v8857_v29, %v8856_v3  ;;  %v1253_v29 = vmul.f32 %v9029_v15, %v6466_v34  ;;  %v1675_v41 = vadd.f32 %v1643_v28, %v1609_v39  ;;  %v1108_v39 = vsel %vm976_vm4, %v1011_v2, %v1010_v32 }
 0x1a7   : > { %v6775_v11 = vmul.f32 0.17677669, %v6745_v63  ;;  %v1611_v61 = vadd.f32 %v1579_v36, %v1545_v19  ;;  %v1711_v3 = vmul.f32 %v6081_v48, %v6784_v43  ;;  %v1187_v19 = vmul.f32 %v9031_v9, %v6652_v8  ;;  %v6854_v8 = vpop.f32.mrf.mxu1 }
 0x1a8   : > { %v6842_v10 = vsel %vm975_vm5, %v1108_v39, 0.0 }
 0x1a9   : > { %v6738_v42 = vld.sshfl [vmem:[#allocation1] sm:$0xff pattern:$0x75316420]  ;;  %9061 = vst [vmem:[#allocation70_spill] sm:$0xff] %v6775_v11  ;;  %1875 = vrot.lane.b32.xlu0 %v6498_v37, %s5463_s5 }
 0x1aa   : > { %9058 = vst [vmem:[#allocation69_spill] sm:$0xff] %v6738_v42  ;;  %v9067_v42 = vld [vmem:[#allocation49_spill] sm:$0xff] }
 0x1ab   : > { %2232 = vst [vmem:[#allocation1] ss:$2 sm:$0xff] %v9059_v59  ;;  %v9063_v59 = vrot.slane %v6468_v44, 7  ;;  %1963 = vrot.lane.b32.xlu1 %v8862_v21, %s5463_s5  ;;  %v1384_v34 = vmul.f32 %v5926_v26, %v9067_v42  ;;  %v6824_v21 = vsel %vm976_vm4, %v1010_v32, %v1011_v2  ;;  %v1450_v32 = vmul.f32 %v5951_v40, %v9062_v33 }
 0x1ac   : > { %2234 = vst [vmem:[#allocation1 + $0x1] ss:$2 sm:$0xff] %v9060_v56  ;;  %v9065_v56 = vld [vmem:[#allocation45_spill] sm:$0xff]  ;;  %1941 = vrot.lane.b32.xlu2 %v6745_v63, %s5463_s5 }
 0x1ad   : > { %v921_v50 = vsel %vm829_vm3, %v9064_v62, %v9063_v59  ;;  %v6800_v17 = vmul.f32 %v9065_v56, %v6591_v25  ;;  %2069 = vst [vmem:[#allocation1 + $0x11] ss:$2 sm:$0xff] %v6775_v11  ;;  %v1709_v59 = vmul.f32 %v6081_v48, %v1143_v12  ;;  %v1448_v25 = vmul.f32 %v5951_v40, %v6468_v44 }
 0x1ae   : > { %v1189_v62 = vmul.f32 %v9031_v9, %v852_v38  ;;  %v6821_v28 = vsel %vm747_vm6, %v921_v50, 0.0  ;;  %v1449_v38 = vmul.f32 %v9046_v18, %v6508_v58  ;;  %v1677_v48 = vadd.f32 %v1645_v24, %v1611_v61 }
 0x1af   : > { %v1382_v36 = vmul.f32 %v5926_v26, %v6821_v28  ;;  %v1415_v50 = vadd.f32 %v1383_v53, %v1349_v27  ;;  %v6838_v2 = vadd.f32 %v1709_v59, %v1675_v41  ;;  %v1514_v61 = vmul.f32 %v9065_v56, %v6824_v21  ;;  %v9070_v27 = vld [vmem:[#allocation55_spill] sm:$0xff] }
 0x1b0   : > { %v6844_v58 = vadd.f32 %v1711_v3, %v1677_v48  ;;  %v9069_v53 = vrot.slane %v9066_v45, 4  ;;  %v8866_v41 = vrot.slane %v6615_v52, 4  ;;  %v1412_v59 = vadd.f32 %v1380_v6, %v9070_v27  ;;  %v6870_v6 = vpop.f32.mrf.mxu0 }
 0x1b1   : > { %v1414_v24 = vadd.f32 %v1382_v36, %v6713_v0  ;;  %v1516_v3 = vmul.f32 %v9065_v56, %v6842_v10  ;;  %v1416_v39 = vadd.f32 %v1384_v34, %v6613_v4  ;;  %v1287_v48 = vadd.f32 %v1255_v22, %v1189_v62 }
 0x1b2   : > { %1947 = vrot.lane.b32.xlu0 %v9069_v53, %s5463_s5  ;;  %v1321_v0 = vmul.f32 %v9038_v57, %v1143_v12  ;;  %v1319_v22 = vmul.f32 %v9038_v57, %v6705_v30  ;;  %v1285_v4 = vadd.f32 %v1253_v29, %v1187_v19  ;;  %v6878_v62 = vmul.f32 0.17677669, %v6844_v58 }
 0x1b3   : > { %v6862_v36 = vld.sshfl [vmem:[#allocation1] sm:$0xff pattern:$0x75316420]  ;;  %v1480_v53 = vadd.f32 %v1448_v25, %v1414_v24  ;;  %2011 = vrot.lane.b32.xlu1 %v8866_v41, %s5463_s5  ;;  %v1481_v34 = vadd.f32 %v1449_v38, %v1415_v50  ;;  %v1515_v27 = vmul.f32 %v5989_v13, %v1143_v12  ;;  %v6882_v25 = vmul.f32 0.17677669, %v6838_v2 }
 0x1b4   : > { %v6849_v15 = vld.sshfl [vmem:[#allocation1 + $0x10] sm:$0xff pattern:$0x75316420]  ;;  %9071 = vst [vmem:[#allocation62_spill] sm:$0xff] %v6862_v36  ;;  %v9074_v36 = vrot.slane %v6637_v23, 7  ;;  %v9075_v41 = vrot.slane %v6562_v35, 7  ;;  %v1478_v29 = vadd.f32 %v6761_v49, %v1412_v59  ;;  %v1254_v12 = vmul.f32 %v5882_v5, %v6468_v44  ;;  %v6941_v5 = vpop.f32.mrf.mxu1 }
 0x1b5   : > { %9068 = vst [vmem:[#allocation64_spill] sm:$0xff] %v6849_v15  ;;  %v6866_v15 = vmul.f32 %v9065_v56, %v6569_v20  ;;  %v1482_v20 = vadd.f32 %v1450_v32, %v1416_v39  ;;  %v6884_v24 = vadd.f32 %v1514_v61, %v1480_v53  ;;  %v8871_v30 = vrot.slane %v6729_v47, 4  ;;  %1893 = vrot.lane.b32.xlu2 %v6882_v25, %s5463_s5  ;;  %v6917_v53 = vpop.permute.xlu2 %2015  ;;  %v9082_v59 = vld [vmem:[#allocation48_spill] sm:$0xff] }
 0x1b6   : > { %2076 = vst [vmem:[#allocation1 + $0x10] ss:$2 sm:$0xff] %v9066_v45  ;;  %v6891_v52 = vsel %vm829_vm3, %v9075_v41, %v9074_v36  ;;  %v1353_v19 = vadd.f32 %v1321_v0, %v1287_v48  ;;  %v9078_v50 = vrot.slane %v6562_v35, 1  ;;  %v9079_v32 = vrot.slane %v6637_v23, 1 }
 0x1b7   : > { %2078 = vst [vmem:[#allocation1 + $0x11] ss:$2 sm:$0xff] %v6745_v63  ;;  %v6896_v38 = vadd.f32 %v1516_v3, %v1482_v20  ;;  %v1322_v49 = vmul.f32 %v5903_v14, %v6842_v10  ;;  %v1385_v41 = vmul.f32 %v9040_v31, %v6754_v55  ;;  %v1351_v39 = vadd.f32 %v1319_v22, %v1285_v4  ;;  %v9081_v4 = vld [vmem:[#allocation38_spill] sm:$0xff]  ;;  %v9089_v22 = vld [vmem:[#allocation47_spill] sm:$0xff] }
 0x1b8   : > { %9072 = vst [vmem:[#allocation49_spill] sm:$0xff] %v6878_v62  ;;  %v1109_v61 = vsel %vm976_vm4, %v9079_v32, %v9078_v50  ;;  %v1547_v48 = vadd.f32 %v1515_v27, %v1481_v34  ;;  %v1451_v0 = vmul.f32 %v9046_v18, %v6562_v35  ;;  %v1453_v36 = vmul.f32 %v9046_v18, %v6637_v23 }
 0x1b9   : > { %9073 = vst [vmem:[#allocation55_spill] sm:$0xff] %v6884_v24  ;;  %v1581_v20 = vmul.f32 %v6022_v46, %v6891_v52  ;;  %v1387_v50 = vmul.f32 %v9040_v31, %v6891_v52  ;;  %v1388_v32 = vmul.f32 %v5926_v26, %v6663_v1  ;;  %v1354_v34 = vadd.f32 %v1322_v49, %v9081_v4  ;;  %v6996_v31 = vld [vmem:[#allocation10 + $0x10] ss:$0 sm:$0xff] }
 0x1ba   : > { %9076 = vst [vmem:[#allocation71_spill] sm:$0xff] %v6891_v52  ;;  %1899 = vrot.lane.b32.xlu0 %v8871_v30, %s5463_s5  ;;  %v6932_v27 = vsel %vm975_vm5, %v1109_v61, 0.0  ;;  %v1647_v3 = vmul.f32 %v6077_v16, %v6637_v23  ;;  %v9085_v30 = vrot.slane %v6711_v51, 7  ;;  %v9086_v49 = vrot.slane %v6786_v7, 7 }
 0x1bb   : > { %2276 = vst [vmem:[#allocation1] ss:$2 sm:$0xff] %v6878_v62  ;;  %v9087_v61 = vrot.slane %v6498_v37, 4  ;;  %v1417_v52 = vadd.f32 %v1385_v41, %v1351_v39  ;;  %v1517_v62 = vmul.f32 %v5989_v13, %v6784_v43  ;;  %v9090_v18 = vrot.slane %v6775_v11, 4  ;;  %v6962_v41 = vpop.f32.mrf.mxu0 }
 0x1bc   : > { %9077 = vst [vmem:[#allocation72_spill] sm:$0xff] %v6896_v38  ;;  %v924_v4 = vsel %vm829_vm3, %v9086_v49, %v9085_v30  ;;  %v8883_v30 = vrot.slane %v6854_v8, 1  ;;  %v8881_v37 = vrot.slane %v6838_v2, 4  ;;  %v1613_v49 = vadd.f32 %v1581_v20, %v1547_v48  ;;  %v9092_v48 = vld [vmem:[#allocation36_spill] sm:$0xff] }
 0x1bd   : > { %9080 = vst [vmem:[#allocation73_spill] sm:$0xff] %v6917_v53  ;;  %v1454_v53 = vmul.f32 %v5951_v40, %v9082_v59  ;;  %v9088_v40 = vrot.slane %v6745_v63, 4  ;;  %v8884_v39 = vrot.slane %v6941_v5, 7  ;;  %v1544_v23 = vadd.f32 %v6800_v17, %v1478_v29 }
 0x1be   : > { %v6938_v24 = vld.sshfl [vmem:[#allocation1 + $0x10] sm:$0xff pattern:$0x75316420]  ;;  %9084 = vst [vmem:[#allocation48_spill] sm:$0xff] %v6941_v5  ;;  %1965 = vrot.lane.b32.xlu2 %v8881_v37, %s5463_s5  ;;  %v1188_v20 = vmul.f32 %v9092_v48, %v6821_v28  ;;  %v9093_v17 = vrot.slane %v6854_v8, 7  ;;  %v6994_v48 = vpop.permute.xlu2 %1943  ;;  %v1679_v38 = vadd.f32 %v1647_v3, %v1613_v49 }
 0x1bf   : > { %9083 = vst [vmem:[#allocation38_spill] sm:$0xff] %v6938_v24  ;;  %1949 = vrot.lane.b32.xlu1 %v9088_v40, %s5463_s5  ;;  %v1578_v24 = vmul.f32 %v9089_v22, %v9067_v42  ;;  %v1420_v40 = vadd.f32 %v1388_v32, %v1354_v34  ;;  %v6968_v42 = vsel %vm747_vm6, %v924_v4, 0.0  ;;  %v1483_v34 = vadd.f32 %v1451_v0, %v1417_v52  ;;  %v9094_v4 = vld [vmem:[#allocation67_spill] sm:$0xff] }
 0x1c0   : > { %2121 = vst [vmem:[#allocation1 + $0x10] ss:$2 sm:$0xff] %v9087_v61  ;;  %v1419_v61 = vadd.f32 %v1387_v50, %v1353_v19  ;;  %v6983_v29 = vsel %vm829_vm3, %v9093_v17, %v8884_v39  ;;  %v1520_v11 = vmul.f32 %v9065_v56, %v9094_v4  ;;  %v1519_v52 = vmul.f32 %v5989_v13, %v6932_v27  ;;  %v9098_v17 = vld [vmem:[#allocation50_spill] sm:$0xff] }
 0x1c1   : > { %2123 = vst [vmem:[#allocation1 + $0x11] ss:$2 sm:$0xff] %v9090_v18  ;;  %v9091_v18 = vld [vmem:[#allocation46_spill] sm:$0xff]  ;;  %v1486_v50 = vadd.f32 %v1454_v53, %v1420_v40  ;;  %v1610_v32 = vadd.f32 %v1578_v24, %v1544_v23  ;;  %v1713_v53 = vmul.f32 %v6996_v31, %v6932_v27  ;;  %v1019_v24 = vrot.slane %v6711_v51, 1 }
 0x1c2   : > { %v1644_v19 = vmul.f32 %v9091_v18, %v9062_v33  ;;  %v9095_v33 = vrot.slane %v6941_v5, 1  ;;  %v1485_v23 = vadd.f32 %v1453_v36, %v1419_v61  ;;  %1957 = vrot.lane.b32.xlu0 %v6838_v2, %s5463_s5  ;;  %v1286_v0 = vadd.f32 %v1254_v12, %v1188_v20 }
 0x1c3   : > { %v1020_v40 = vrot.slane %v6786_v7, 1  ;;  %v1583_v3 = vmul.f32 %v6022_v46, %v6968_v42  ;;  %v1586_v49 = vmul.f32 %v9089_v22, %v6983_v29  ;;  %v1320_v36 = vmul.f32 %v5903_v14, %v6824_v21 }
 0x1c4   : > { %v6992_v37 = vsel %vm976_vm4, %v9095_v33, %v8883_v30  ;;  %v1676_v33 = vadd.f32 %v1644_v19, %v1610_v32  ;;  %v7016_v30 = vld [vmem:[#allocation10 + $0x18] ss:$0 sm:$0xff]  ;;  %v1576_v20 = vmul.f32 %v9089_v22, %v6821_v28  ;;  %v1549_v39 = vadd.f32 %v1517_v62, %v1483_v34  ;;  %v9101_v19 = vld [vmem:[#allocation40_spill] sm:$0xff]  ;;  %v9103_v62 = vld [vmem:[#allocation66_spill] sm:$0xff] }
 0x1c5   : > { %9096 = vst [vmem:[#allocation47_spill] sm:$0xff] %v6992_v37  ;;  %v1710_v12 = vmul.f32 %v7016_v30, %v6842_v10  ;;  %v9100_v37 = vrot.slane %v9066_v45, 4  ;;  %v1552_v56 = vadd.f32 %v1520_v11, %v1486_v50  ;;  %v8890_v14 = vrot.slane %v6844_v58, 4 }
 0x1c6   : > { %9099 = vst [vmem:[#allocation67_spill] sm:$0xff] %v7016_v30  ;;  %v7027_v5 = vadd.f32 %v1713_v53, %v1679_v38  ;;  %v1257_v32 = vmul.f32 %v9101_v19, %v6562_v35  ;;  %v1191_v10 = vmul.f32 %v9031_v9, %v6754_v55  ;;  %v9102_v28 = vrot.slane %v6745_v63, 4 }
 0x1c7   : > { %2135 = vrot.lane.b32.xlu1 %v9098_v17, %s5464_s20  ;;  %v1551_v17 = vadd.f32 %v1519_v52, %v1485_v23  ;;  %v1542_v45 = vadd.f32 %v6866_v15, %v9103_v62  ;;  %v1649_v11 = vmul.f32 %v6077_v16, %v6711_v51  ;;  %v9105_v38 = vrot.slane %v6711_v51, 7  ;;  %1975 = vrot.lane.b32.xlu2 %v8890_v14, %s5463_s5  ;;  %v7054_v15 = vpop.f32.mrf.mxu0  ;;  %v7082_v62 = vpop.permute.xlu1 %1951 }
 0x1c8   : > { %v7012_v61 = vld.sshfl [vmem:[#allocation1 + $0x10] sm:$0xff pattern:$0x75316420]  ;;  %v7046_v35 = vadd.f32 %v1586_v49, %v1552_v56  ;;  %v1615_v63 = vadd.f32 %v1583_v3, %v1549_v39  ;;  %v7052_v55 = vsel %vm976_vm4, %v1019_v24, %v1020_v40  ;;  %v7056_v34 = vadd.f32 %v1710_v12, %v1676_v33 }
 0x1c9   : > { %9097 = vst [vmem:[#allocation46_spill] sm:$0xff] %v7012_v61  ;;  %v7025_v61 = vadd.f32 %v1320_v36, %v1286_v0  ;;  %v1608_v53 = vadd.f32 %v1576_v20, %v1542_v45  ;;  %v1642_v23 = vmul.f32 %v9091_v18, %v6468_v44  ;;  %v8892_v52 = vrot.slane %v6870_v6, 7  ;;  %v7073_v44 = vpop.permute.xlu2 %2007  ;;  %v9109_v20 = vld [vmem:[#allocation68_spill] sm:$0xff] }
 0x1ca   : > { %2130 = vst [vmem:[#allocation1 + $0x10] ss:$2 sm:$0xff] %v9100_v37  ;;  %v9104_v37 = vrot.slane %v6786_v7, 7  ;;  %v8894_v56 = vrot.slane %v6962_v41, 7  ;;  %v1392_v0 = vmul.f32 %v5926_v26, %v6983_v29  ;;  %v7065_v39 = vmul.f32 0.17677669, %v7027_v5  ;;  %2021 = vrot.lane.b32.xlu0 %v7056_v34, %s5463_s5 }
 0x1cb   : > { %2132 = vst [vmem:[#allocation1 + $0x11] ss:$2 sm:$0xff] %v9102_v28  ;;  %v1261_v3 = vmul.f32 %v9101_v19, %v6711_v51  ;;  %v1111_v49 = vsel %vm976_vm4, %v1020_v40, %v1019_v24  ;;  %v8891_v36 = vrot.slane %v6882_v25, 4  ;;  %v1195_v12 = vmul.f32 %v9031_v9, %v6968_v42 }
 0x1cc   : > { %v7044_v50 = vsel %vm829_vm3, %v9105_v38, %v9104_v37  ;;  %9106 = vst [vmem:[#allocation50_spill] sm:$0xff] %v7046_v35  ;;  %v7080_v28 = vadd.f32 %v1392_v0, %v9109_v20  ;;  %v1681_v45 = vadd.f32 %v1649_v11, %v1615_v63  ;;  %v1715_v24 = vmul.f32 %v6996_v31, %v7052_v55 }
 0x1cd   : > { %9107 = vst [vmem:[#allocation40_spill] sm:$0xff] %v7056_v34  ;;  %v1585_v33 = vmul.f32 %v6022_v46, %v7044_v50  ;;  %v1674_v40 = vadd.f32 %v1642_v23, %v1608_v53  ;;  %v1708_v37 = vmul.f32 %v7016_v30, %v6824_v21  ;;  %v7093_v38 = vsel %vm975_vm5, %v1111_v49, 0.0  ;;  %v7108_v23 = vpop.permute.xlu0 %1935 }
 0x1ce   : > { %9108 = vst [vmem:[#allocation66_spill] sm:$0xff] %v7073_v44  ;;  %v1651_v0 = vmul.f32 %v6077_v16, %v6786_v7  ;;  %v926_v11 = vsel %vm829_vm3, %v8894_v56, %v8892_v52  ;;  %v8893_v63 = vrot.slane %v7065_v39, 4  ;;  %v1289_v53 = vadd.f32 %v1257_v32, %v1191_v10 }
 0x1cf   : > { %9110 = vst [vmem:[#allocation68_spill] sm:$0xff] %v7080_v28  ;;  %1901 = vrot.lane.b32.xlu1 %v8891_v36, %s5463_s5  ;;  %v1323_v21 = vmul.f32 %v9038_v57, %v6784_v43  ;;  %v1617_v49 = vadd.f32 %v1585_v33, %v1551_v17  ;;  %v1327_v14 = vmul.f32 %v9038_v57, %v7052_v55  ;;  %v966_v43 = vsel %vm747_vm6, %v926_v11, 0.0  ;;  %v7133_v11 = vpop.f32.mrf.mxu0 }
 0x1d0   : > { %v1293_v36 = vadd.f32 %v1261_v3, %v1195_v12  ;;  %1927 = vrot.lane.b32.xlu2 %v8893_v63, %s5463_s5  ;;  %v7116_v52 = vadd.f32 %v1715_v24, %v1681_v45  ;;  %v7120_v32 = vadd.f32 %v1708_v37, %v1674_v40  ;;  %v1717_v10 = vmul.f32 %v6996_v31, %v7093_v38  ;;  %v9112_v24 = vld [vmem:[#allocation42_spill] sm:$0xff] }
 0x1d1   : > { %v1683_v17 = vadd.f32 %v1651_v0, %v1617_v49  ;;  %v1582_v3 = vmul.f32 %v9089_v22, %v6663_v1  ;;  %v1648_v12 = vmul.f32 %v9091_v18, %v9082_v59  ;;  %v1355_v45 = vadd.f32 %v1323_v21, %v1289_v53  ;;  %v7137_v40 = vpop.permute.xlu2 %1895  ;;  %v9114_v1 = vld [vmem:[#allocation72_spill] sm:$0xff] }
 0x1d2   : > { %v7097_v20 = vld.sshfl [vmem:[#allocation1 + $0x10] sm:$0xff pattern:$0x75316420]  ;;  %9111 = vst [vmem:[#allocation74_spill] sm:$0xff] %v7120_v32  ;;  %v7125_v33 = vmul.f32 0.17677669, %v7116_v52  ;;  %v1389_v63 = vmul.f32 %v9112_v24, %v6968_v42  ;;  %2005 = vrot.lane.b32.xlu0 %v7120_v32, %s5463_s5  ;;  %v1359_v37 = vadd.f32 %v1327_v14, %v1293_v36  ;;  %v1393_v0 = vmul.f32 %v9112_v24, %v966_v43 }
 0x1d3   : > { %2174 = vst [vmem:[#allocation1 + $0x10] ss:$2 sm:$0xff] %v6729_v47  ;;  %v1614_v49 = vadd.f32 %v1582_v3, %v9114_v1  ;;  %v1714_v42 = vmul.f32 %v7016_v30, %v9094_v4  ;;  %v8896_v21 = vrot.slane %v7054_v15, 7  ;;  %v7150_v36 = vpop.permute.xlu1 %1999  ;;  %v7152_v44 = vadd.f32 %v1717_v10, %v1683_v17  ;;  %v9116_v3 = vld [vmem:[#allocation44_spill] sm:$0xff] }
 0x1d4   : > { %2176 = vst [vmem:[#allocation1 + $0x11] ss:$2 sm:$0xff] %v6882_v25  ;;  %v1455_v1 = vmul.f32 %v9116_v3, %v6711_v51  ;;  %v1421_v53 = vadd.f32 %v1389_v63, %v1355_v45  ;;  %v1459_v28 = vmul.f32 %v9116_v3, %v6870_v6  ;;  %v1425_v4 = vadd.f32 %v1393_v0, %v1359_v37 }
 0x1d5   : > { %9113 = vst [vmem:[#allocation42_spill] sm:$0xff] %v7137_v40  ;;  %v1680_v35 = vadd.f32 %v1648_v12, %v1614_v49  ;;  %v9118_v40 = vld [vmem:[#allocation65_spill] sm:$0xff]  ;;  %v9120_v10 = vrot.slane %v6962_v41, 1  ;;  %v9121_v51 = vrot.slane %v6870_v6, 1  ;;  %v8895_v63 = vrot.slane %v7056_v34, 4  ;;  %v7172_v12 = vpop.permute.xlu0 %1887 }
 0x1d6   : > { %2278 = vst [vmem:[#allocation1 + $0x1] ss:$2 sm:$0xff] %v7125_v33  ;;  %v9122_v45 = vrot.slane %v7133_v11, 7  ;;  %v8897_v49 = vrot.slane %v7027_v5, 4  ;;  %v8904_v34 = vrot.slane %v7133_v11, 1 }
 0x1d7   : > { %1983 = vrot.lane.b32.xlu1 %v7027_v5, %s5463_s5  ;;  %9115 = vst [vmem:[#allocation72_spill] sm:$0xff] %v7150_v36  ;;  %v7163_v14 = vadd.f32 %v1714_v42, %v1680_v35  ;;  %v1027_v17 = vsel %vm976_vm4, %v9121_v51, %v9120_v10  ;;  %v1521_v35 = vmul.f32 %v5989_v13, %v7052_v55 }
 0x1d8   : > { %1985 = vrot.lane.b32.xlu2 %v7152_v44, %s5463_s5  ;;  %v928_v37 = vsel %vm829_vm3, %v9122_v45, %v8896_v21  ;;  %v1487_v10 = vadd.f32 %v1455_v1, %v1421_v53  ;;  %v1491_v51 = vadd.f32 %v1459_v28, %v1425_v4  ;;  %v1525_v36 = vmul.f32 %v5989_v13, %v1027_v17 }
 0x1d9   : > { %9119 = vst [vmem:[#allocation65_spill] sm:$0xff] %v7163_v14  ;;  %v7184_v0 = vpop.permute.xlu2 %1953  ;;  %v970_v45 = vsel %vm747_vm6, %v928_v37, 0.0  ;;  %v1587_v53 = vmul.f32 %v6022_v46, %v966_v43  ;;  %v9125_v37 = vrot.slane %v6729_v47, 4  ;;  %v9126_v14 = vrot.slane %v6882_v25, 4 }
 0x1da   : > { %2029 = vrot.lane.b32.xlu0 %v8895_v63, %s5463_s5  ;;  %9123 = vst [vmem:[#allocation75_spill] sm:$0xff] %v7184_v0  ;;  %v8901_v63 = vrot.slane %v7152_v44, 4  ;;  %v1553_v28 = vadd.f32 %v1521_v35, %v1487_v10  ;;  %v1557_v1 = vadd.f32 %v1525_v36, %v1491_v51  ;;  %v1591_v21 = vmul.f32 %v6022_v46, %v970_v45  ;;  %v9127_v35 = vld [vmem:[#allocation70_spill] sm:$0xff]  ;;  %v9129_v45 = vld [vmem:[#allocation49_spill] sm:$0xff] }
 0x1db   : > { %v7156_v56 = vld.sshfl [vmem:[#allocation1 + $0x10] sm:$0xff pattern:$0x75316420]  ;;  %v7197_v55 = vpop.permute.xlu1 %1871  ;;  %v1653_v36 = vmul.f32 %v6077_v16, %v6870_v6  ;;  %v1719_v30 = vmul.f32 %v6996_v31, %v1027_v17 }
 0x1dc   : > { %9117 = vst [vmem:[#allocation44_spill] sm:$0xff] %v7156_v56  ;;  %v1619_v47 = vadd.f32 %v1587_v53, %v1553_v28  ;;  %v1623_v25 = vadd.f32 %v1591_v21, %v1557_v1  ;;  %v9131_v28 = vld [vmem:[#allocation41_spill] sm:$0xff]  ;;  %v9132_v21 = vrot.slane %v7125_v33, 4 }
 0x1dd   : > { %2183 = vst [vmem:[#allocation1 + $0x10] ss:$2 sm:$0xff] %v9118_v40  ;;  %v7187_v42 = vld.sshfl [vmem:[#allocation1] sm:$0xff pattern:$0x75316420]  ;;  %v7220_v51 = vpop.permute.xlu0 %1959  ;;  %v1259_v56 = vmul.f32 %v9101_v19, %v9131_v28  ;;  %v1325_v28 = vmul.f32 %v9038_v57, %v6932_v27  ;;  %v9137_v27 = vld [vmem:[#allocation58_spill] sm:$0xff] }
 0x1de   : > { %2185 = vst [vmem:[#allocation1 + $0x11] ss:$2 sm:$0xff] %v6838_v2 }
 0x1df   : > { %9124 = vst [vmem:[#allocation76_spill] sm:$0xff] %v7187_v42  ;;  %1991 = vrot.lane.b32.xlu1 %v8897_v49, %s5463_s5  ;;  %v8905_v49 = vrot.slane %v7054_v15, 1  ;;  %v9130_v42 = vld [vmem:[#allocation71_spill] sm:$0xff] }
 0x1e0   : > { %2285 = vst [vmem:[#allocation1] ss:$2 sm:$0xff] %v6844_v58  ;;  %1993 = vrot.lane.b32.xlu2 %v8901_v63, %s5463_s5  ;;  %v1657_v63 = vmul.f32 %v6077_v16, %v7054_v15  ;;  %v1193_v53 = vmul.f32 %v9031_v9, %v9130_v42  ;;  %v8906_v42 = vrot.slane %v7120_v32, 4 }
 0x1e1   : > { %2287 = vst [vmem:[#allocation1 + $0x1] ss:$2 sm:$0xff] %v7116_v52  ;;  %v7218_v10 = vpop.permute.xlu2 %1881  ;;  %v1033_v43 = vsel %vm976_vm4, %v8905_v49, %v8904_v34 }
 0x1e2   : > { %1877 = vrot.lane.b32.xlu0 %v9127_v35, %s5463_s5  ;;  %9128 = vst [vmem:[#allocation70_spill] sm:$0xff] %v7220_v51  ;;  %v1685_v51 = vadd.f32 %v1653_v36, %v1619_v47  ;;  %v1689_v0 = vadd.f32 %v1657_v63, %v1623_v25  ;;  %v1723_v34 = vmul.f32 %v6996_v31, %v1033_v43  ;;  %v9135_v36 = vrot.slane %v6838_v2, 4 }
 0x1e3   : > { %v1291_v49 = vadd.f32 %v1259_v56, %v1193_v53  ;;  %v1391_v25 = vmul.f32 %v9112_v24, %v7044_v50  ;;  %v9139_v53 = vrot.slane %v6844_v58, 4 }
 0x1e4   : > { %v7240_v1 = vpop.permute.xlu1 %1879  ;;  %v7260_v63 = vadd.f32 %v1719_v30, %v1685_v51  ;;  %v7262_v43 = vadd.f32 %v1723_v34, %v1689_v0  ;;  %v1197_v34 = vmul.f32 %v9031_v9, %v7044_v50  ;;  %v1263_v0 = vmul.f32 %v9101_v19, %v6786_v7  ;;  %v9140_v51 = vld [vmem:[#allocation62_spill] sm:$0xff] }
 0x1e5   : > { %v7201_v4 = vld.sshfl [vmem:[#allocation1 + $0x10] sm:$0xff pattern:$0x75316420]  ;;  %v1357_v2 = vadd.f32 %v1325_v28, %v1291_v49  ;;  %v9142_v9 = vrot.slane %v9127_v35, 4 }
 0x1e6   : > { %2227 = vst [vmem:[#allocation1 + $0x10] ss:$2 sm:$0xff] %v9125_v37  ;;  %v1799_v37 = vrot.slane %v9129_v45, 4  ;;  %v7276_v30 = vmul.f32 0.17677669, %v7260_v63  ;;  %v1295_v50 = vadd.f32 %v1263_v0, %v1197_v34 }
 0x1e7   : > { %2229 = vst [vmem:[#allocation1 + $0x11] ss:$2 sm:$0xff] %v9126_v14  ;;  %1903 = vrot.lane.b32.xlu1 %v9129_v45, %s5463_s5  ;;  %v7285_v49 = vmul.f32 0.17677669, %v7262_v43  ;;  %v7315_v34 = vmul.f32 0.17677669, %v7152_v44 }
 0x1e8   : > { %v7225_v14 = vld.sshfl [vmem:[#allocation1] sm:$0xff pattern:$0x75316420]  ;;  %1905 = vrot.lane.b32.xlu2 %v7125_v33, %s5463_s5 }
 0x1e9   : > { %2329 = vst [vmem:[#allocation1] ss:$2 sm:$0xff] %v1799_v37  ;;  %v7258_v17 = vpop.permute.xlu2 %1955 }
 0x1ea   : > { %2331 = vst [vmem:[#allocation1 + $0x1] ss:$2 sm:$0xff] %v9132_v21  ;;  %v9134_v21 = vrot.slane %v9118_v40, 4  ;;  %2013 = vrot.lane.b32.xlu0 %v8906_v42, %s5463_s5  ;;  %v8907_v40 = vrot.slane %v7116_v52, 4 }
 0x1eb   : > { %v7264_v56 = vpop.permute.xlu0 %2001 }
 0x1ec   : > { %9136 = vst [vmem:[#allocation71_spill] sm:$0xff] %v7264_v56  ;;  %v9188_v56 = vrot.slane %v6854_v8, 1 }
 0x1ed   : > { %v7289_v28 = vpop.permute.xlu1 %2017 }
 0x1ee   : > { %v7246_v45 = vld.sshfl [vmem:[#allocation1 + $0x10] sm:$0xff pattern:$0x75316420]  ;;  %9141 = vst [vmem:[#allocation58_spill] sm:$0xff] %v7289_v28 }
 0x1ef   : > { %9133 = vst [vmem:[#allocation49_spill] sm:$0xff] %v7246_v45  ;;  %2188 = vrot.lane.b32.xlu1 %v9137_v27, %s5464_s20 }
 0x1f0   : > { %2236 = vst [vmem:[#allocation1 + $0x10] ss:$2 sm:$0xff] %v9134_v21  ;;  %2241 = vrot.lane.b32.xlu2 %v9140_v51, %s5464_s20  ;;  %v1423_v21 = vadd.f32 %v1391_v25, %v1357_v2  ;;  %v9143_v2 = vrot.slane %v6962_v41, 7 }
 0x1f1   : > { %2238 = vst [vmem:[#allocation1 + $0x11] ss:$2 sm:$0xff] %v9135_v36  ;;  %v7269_v47 = vld.sshfl [vmem:[#allocation1] sm:$0xff pattern:$0x75316420]  ;;  %v1457_v36 = vmul.f32 %v9116_v3, %v6786_v7  ;;  %v7299_v19 = vpop.permute.xlu2 %1939  ;;  %v9144_v7 = vrot.slane %v6870_v6, 7 }
 0x1f2   : > { %9138 = vst [vmem:[#allocation41_spill] sm:$0xff] %v7269_v47  ;;  %1885 = vrot.lane.b32.xlu0 %v9142_v9, %s5463_s5  ;;  %v1523_v9 = vmul.f32 %v5989_v13, %v7093_v38 }
 0x1f3   : > { %2338 = vst [vmem:[#allocation1] ss:$2 sm:$0xff] %v9139_v53  ;;  %v1329_v53 = vmul.f32 %v9038_v57, %v7093_v38  ;;  %v864_v25 = vsel %vm829_vm3, %v9144_v7, %v9143_v2  ;;  %v7309_v51 = vpop.permute.xlu0 %1945  ;;  %v1489_v35 = vadd.f32 %v1457_v36, %v1423_v21  ;;  %v9146_v21 = vrot.slane %v6962_v41, 1 }
 0x1f4   : > { %2340 = vst [vmem:[#allocation1 + $0x1] ss:$2 sm:$0xff] %v8907_v40  ;;  %v1395_v42 = vmul.f32 %v9112_v24, %v864_v25  ;;  %v1589_v2 = vmul.f32 %v6022_v46, %v864_v25 }
 0x1f5   : > { %v1361_v0 = vadd.f32 %v1329_v53, %v1295_v50  ;;  %v1555_v36 = vadd.f32 %v1523_v9, %v1489_v35  ;;  %v7334_v24 = vpop.permute.xlu1 %1937  ;;  %v1655_v35 = vmul.f32 %v6077_v16, %v6962_v41 }
 0x1f7   : > { %1911 = vrot.lane.b32.xlu1 %v1799_v37, %s5463_s5  ;;  %v9145_v37 = vrot.slane %v6870_v6, 1  ;;  %v1427_v53 = vadd.f32 %v1395_v42, %v1361_v0  ;;  %v1461_v6 = vmul.f32 %v9116_v3, %v6962_v41  ;;  %v9151_v0 = vrot.slane %v7125_v33, 4 }
 0x1f8   : > { %v7293_v27 = vld.sshfl [vmem:[#allocation1 + $0x10] sm:$0xff pattern:$0x75316420]  ;;  %2137 = vrot.lane.b32.xlu2 %v7097_v20, %s5464_s20 }
 0x1f9   : > { %2280 = vst [vmem:[#allocation1 + $0x10] ss:$2 sm:$0xff] %v7276_v30  ;;  %v1113_v38 = vsel %vm976_vm4, %v9146_v21, %v9145_v37  ;;  %v7336_v50 = vpop.permute.xlu2 %2003  ;;  %v1493_v9 = vadd.f32 %v1461_v6, %v1427_v53  ;;  %v9152_v37 = vrot.slane %v7133_v11, 7  ;;  %v9153_v21 = vrot.slane %v7054_v15, 7 }
 0x1fa   : > { %2282 = vst [vmem:[#allocation1 + $0x11] ss:$2 sm:$0xff] %v7285_v49  ;;  %1967 = vrot.lane.b32.xlu0 %v6844_v58, %s5463_s5  ;;  %v1155_v20 = vsel %vm975_vm5, %v1113_v38, 0.0  ;;  %v1621_v58 = vadd.f32 %v1589_v2, %v1555_v36  ;;  %v8908_v36 = vrot.slane %v7285_v49, 4 }
 0x1fb   : > { %v7317_v57 = vld.sshfl [vmem:[#allocation1] sm:$0xff pattern:$0x75316420]  ;;  %9148 = vst [vmem:[#allocation77_spill] sm:$0xff] %v7336_v50  ;;  %v7344_v25 = vpop.permute.xlu0 %2009  ;;  %v1527_v3 = vmul.f32 %v5989_v13, %v1155_v20  ;;  %v868_v38 = vsel %vm829_vm3, %v9153_v21, %v9152_v37  ;;  %v1721_v2 = vmul.f32 %v6996_v31, %v1155_v20  ;;  %v1803_v13 = vrot.slane %v7276_v30, 4 }
 0x1fc   : > { %2382 = vst [vmem:[#allocation1] ss:$2 sm:$0xff] %v7065_v39  ;;  %v1687_v41 = vadd.f32 %v1655_v35, %v1621_v58  ;;  %v9154_v20 = vrot.slane %v7054_v15, 1  ;;  %v9155_v58 = vrot.slane %v7133_v11, 1 }
 0x1fd   : > { %2384 = vst [vmem:[#allocation1 + $0x1] ss:$2 sm:$0xff] %v7315_v34  ;;  %v7368_v33 = vpop.permute.xlu1 %1889  ;;  %v1559_v6 = vadd.f32 %v1527_v3, %v1493_v9  ;;  %v1659_v9 = vmul.f32 %v6077_v16, %v7133_v11  ;;  %v1802_v3 = vrot.slane %v7315_v34, 4  ;;  %v8909_v11 = vrot.slane %v7260_v63, 4 }
 0x1fe   : > { %9149 = vst [vmem:[#allocation78_spill] sm:$0xff] %v7344_v25  ;;  %v1115_v35 = vsel %vm976_vm4, %v9155_v58, %v9154_v20  ;;  %v7386_v40 = vadd.f32 %v1721_v2, %v1687_v41  ;;  %v1837_v41 = vrot.slane %v7262_v43, 4  ;;  %v9157_v2 = vld [vmem:[#allocation38_spill] sm:$0xff] }
 0x1ff   : > { %1969 = vrot.lane.b32.xlu1 %v7116_v52, %s5463_s5  ;;  %v1159_v15 = vsel %vm975_vm5, %v1115_v35, 0.0  ;;  %v9161_v35 = vrot.slane %v7027_v5, 4 }
 0x200   : > { %1913 = vrot.lane.b32.xlu2 %v9151_v0, %s5463_s5  ;;  %v1593_v0 = vmul.f32 %v6022_v46, %v868_v38  ;;  %v7403_v16 = vmul.f32 0.17677669, %v7386_v40 }
 0x201   : > { %v7330_v7 = vld.sshfl [vmem:[#allocation1 + $0x10] sm:$0xff pattern:$0x75316420]  ;;  %v7370_v53 = vpop.permute.xlu2 %2081 }
 0x202   : > { %9147 = vst [vmem:[#allocation62_spill] sm:$0xff] %v7330_v7  ;;  %1919 = vrot.lane.b32.xlu0 %v7065_v39, %s5463_s5  ;;  %v1625_v46 = vadd.f32 %v1593_v0, %v1559_v6  ;;  %v1725_v6 = vmul.f32 %v6996_v31, %v1159_v15 }
 0x203   : > { %2291 = vst [vmem:[#allocation1 + $0x11] ss:$2 sm:$0xff] %v7262_v43  ;;  %v7375_v21 = vpop.permute.xlu0 %1897 }
 0x204   : > { %2289 = vst [vmem:[#allocation1 + $0x10] ss:$2 sm:$0xff] %v7260_v63  ;;  %v7350_v42 = vld.sshfl [vmem:[#allocation1] sm:$0xff pattern:$0x75316420] }
 0x205   : > { %9150 = vst [vmem:[#allocation79_spill] sm:$0xff] %v7350_v42  ;;  %v7407_v0 = vpop.permute.xlu1 %1961 }
 0x206   : > { %2391 = vst [vmem:[#allocation1] ss:$2 sm:$0xff] %v7027_v5 }
 0x207   : > { %2393 = vst [vmem:[#allocation1 + $0x1] ss:$2 sm:$0xff] %v7152_v44  ;;  %1921 = vrot.lane.b32.xlu1 %v7315_v34, %s5463_s5  ;;  %v1691_v34 = vadd.f32 %v1659_v9, %v1625_v46  ;;  %v9162_v46 = vrot.slane %v7152_v44, 4  ;;  %v9163_v9 = vrot.slane %v7116_v52, 4 }
 0x208   : > { %1987 = vrot.lane.b32.xlu2 %v7386_v40, %s5463_s5 }
 0x209   : > { %v7409_v20 = vpop.permute.xlu2 %1883  ;;  %v7419_v58 = vadd.f32 %v1725_v6, %v1691_v34 }
 0x20a   : > { %2083 = vrot.lane.b32.xlu0 %v9157_v2, %s5464_s20 }
 0x20b   : > { %v7373_v37 = vld.sshfl [vmem:[#allocation1 + $0x10] sm:$0xff pattern:$0x75316420]  ;;  %v1838_v15 = vrot.slane %v7419_v58, 4  ;;  %v1774_v2 = vmul.f32 0.17677669, %v7419_v58 }
 0x20c   : > { %2335 = vst [vmem:[#allocation1 + $0x11] ss:$2 sm:$0xff] %v8908_v36  ;;  %v9156_v36 = vrot.slane %v7065_v39, 4  ;;  %v7411_v39 = vpop.permute.xlu0 %2019 }
 0x20d   : > { %2333 = vst [vmem:[#allocation1 + $0x10] ss:$2 sm:$0xff] %v1803_v13  ;;  %v1874_v34 = vpop.permute.xlu1 %1873 }
 0x20e   : > { %v7391_v38 = vld.sshfl [vmem:[#allocation1] sm:$0xff pattern:$0x75316420]  ;;  %9158 = vst [vmem:[#allocation38_spill] sm:$0xff] %v7411_v39 }
 0x20f   : > { %2435 = vst [vmem:[#allocation1] ss:$2 sm:$0xff] %v9156_v36  ;;  %1923 = vrot.lane.b32.xlu1 %v7403_v16, %s5463_s5 }
 0x210   : > { %2437 = vst [vmem:[#allocation1 + $0x1] ss:$2 sm:$0xff] %v1802_v3  ;;  %1971 = vrot.lane.b32.xlu2 %v7260_v63, %s5463_s5 }
 0x211   : > { %v7435_v6 = vpop.permute.xlu2 %1941 }
 0x212   : > { %1977 = vrot.lane.b32.xlu0 %v9163_v9, %s5463_s5  ;;  %v1836_v9 = vrot.slane %v7386_v40, 4 }
 0x214   : > { %v7415_v36 = vld.sshfl [vmem:[#allocation1 + $0x10] sm:$0xff pattern:$0x75316420]  ;;  %v7439_v5 = vpop.permute.xlu0 %2027 }
 0x215   : > { %9159 = vst [vmem:[#allocation80_spill] sm:$0xff] %v7415_v36 }
 0x216   : > { %2344 = vst [vmem:[#allocation1 + $0x11] ss:$2 sm:$0xff] %v1837_v41 }
 0x217   : > { %2342 = vst [vmem:[#allocation1 + $0x10] ss:$2 sm:$0xff] %v8909_v11  ;;  %v7423_v31 = vld.sshfl [vmem:[#allocation1] sm:$0xff pattern:$0x75316420]  ;;  %1997 = vrot.lane.b32.xlu1 %v1838_v15, %s5463_s5 }
 0x218   : > { %9160 = vst [vmem:[#allocation81_spill] sm:$0xff] %v7423_v31  ;;  %1907 = vrot.lane.b32.xlu2 %v7276_v30, %s5463_s5  ;;  %v9192_v31 = vld [vmem:[#allocation67_spill] sm:$0xff] }
 0x219   : > { %2444 = vst [vmem:[#allocation1] ss:$2 sm:$0xff] %v9161_v35  ;;  %v7452_v35 = vpop.permute.xlu1 %1891 }
 0x21a   : > { %2446 = vst [vmem:[#allocation1 + $0x1] ss:$2 sm:$0xff] %v9162_v46  ;;  %1929 = vrot.lane.b32.xlu0 %v1802_v3, %s5463_s5  ;;  %v7454_v46 = vpop.permute.xlu2 %1893 }
 0x21b   : > { %9164 = vst [vmem:[#allocation82_spill] sm:$0xff] %v7439_v5 }
 0x21c   : > { %v1876_v30 = vpop.permute.xlu0 %1875 }
 0x21e   : > { %v7437_v11 = vld.sshfl [vmem:[#allocation1 + $0x10] sm:$0xff pattern:$0x75316420] }
 0x21f   : > { %2386 = vst [vmem:[#allocation1 + $0x10] ss:$2 sm:$0xff] %v7403_v16  ;;  %2243 = vrot.lane.b32.xlu1 %v7293_v27, %s5464_s20  ;;  %v1806_v27 = vrot.slane %v1774_v2, 4 }
 0x220   : > { %2388 = vst [vmem:[#allocation1 + $0x11] ss:$2 sm:$0xff] %v1774_v2  ;;  %1915 = vrot.lane.b32.xlu2 %v1803_v13, %s5463_s5  ;;  %v1804_v13 = vrot.slane %v7403_v16, 4 }
 0x221   : > { %v7444_v52 = vld.sshfl [vmem:[#allocation1] sm:$0xff pattern:$0x75316420]  ;;  %v7467_v3 = vpop.permute.xlu1 %1963 }
 0x222   : > { %2488 = vst [vmem:[#allocation1] ss:$2 sm:$0xff] %v7197_v55  ;;  %1995 = vrot.lane.b32.xlu0 %v1836_v9, %s5463_s5 }
 0x223   : > { %2490 = vst [vmem:[#allocation1 + $0x1] ss:$2 sm:$0xff] %v1874_v34  ;;  %v7469_v34 = vpop.permute.xlu2 %1965 }
 0x224   : > { %v7474_v5 = vpop.permute.xlu0 %1947 }
 0x227   : > { %v7450_v44 = vld.sshfl [vmem:[#allocation1 + $0x10] sm:$0xff pattern:$0x75316420]  ;;  %1981 = vrot.lane.b32.xlu1 %v1837_v41, %s5463_s5 }
 0x228   : > { %9165 = vst [vmem:[#allocation83_spill] sm:$0xff] %v7450_v44  ;;  %1925 = vrot.lane.b32.xlu2 %v1774_v2, %s5463_s5 }
 0x229   : > { %2397 = vst [vmem:[#allocation1 + $0x11] ss:$2 sm:$0xff] %v7419_v58  ;;  %v7483_v16 = vpop.permute.xlu1 %2011 }
 0x22a   : > { %2395 = vst [vmem:[#allocation1 + $0x10] ss:$2 sm:$0xff] %v7386_v40  ;;  %v7460_v55 = vld.sshfl [vmem:[#allocation1] sm:$0xff pattern:$0x75316420]  ;;  %2190 = vrot.lane.b32.xlu0 %v7201_v4, %s5464_s20 }
 0x22b   : > { %9166 = vst [vmem:[#allocation84_spill] sm:$0xff] %v7460_v55  ;;  %v7485_v2 = vpop.permute.xlu2 %1975 }
 0x22c   : > { %2497 = vst [vmem:[#allocation1] ss:$2 sm:$0xff] %v7108_v23  ;;  %v7490_v39 = vpop.permute.xlu0 %1899 }
 0x22d   : > { %2499 = vst [vmem:[#allocation1 + $0x1] ss:$2 sm:$0xff] %v7334_v24  ;;  %v9167_v24 = vld [vmem:[#allocation61_spill] sm:$0xff] }
 0x22e   : > { %v8910_v41 = vrot.slane %v9167_v24, 4  ;;  %9168 = vst [vmem:[#allocation85_spill] sm:$0xff] %v7483_v16  ;;  %v9173_v16 = vrot.slane %v7260_v63, 4  ;;  %v9193_v24 = vld [vmem:[#allocation55_spill] sm:$0xff] }
 0x22f   : > { %2347 = vrot.lane.b32.xlu1 %v7317_v57, %s5464_s20  ;;  %v9172_v57 = vrot.slane %v9082_v59, 7 }
 0x230   : > { %2025 = vrot.lane.b32.xlu2 %v8910_v41, %s5463_s5 }
 0x231   : > { %v7472_v40 = vld.sshfl [vmem:[#allocation1 + $0x10] sm:$0xff pattern:$0x75316420] }
 0x232   : > { %2439 = vst [vmem:[#allocation1 + $0x10] ss:$2 sm:$0xff] %v1804_v13  ;;  %1979 = vrot.lane.b32.xlu0 %v9173_v16, %s5463_s5 }
 0x233   : > { %2441 = vst [vmem:[#allocation1 + $0x11] ss:$2 sm:$0xff] %v1806_v27  ;;  %v7515_v63 = vpop.permute.xlu2 %1927 }
 0x234   : > { %v2504_v23 = vld.sshfl [vmem:[#allocation1] sm:$0xff pattern:$0x75316420] }
 0x235   : > { %2541 = vst [vmem:[#allocation1] ss:$2 sm:$0xff] %v7240_v1  ;;  %v9170_v1 = vld [vmem:[#allocation54_spill] sm:$0xff] }
 0x236   : > { %2543 = vst [vmem:[#allocation1 + $0x1] ss:$2 sm:$0xff] %v7218_v10  ;;  %v9171_v50 = vrot.slane %v9170_v1, 7 }
 0x237   : > { %1933 = vrot.lane.b32.xlu1 %v1806_v27, %s5463_s5 }
 0x238   : > { %v923_v10 = vsel %vm829_vm3, %v9172_v57, %v9171_v50  ;;  %v7513_v50 = vpop.permute.xlu1 %1949  ;;  %2400 = vrot.lane.b32.xlu2 %v7391_v38, %s5464_s20  ;;  %v9177_v57 = vld [vmem:[#allocation48_spill] sm:$0xff]  ;;  %v9179_v38 = vrot.slane %v9082_v59, 1 }
 0x239   : > { %v7504_v28 = vsel %vm747_vm6, %v923_v10, 0.0  ;;  %v9178_v10 = vrot.slane %v9177_v57, 7 }
 0x23a   : > { %v7492_v4 = vld.sshfl [vmem:[#allocation1 + $0x10] sm:$0xff pattern:$0x75316420]  ;;  %v1386_v32 = vmul.f32 %v5926_v26, %v7504_v28  ;;  %2294 = vrot.lane.b32.xlu0 %v7225_v14, %s5464_s20 }
 0x23b   : > { %9169 = vst [vmem:[#allocation86_spill] sm:$0xff] %v7492_v4  ;;  %v9181_v14 = vld [vmem:[#allocation45_spill] sm:$0xff] }
 0x23c   : > { %2450 = vst [vmem:[#allocation1 + $0x11] ss:$2 sm:$0xff] %v1838_v15  ;;  %v7519_v15 = vpop.permute.xlu0 %1957 }
 0x23d   : > { %2448 = vst [vmem:[#allocation1 + $0x10] ss:$2 sm:$0xff] %v1836_v9  ;;  %v7506_v41 = vld.sshfl [vmem:[#allocation1] sm:$0xff pattern:$0x75316420] }
 0x23e   : > { %9174 = vst [vmem:[#allocation54_spill] sm:$0xff] %v7506_v41  ;;  %v9175_v9 = vld [vmem:[#allocation43_spill] sm:$0xff]  ;;  %v9180_v41 = vrot.slane %v9170_v1, 1 }
 0x23f   : > { %2550 = vst [vmem:[#allocation1] ss:$2 sm:$0xff] %v6994_v48  ;;  %v1452_v16 = vmul.f32 %v9175_v9, %v9170_v1  ;;  %v1418_v48 = vadd.f32 %v1386_v32, %v7025_v61  ;;  %2296 = vrot.lane.b32.xlu1 %v7373_v37, %s5464_s20 }
 0x240   : > { %2552 = vst [vmem:[#allocation1 + $0x1] ss:$2 sm:$0xff] %v7309_v51  ;;  %v9176_v51 = vrot.slane %v6854_v8, 7  ;;  %v7536_v25 = vsel %vm976_vm4, %v9180_v41, %v9179_v38  ;;  %v7550_v59 = vpop.permute.xlu1 %2135  ;;  %v7552_v41 = vpop.permute.xlu2 %1985  ;;  %2349 = vrot.lane.b32.xlu2 %v7437_v11, %s5464_s20  ;;  %v1650_v11 = vmul.f32 %v9091_v18, %v6854_v8  ;;  %v9184_v38 = vld [vmem:[#allocation36_spill] sm:$0xff] }
 0x241   : > { %v1484_v32 = vadd.f32 %v1452_v16, %v1418_v48 }
 0x242   : > { %v925_v55 = vsel %vm829_vm3, %v9178_v10, %v9176_v51  ;;  %1931 = vrot.lane.b32.xlu0 %v1804_v13, %s5463_s5  ;;  %v7562_v10 = vpop.f32.mrf.mxu1  ;;  %v9187_v13 = vrot.slane %v9177_v57, 1 }
 0x243   : > { %v7547_v51 = vsel %vm747_vm6, %v925_v55, 0.0 }
 0x244   : > { %v2452_v27 = vld.sshfl [vmem:[#allocation1 + $0x10] sm:$0xff pattern:$0x75316420]  ;;  %v7556_v37 = vpop.permute.xlu0 %2021  ;;  %v1584_v48 = vmul.f32 %v9089_v22, %v7547_v51  ;;  %v7580_v42 = vsel %vm976_vm4, %v9188_v56, %v9187_v13 }
 0x245   : > { %2492 = vst [vmem:[#allocation1 + $0x10] ss:$2 sm:$0xff] %v1876_v30  ;;  %v1518_v30 = vmul.f32 %v9181_v14, %v7536_v25  ;;  %v1716_v56 = vmul.f32 %v9192_v31, %v7580_v42 }
 0x246   : > { %9182 = vst [vmem:[#allocation43_spill] sm:$0xff] %v7556_v37 }
 0x247   : > { %v7540_v61 = vld.sshfl [vmem:[#allocation1] sm:$0xff pattern:$0x75316420]  ;;  %v1550_v16 = vadd.f32 %v1518_v30, %v1484_v32  ;;  %v1198_v32 = vmul.f32 %v9184_v38, %v6983_v29  ;;  %v9185_v30 = vld [vmem:[#allocation37_spill] sm:$0xff] }
 0x248   : > { %2596 = vst [vmem:[#allocation1 + $0x1] ss:$2 sm:$0xff] %v7368_v33  ;;  %v9183_v33 = vld [vmem:[#allocation51_spill] sm:$0xff]  ;;  %v1264_v37 = vmul.f32 %v9185_v30, %v9177_v57  ;;  %2506 = vrot.lane.b32.xlu2 %v2504_v23, %s5464_s20 }
 0x249   : > { %2594 = vst [vmem:[#allocation1] ss:$2 sm:$0xff] %v7172_v12  ;;  %v8913_v55 = vrot.slane %v9183_v33, 4  ;;  %v1616_v12 = vadd.f32 %v1584_v48, %v1550_v16  ;;  %v1580_v16 = vmul.f32 %v9089_v22, %v7504_v28  ;;  %v7584_v48 = vpop.permute.xlu1 %1901  ;;  %v9194_v23 = vld [vmem:[#allocation47_spill] sm:$0xff] }
 0x24a   : > { %v1296_v13 = vadd.f32 %v1264_v37, %v1198_v32  ;;  %1989 = vrot.lane.b32.xlu0 %v7419_v58, %s5463_s5  ;;  %v7608_v37 = vpop.f32.mrf.mxu1  ;;  %v9195_v58 = vld [vmem:[#allocation39_spill] sm:$0xff] }
 0x24b   : > { %2023 = vrot.lane.b32.xlu1 %v8913_v55, %s5463_s5  ;;  %v9190_v55 = vld [vmem:[#allocation75_spill] sm:$0xff]  ;;  %v1682_v4 = vadd.f32 %v1650_v11, %v1616_v12  ;;  %v1612_v33 = vadd.f32 %v1580_v16, %v9193_v24  ;;  %v786_v24 = vrot.slane %v7608_v37, 7  ;;  %v8916_v32 = vrot.slane %v7608_v37, 1 }
 0x24c   : > { %v7588_v29 = vpop.permute.xlu0 %2005 }
 0x24d   : > { %9189 = vst [vmem:[#allocation45_spill] sm:$0xff] %v7588_v29  ;;  %v7603_v29 = vsel %vm975_vm5, %v9194_v23, 0.0  ;;  %v7614_v16 = vadd.f32 %v1716_v56, %v1682_v4 }
 0x24e   : > { %v1330_v11 = vmul.f32 %v9195_v58, %v7603_v29 }
 0x250   : > { %v7573_v44 = vld.sshfl [vmem:[#allocation1] sm:$0xff pattern:$0x75316420]  ;;  %v1362_v7 = vadd.f32 %v1330_v11, %v1296_v13  ;;  %2033 = vrot.lane.b32.xlu2 %v7614_v16, %s5463_s5 }
 0x251   : > { %9186 = vst [vmem:[#allocation48_spill] sm:$0xff] %v7573_v44  ;;  %v7591_v44 = vpop.permute.xlu2 %1993  ;;  %v7618_v36 = vpop.permute.xlu1 %1983 }
 0x252   : > { %2603 = vst [vmem:[#allocation1] ss:$2 sm:$0xff] %v7082_v62  ;;  %v1646_v62 = vmul.f32 %v9091_v18, %v9170_v1  ;;  %1973 = vrot.lane.b32.xlu0 %v7262_v43, %s5463_s5 }
 0x253   : > { %2605 = vst [vmem:[#allocation1 + $0x1] ss:$2 sm:$0xff] %v9190_v55  ;;  %2455 = vrot.lane.b32.xlu1 %v2452_v27, %s5464_s20  ;;  %v1712_v55 = vmul.f32 %v9192_v31, %v7536_v25  ;;  %v9196_v27 = vrot.slane %v7562_v10, 7 }
 0x254   : > { %9191 = vst [vmem:[#allocation36_spill] sm:$0xff] %v7591_v44  ;;  %v1678_v23 = vadd.f32 %v1646_v62, %v1612_v33  ;;  %v9197_v44 = vrot.slane %v7562_v10, 1  ;;  %v9198_v33 = vld [vmem:[#allocation42_spill] sm:$0xff]  ;;  %v7635_v56 = vpop.permute.xlu0 %2029  ;;  %v1462_v62 = vmul.f32 %v9175_v9, %v7608_v37 }
 0x255   : > { %v7623_v47 = vsel %vm829_vm3, %v9196_v27, %v786_v24  ;;  %9199 = vst [vmem:[#allocation37_spill] sm:$0xff] %v7635_v56 }
 0x256   : > { %v7630_v4 = vsel %vm976_vm4, %v8916_v32, %v9197_v44  ;;  %v1396_v13 = vmul.f32 %v5926_v26, %v7623_v47  ;;  %v7644_v11 = vadd.f32 %v1712_v55, %v1678_v23 }
 0x258   : > { %v1428_v44 = vadd.f32 %v1396_v13, %v1362_v7  ;;  %v9203_v13 = vrot.slane %v7285_v49, 4 }
 0x259   : > { %v1906_v27 = vpop.permute.xlu2 %1905  ;;  %v7653_v56 = vpop.permute.xlu1 %1991 }
 0x25a   : > { %v2610_v12 = vld.sshfl [vmem:[#allocation1] sm:$0xff pattern:$0x75316420]  ;;  %v7646_v32 = vadd.f32 %v1462_v62, %v1428_v44  ;;  %1909 = vrot.lane.b32.xlu0 %v7285_v49, %s5463_s5  ;;  %v1192_v62 = vmul.f32 %v9184_v38, %v7504_v28  ;;  %v1324_v44 = vmul.f32 %v9195_v58, %v7536_v25  ;;  %v1458_v49 = vmul.f32 %v9175_v9, %v9177_v57 }
 0x25b   : > { %2647 = vst [vmem:[#allocation1] ss:$2 sm:$0xff] %v9198_v33  ;;  %2031 = vrot.lane.b32.xlu1 %v7644_v11, %s5463_s5  ;;  %2612 = vrot.lane.b32.xlu2 %v2610_v12, %s5464_s20  ;;  %v1456_v28 = vmul.f32 %v9175_v9, %v6854_v8  ;;  %v1262_v25 = vmul.f32 %v9185_v30, %v6854_v8 }
 0x25c   : > { %2649 = vst [vmem:[#allocation1 + $0x1] ss:$2 sm:$0xff] %v7375_v21  ;;  %v1878_v45 = vpop.permute.xlu0 %1877  ;;  %v9201_v21 = vld [vmem:[#allocation70_spill] sm:$0xff]  ;;  %v1654_v8 = vmul.f32 %v9091_v18, %v7562_v10 }
 0x25d   : > { %2494 = vst [vmem:[#allocation1 + $0x11] ss:$2 sm:$0xff] %v1878_v45 }
 0x261   : > { %v7659_v43 = vpop.permute.xlu2 %2241  ;;  %v1904_v23 = vpop.permute.xlu1 %1903 }
 0x262   : > { %1917 = vrot.lane.b32.xlu0 %v9203_v13, %s5463_s5  ;;  %v9204_v13 = vld [vmem:[#allocation68_spill] sm:$0xff] }
 0x263   : > { %v7651_v33 = vld.sshfl [vmem:[#allocation1] sm:$0xff pattern:$0x75316420] }
 0x264   : > { %9200 = vst [vmem:[#allocation75_spill] sm:$0xff] %v7651_v33  ;;  %v7661_v7 = vpop.permute.xlu0 %2013  ;;  %v7665_v12 = vld.sshfl [vmem:[#allocation1 + $0x10] sm:$0xff pattern:$0x75316420] }
 0x265   : > { %2656 = vst [vmem:[#allocation1] ss:$2 sm:$0xff] %v9201_v21 }
 0x266   : > { %2658 = vst [vmem:[#allocation1 + $0x1] ss:$2 sm:$0xff] %v7407_v0  ;;  %v1258_v0 = vmul.f32 %v9185_v30, %v9170_v1  ;;  %v1524_v30 = vmul.f32 %v9181_v14, %v7603_v29 }
 0x267   : > { %9202 = vst [vmem:[#allocation67_spill] sm:$0xff] %v7661_v7  ;;  %v1490_v7 = vadd.f32 %v1458_v49, %v9204_v13 }
 0x268   : > { %2501 = vst [vmem:[#allocation1 + $0x10] ss:$2 sm:$0xff] %v7299_v19  ;;  %v1390_v19 = vmul.f32 %v5926_v26, %v7547_v51 }
 0x269   : > { %2503 = vst [vmem:[#allocation1 + $0x11] ss:$2 sm:$0xff] %v7435_v6  ;;  %v7672_v45 = vpop.permute.xlu2 %2137  ;;  %v1290_v6 = vadd.f32 %v1258_v0, %v1192_v62  ;;  %v1522_v0 = vmul.f32 %v9181_v14, %v7580_v42  ;;  %v7698_v62 = vpop.f32.mrf.mxu1 }
 0x26b   : > { %v1356_v1 = vadd.f32 %v1324_v44, %v1290_v6  ;;  %v1328_v6 = vmul.f32 %v9195_v58, %v7580_v42  ;;  %v1156_v42 = vsel %vm975_vm5, %v7630_v4, 0.0  ;;  %v867_v4 = vrot.slane %v7698_v62, 7 }
 0x26d   : > { %v7663_v55 = vld.sshfl [vmem:[#allocation1] sm:$0xff pattern:$0x75316420]  ;;  %v1422_v44 = vadd.f32 %v1390_v19, %v1356_v1 }
 0x26e   : > { %2702 = vst [vmem:[#allocation1 + $0x1] ss:$2 sm:$0xff] %v1906_v27  ;;  %v1886_v27 = vpop.permute.xlu0 %1885 }
 0x26f   : > { %2700 = vst [vmem:[#allocation1] ss:$2 sm:$0xff] %v1904_v23  ;;  %v1196_v23 = vmul.f32 %v9184_v38, %v7547_v51  ;;  %v1488_v51 = vadd.f32 %v1456_v28, %v1422_v44  ;;  %v8917_v38 = vrot.slane %v7614_v16, 4  ;;  %v1590_v44 = vmul.f32 %v9089_v22, %v7623_v47 }
 0x270   : > { %v2505_v21 = vld.sshfl [vmem:[#allocation1 + $0x10] sm:$0xff pattern:$0x75316420] }
 0x271   : > { %2545 = vst [vmem:[#allocation1 + $0x10] ss:$2 sm:$0xff] %v7409_v20  ;;  %2508 = vrot.lane.b32.xlu1 %v2505_v21, %s5464_s20  ;;  %v9205_v20 = vrot.slane %v7562_v10, 7  ;;  %v7702_v21 = vpop.permute.xlu2 %1913  ;;  %v1294_v49 = vadd.f32 %v1262_v25, %v1196_v23  ;;  %v1554_v13 = vadd.f32 %v1522_v0, %v1488_v51  ;;  %v9206_v23 = vrot.slane %v7608_v37, 1 }
 0x272   : > { %2547 = vst [vmem:[#allocation1 + $0x11] ss:$2 sm:$0xff] %v1886_v27  ;;  %v7700_v27 = vpop.permute.xlu1 %2188  ;;  %v9207_v0 = vrot.slane %v7562_v10, 1 }
 0x273   : > { %v927_v33 = vsel %vm829_vm3, %v786_v24, %v9205_v20  ;;  %v1656_v24 = vmul.f32 %v9091_v18, %v7608_v37  ;;  %v1556_v20 = vadd.f32 %v1524_v30, %v1490_v7  ;;  %v1360_v25 = vadd.f32 %v1328_v6, %v1294_v49 }
 0x274   : > { %v967_v19 = vsel %vm747_vm6, %v927_v33, 0.0  ;;  %v1030_v7 = vsel %vm976_vm4, %v9207_v0, %v9206_v23  ;;  %v1528_v49 = vmul.f32 %v9181_v14, %v1156_v42 }
 0x275   : > { %v1588_v28 = vmul.f32 %v9089_v22, %v967_v19  ;;  %v1622_v33 = vadd.f32 %v1590_v44, %v1556_v20  ;;  %v1720_v47 = vmul.f32 %v9192_v31, %v1030_v7  ;;  %v1394_v37 = vmul.f32 %v5926_v26, %v967_v19 }
 0x277   : > { %v1620_v58 = vadd.f32 %v1588_v28, %v1554_v13  ;;  %v1688_v30 = vadd.f32 %v1656_v24, %v1622_v33  ;;  %v7742_v28 = vld.sshfl [vmem:[#allocation1] sm:$0xff pattern:$0x75316420]  ;;  %v1426_v26 = vadd.f32 %v1394_v37, %v1360_v25  ;;  %v1863_v37 = vrot.slane %v7644_v11, 4 }
 0x279   : > { %v7715_v1 = vld.sshfl [vmem:[#allocation1 + $0x10] sm:$0xff pattern:$0x75316420]  ;;  %2041 = vrot.lane.b32.xlu1 %v8917_v38, %s5463_s5  ;;  %v1686_v51 = vadd.f32 %v1654_v8, %v1620_v58  ;;  %v1722_v38 = vmul.f32 %v9192_v31, %v1156_v42  ;;  %v1034_v8 = vrot.slane %v7698_v62, 1  ;;  %v7745_v44 = vpop.permute.xlu2 %1987  ;;  %v1968_v58 = vpop.permute.xlu0 %1967 }
 0x27a   : > { %2554 = vst [vmem:[#allocation1 + $0x10] ss:$2 sm:$0xff] %v7474_v5  ;;  %v1460_v5 = vmul.f32 %v9175_v9, %v7562_v10  ;;  %v1912_v13 = vpop.permute.xlu1 %1911  ;;  %v1560_v9 = vadd.f32 %v1528_v49, %v7646_v32  ;;  %v1526_v10 = vmul.f32 %v9181_v14, %v1030_v7  ;;  %v1658_v7 = vmul.f32 %v9091_v18, %v7698_v62 }
 0x27b   : > { %2556 = vst [vmem:[#allocation1 + $0x11] ss:$2 sm:$0xff] %v7513_v50  ;;  %v741_v50 = vpop.f32.mrf.mxu1  ;;  %v7740_v6 = vadd.f32 %v1720_v47, %v1686_v51  ;;  %v7747_v33 = vadd.f32 %v1722_v38, %v1688_v30 }
 0x27c   : > { %v788_v24 = vrot.slane %v741_v50, 7  ;;  %v1035_v20 = vrot.slane %v741_v50, 1  ;;  %2709 = vst [vmem:[#allocation1] ss:$2 sm:$0xff] %v1968_v58  ;;  %v1492_v32 = vadd.f32 %v1460_v5, %v1426_v26 }
 0x27d   : > { %2035 = vrot.lane.b32.xlu0 %v7740_v6, %s5463_s5 }
 0x27e   : > { %v869_v42 = vsel %vm829_vm3, %v867_v4, %v788_v24  ;;  %v929_v23 = vsel %vm829_vm3, %v788_v24, %v867_v4  ;;  %v1036_v14 = vsel %vm976_vm4, %v1034_v8, %v1035_v20  ;;  %v1558_v47 = vadd.f32 %v1526_v10, %v1492_v32 }
 0x27f   : > { %v971_v38 = vsel %vm747_vm6, %v929_v23, 0.0  ;;  %v1594_v0 = vmul.f32 %v9089_v22, %v869_v42  ;;  %v1724_v30 = vmul.f32 %v9192_v31, %v1036_v14  ;;  %v1116_v62 = vsel %vm976_vm4, %v1035_v20, %v1034_v8  ;;  %v9210_v42 = vld [vmem:[#allocation63_spill] sm:$0xff] }
 0x280   : > { %v1592_v25 = vmul.f32 %v9089_v22, %v971_v38 }
 0x281   : > { %v1626_v51 = vadd.f32 %v1594_v0, %v1560_v9  ;;  %v7767_v5 = vpop.permute.xlu2 %1971  ;;  %v1920_v49 = vpop.permute.xlu0 %1919  ;;  %v9211_v0 = vld [vmem:[#allocation69_spill] sm:$0xff] }
 0x282   : > { %v2558_v19 = vld.sshfl [vmem:[#allocation1 + $0x10] sm:$0xff pattern:$0x75316420]  ;;  %v1624_v54 = vadd.f32 %v1592_v25, %v1558_v47  ;;  %v1970_v4 = vpop.permute.xlu1 %1969  ;;  %v9212_v25 = vld [vmem:[#allocation46_spill] sm:$0xff] }
 0x283   : > { %2598 = vst [vmem:[#allocation1 + $0x10] ss:$2 sm:$0xff] %v7452_v35  ;;  %2561 = vrot.lane.b32.xlu2 %v2558_v19, %s5464_s20  ;;  %v1660_v35 = vmul.f32 %v9091_v18, %v741_v50  ;;  %v1160_v50 = vsel %vm975_vm5, %v1116_v62, 0.0  ;;  %v9220_v62 = vld [vmem:[#allocation80_spill] sm:$0xff] }
 0x284   : > { %2600 = vst [vmem:[#allocation1 + $0x11] ss:$2 sm:$0xff] %v7454_v46  ;;  %v1690_v46 = vadd.f32 %v1658_v7, %v1624_v54  ;;  %v1726_v9 = vmul.f32 %v9192_v31, %v1160_v50  ;;  %v9217_v54 = vld [vmem:[#allocation44_spill] sm:$0xff] }
 0x285   : > { %2711 = vst [vmem:[#allocation1 + $0x1] ss:$2 sm:$0xff] %v1970_v4  ;;  %v1692_v22 = vadd.f32 %v1660_v35, %v1626_v51  ;;  %v9214_v51 = vld [vmem:[#allocation57_spill] sm:$0xff] }
 0x286   : > { %v7772_v58 = vadd.f32 %v1724_v30, %v1690_v46  ;;  %v9219_v46 = vld [vmem:[#allocation56_spill] sm:$0xff] }
 0x287   : > { %v7787_v19 = vadd.f32 %v1726_v9, %v1692_v22  ;;  %v9221_v9 = vld [vmem:[#allocation76_spill] sm:$0xff] }
 0x288   : > { %2037 = vrot.lane.b32.xlu0 %v7772_v58, %s5463_s5  ;;  %v1869_v4 = vrot.slane %v7772_v58, 4 }
 0x289   : > { %v1908_v8 = vpop.permute.xlu2 %1907  ;;  %v2084_v20 = vpop.permute.xlu0 %2083 }
 0x28a   : > { %v1922_v26 = vpop.permute.xlu1 %1921  ;;  %4596 = vmatpush.xpose.msk.msrb.mxu1 %vm2085_vm7, %v2084_v20  ;;  %v9222_v20 = vld [vmem:[#allocation62_spill] sm:$0xff] }
 0x28b   : > { %v7770_v24 = vld.sshfl [vmem:[#allocation1 + $0x10] sm:$0xff pattern:$0x75316420]  ;;  %2039 = vrot.lane.b32.xlu2 %v1863_v37, %s5463_s5 }
 0x28c   : > { %2607 = vst [vmem:[#allocation1 + $0x10] ss:$2 sm:$0xff] %v7258_v17  ;;  %v7785_v10 = vld.sshfl [vmem:[#allocation1] sm:$0xff pattern:$0x75316420] }
 0x28d   : > { %2609 = vst [vmem:[#allocation1 + $0x11] ss:$2 sm:$0xff] %v7519_v15 }
 0x28e   : > { %2753 = vst [vmem:[#allocation1] ss:$2 sm:$0xff] %v1912_v13  ;;  %4597 = vmatpush.xpose.msk.msrb.mxu1 %vm2085_vm7, %v7370_v53 }
 0x28f   : > { %2755 = vst [vmem:[#allocation1 + $0x1] ss:$2 sm:$0xff] %v7702_v21  ;;  %v9208_v21 = vld [vmem:[#allocation59_spill] sm:$0xff] }
 0x290   : > { %2453 = vrot.lane.b32.xlu0 %v7444_v52, %s5464_s20 }
 0x291   : > { %v7803_v15 = vpop.permute.xlu2 %1915  ;;  %4598 = vmatmul.msk.f32.vlgmr.msrb.gmra.mxu1 %vm2085_vm7, %v9208_v21 }
 0x292   : > { %4600 = vmatpush.xpose.msk.msra.mxu1 %vm2085_vm7, %v7672_v45  ;;  %v7799_v17 = vpop.permute.xlu1 %1923  ;;  %v9209_v45 = vld [vmem:[#allocation64_spill] sm:$0xff] }
 0x294   : > { %v2611_v60 = vld.sshfl [vmem:[#allocation1 + $0x10] sm:$0xff pattern:$0x75316420] }
 0x295   : > { %2651 = vst [vmem:[#allocation1 + $0x10] ss:$2 sm:$0xff] %v7490_v39  ;;  %v1978_v39 = vpop.permute.xlu0 %1977 }
 0x296   : > { %2653 = vst [vmem:[#allocation1 + $0x11] ss:$2 sm:$0xff] %v7584_v48  ;;  %v7801_v31 = vld.sshfl [vmem:[#allocation1] sm:$0xff pattern:$0x75316420]  ;;  %4601 = vmatpush.xpose.msk.msra.mxu1 %vm2085_vm7, %v7550_v59  ;;  %v1867_v59 = vrot.slane %v7740_v6, 4 }
 0x297   : > { %2762 = vst [vmem:[#allocation1] ss:$2 sm:$0xff] %v7485_v2 }
 0x298   : > { %2764 = vst [vmem:[#allocation1 + $0x1] ss:$2 sm:$0xff] %v1978_v39  ;;  %2402 = vrot.lane.b32.xlu0 %v7472_v40, %s5464_s20 }
 0x299   : > { %v7818_v48 = vpop.permute.xlu2 %1925  ;;  %4599 = vmatmul.msk.f32.gmra.mxu1 %vm2085_vm7, %v9209_v45 }
 0x29a   : > { %v7816_v52 = vpop.permute.xlu1 %1997 }
 0x29d   : > { %v7810_v53 = vld.sshfl [vmem:[#allocation1 + $0x10] sm:$0xff pattern:$0x75316420]  ;;  %v1930_v2 = vpop.permute.xlu0 %1929 }
 0x29e   : > { %2662 = vst [vmem:[#allocation1 + $0x11] ss:$2 sm:$0xff] %v7469_v34 }
 0x29f   : > { %2660 = vst [vmem:[#allocation1 + $0x10] ss:$2 sm:$0xff] %v7467_v3  ;;  %v2769_v13 = vld.sshfl [vmem:[#allocation1] sm:$0xff pattern:$0x75316420] }
 0x2a0   : > { %2806 = vst [vmem:[#allocation1] ss:$2 sm:$0xff] %v1920_v49  ;;  %2043 = vrot.lane.b32.xlu0 %v1867_v59, %s5463_s5 }
 0x2a1   : > { %2808 = vst [vmem:[#allocation1 + $0x1] ss:$2 sm:$0xff] %v1922_v26  ;;  %v7827_v40 = vpop.permute.xlu2 %2025  ;;  %4602 = vmatmul.msk.f32.vlgmr.msra.gmra.mxu1 %vm2085_vm7, %v9210_v42 }
 0x2a2   : > { %v2244_v3 = vpop.permute.xlu1 %2243 }
 0x2a3   : > { %4608 = vmatpush.xpose.msk.msra.mxu3 %vm2085_vm7, %v2244_v3  ;;  %v9226_v3 = vld [vmem:[#allocation61_spill] sm:$0xff] }
 0x2a5   : > { %v7831_v23 = vpop.permute.xlu0 %1995 }
 0x2a6   : > { %v2664_v34 = vld.sshfl [vmem:[#allocation1 + $0x10] sm:$0xff pattern:$0x75316420] }
 0x2a7   : > { %2704 = vst [vmem:[#allocation1 + $0x10] ss:$2 sm:$0xff] %v1908_v8  ;;  %2667 = vrot.lane.b32.xlu1 %v2664_v34, %s5464_s20  ;;  %4609 = vmatpush.xpose.msk.msra.mxu3 %vm2085_vm7, %v7659_v43  ;;  %v9225_v34 = vld [vmem:[#allocation51_spill] sm:$0xff] }
 0x2a8   : > { %v7834_v38 = vld.sshfl [vmem:[#allocation1] sm:$0xff pattern:$0x75316420]  ;;  %2559 = vrot.lane.b32.xlu0 %v7540_v61, %s5464_s20  ;;  %v9213_v61 = vld [vmem:[#allocation49_spill] sm:$0xff] }
 0x2a9   : > { %2815 = vst [vmem:[#allocation1] ss:$2 sm:$0xff] %v7618_v36  ;;  %v7847_v14 = vpop.permute.xlu2 %2400  ;;  %4603 = vmatmul.msk.f32.gmra.mxu1 %vm2085_vm7, %v9212_v25  ;;  %v9227_v25 = vrot.slane %v9225_v34, 4 }
 0x2aa   : > { %2817 = vst [vmem:[#allocation1 + $0x1] ss:$2 sm:$0xff] %v7552_v41  ;;  %4610 = vmatmul.msk.f32.vlgmr.msra.gmra.mxu3 %vm2085_vm7, %v9211_v0  ;;  %v7844_v32 = vpop.permute.xlu1 %1981 }
 0x2ad   : > { %v2191_v36 = vpop.permute.xlu0 %2190 }
 0x2ae   : > { %4604 = vmatpush.xpose.msk.msra.mxu2 %vm2085_vm7, %v2191_v36 }
 0x2af   : > { %2771 = vrot.lane.b32.xlu1 %v2769_v13, %s5464_s20 }
 0x2b0   : > { %2665 = vrot.lane.b32.xlu0 %v7663_v55, %s5464_s20 }
 0x2b1   : > { %v7852_v41 = vld.sshfl [vmem:[#allocation1] sm:$0xff pattern:$0x75316420]  ;;  %v2350_v7 = vpop.permute.xlu2 %2349 }
 0x2b2   : > { %2859 = vst [vmem:[#allocation1] ss:$2 sm:$0xff] %v7515_v63  ;;  %4605 = vmatpush.xpose.msk.msra.mxu2 %vm2085_vm7, %v7700_v27  ;;  %4611 = vmatmul.msk.f32.gmra.mxu3 %vm2085_vm7, %v9213_v61  ;;  %v2348_v43 = vpop.permute.xlu1 %2347  ;;  %v9215_v63 = vld [vmem:[#allocation36_spill] sm:$0xff]  ;;  %v9216_v27 = vld [vmem:[#allocation41_spill] sm:$0xff]  ;;  %v9228_v61 = vrot.slane %v9226_v3, 4 }
 0x2b3   : > { %2861 = vst [vmem:[#allocation1 + $0x1] ss:$2 sm:$0xff] %v1930_v2  ;;  %4616 = vmatpush.xpose.msk.msrb.mxu3 %vm2085_vm7, %v2350_v7 }
 0x2b5   : > { %4606 = vmatmul.msk.f32.vlgmr.msra.gmra.mxu2 %vm2085_vm7, %v9214_v51  ;;  %v1980_v47 = vpop.permute.xlu0 %1979 }
 0x2b7   : > { %4617 = vmatpush.xpose.msk.msrb.mxu3 %vm2085_vm7, %v2348_v43 }
 0x2b8   : > { %2614 = vrot.lane.b32.xlu0 %v2611_v60, %s5464_s20 }
 0x2b9   : > { %v7918_v36 = vpop.permute.xlu2 %2506 }
 0x2ba   : > { %v7864_v35 = vld.sshfl [vmem:[#allocation1] sm:$0xff pattern:$0x75316420]  ;;  %v7870_v55 = vpop.permute.xlu1 %1933  ;;  %4618 = vmatmul.msk.f32.vlgmr.msrb.gmra.mxu3 %vm2085_vm7, %v9216_v27 }
 0x2bb   : > { %2868 = vst [vmem:[#allocation1] ss:$2 sm:$0xff] %v7653_v56  ;;  %v9218_v56 = vld [vmem:[#allocation60_spill] sm:$0xff] }
 0x2bc   : > { %2870 = vst [vmem:[#allocation1 + $0x1] ss:$2 sm:$0xff] %v9215_v63  ;;  %v9224_v45 = vrot.slane %v9218_v56, 4 }
 0x2bd   : > { %4607 = vmatmul.msk.f32.gmra.mxu2 %vm2085_vm7, %v9217_v54  ;;  %v2295_v30 = vpop.permute.xlu0 %2294  ;;  %v1652_v54 = vmul.f32 %v9091_v18, %v9177_v57 }
 0x2c0   : > { %2045 = vrot.lane.b32.xlu0 %v1869_v4, %s5463_s5 }
 0x2c2   : > { %v2297_v22 = vpop.permute.xlu1 %2296  ;;  %4619 = vmatmul.msk.f32.gmra.mxu3 %vm2085_vm7, %v9220_v62  ;;  %v9231_v62 = vld [vmem:[#allocation65_spill] sm:$0xff] }
 0x2c3   : > { %v7877_v49 = vld.sshfl [vmem:[#allocation1] sm:$0xff pattern:$0x75316420]  ;;  %4612 = vmatpush.xpose.msk.msrb.mxu2 %vm2085_vm7, %v2297_v22 }
 0x2c4   : > { %3267 = vst [vmem:[#allocation1 + $0x1] ss:$2 sm:$0xff] %v9218_v56  ;;  %v5109_v22 = vld [vmem:[#allocation10 + $0x18] ss:$0 sm:$0xff] }
 0x2c5   : > { %3265 = vst [vmem:[#allocation1] ss:$2 sm:$0xff] %v9219_v46  ;;  %v7886_v50 = vpop.permute.xlu0 %1931 }
 0x2c7   : > { %4613 = vmatpush.xpose.msk.msrb.mxu2 %vm2085_vm7, %v2295_v30  ;;  %v9229_v30 = vrot.slane %v7614_v16, 4 }
 0x2c8   : > { %2718 = vrot.lane.b32.xlu0 %v7785_v10, %s5464_s20  ;;  %v9223_v10 = vrot.slane %v9219_v46, 4 }
 0x2ca   : > { %4614 = vmatmul.msk.f32.vlgmr.msrb.gmra.mxu2 %vm2085_vm7, %v9221_v9  ;;  %v7894_v26 = vpop.permute.xlu1 %2023 }
 0x2cc   : > { %v7901_v39 = vld.sshfl [vmem:[#allocation1] sm:$0xff pattern:$0x75316420] }
 0x2cd   : > { %v1990_v8 = vpop.permute.xlu0 %1989  ;;  %3305 = vst [vmem:[#allocation1] ss:$2 sm:$0xff] %v9223_v10 }
 0x2ce   : > { %3307 = vst [vmem:[#allocation1 + $0x1] ss:$2 sm:$0xff] %v9224_v45 }
 0x2d0   : > { %2051 = vrot.lane.b32.xlu0 %v7747_v33, %s5463_s5 }
 0x2d2   : > { %4615 = vmatmul.msk.f32.gmra.mxu2 %vm2085_vm7, %v9222_v20  ;;  %v2456_v60 = vpop.permute.xlu1 %2455  ;;  %v1864_v20 = vrot.slane %v9231_v62, 4 }
 0x2d3   : > { %4624 = vmatpush.xpose.msk.msra.mxu3 %vm2085_vm7, %v2456_v60 }
 0x2d5   : > { %v1974_v21 = vpop.permute.xlu0 %1973  ;;  %v7907_v13 = vld.sshfl [vmem:[#allocation1] sm:$0xff pattern:$0x75316420] }
 0x2d6   : > { %3345 = vst [vmem:[#allocation1] ss:$2 sm:$0xff] %v9225_v34  ;;  %v9234_v34 = vld [vmem:[#allocation79_spill] sm:$0xff] }
 0x2d7   : > { %3347 = vst [vmem:[#allocation1 + $0x1] ss:$2 sm:$0xff] %v9226_v3 }
 0x2da   : > { %v7955_v18 = vpop.permute.xlu1 %2031 }
 0x2dd   : > { %v1910_v2 = vpop.permute.xlu0 %1909 }
 0x2de   : > { %2706 = vst [vmem:[#allocation1 + $0x11] ss:$2 sm:$0xff] %v1910_v2  ;;  %v7914_v0 = vld.sshfl [vmem:[#allocation1] sm:$0xff pattern:$0x75316420] }
 0x2df   : > { %3385 = vst [vmem:[#allocation1] ss:$2 sm:$0xff] %v9227_v25 }
 0x2e0   : > { %3387 = vst [vmem:[#allocation1 + $0x1] ss:$2 sm:$0xff] %v9228_v61 }
 0x2e5   : > { %v7911_v42 = vld.sshfl [vmem:[#allocation1 + $0x10] sm:$0xff pattern:$0x75316420]  ;;  %v1918_v43 = vpop.permute.xlu0 %1917 }
 0x2e6   : > { %2713 = vst [vmem:[#allocation1 + $0x10] ss:$2 sm:$0xff] %v7767_v5  ;;  %v7928_v5 = vpop.permute.xlu2 %2033 }
 0x2e7   : > { %2715 = vst [vmem:[#allocation1 + $0x11] ss:$2 sm:$0xff] %v1974_v21  ;;  %v7924_v51 = vld.sshfl [vmem:[#allocation1] sm:$0xff pattern:$0x75316420] }
 0x2e8   : > { %3425 = vst [vmem:[#allocation1] ss:$2 sm:$0xff] %v7644_v11 }
 0x2e9   : > { %3427 = vst [vmem:[#allocation1 + $0x1] ss:$2 sm:$0xff] %v7614_v16 }
 0x2ee   : > { %v2717_v7 = vld.sshfl [vmem:[#allocation1 + $0x10] sm:$0xff pattern:$0x75316420]  ;;  %v7947_v46 = vpop.permute.xlu2 %2612 }
 0x2ef   : > { %2757 = vst [vmem:[#allocation1 + $0x10] ss:$2 sm:$0xff] %v7803_v15  ;;  %2720 = vrot.lane.b32.xlu1 %v2717_v7, %s5464_s20  ;;  %v7930_v63 = vpop.permute.xlu0 %2035  ;;  %v9237_v7 = vld [vmem:[#allocation83_spill] sm:$0xff] }
 0x2f0   : > { %2759 = vst [vmem:[#allocation1 + $0x11] ss:$2 sm:$0xff] %v1918_v43  ;;  %v7937_v15 = vld.sshfl [vmem:[#allocation1] sm:$0xff pattern:$0x75316420] }
 0x2f1   : > { %3465 = vst [vmem:[#allocation1] ss:$2 sm:$0xff] %v1863_v37 }
 0x2f2   : > { %3467 = vst [vmem:[#allocation1 + $0x1] ss:$2 sm:$0xff] %v9229_v30  ;;  %v9239_v30 = vld [vmem:[#allocation78_spill] sm:$0xff] }
 0x2f6   : > { %v2562_v11 = vpop.permute.xlu2 %2561 }
 0x2f7   : > { %v7932_v27 = vld.sshfl [vmem:[#allocation1 + $0x10] sm:$0xff pattern:$0x75316420]  ;;  %2824 = vrot.lane.b32.xlu1 %v7852_v41, %s5464_s20  ;;  %v1718_v41 = vmul.f32 %v5109_v22, %v7603_v29  ;;  %v9240_v22 = vld [vmem:[#allocation54_spill] sm:$0xff] }
 0x2f8   : > { %2766 = vst [vmem:[#allocation1 + $0x10] ss:$2 sm:$0xff] %v1980_v47  ;;  %v9230_v47 = vld [vmem:[#allocation50_spill] sm:$0xff] }
 0x2f9   : > { %2768 = vst [vmem:[#allocation1 + $0x11] ss:$2 sm:$0xff] %v7844_v32  ;;  %v1684_v32 = vadd.f32 %v1652_v54, %v9230_v47  ;;  %v7960_v16 = vld.sshfl [vmem:[#allocation1] sm:$0xff pattern:$0x75316420]  ;;  %v9241_v47 = vld [vmem:[#allocation84_spill] sm:$0xff] }
 0x2fa   : > { %v7945_v56 = vpop.permute.xlu0 %2037  ;;  %3505 = vst [vmem:[#allocation1] ss:$2 sm:$0xff] %v9231_v62 }
 0x2fb   : > { %v7958_v57 = vadd.f32 %v1718_v41, %v1684_v32 }
 0x2fd   : > { %3507 = vst [vmem:[#allocation1 + $0x1] ss:$2 sm:$0xff] %v7958_v57  ;;  %v1866_v60 = vrot.slane %v7958_v57, 4 }
 0x2ff   : > { %2047 = vrot.lane.b32.xlu1 %v9231_v62, %s5463_s5 }
 0x300   : > { %v2770_v9 = vld.sshfl [vmem:[#allocation1 + $0x10] sm:$0xff pattern:$0x75316420] }
 0x301   : > { %2810 = vst [vmem:[#allocation1 + $0x10] ss:$2 sm:$0xff] %v7799_v17  ;;  %2773 = vrot.lane.b32.xlu2 %v2770_v9, %s5464_s20  ;;  %v9232_v17 = vld [vmem:[#allocation81_spill] sm:$0xff]  ;;  %v9243_v9 = vld [vmem:[#allocation74_spill] sm:$0xff] }
 0x302   : > { %2812 = vst [vmem:[#allocation1 + $0x11] ss:$2 sm:$0xff] %v7818_v48  ;;  %v2454_v29 = vpop.permute.xlu0 %2453  ;;  %v2509_v48 = vpop.permute.xlu1 %2508 }
 0x303   : > { %4625 = vmatpush.xpose.msk.msra.mxu3 %vm2085_vm7, %v2454_v29 }
 0x304   : > { %v7975_v21 = vld.sshfl [vmem:[#allocation1] sm:$0xff pattern:$0x75316420] }
 0x305   : > { %3545 = vst [vmem:[#allocation1] ss:$2 sm:$0xff] %v1864_v20 }
 0x306   : > { %4626 = vmatmul.msk.f32.vlgmr.msra.gmra.mxu3 %vm2085_vm7, %v9232_v17  ;;  %3547 = vst [vmem:[#allocation1 + $0x1] ss:$2 sm:$0xff] %v1866_v60  ;;  %v9244_v17 = vld [vmem:[#allocation73_spill] sm:$0xff] }
 0x307   : > { %4632 = vmatpush.xpose.msk.msrb.mxu3 %vm2085_vm7, %v2562_v11 }
 0x309   : > { %v7966_v37 = vld.sshfl [vmem:[#allocation1 + $0x10] sm:$0xff pattern:$0x75316420]  ;;  %2877 = vrot.lane.b32.xlu2 %v7877_v49, %s5464_s20  ;;  %v9233_v49 = vld [vmem:[#allocation86_spill] sm:$0xff] }
 0x30a   : > { %2819 = vst [vmem:[#allocation1 + $0x10] ss:$2 sm:$0xff] %v7745_v44  ;;  %v2403_v10 = vpop.permute.xlu0 %2402  ;;  %v7992_v45 = vpop.permute.xlu1 %2041 }
 0x30b   : > { %2821 = vst [vmem:[#allocation1 + $0x11] ss:$2 sm:$0xff] %v1990_v8  ;;  %4620 = vmatpush.xpose.msk.msra.mxu2 %vm2085_vm7, %v2403_v10 }
 0x30d   : > { %v7998_v3 = vld.sshfl [vmem:[#allocation1] sm:$0xff pattern:$0x75316420] }
 0x30e   : > { %4627 = vmatmul.msk.f32.gmra.mxu3 %vm2085_vm7, %v9233_v49  ;;  %v7986_v8 = vpop.f32.mrf.mxu1 }
 0x30f   : > { %4621 = vmatpush.xpose.msk.msra.mxu2 %vm2085_vm7, %v7847_v14  ;;  %v9235_v14 = vld [vmem:[#allocation72_spill] sm:$0xff] }
 0x310   : > { %3585 = vst [vmem:[#allocation1] ss:$2 sm:$0xff] %v9235_v14 }
 0x312   : > { %v2823_v44 = vld.sshfl [vmem:[#allocation1 + $0x10] sm:$0xff pattern:$0x75316420]  ;;  %v7994_v2 = vpop.permute.xlu0 %2043  ;;  %4622 = vmatmul.msk.f32.vlgmr.msra.gmra.mxu2 %vm2085_vm7, %v9234_v34 }
 0x313   : > { %2863 = vst [vmem:[#allocation1 + $0x10] ss:$2 sm:$0xff] %v7886_v50  ;;  %4628 = vmatpush.xpose.msk.msrb.mxu2 %vm2085_vm7, %v2509_v48  ;;  %2826 = vrot.lane.b32.xlu2 %v2823_v44, %s5464_s20  ;;  %v9236_v50 = vld [vmem:[#allocation71_spill] sm:$0xff]  ;;  %v9245_v48 = vld [vmem:[#allocation58_spill] sm:$0xff] }
 0x314   : > { %2865 = vst [vmem:[#allocation1 + $0x11] ss:$2 sm:$0xff] %v7870_v55 }
 0x315   : > { %3587 = vst [vmem:[#allocation1 + $0x1] ss:$2 sm:$0xff] %v9236_v50 }
 0x316   : > { %v8004_v25 = vpop.f32.mrf.mxu1 }
 0x317   : > { %4629 = vmatpush.xpose.msk.msrb.mxu2 %vm2085_vm7, %v7918_v36  ;;  %v9238_v36 = vld [vmem:[#allocation66_spill] sm:$0xff] }
 0x319   : > { %v2668_v55 = vpop.permute.xlu1 %2667 }
 0x31a   : > { %v2560_v43 = vpop.permute.xlu0 %2559  ;;  %4623 = vmatmul.msk.f32.gmra.mxu2 %vm2085_vm7, %v9237_v7 }
 0x31b   : > { %v8006_v61 = vld.sshfl [vmem:[#allocation1 + $0x10] sm:$0xff pattern:$0x75316420]  ;;  %4633 = vmatpush.xpose.msk.msrb.mxu3 %vm2085_vm7, %v2560_v43 }
 0x31c   : > { %2872 = vst [vmem:[#allocation1 + $0x10] ss:$2 sm:$0xff] %v7831_v23  ;;  %v8013_v54 = vld.sshfl [vmem:[#allocation1] sm:$0xff pattern:$0x75316420] }
 0x31d   : > { %2874 = vst [vmem:[#allocation1 + $0x11] ss:$2 sm:$0xff] %v7816_v52  ;;  %v9242_v52 = vld [vmem:[#allocation53_spill] sm:$0xff] }
 0x31e   : > { %3625 = vst [vmem:[#allocation1] ss:$2 sm:$0xff] %v9238_v36  ;;  %4634 = vmatmul.msk.f32.vlgmr.msrb.gmra.mxu3 %vm2085_vm7, %v9240_v22  ;;  %v8024_v32 = vpop.f32.mrf.mxu1  ;;  %v9248_v50 = vrot.slane %v9242_v52, 4  ;;  %v9251_v36 = vld [vmem:[#allocation40_spill] sm:$0xff] }
 0x31f   : > { %4640 = vmatpush.xpose.msk.msra.mxu3 %vm2085_vm7, %v2668_v55  ;;  %3627 = vst [vmem:[#allocation1 + $0x1] ss:$2 sm:$0xff] %v9239_v30  ;;  %v2919_v11 = vsel %vm2912_vm8, %v8024_v32, -inf  ;;  %v9249_v55 = vrot.slane %v9243_v9, 4 }
 0x322   : > { %v2666_v41 = vpop.permute.xlu0 %2665  ;;  %4630 = vmatmul.msk.f32.vlgmr.msrb.gmra.mxu2 %vm2085_vm7, %v9241_v47 }
 0x323   : > { %4641 = vmatpush.xpose.msk.msra.mxu3 %vm2085_vm7, %v2666_v41  ;;  %v9253_v41 = vrot.slane %v9251_v36, 4 }
 0x324   : > { %v2876_v23 = vld.sshfl [vmem:[#allocation1 + $0x10] sm:$0xff pattern:$0x75316420] }
 0x325   : > { %2879 = vrot.lane.b32.xlu0 %v2876_v23, %s5464_s20  ;;  %3269 = vst [vmem:[#allocation1 + $0x10] ss:$2 sm:$0xff] %v9242_v52 }
 0x326   : > { %3271 = vst [vmem:[#allocation1 + $0x11] ss:$2 sm:$0xff] %v9243_v9  ;;  %v8028_v29 = vld.sshfl [vmem:[#allocation1] sm:$0xff pattern:$0x75316420]  ;;  %4635 = vmatmul.msk.f32.gmra.mxu3 %vm2085_vm7, %v7715_v1  ;;  %v8075_v7 = vpop.f32.mrf.mxu1 }
 0x327   : > { %3665 = vst [vmem:[#allocation1] ss:$2 sm:$0xff] %v9244_v17  ;;  %v9246_v1 = vld [vmem:[#allocation75_spill] sm:$0xff]  ;;  %v2913_v17 = vsel %vm2912_vm8, %v7986_v8, -inf }
 0x328   : > { %3667 = vst [vmem:[#allocation1 + $0x1] ss:$2 sm:$0xff] %v9245_v48 }
 0x329   : > { %2920 = vmax.xlane.f32.xlu1 %v2919_v11 }
 0x32a   : > { %4631 = vmatmul.msk.f32.gmra.mxu2 %vm2085_vm7, %v7665_v12  ;;  %v2615_v10 = vpop.permute.xlu0 %2614  ;;  %v9247_v12 = vld [vmem:[#allocation48_spill] sm:$0xff] }
 0x32b   : > { %4636 = vmatpush.xpose.msk.msra.mxu2 %vm2085_vm7, %v2615_v10 }
 0x32d   : > { %2053 = vrot.lane.b32.xlu0 %v7787_v19, %s5463_s5  ;;  %v8041_v49 = vpop.f32.mrf.mxu3  ;;  %v8055_v14 = vld.sshfl [vmem:[#allocation1 + $0x10] sm:$0xff pattern:$0x75316420] }
 0x32e   : > { %v2931_v44 = vsel %vm2912_vm8, %v8041_v49, -inf  ;;  %4642 = vmatmul.msk.f32.vlgmr.msra.gmra.mxu3 %vm2085_vm7, %v9246_v1  ;;  %3309 = vst [vmem:[#allocation1 + $0x10] ss:$2 sm:$0xff] %v9248_v50 }
 0x32f   : > { %v8045_v34 = vld.sshfl [vmem:[#allocation1] sm:$0xff pattern:$0x75316420]  ;;  %4637 = vmatpush.xpose.msk.msra.mxu2 %vm2085_vm7, %v7947_v46  ;;  %3311 = vst [vmem:[#allocation1 + $0x11] ss:$2 sm:$0xff] %v9249_v55 }
 0x330   : > { %3705 = vst [vmem:[#allocation1] ss:$2 sm:$0xff] %v7894_v26 }
 0x331   : > { %2932 = vmax.xlane.f32.xlu1 %v2931_v44  ;;  %3707 = vst [vmem:[#allocation1 + $0x1] ss:$2 sm:$0xff] %v7827_v40  ;;  %v2916_v40 = vsel %vm2912_vm8, %v8004_v25, -inf  ;;  %v2772_v44 = vpop.permute.xlu1 %2771 }
 0x332   : > { %4638 = vmatmul.msk.f32.vlgmr.msra.gmra.mxu2 %vm2085_vm7, %v9247_v12  ;;  %v8112_v12 = vpop.permute.xlu0 %2045 }
 0x335   : > { %v8101_v11 = vpop.f32.mrf.mxu3 }
 0x336   : > { %4643 = vmatmul.msk.f32.gmra.mxu3 %vm2085_vm7, %v7810_v53  ;;  %v8073_v43 = vld.sshfl [vmem:[#allocation1 + $0x10] sm:$0xff pattern:$0x75316420]  ;;  %v9250_v53 = vld [vmem:[#allocation52_spill] sm:$0xff] }
 0x337   : > { %3349 = vst [vmem:[#allocation1 + $0x10] ss:$2 sm:$0xff] %v9250_v53  ;;  %v9252_v23 = vrot.slane %v9250_v53, 4 }
 0x338   : > { %v8063_v26 = vld.sshfl [vmem:[#allocation1] sm:$0xff pattern:$0x75316420]  ;;  %v8071_v46 = vpop.f32.mrf.mxu2  ;;  %3351 = vst [vmem:[#allocation1 + $0x11] ss:$2 sm:$0xff] %v9251_v36 }
 0x339   : > { %3745 = vst [vmem:[#allocation1] ss:$2 sm:$0xff] %v7955_v18  ;;  %v2040_v18 = vpop.permute.xlu2 %2039 }
 0x33a   : > { %3747 = vst [vmem:[#allocation1 + $0x1] ss:$2 sm:$0xff] %v7928_v5  ;;  %4639 = vmatmul.msk.f32.gmra.mxu2 %vm2085_vm7, %v7770_v24  ;;  %v2922_v5 = vsel %vm2912_vm8, %v8075_v7, -inf }
 0x33c   : > { %2917 = vmax.xlane.f32.xlu2 %v2916_v40  ;;  %v2925_v40 = vsel %vm2912_vm8, %v8071_v46, -inf }
 0x33d   : > { %v8119_v55 = vpop.f32.mrf.mxu3 }
 0x33e   : > { %v2943_v53 = vsel %vm2912_vm8, %v8119_v55, -inf }
 0x33f   : > { %v8086_v22 = vld.sshfl [vmem:[#allocation1 + $0x10] sm:$0xff pattern:$0x75316420] }
 0x340   : > { %v8084_v24 = vpop.f32.mrf.mxu2  ;;  %3389 = vst [vmem:[#allocation1 + $0x10] ss:$2 sm:$0xff] %v9252_v23  ;;  %v1870_v23 = vrot.slane %v7787_v19, 4 }
 0x341   : > { %v8079_v30 = vld.sshfl [vmem:[#allocation1] sm:$0xff pattern:$0x75316420]  ;;  %3391 = vst [vmem:[#allocation1 + $0x11] ss:$2 sm:$0xff] %v9253_v41  ;;  %v2928_v47 = vsel %vm2912_vm8, %v8084_v24, -inf }
 0x342   : > { %3785 = vst [vmem:[#allocation1] ss:$2 sm:$0xff] %v2040_v18 }
 0x343   : > { %3787 = vst [vmem:[#allocation1 + $0x1] ss:$2 sm:$0xff] %v7992_v45 }
 0x344   : > { %2923 = vmax.xlane.f32.xlu2 %v2922_v5  ;;  %v1868_v5 = vrot.slane %v7747_v33, 4 }
 0x348   : > { %v8098_v45 = vld.sshfl [vmem:[#allocation1 + $0x10] sm:$0xff pattern:$0x75316420] }
 0x349   : > { %3429 = vst [vmem:[#allocation1 + $0x10] ss:$2 sm:$0xff] %v7740_v6 }
 0x34a   : > { %3431 = vst [vmem:[#allocation1 + $0x11] ss:$2 sm:$0xff] %v7772_v58 }
 0x34c   : > { %2929 = vmax.xlane.f32.xlu2 %v2928_v47 }
 0x34d   : > { %v8094_v52 = vpop.f32.mrf.mxu2 }
 0x34e   : > { %v2937_v9 = vsel %vm2912_vm8, %v8094_v52, -inf }
 0x34f   : > { %2938 = vmax.xlane.f32.xlu1 %v2937_v9  ;;  %v8156_v9 = vld.sshfl [vmem:[#allocation1] sm:$0xff pattern:$0x75316420] }
 0x351   : > { %v8110_v1 = vld.sshfl [vmem:[#allocation1 + $0x10] sm:$0xff pattern:$0x75316420] }
 0x352   : > { %3469 = vst [vmem:[#allocation1 + $0x10] ss:$2 sm:$0xff] %v1867_v59  ;;  %v2719_v59 = vpop.permute.xlu0 %2718 }
 0x353   : > { %3471 = vst [vmem:[#allocation1 + $0x11] ss:$2 sm:$0xff] %v1869_v4  ;;  %v2934_v4 = vsel %vm2912_vm8, %v8101_v11, -inf }
 0x355   : > { %v8106_v48 = vpop.f32.mrf.mxu2 }
 0x356   : > { %v2940_v10 = vsel %vm2912_vm8, %v8106_v48, -inf }
 0x357   : > { %2914 = vmax.xlane.f32.xlu0 %v2913_v17  ;;  %2941 = vmax.xlane.f32.xlu2 %v2940_v10  ;;  %v9254_v10 = vld [vmem:[#allocation77_spill] sm:$0xff] }
 0x35a   : > { %v8127_v6 = vld.sshfl [vmem:[#allocation1 + $0x10] sm:$0xff pattern:$0x75316420] }
 0x35b   : > { %v2774_v50 = vpop.permute.xlu2 %2773  ;;  %3509 = vst [vmem:[#allocation1 + $0x10] ss:$2 sm:$0xff] %v7747_v33 }
 0x35c   : > { %4648 = vmatpush.xpose.msk.msrb.mxu3 %vm2085_vm7, %v2774_v50  ;;  %3511 = vst [vmem:[#allocation1 + $0x11] ss:$2 sm:$0xff] %v7787_v19  ;;  %v9258_v50 = vld [vmem:[#allocation38_spill] sm:$0xff] }
 0x35f   : > { %2926 = vmax.xlane.f32.xlu0 %v2925_v40  ;;  %2944 = vmax.xlane.f32.xlu2 %v2943_v53  ;;  %v9261_v53 = vld [vmem:[#allocation37_spill] sm:$0xff] }
 0x360   : > { %4649 = vmatpush.xpose.msk.msrb.mxu3 %vm2085_vm7, %v2772_v44  ;;  %v9255_v44 = vld [vmem:[#allocation45_spill] sm:$0xff] }
 0x361   : > { %v2721_v36 = vpop.permute.xlu1 %2720 }
 0x362   : > { %4644 = vmatpush.xpose.msk.msrb.mxu2 %vm2085_vm7, %v2721_v36 }
 0x363   : > { %4650 = vmatmul.msk.f32.vlgmr.msrb.gmra.mxu3 %vm2085_vm7, %v7801_v31  ;;  %v8131_v58 = vpop.permute.xlu2 %2877  ;;  %v8141_v31 = vpop.f32.mrf.mxu3  ;;  %v3513_v41 = vld.sshfl [vmem:[#allocation1 + $0x10] sm:$0xff pattern:$0x75316420] }
 0x364   : > { %3536 = vmatpush.msrb.mxu0 %v3513_v41  ;;  %3549 = vst [vmem:[#allocation1 + $0x10] ss:$2 sm:$0xff] %v1868_v5 }
 0x365   : > { %3551 = vst [vmem:[#allocation1 + $0x11] ss:$2 sm:$0xff] %v1870_v23 }
 0x366   : > { %4645 = vmatpush.xpose.msk.msrb.mxu2 %vm2085_vm7, %v2719_v59  ;;  %3537 = vmatpush.msrb.mxu0 %v7975_v21  ;;  %v9256_v21 = vld [vmem:[#allocation85_spill] sm:$0xff] }
 0x367   : > { %2935 = vmax.xlane.f32.xlu0 %v2934_v4 }
 0x369   : > { %4646 = vmatmul.msk.f32.vlgmr.msrb.gmra.mxu2 %vm2085_vm7, %v7742_v28  ;;  %v2825_v18 = vpop.permute.xlu1 %2824  ;;  %v2946_v28 = vsel %vm2912_vm8, %v8141_v31, -inf }
 0x36b   : > { %4651 = vmatmul.msk.f32.gmra.mxu3 %vm2085_vm7, %v7932_v27 }
 0x36c   : > { %v3553_v17 = vld.sshfl [vmem:[#allocation1 + $0x10] sm:$0xff pattern:$0x75316420] }
 0x36d   : > { %v2827_v47 = vpop.permute.xlu2 %2826  ;;  %3576 = vmatpush.msrb.mxu1 %v3553_v17  ;;  %3589 = vst [vmem:[#allocation1 + $0x10] ss:$2 sm:$0xff] %v9254_v10 }
 0x36e   : > { %4652 = vmatpush.xpose.msk.msra.mxu2 %vm2085_vm7, %v2827_v47  ;;  %3591 = vst [vmem:[#allocation1 + $0x11] ss:$2 sm:$0xff] %v9255_v44 }
 0x36f   : > { %2947 = vmax.xlane.f32.xlu0 %v2946_v28  ;;  %3577 = vmatpush.msrb.mxu1 %v7998_v3  ;;  %v9259_v3 = vld [vmem:[#allocation43_spill] sm:$0xff] }
 0x371   : > { %4647 = vmatmul.msk.f32.gmra.mxu2 %vm2085_vm7, %v7911_v42  ;;  %v2048_v27 = vpop.permute.xlu1 %2047 }
 0x372   : > { %4653 = vmatpush.xpose.msk.msra.mxu2 %vm2085_vm7, %v2825_v18  ;;  %3825 = vst [vmem:[#allocation1] ss:$2 sm:$0xff] %v2048_v27 }
 0x375   : > { %v8168_v42 = vld.sshfl [vmem:[#allocation1 + $0x10] sm:$0xff pattern:$0x75316420] }
 0x376   : > { %3296 = vmatpush.msrb.mxu2 %v8055_v14  ;;  %3629 = vst [vmem:[#allocation1 + $0x10] ss:$2 sm:$0xff] %v9256_v21  ;;  %v9257_v14 = vld [vmem:[#allocation67_spill] sm:$0xff] }
 0x377   : > { %3631 = vst [vmem:[#allocation1 + $0x11] ss:$2 sm:$0xff] %v9257_v14 }
 0x378   : > { %3297 = vmatpush.msrb.mxu2 %v7901_v39 }
 0x379   : > { %4654 = vmatmul.msk.f32.vlgmr.msra.gmra.mxu2 %vm2085_vm7, %v7834_v38 }
 0x37a   : > { %3376 = vmatpush.msra.mxu2 %v8086_v22  ;;  %v2052_v22 = vpop.permute.xlu0 %2051 }
 0x37c   : > { %3377 = vmatpush.msra.mxu2 %v7914_v0  ;;  %v9260_v0 = vld [vmem:[#allocation82_spill] sm:$0xff] }
 0x37e   : > { %v8174_v39 = vld.sshfl [vmem:[#allocation1 + $0x10] sm:$0xff pattern:$0x75316420] }
 0x37f   : > { %3669 = vst [vmem:[#allocation1 + $0x10] ss:$2 sm:$0xff] %v9258_v50 }
 0x380   : > { %3671 = vst [vmem:[#allocation1 + $0x11] ss:$2 sm:$0xff] %v9259_v3 }
 0x381   : > { %4655 = vmatmul.msk.f32.gmra.mxu2 %vm2085_vm7, %v7966_v37 }
 0x387   : > { %v3673_v40 = vld.sshfl [vmem:[#allocation1 + $0x10] sm:$0xff pattern:$0x75316420] }
 0x388   : > { %3696 = vmatpush.msra.mxu0 %v3673_v40  ;;  %3709 = vst [vmem:[#allocation1 + $0x10] ss:$2 sm:$0xff] %v9260_v0 }
 0x389   : > { %v8178_v38 = vpop.f32.mrf.mxu3  ;;  %3711 = vst [vmem:[#allocation1 + $0x11] ss:$2 sm:$0xff] %v9261_v53 }
 0x38a   : > { %3697 = vmatpush.msra.mxu0 %v8045_v34 }
 0x390   : > { %v3713_v18 = vld.sshfl [vmem:[#allocation1 + $0x10] sm:$0xff pattern:$0x75316420] }
 0x391   : > { %v8183_v36 = vpop.f32.mrf.mxu3  ;;  %3736 = vmatpush.msra.mxu1 %v3713_v18  ;;  %3749 = vst [vmem:[#allocation1 + $0x10] ss:$2 sm:$0xff] %v7930_v63 }
 0x392   : > { %v2958_v37 = vsel %vm2912_vm8, %v8183_v36, -inf  ;;  %3751 = vst [vmem:[#allocation1 + $0x11] ss:$2 sm:$0xff] %v7945_v56 }
 0x393   : > { %2959 = vmax.xlane.f32.xlu2 %v2958_v37  ;;  %3737 = vmatpush.msra.mxu1 %v8063_v26 }
 0x395   : > { %v8187_v4 = vpop.f32.mrf.mxu2 }
 0x396   : > { %v2949_v41 = vsel %vm2912_vm8, %v8187_v4, -inf }
 0x397   : > { %v2880_v59 = vpop.permute.xlu0 %2879  ;;  %2950 = vmax.xlane.f32.xlu0 %v2949_v41 }
 0x398   : > { %4656 = vmatpush.xpose.msk.msra.mxu3 %vm2085_vm7, %v2880_v59 }
 0x399   : > { %v8206_v56 = vld.sshfl [vmem:[#allocation1 + $0x10] sm:$0xff pattern:$0x75316420] }
 0x39a   : > { %3789 = vst [vmem:[#allocation1 + $0x10] ss:$2 sm:$0xff] %v7994_v2 }
 0x39b   : > { %3791 = vst [vmem:[#allocation1 + $0x11] ss:$2 sm:$0xff] %v8112_v12 }
 0x39c   : > { %4657 = vmatpush.xpose.msk.msra.mxu3 %vm2085_vm7, %v8131_v58  ;;  %v2921_v26 = vpop.xlane.xlu1 %2920 }
 0x39d   : > { %v8200_v34 = vpop.f32.mrf.mxu2 }
 0x39e   : > { %v2952_v63 = vsel %vm2912_vm8, %v8200_v34, -inf }
 0x39f   : > { %4658 = vmatmul.msk.f32.vlgmr.msra.gmra.mxu3 %vm2085_vm7, %v7864_v35  ;;  %2953 = vmax.xlane.f32.xlu1 %v2952_v63  ;;  %v3011_v35 = vsub.f32 %v8024_v32, %v2921_v26  ;;  %v2054_v58 = vpop.permute.xlu0 %2053 }
 0x3a0   : > { %3336 = vmatpush.msrb.mxu3 %v8073_v43  ;;  %v2955_v43 = vsel %vm2912_vm8, %v8178_v38, -inf }
 0x3a1   : > { %v3045_v2 = vmul.f32 1.442695, %v3011_v35  ;;  %v8222_v12 = vpop.f32.mrf.mxu3 }
 0x3a2   : > { %3337 = vmatpush.msrb.mxu3 %v7907_v13  ;;  %v2967_v47 = vsel %vm2912_vm8, %v8222_v12, -inf }
 0x3a3   : > { %4979 = vpow2.f32 %v3045_v2 }
 0x3a4   : > { %3416 = vmatpush.msra.mxu3 %v8098_v45  ;;  %v2933_v59 = vpop.xlane.xlu1 %2932 }
 0x3a5   : > { %v8214_v13 = vpop.f32.mrf.mxu2  ;;  %v3015_v41 = vsub.f32 %v8041_v49, %v2933_v59 }
 0x3a6   : > { %3417 = vmatpush.msra.mxu3 %v7924_v51  ;;  %v2961_v45 = vsel %vm2912_vm8, %v8214_v13, -inf  ;;  %v8220_v51 = vld.sshfl [vmem:[#allocation1 + $0x10] sm:$0xff pattern:$0x75316420] }
 0x3a7   : > { %4659 = vmatmul.msk.f32.gmra.mxu3 %vm2085_vm7, %v8006_v61  ;;  %2956 = vmax.xlane.f32.xlu1 %v2955_v43  ;;  %3829 = vst [vmem:[#allocation1 + $0x10] ss:$2 sm:$0xff] %v2052_v22  ;;  %v3053_v35 = vmul.f32 1.442695, %v3015_v41 }
 0x3a8   : > { %2962 = vmax.xlane.f32.xlu0 %v2961_v45  ;;  %3831 = vst [vmem:[#allocation1 + $0x11] ss:$2 sm:$0xff] %v2054_v58 }
 0x3a9   : > { %v8230_v27 = vpop.eup %4979  ;;  %v8232_v17 = vpop.f32.mrf.mxu3 }
 0x3aa   : > { %v2970_v21 = vsel %vm2912_vm8, %v8232_v17, -inf  ;;  %v3111_v14 = vsel %vm2912_vm8, %v8230_v27, 0.0 }
 0x3ad   : > { %v8224_v32 = vpop.f32.mrf.mxu2 }
 0x3ae   : > { %v2964_v28 = vsel %vm2912_vm8, %v8224_v32, -inf }
 0x3af   : > { %v2918_v61 = vpop.xlane.xlu2 %2917  ;;  %2968 = vmax.xlane.f32.xlu1 %v2967_v47 }
 0x3b0   : > { %2965 = vmax.xlane.f32.xlu0 %v2964_v28  ;;  %v3010_v45 = vsub.f32 %v8004_v25, %v2918_v61 }
 0x3b2   : > { %v3043_v49 = vmul.f32 1.442695, %v3010_v45 }
 0x3b5   : > { %v8239_v3 = vpop.f32.mrf.mxu2 }
 0x3b6   : > { %v2973_v0 = vsel %vm2912_vm8, %v8239_v3, -inf }
 0x3b7   : > { %v2924_v10 = vpop.xlane.xlu2 %2923  ;;  %2971 = vmax.xlane.f32.xlu1 %v2970_v21  ;;  %v8260_v21 = vpop.f32.mrf.mxu3 }
 0x3b8   : > { %v3012_v44 = vsub.f32 %v8075_v7, %v2924_v10  ;;  %3112 = vadd.xlane.f32.xlu0 %v3111_v14 }
 0x3ba   : > { %v3047_v50 = vmul.f32 1.442695, %v3012_v44 }
 0x3bc   : > { %4981 = vpow2.f32 %v3047_v50 }
 0x3bd   : > { %v8248_v18 = vpop.f32.mrf.mxu2 }
 0x3bf   : > { %v2930_v22 = vpop.xlane.xlu2 %2929  ;;  %2974 = vmax.xlane.f32.xlu1 %v2973_v0  ;;  %v8275_v0 = vpop.f32.mrf.mxu3 }
 0x3c0   : > { %v3014_v40 = vsub.f32 %v8084_v24, %v2930_v22  ;;  %v2976_v24 = vsel %vm2912_vm8, %v8248_v18, -inf }
 0x3c2   : > { %v8244_v53 = vpop.eup %4981  ;;  %v3051_v37 = vmul.f32 1.442695, %v3014_v40 }
 0x3c3   : > { %v3114_v7 = vsel %vm2912_vm8, %v8244_v53, 0.0 }
 0x3c4   : > { %3115 = vadd.xlane.f32.xlu0 %v3114_v7  ;;  %4983 = vpow2.f32 %v3051_v37  ;;  %v2939_v37 = vpop.xlane.xlu1 %2938 }
 0x3c5   : > { %v3017_v41 = vsub.f32 %v8094_v52, %v2939_v37 }
 0x3c7   : > { %2977 = vmax.xlane.f32.xlu1 %v2976_v24 }
 0x3ca   : > { %v2915_v63 = vpop.xlane.xlu0 %2914  ;;  %v2942_v43 = vpop.xlane.xlu2 %2941 }
 0x3cb   : > { %v3009_v26 = vsub.f32 %v7986_v8, %v2915_v63  ;;  %v8255_v2 = vpop.eup %4983  ;;  %v3018_v47 = vsub.f32 %v8106_v48, %v2942_v43 }
 0x3cc   : > { %v3120_v28 = vsel %vm2912_vm8, %v8255_v2, 0.0 }
 0x3cd   : > { %v3041_v58 = vmul.f32 1.442695, %v3009_v26  ;;  %v3059_v44 = vmul.f32 1.442695, %v3018_v47  ;;  %v2979_v47 = vsel %vm2912_vm8, %v8260_v21, -inf }
 0x3cf   : > { %4985 = vpow2.f32 %v3041_v58  ;;  %3121 = vadd.xlane.f32.xlu1 %v3120_v28 }
 0x3d0   : > { %4987 = vpow2.f32 %v3053_v35  ;;  %v3057_v35 = vmul.f32 1.442695, %v3017_v41 }
 0x3d1   : > { %4989 = vpow2.f32 %v3043_v49 }
 0x3d2   : > { %v2927_v10 = vpop.xlane.xlu0 %2926  ;;  %4991 = vpow2.f32 %v3059_v44 }
 0x3d3   : > { %v3013_v25 = vsub.f32 %v8071_v46, %v2927_v10 }
 0x3d5   : > { %v8262_v8 = vpop.eup %4985  ;;  %v3049_v14 = vmul.f32 1.442695, %v3013_v25  ;;  %v2945_v25 = vpop.xlane.xlu2 %2944 }
 0x3d6   : > { %v8265_v61 = vpop.eup %4987  ;;  %v3105_v48 = vsel %vm2912_vm8, %v8262_v8, 0.0 }
 0x3d7   : > { %3106 = vadd.xlane.f32.xlu2 %v3105_v48  ;;  %v3123_v50 = vsel %vm2912_vm8, %v8265_v61, 0.0  ;;  %v8271_v22 = vpop.eup %4989  ;;  %4993 = vpow2.f32 %v3049_v14  ;;  %v2982_v14 = vsel %vm2912_vm8, %v8275_v0, -inf }
 0x3d8   : > { %3124 = vadd.xlane.f32.xlu1 %v3123_v50  ;;  %v8273_v40 = vpop.eup %4991  ;;  %v3108_v46 = vsel %vm2912_vm8, %v8271_v22, 0.0  ;;  %4995 = vpow2.f32 %v3057_v35 }
 0x3d9   : > { %v3132_v7 = vsel %vm2912_vm8, %v8273_v40, 0.0 }
 0x3da   : > { %v2936_v43 = vpop.xlane.xlu0 %2935 }
 0x3db   : > { %v3016_v58 = vsub.f32 %v8101_v11, %v2936_v43  ;;  %v3019_v11 = vsub.f32 %v8119_v55, %v2945_v25 }
 0x3dd   : > { %v8281_v59 = vpop.eup %4993  ;;  %v3055_v10 = vmul.f32 1.442695, %v3016_v58 }
 0x3de   : > { %v3117_v24 = vsel %vm2912_vm8, %v8281_v59, 0.0  ;;  %v8301_v44 = vpop.eup %4995 }
 0x3df   : > { %3109 = vadd.xlane.f32.xlu2 %v3108_v46  ;;  %4997 = vpow2.f32 %v3055_v10  ;;  %v3129_v48 = vsel %vm2912_vm8, %v8301_v44, 0.0  ;;  %v3061_v46 = vmul.f32 1.442695, %v3019_v11 }
 0x3e0   : > { %3133 = vadd.xlane.f32.xlu1 %v3132_v7 }
 0x3e1   : > { %4999 = vpow2.f32 %v3061_v46 }
 0x3e2   : > { %v2948_v7 = vpop.xlane.xlu0 %2947 }
 0x3e3   : > { %v3020_v41 = vsub.f32 %v8141_v31, %v2948_v7 }
 0x3e5   : > { %v8310_v37 = vpop.eup %4997 }
 0x3e6   : > { %v8286_v63 = vpop.f32.mrf.mxu3 }
 0x3e7   : > { %3118 = vadd.xlane.f32.xlu2 %v3117_v24  ;;  %v2991_v26 = vsel %vm2912_vm8, %v8286_v63, -inf  ;;  %v3126_v24 = vsel %vm2912_vm8, %v8310_v37, 0.0  ;;  %v8319_v43 = vpop.eup %4999 }
 0x3e8   : > { %2992 = vmax.xlane.f32.xlu1 %v2991_v26  ;;  %v3063_v26 = vmul.f32 1.442695, %v3020_v41  ;;  %v3135_v31 = vsel %vm2912_vm8, %v8319_v43, 0.0 }
 0x3ea   : > { %5001 = vpow2.f32 %v3063_v26 }
 0x3ec   : > { %v8290_v45 = vpop.f32.mrf.mxu2 }
 0x3ed   : > { %v2985_v52 = vsel %vm2912_vm8, %v8290_v45, -inf }
 0x3ee   : > { %v8297_v49 = vpop.f32.mrf.mxu3  ;;  %2986 = vmax.xlane.f32.xlu0 %v2985_v52 }
 0x3ef   : > { %2980 = vmax.xlane.f32.xlu2 %v2979_v47  ;;  %v2994_v28 = vsel %vm2912_vm8, %v8297_v49, -inf }
 0x3f0   : > { %2995 = vmax.xlane.f32.xlu1 %v2994_v28  ;;  %v8325_v52 = vpop.eup %5001 }
 0x3f1   : > { %v3138_v10 = vsel %vm2912_vm8, %v8325_v52, 0.0 }
 0x3f4   : > { %v8308_v50 = vpop.f32.mrf.mxu2 }
 0x3f5   : > { %v2988_v55 = vsel %vm2912_vm8, %v8308_v50, -inf }
 0x3f6   : > { %3130 = vadd.xlane.f32.xlu0 %v3129_v48 }
 0x3f7   : > { %2983 = vmax.xlane.f32.xlu2 %v2982_v14 }
 0x3fc   : > { %v8317_v35 = vpop.f32.mrf.mxu2 }
 0x3fd   : > { %v2997_v58 = vsel %vm2912_vm8, %v8317_v35, -inf }
 0x3fe   : > { %2989 = vmax.xlane.f32.xlu0 %v2988_v55 }
 0x3ff   : > { %3127 = vadd.xlane.f32.xlu2 %v3126_v24 }
 0x406   : > { %2998 = vmax.xlane.f32.xlu0 %v2997_v58  ;;  %v2960_v24 = vpop.xlane.xlu2 %2959 }
 0x407   : > { %3136 = vadd.xlane.f32.xlu2 %v3135_v31  ;;  %v3024_v31 = vsub.f32 %v8183_v36, %v2960_v24 }
 0x40a   : > { %v2951_v47 = vpop.xlane.xlu0 %2950 }
 0x40b   : > { %v3021_v28 = vsub.f32 %v8187_v4, %v2951_v47  ;;  %v8335_v4 = vpop.f32.mrf.mxu2 }
 0x40c   : > { %v3000_v47 = vsel %vm2912_vm8, %v8335_v4, -inf }
 0x40d   : > { %v3065_v25 = vmul.f32 1.442695, %v3021_v28 }
 0x40f   : > { %3139 = vadd.xlane.f32.xlu2 %v3138_v10  ;;  %5003 = vpow2.f32 %v3065_v25  ;;  %v3071_v25 = vmul.f32 1.442695, %v3024_v31 }
 0x412   : > { %v2954_v11 = vpop.xlane.xlu1 %2953 }
 0x413   : > { %v3022_v14 = vsub.f32 %v8200_v34, %v2954_v11 }
 0x415   : > { %v8330_v48 = vpop.eup %5003  ;;  %v3067_v7 = vmul.f32 1.442695, %v3022_v14 }
 0x416   : > { %v3141_v46 = vsel %vm2912_vm8, %v8330_v48, 0.0 }
 0x417   : > { %3142 = vadd.xlane.f32.xlu0 %v3141_v46  ;;  %5005 = vpow2.f32 %v3067_v7 }
 0x41a   : > { %v2957_v41 = vpop.xlane.xlu1 %2956 }
 0x41b   : > { %v2963_v55 = vpop.xlane.xlu0 %2962  ;;  %v3023_v26 = vsub.f32 %v8178_v38, %v2957_v41 }
 0x41c   : > { %v3025_v34 = vsub.f32 %v8214_v13, %v2963_v55 }
 0x41d   : > { %v3069_v58 = vmul.f32 1.442695, %v3023_v26  ;;  %v8346_v14 = vpop.eup %5005 }
 0x41e   : > { %v3073_v46 = vmul.f32 1.442695, %v3025_v34  ;;  %v3144_v13 = vsel %vm2912_vm8, %v8346_v14, 0.0 }
 0x41f   : > { %5007 = vpow2.f32 %v3069_v58  ;;  %3001 = vmax.xlane.f32.xlu0 %v3000_v47 }
 0x420   : > { %5009 = vpow2.f32 %v3071_v25 }
 0x421   : > { %5011 = vpow2.f32 %v3073_v46 }
 0x422   : > { %v8342_v28 = vpop.f32.mrf.mxu3  ;;  %v2969_v11 = vpop.xlane.xlu1 %2968 }
 0x423   : > { %v3003_v10 = vsel %vm2912_vm8, %v8342_v28, -inf  ;;  %v2966_v38 = vpop.xlane.xlu0 %2965  ;;  %v3027_v25 = vsub.f32 %v8222_v12, %v2969_v11 }
 0x424   : > { %3004 = vmax.xlane.f32.xlu2 %v3003_v10  ;;  %v3026_v7 = vsub.f32 %v8224_v32, %v2966_v38 }
 0x425   : > { %v8348_v36 = vpop.eup %5007 }
 0x426   : > { %v3147_v24 = vsel %vm2912_vm8, %v8348_v36, 0.0  ;;  %v3075_v26 = vmul.f32 1.442695, %v3026_v7  ;;  %v8360_v47 = vpop.eup %5009 }
 0x427   : > { %3145 = vadd.xlane.f32.xlu0 %v3144_v13  ;;  %v8362_v34 = vpop.eup %5011  ;;  %v3150_v38 = vsel %vm2912_vm8, %v8360_v47, 0.0 }
 0x428   : > { %v3153_v46 = vsel %vm2912_vm8, %v8362_v34, 0.0 }
 0x42a   : > { %v8353_v41 = vpop.f32.mrf.mxu3  ;;  %v2972_v58 = vpop.xlane.xlu1 %2971 }
 0x42b   : > { %v3006_v55 = vsel %vm2912_vm8, %v8353_v41, -inf  ;;  %v3113_v31 = vpop.xlane.xlu0 %3112  ;;  %v3028_v32 = vsub.f32 %v8232_v17, %v2972_v58  ;;  %v3077_v17 = vmul.f32 1.442695, %v3027_v25 }
 0x42c   : > { %3007 = vmax.xlane.f32.xlu1 %v3006_v55  ;;  %3148 = vadd.xlane.f32.xlu2 %v3147_v24  ;;  %5013 = vrcp.f32 %v3113_v31 }
 0x42d   : > { %v3079_v10 = vmul.f32 1.442695, %v3028_v32  ;;  %5015 = vpow2.f32 %v3075_v26 }
 0x42f   : > { %5017 = vpow2.f32 %v3079_v10 }
 0x432   : > { %v5014_v7 = vpop.eup %5013  ;;  %v2975_v55 = vpop.xlane.xlu1 %2974 }
 0x433   : > { %v3235_v13 = vmul.f32 %v5014_v7, %v8230_v27  ;;  %v3029_v24 = vsub.f32 %v8239_v3, %v2975_v55  ;;  %v8371_v58 = vpop.eup %5015 }
 0x434   : > { %3151 = vadd.xlane.f32.xlu2 %v3150_v38  ;;  %3154 = vadd.xlane.f32.xlu1 %v3153_v46  ;;  %v3156_v3 = vsel %vm2912_vm8, %v8371_v58, 0.0 }
 0x435   : > { %4662 = vmatmul.msk.f32.vlgmr.msrb.gmra.mxu3 %vm2912_vm8, %v3235_v13  ;;  %v8374_v11 = vpop.eup %5017  ;;  %v3081_v26 = vmul.f32 1.442695, %v3029_v24 }
 0x436   : > { %3496 = vmatpush.msrb.mxu3 %v8127_v6  ;;  %v3162_v27 = vsel %vm2912_vm8, %v8374_v11, 0.0 }
 0x437   : > { %v3116_v12 = vpop.xlane.xlu0 %3115 }
 0x438   : > { %5019 = vrcp.f32 %v3116_v12  ;;  %3497 = vmatpush.msrb.mxu3 %v7960_v16 }
 0x439   : > { %5021 = vpow2.f32 %v3077_v17 }
 0x43a   : > { %5023 = vpow2.f32 %v3081_v26  ;;  %v2978_v31 = vpop.xlane.xlu1 %2977 }
 0x43b   : > { %v3030_v10 = vsub.f32 %v8248_v18, %v2978_v31 }
 0x43c   : > { %3163 = vadd.xlane.f32.xlu1 %v3162_v27  ;;  %3157 = vadd.xlane.f32.xlu2 %v3156_v3 }
 0x43d   : > { %v3083_v46 = vmul.f32 1.442695, %v3030_v10 }
 0x43e   : > { %v5020_v32 = vpop.eup %5019 }
 0x43f   : > { %v8383_v25 = vpop.eup %5021  ;;  %v3236_v6 = vmul.f32 %v5020_v32, %v8244_v53  ;;  %5025 = vpow2.f32 %v3083_v46 }
 0x440   : > { %v8386_v38 = vpop.eup %5023  ;;  %v3159_v7 = vsel %vm2912_vm8, %v8383_v25, 0.0 }
 0x441   : > { %v3165_v16 = vsel %vm2912_vm8, %v8386_v38, 0.0  ;;  %4663 = vmatmul.msk.f32.gmra.mxu3 %vm2912_vm8, %v3236_v6 }
 0x442   : > { %3166 = vadd.xlane.f32.xlu0 %v3165_v16  ;;  %v3122_v17 = vpop.xlane.xlu1 %3121 }
 0x444   : > { %3160 = vadd.xlane.f32.xlu2 %v3159_v7 }
 0x445   : > { %v8393_v18 = vpop.eup %5025 }
 0x446   : > { %v3168_v53 = vsel %vm2912_vm8, %v8393_v18, 0.0 }
 0x44a   : > { %3169 = vadd.xlane.f32.xlu0 %v3168_v53  ;;  %v3107_v13 = vpop.xlane.xlu2 %3106 }
 0x44b   : > { %5027 = vrcp.f32 %v3107_v13  ;;  %v3125_v55 = vpop.xlane.xlu1 %3124 }
 0x44c   : > { %5029 = vrcp.f32 %v3125_v55 }
 0x451   : > { %v5028_v24 = vpop.eup %5027 }
 0x452   : > { %v3233_v12 = vmul.f32 %v5028_v24, %v8262_v8  ;;  %v3110_v26 = vpop.xlane.xlu2 %3109  ;;  %v5030_v27 = vpop.eup %5029 }
 0x453   : > { %5031 = vrcp.f32 %v3110_v26  ;;  %v3239_v3 = vmul.f32 %v5030_v27, %v8265_v61 }
 0x454   : > { %4660 = vmatmul.msk.f32.vlgmr.msrb.gmra.mxu2 %vm2912_vm8, %v3233_v12 }
 0x455   : > { %3456 = vmatpush.msrb.mxu2 %v8110_v1  ;;  %4666 = vmatmul.msk.f32.vlgmr.msra.gmra.mxu3 %vm2912_vm8, %v3239_v3 }
 0x456   : > { %3656 = vmatpush.msra.mxu3 %v8174_v39 }
 0x457   : > { %3457 = vmatpush.msrb.mxu2 %v7937_v15 }
 0x458   : > { %3657 = vmatpush.msra.mxu3 %v8028_v29 }
 0x459   : > { %v5032_v31 = vpop.eup %5031 }
 0x45a   : > { %v3119_v32 = vpop.xlane.xlu2 %3118  ;;  %v3234_v8 = vmul.f32 %v5032_v31, %v8271_v22 }
 0x45b   : > { %5033 = vrcp.f32 %v3119_v32 }
 0x45c   : > { %2049 = vrot.lane.b32.xlu2 %v7958_v57, %s5463_s5  ;;  %4661 = vmatmul.msk.f32.gmra.mxu2 %vm2912_vm8, %v3234_v8  ;;  %5035 = vrcp.f32 %v3122_v17 }
 0x45e   : > { %2059 = vrot.lane.b32.xlu0 %v1868_v5, %s5463_s5 }
 0x461   : > { %v5034_v1 = vpop.eup %5033  ;;  %v2987_v15 = vpop.xlane.xlu0 %2986 }
 0x462   : > { %v3237_v39 = vmul.f32 %v5034_v1, %v8281_v59  ;;  %v2981_v61 = vpop.xlane.xlu2 %2980  ;;  %v3033_v10 = vsub.f32 %v8290_v45, %v2987_v15  ;;  %v5036_v33 = vpop.eup %5035 }
 0x463   : > { %v3031_v29 = vsub.f32 %v8260_v21, %v2981_v61  ;;  %v3238_v21 = vmul.f32 %v5036_v33, %v8255_v2 }
 0x464   : > { %4664 = vmatmul.msk.f32.vlgmr.msra.gmra.mxu2 %vm2912_vm8, %v3237_v39  ;;  %v3089_v5 = vmul.f32 1.442695, %v3033_v10  ;;  %v3833_v10 = vld.sshfl [vmem:[#allocation1 + $0x10] sm:$0xff pattern:$0x75316420] }
 0x465   : > { %v3085_v22 = vmul.f32 1.442695, %v3031_v29  ;;  %3616 = vmatpush.msra.mxu2 %v8168_v42  ;;  %v3134_v42 = vpop.xlane.xlu1 %3133 }
 0x466   : > { %2061 = vrot.lane.b32.xlu0 %v1870_v23, %s5463_s5 }
 0x467   : > { %5037 = vpow2.f32 %v3085_v22  ;;  %3617 = vmatpush.msra.mxu2 %v8013_v54 }
 0x469   : > { %v3131_v59 = vpop.xlane.xlu0 %3130 }
 0x46a   : > { %v2984_v6 = vpop.xlane.xlu2 %2983  ;;  %5039 = vrcp.f32 %v3131_v59 }
 0x46b   : > { %5041 = vpow2.f32 %v3089_v5  ;;  %v3032_v54 = vsub.f32 %v8275_v0, %v2984_v6 }
 0x46c   : > { %4665 = vmatmul.msk.f32.gmra.mxu2 %vm2912_vm8, %v3238_v21  ;;  %5043 = vrcp.f32 %v3134_v42 }
 0x46d   : > { %v8423_v46 = vpop.eup %5037  ;;  %v3087_v17 = vmul.f32 1.442695, %v3032_v54  ;;  %v2993_v55 = vpop.xlane.xlu1 %2992 }
 0x46e   : > { %v3171_v19 = vsel %vm2912_vm8, %v8423_v46, 0.0 }
 0x46f   : > { %3172 = vadd.xlane.f32.xlu1 %v3171_v19 }
 0x470   : > { %v5040_v23 = vpop.eup %5039 }
 0x471   : > { %v8427_v45 = vpop.xlane.xlu0 %2989  ;;  %v3241_v16 = vmul.f32 %v5040_v23, %v8301_v44  ;;  %v8431_v7 = vpop.eup %5041  ;;  %v3035_v44 = vsub.f32 %v8286_v63, %v2993_v55 }
 0x472   : > { %v3128_v2 = vpop.xlane.xlu2 %3127  ;;  %v3177_v53 = vsel %vm2912_vm8, %v8431_v7, 0.0  ;;  %v5044_v13 = vpop.eup %5043 }
 0x473   : > { %5045 = vrcp.f32 %v3128_v2  ;;  %v3242_v26 = vmul.f32 %v5044_v13, %v8273_v40  ;;  %v3093_v27 = vmul.f32 1.442695, %v3035_v44 }
 0x474   : > { %4668 = vmatmul.msk.f32.vlgmr.msrb.gmra.mxu2 %vm2912_vm8, %v3241_v16  ;;  %5047 = vpow2.f32 %v3087_v17 }
 0x475   : > { %3776 = vmatpush.msrb.mxu2 %v8206_v56  ;;  %v8464_v22 = vpop.xlane.xlu1 %2995 }
 0x477   : > { %3178 = vadd.xlane.f32.xlu1 %v3177_v53  ;;  %3777 = vmatpush.msrb.mxu2 %v8079_v30 }
 0x479   : > { %v5046_v0 = vpop.eup %5045  ;;  %v2999_v56 = vpop.xlane.xlu0 %2998 }
 0x47a   : > { %v3137_v24 = vpop.xlane.xlu2 %3136  ;;  %v3240_v12 = vmul.f32 %v5046_v0, %v8310_v37  ;;  %v3037_v3 = vsub.f32 %v8317_v35, %v2999_v56  ;;  %v8444_v31 = vpop.eup %5047 }
 0x47b   : > { %5049 = vrcp.f32 %v3137_v24  ;;  %v3174_v40 = vsel %vm2912_vm8, %v8444_v31, 0.0 }
 0x47c   : > { %4667 = vmatmul.msk.f32.gmra.mxu3 %vm2912_vm8, %v3240_v12  ;;  %4669 = vmatmul.msk.f32.gmra.mxu2 %vm2912_vm8, %v3242_v26  ;;  %5051 = vpow2.f32 %v3093_v27  ;;  %v3097_v32 = vmul.f32 1.442695, %v3037_v3 }
 0x481   : > { %v5050_v30 = vpop.eup %5049 }
 0x482   : > { %v3243_v63 = vmul.f32 %v5050_v30, %v8319_v43  ;;  %v3140_v8 = vpop.xlane.xlu2 %3139  ;;  %v8452_v37 = vpop.eup %5051 }
 0x483   : > { %5053 = vrcp.f32 %v3140_v8  ;;  %v3183_v15 = vsel %vm2912_vm8, %v8452_v37, 0.0 }
 0x484   : > { %4670 = vmatmul.msk.f32.vlgmr.msrb.gmra.mxu3 %vm2912_vm8, %v3243_v63  ;;  %5055 = vpow2.f32 %v3097_v32  ;;  %v3034_v63 = vsub.f32 %v8308_v50, %v8427_v45 }
 0x485   : > { %3816 = vmatpush.msrb.mxu3 %v8220_v51  ;;  %3175 = vadd.xlane.f32.xlu2 %v3174_v40 }
 0x487   : > { %3817 = vmatpush.msrb.mxu3 %v8156_v9 }
 0x489   : > { %v5054_v35 = vpop.eup %5053 }
 0x48a   : > { %v3244_v1 = vmul.f32 %v5054_v35, %v8325_v52  ;;  %v8455_v43 = vpop.eup %5055  ;;  %v3143_v39 = vpop.xlane.xlu0 %3142 }
 0x48b   : > { %5057 = vrcp.f32 %v3143_v39  ;;  %v3189_v51 = vsel %vm2912_vm8, %v8455_v43, 0.0 }
 0x48c   : > { %4671 = vmatmul.msk.f32.gmra.mxu3 %vm2912_vm8, %v3244_v1  ;;  %v3091_v1 = vmul.f32 1.442695, %v3034_v63 }
 0x48d   : > { %3184 = vadd.xlane.f32.xlu2 %v3183_v15 }
 0x490   : > { %3190 = vadd.xlane.f32.xlu0 %v3189_v51 }
 0x491   : > { %v5058_v9 = vpop.eup %5057 }
 0x492   : > { %v3002_v61 = vpop.xlane.xlu0 %3001  ;;  %v3245_v29 = vmul.f32 %v5058_v9, %v8330_v48 }
 0x493   : > { %v3038_v52 = vsub.f32 %v8335_v4, %v3002_v61 }
 0x494   : > { %4672 = vmatmul.msk.f32.vlgmr.msrb.gmra.mxu0 %vm2912_vm8, %v3245_v29 }
 0x495   : > { %v3099_v5 = vmul.f32 1.442695, %v3038_v52  ;;  %3856 = vmatpush.msrb.mxu0 %v3833_v10 }
 0x497   : > { %v3005_v33 = vpop.xlane.xlu2 %3004  ;;  %5059 = vpow2.f32 %v3099_v5 }
 0x498   : > { %v3039_v59 = vsub.f32 %v8342_v28, %v3005_v33 }
 0x49a   : > { %v3101_v6 = vmul.f32 1.442695, %v3039_v59  ;;  %v3146_v21 = vpop.xlane.xlu0 %3145 }
 0x49c   : > { %5061 = vpow2.f32 %v3101_v6 }
 0x49d   : > { %5063 = vrcp.f32 %v3146_v21  ;;  %v8468_v48 = vpop.eup %5059 }
 0x49e   : > { %v3192_v23 = vsel %vm2912_vm8, %v8468_v48, 0.0 }
 0x49f   : > { %v3008_v42 = vpop.xlane.xlu1 %3007  ;;  %v3149_v19 = vpop.xlane.xlu2 %3148  ;;  %3193 = vadd.xlane.f32.xlu0 %v3192_v23 }
 0x4a0   : > { %v3040_v4 = vsub.f32 %v8353_v41, %v3008_v42  ;;  %5065 = vrcp.f32 %v3149_v19 }
 0x4a2   : > { %v8473_v54 = vpop.eup %5061  ;;  %v3103_v16 = vmul.f32 1.442695, %v3040_v4 }
 0x4a3   : > { %v3195_v28 = vsel %vm2912_vm8, %v8473_v54, 0.0  ;;  %v5064_v2 = vpop.eup %5063 }
 0x4a4   : > { %5067 = vpow2.f32 %v3103_v16  ;;  %3196 = vadd.xlane.f32.xlu1 %v3195_v28  ;;  %v3246_v41 = vmul.f32 %v5064_v2, %v8346_v14 }
 0x4a5   : > { %2055 = vrot.lane.b32.xlu2 %v1864_v20, %s5463_s5 }
 0x4a6   : > { %v5066_v17 = vpop.eup %5065  ;;  %4673 = vmatmul.msk.f32.gmra.mxu0 %vm2912_vm8, %v3246_v41 }
 0x4a7   : > { %v3247_v53 = vmul.f32 %v5066_v17, %v8348_v36  ;;  %v3152_v13 = vpop.xlane.xlu2 %3151  ;;  %v3155_v55 = vpop.xlane.xlu1 %3154 }
 0x4a8   : > { %5069 = vrcp.f32 %v3152_v13 }
 0x4a9   : > { %5071 = vrcp.f32 %v3155_v55  ;;  %4674 = vmatmul.msk.f32.vlgmr.msrb.gmra.mxu1 %vm2912_vm8, %v3247_v53 }
 0x4aa   : > { %v8484_v0 = vpop.eup %5067 }
 0x4ab   : > { %v3198_v44 = vsel %vm2912_vm8, %v8484_v0, 0.0 }
 0x4ac   : > { %3199 = vadd.xlane.f32.xlu0 %v3198_v44 }
 0x4ae   : > { %v5070_v62 = vpop.eup %5069 }
 0x4af   : > { %v5072_v20 = vpop.eup %5071  ;;  %v3158_v14 = vpop.xlane.xlu2 %3157  ;;  %v3248_v24 = vmul.f32 %v5070_v62, %v8360_v47 }
 0x4b0   : > { %v3249_v36 = vmul.f32 %v5072_v20, %v8362_v34  ;;  %5073 = vrcp.f32 %v3158_v14  ;;  %v3164_v3 = vpop.xlane.xlu1 %3163 }
 0x4b1   : > { %4675 = vmatmul.msk.f32.gmra.mxu1 %vm2912_vm8, %v3248_v24 }
 0x4b2   : > { %4676 = vmatmul.msk.f32.vlgmr.msra.gmra.mxu2 %vm2912_vm8, %v3249_v36 }
 0x4b5   : > { %v3167_v12 = vpop.xlane.xlu0 %3166 }
 0x4b6   : > { %5075 = vrcp.f32 %v3167_v12  ;;  %v5074_v26 = vpop.eup %5073 }
 0x4b7   : > { %v3161_v56 = vpop.xlane.xlu2 %3160  ;;  %v3250_v27 = vmul.f32 %v5074_v26, %v8371_v58 }
 0x4b8   : > { %5077 = vrcp.f32 %v3161_v56  ;;  %v8493_v30 = vpop.f32.mrf.mxu3 }
 0x4b9   : > { %v3923_v47 = vrot.slane %v8493_v30, 4  ;;  %5079 = vrcp.f32 %v3164_v3 }
 0x4ba   : > { %4677 = vmatmul.msk.f32.gmra.mxu2 %vm2912_vm8, %v3250_v27 }
 0x4bb   : > { %3981 = vst [vmem:[#allocation1 + $0x21] ss:$2 sm:$0xff] %v3923_v47 }
 0x4bc   : > { %v5076_v34 = vpop.eup %5075 }
 0x4bd   : > { %v3253_v32 = vmul.f32 %v5076_v34, %v8386_v38  ;;  %v3170_v8 = vpop.xlane.xlu0 %3169  ;;  %2057 = vrot.lane.b32.xlu1 %v1866_v60, %s5463_s5 }
 0x4be   : > { %v5078_v58 = vpop.eup %5077  ;;  %5081 = vrcp.f32 %v3170_v8 }
 0x4bf   : > { %v3251_v40 = vmul.f32 %v5078_v58, %v8383_v25  ;;  %4680 = vmatmul.msk.f32.vlgmr.msra.gmra.mxu0 %vm2912_vm8, %v3253_v32  ;;  %v2050_v35 = vpop.permute.xlu2 %2049  ;;  %v5080_v50 = vpop.eup %5079  ;;  %5083 = vpow2.f32 %v3091_v1 }
 0x4c0   : > { %3827 = vst [vmem:[#allocation1 + $0x1] ss:$2 sm:$0xff] %v2050_v35  ;;  %v3252_v60 = vmul.f32 %v5080_v50, %v8374_v11 }
 0x4c1   : > { %4678 = vmatmul.msk.f32.vlgmr.msra.gmra.mxu3 %vm2912_vm8, %v3251_v40 }
 0x4c4   : > { %v5082_v45 = vpop.eup %5081  ;;  %v8514_v51 = vpop.f32.mrf.mxu3 }
 0x4c5   : > { %v3254_v38 = vmul.f32 %v5082_v45, %v8393_v18  ;;  %v8510_v25 = vpop.eup %5083  ;;  %v3036_v18 = vsub.f32 %v8297_v49, %v8464_v22  ;;  %v3924_v5 = vrot.slane %v8514_v51, 4 }
 0x4c6   : > { %v3180_v15 = vsel %vm2912_vm8, %v8510_v25, 0.0 }
 0x4c7   : > { %4681 = vmatmul.msk.f32.gmra.mxu0 %vm2912_vm8, %v3254_v38  ;;  %v3832_v57 = vld.sshfl [vmem:[#allocation1] sm:$0xff pattern:$0x75316420]  ;;  %v3095_v29 = vmul.f32 1.442695, %v3036_v18 }
 0x4c8   : > { %3857 = vmatpush.msrb.mxu0 %v3832_v57 }
 0x4c9   : > { %4679 = vmatmul.msk.f32.gmra.mxu3 %vm2912_vm8, %v3252_v60  ;;  %5085 = vpow2.f32 %v3095_v29 }
 0x4ce   : > { %3181 = vadd.xlane.f32.xlu2 %v3180_v15 }
 0x4cf   : > { %v8527_v21 = vpop.eup %5085 }
 0x4d0   : > { %v2060_v39 = vpop.permute.xlu0 %2059  ;;  %v3186_v42 = vsel %vm2912_vm8, %v8527_v21, 0.0 }
 0x4d1   : > { %3869 = vst [vmem:[#allocation1 + $0x10] ss:$2 sm:$0xff] %v2060_v39 }
 0x4d7   : > { %v8518_v9 = vpop.f32.mrf.mxu2 }
 0x4d8   : > { %v2062_v61 = vpop.permute.xlu0 %2061  ;;  %v3921_v11 = vrot.slane %v8518_v9, 4  ;;  %v3419_v52 = vpop.f32.mrf.mxu3 }
 0x4d9   : > { %3871 = vst [vmem:[#allocation1 + $0x11] ss:$2 sm:$0xff] %v2062_v61  ;;  %v3927_v10 = vrot.slane %v3419_v52, 4 }
 0x4da   : > { %3979 = vst [vmem:[#allocation1 + $0x20] ss:$2 sm:$0xff] %v3921_v11 }
 0x4db   : > { %3985 = vst [vmem:[#allocation1 + $0x31] ss:$2 sm:$0xff] %v3927_v10 }
 0x4df   : > { %v8521_v33 = vpop.f32.mrf.mxu2 }
 0x4e0   : > { %v3922_v59 = vrot.slane %v8521_v33, 4  ;;  %v3873_v6 = vld.sshfl [vmem:[#allocation1 + $0x10] sm:$0xff pattern:$0x75316420] }
 0x4e1   : > { %v8525_v49 = vld.sshfl [vmem:[#allocation1 + $0x20] sm:$0xff pattern:$0x75316420]  ;;  %3896 = vmatpush.msrb.mxu1 %v3873_v6  ;;  %3975 = vst [vmem:[#allocation1 + $0x11] ss:$2 sm:$0xff] %v3419_v52 }
 0x4e2   : > { %3995 = vst [vmem:[#allocation1 + $0x21] ss:$2 sm:$0xff] %v3924_v5  ;;  %v3173_v22 = vpop.xlane.xlu1 %3172 }
 0x4e3   : > { %3994 = vst [vmem:[#allocation1 + $0x20] ss:$2 sm:$0xff] %v3922_v59  ;;  %5087 = vrcp.f32 %v3173_v22 }
 0x4e7   : > { %3187 = vadd.xlane.f32.xlu1 %v3186_v42  ;;  %v3379_v19 = vpop.f32.mrf.mxu2 }
 0x4e8   : > { %v3925_v4 = vrot.slane %v3379_v19, 4  ;;  %3973 = vst [vmem:[#allocation1 + $0x10] ss:$2 sm:$0xff] %v3379_v19 }
 0x4e9   : > { %v5088_v23 = vpop.eup %5087 }
 0x4ea   : > { %v3255_v16 = vmul.f32 %v5088_v23, %v8423_v46  ;;  %3983 = vst [vmem:[#allocation1 + $0x30] ss:$2 sm:$0xff] %v3925_v4  ;;  %v3179_v28 = vpop.xlane.xlu1 %3178  ;;  %v8542_v20 = vld.sshfl [vmem:[#allocation1 + $0x20] sm:$0xff pattern:$0x75316420] }
 0x4eb   : > { %5089 = vrcp.f32 %v3179_v28 }
 0x4ec   : > { %4682 = vmatmul.msk.f32.vlgmr.msra.gmra.mxu1 %vm2912_vm8, %v3255_v16 }
 0x4ef   : > { %v8533_v2 = vld.sshfl [vmem:[#allocation1 + $0x10] sm:$0xff pattern:$0x75316420]  ;;  %v3382_v41 = vpop.f32.mrf.mxu2 }
 0x4f0   : > { %v3926_v17 = vrot.slane %v3382_v41, 4  ;;  %3990 = vst [vmem:[#allocation1 + $0x10] ss:$2 sm:$0xff] %v3382_v41 }
 0x4f1   : > { %v5090_v53 = vpop.eup %5089  ;;  %v8535_v13 = vld.sshfl [vmem:[#allocation1 + $0x30] sm:$0xff pattern:$0x75316420] }
 0x4f2   : > { %v3257_v55 = vmul.f32 %v5090_v53, %v8431_v7  ;;  %3996 = vst [vmem:[#allocation1 + $0x30] ss:$2 sm:$0xff] %v3926_v17 }
 0x4f4   : > { %4684 = vmatmul.msk.f32.vlgmr.msrb.gmra.mxu2 %vm2912_vm8, %v3257_v55 }
 0x4f7   : > { %v8539_v44 = vpop.f32.mrf.mxu2 }
 0x4f8   : > { %v3176_v46 = vpop.xlane.xlu2 %3175  ;;  %v3929_v62 = vrot.slane %v8539_v44, 4 }
 0x4f9   : > { %5091 = vrcp.f32 %v3176_v46 }
 0x4fa   : > { %4006 = vst [vmem:[#allocation1 + $0x20] ss:$2 sm:$0xff] %v3929_v62 }
 0x4ff   : > { %v5092_v14 = vpop.eup %5091  ;;  %v3422_v24 = vpop.f32.mrf.mxu3 }
 0x500   : > { %v3928_v36 = vrot.slane %v3422_v24, 4  ;;  %3991 = vst [vmem:[#allocation1 + $0x11] ss:$2 sm:$0xff] %v3422_v24  ;;  %v3185_v12 = vpop.xlane.xlu2 %3184  ;;  %v3256_v26 = vmul.f32 %v5092_v14, %v8444_v31  ;;  %v8552_v32 = vpop.f32.mrf.mxu2 }
 0x501   : > { %5093 = vrcp.f32 %v3185_v12  ;;  %v3930_v58 = vrot.slane %v8552_v32, 4 }
 0x502   : > { %3997 = vst [vmem:[#allocation1 + $0x31] ss:$2 sm:$0xff] %v3928_v36  ;;  %4683 = vmatmul.msk.f32.gmra.mxu1 %vm2912_vm8, %v3256_v26 }
 0x503   : > { %v3191_v7 = vpop.xlane.xlu0 %3190 }
 0x504   : > { %5095 = vrcp.f32 %v3191_v7 }
 0x507   : > { %v5094_v56 = vpop.eup %5093  ;;  %v8546_v27 = vpop.f32.mrf.mxu3  ;;  %v8561_v35 = vld.sshfl [vmem:[#allocation1 + $0x10] sm:$0xff pattern:$0x75316420] }
 0x508   : > { %v3259_v3 = vmul.f32 %v5094_v56, %v8452_v37  ;;  %v3931_v47 = vrot.slane %v8546_v27, 4  ;;  %v2056_v34 = vpop.permute.xlu2 %2055 }
 0x509   : > { %3865 = vst [vmem:[#allocation1] ss:$2 sm:$0xff] %v2056_v34  ;;  %v8563_v45 = vld.sshfl [vmem:[#allocation1 + $0x30] sm:$0xff pattern:$0x75316420] }
 0x50a   : > { %v5096_v63 = vpop.eup %5095  ;;  %4007 = vst [vmem:[#allocation1 + $0x21] ss:$2 sm:$0xff] %v3931_v47  ;;  %4686 = vmatmul.msk.f32.vlgmr.msrb.gmra.mxu3 %vm2912_vm8, %v3259_v3 }
 0x50b   : > { %v3261_v31 = vmul.f32 %v5096_v63, %v8455_v43 }
 0x50d   : > { %4688 = vmatmul.msk.f32.vlgmr.msrb.gmra.mxu0 %vm2912_vm8, %v3261_v31 }
 0x50f   : > { %v8555_v8 = vpop.f32.mrf.mxu3 }
 0x510   : > { %v3932_v37 = vrot.slane %v8555_v8, 4 }
 0x511   : > { %v8559_v40 = vld.sshfl [vmem:[#allocation1 + $0x20] sm:$0xff pattern:$0x75316420]  ;;  %v3539_v1 = vpop.f32.mrf.mxu0 }
 0x512   : > { %4018 = vst [vmem:[#allocation1 + $0x20] ss:$2 sm:$0xff] %v3930_v58  ;;  %v3933_v50 = vrot.slane %v3539_v1, 4  ;;  %v3194_v43 = vpop.xlane.xlu0 %3193 }
 0x513   : > { %4019 = vst [vmem:[#allocation1 + $0x21] ss:$2 sm:$0xff] %v3932_v37  ;;  %5097 = vrcp.f32 %v3194_v43 }
 0x514   : > { %4002 = vst [vmem:[#allocation1 + $0x10] ss:$2 sm:$0xff] %v3539_v1 }
 0x515   : > { %4008 = vst [vmem:[#allocation1 + $0x30] ss:$2 sm:$0xff] %v3933_v50 }
 0x517   : > { %v3197_v39 = vpop.xlane.xlu1 %3196 }
 0x518   : > { %5099 = vrcp.f32 %v3197_v39 }
 0x519   : > { %v5098_v38 = vpop.eup %5097 }
 0x51a   : > { %v3262_v57 = vmul.f32 %v5098_v38, %v8468_v48  ;;  %v8571_v42 = vld.sshfl [vmem:[#allocation1 + $0x20] sm:$0xff pattern:$0x75316420] }
 0x51c   : > { %4689 = vmatmul.msk.f32.gmra.mxu0 %vm2912_vm8, %v3262_v57 }
 0x51e   : > { %v5100_v22 = vpop.eup %5099 }
 0x51f   : > { %v3200_v59 = vpop.xlane.xlu0 %3199  ;;  %v3263_v19 = vmul.f32 %v5100_v22, %v8473_v54 }
 0x520   : > { %5101 = vrcp.f32 %v3200_v59 }
 0x523   : > { %v3542_v18 = vpop.f32.mrf.mxu0 }
 0x524   : > { %v3934_v29 = vrot.slane %v3542_v18, 4 }
 0x526   : > { %v3579_v60 = vpop.f32.mrf.mxu1  ;;  %v5102_v23 = vpop.eup %5101 }
 0x527   : > { %v3935_v15 = vrot.slane %v3579_v60, 4  ;;  %4003 = vst [vmem:[#allocation1 + $0x11] ss:$2 sm:$0xff] %v3579_v60  ;;  %v3264_v54 = vmul.f32 %v5102_v23, %v8484_v0 }
 0x529   : > { %4009 = vst [vmem:[#allocation1 + $0x31] ss:$2 sm:$0xff] %v3935_v15 }
 0x52e   : > { %v8567_v61 = vld.sshfl [vmem:[#allocation1 + $0x10] sm:$0xff pattern:$0x75316420]  ;;  %v3582_v11 = vpop.f32.mrf.mxu1 }
 0x52f   : > { %4014 = vst [vmem:[#allocation1 + $0x10] ss:$2 sm:$0xff] %v3542_v18  ;;  %v3936_v52 = vrot.slane %v3582_v11, 4  ;;  %v2058_v5 = vpop.permute.xlu1 %2057 }
 0x530   : > { %v8569_v10 = vld.sshfl [vmem:[#allocation1 + $0x30] sm:$0xff pattern:$0x75316420]  ;;  %4015 = vst [vmem:[#allocation1 + $0x11] ss:$2 sm:$0xff] %v3582_v11 }
 0x531   : > { %4020 = vst [vmem:[#allocation1 + $0x30] ss:$2 sm:$0xff] %v3934_v29 }
 0x532   : > { %4021 = vst [vmem:[#allocation1 + $0x31] ss:$2 sm:$0xff] %v3936_v52 }
 0x533   : > { %3867 = vst [vmem:[#allocation1 + $0x1] ss:$2 sm:$0xff] %v2058_v5 }
 0x535   : > { %v3619_v48 = vpop.f32.mrf.mxu2 }
 0x536   : > { %v3953_v6 = vrot.slane %v3619_v48, 4 }
 0x537   : > { %v8577_v16 = vld.sshfl [vmem:[#allocation1 + $0x10] sm:$0xff pattern:$0x75316420] }
 0x538   : > { %4050 = vst [vmem:[#allocation1 + $0x20] ss:$2 sm:$0xff] %v3953_v6 }
 0x539   : > { %v8579_v17 = vld.sshfl [vmem:[#allocation1 + $0x30] sm:$0xff pattern:$0x75316420] }
 0x53a   : > { %v3872_v4 = vld.sshfl [vmem:[#allocation1] sm:$0xff pattern:$0x75316420] }
 0x53b   : > { %3897 = vmatpush.msrb.mxu1 %v3872_v4  ;;  %3969 = vst [vmem:[#allocation1] ss:$2 sm:$0xff] %v8518_v9 }
 0x53c   : > { %3971 = vst [vmem:[#allocation1 + $0x1] ss:$2 sm:$0xff] %v8493_v30  ;;  %4690 = vmatmul.msk.f32.vlgmr.msrb.gmra.mxu1 %vm2912_vm8, %v3263_v19  ;;  %v3699_v28 = vpop.f32.mrf.mxu0 }
 0x53d   : > { %v3957_v41 = vrot.slane %v3699_v28, 4  ;;  %4044 = vst [vmem:[#allocation1 + $0x10] ss:$2 sm:$0xff] %v3699_v28  ;;  %v3622_v14 = vpop.f32.mrf.mxu2 }
 0x53f   : > { %4054 = vst [vmem:[#allocation1 + $0x30] ss:$2 sm:$0xff] %v3957_v41 }
 0x541   : > { %v3182_v53 = vpop.xlane.xlu2 %3181 }
 0x542   : > { %5103 = vrcp.f32 %v3182_v53 }
 0x543   : > { %v8582_v55 = vld.sshfl [vmem:[#allocation1] sm:$0xff pattern:$0x75316420] }
 0x544   : > { %3988 = vst [vmem:[#allocation1] ss:$2 sm:$0xff] %v8521_v33  ;;  %4691 = vmatmul.msk.f32.gmra.mxu1 %vm2912_vm8, %v3264_v54  ;;  %v3659_v30 = vpop.f32.mrf.mxu3  ;;  %v3954_v33 = vrot.slane %v3622_v14, 4  ;;  %v3702_v47 = vpop.f32.mrf.mxu0 }
 0x545   : > { %3989 = vst [vmem:[#allocation1 + $0x1] ss:$2 sm:$0xff] %v8514_v51  ;;  %v3955_v9 = vrot.slane %v3659_v30, 4  ;;  %v3958_v63 = vrot.slane %v3702_v47, 4 }
 0x547   : > { %4052 = vst [vmem:[#allocation1 + $0x21] ss:$2 sm:$0xff] %v3955_v9  ;;  %v4749_v9 = vld [vmem:[#allocation11 + $0x18] sm:$0xff] }
 0x548   : > { %v5104_v46 = vpop.eup %5103  ;;  %4751 = vmatpush.bf16.msra.mxu2 %v4749_v9  ;;  %4227 = vmatpush.bf16.msra.mxu0 %v4749_v9 }
 0x549   : > { %v3258_v62 = vmul.f32 %v5104_v46, %v8510_v25  ;;  %v4748_v46 = vld [vmem:[#allocation11 + $0x10] sm:$0xff]  ;;  %4752 = vmatpush.bf16.msra.mxu3 %v4749_v9 }
 0x54b   : > { %4685 = vmatmul.msk.f32.gmra.mxu2 %vm2912_vm8, %v3258_v62  ;;  %v4747_v62 = vld [vmem:[#allocation11 + $0x8] sm:$0xff] }
 0x54c   : > { %v8589_v24 = vld.sshfl [vmem:[#allocation1] sm:$0xff pattern:$0x75316420]  ;;  %v3662_v0 = vpop.f32.mrf.mxu3  ;;  %4753 = vmatpush.bf16.msra.mxu2 %v4748_v46  ;;  %4228 = vmatpush.bf16.msra.mxu0 %v4748_v46 }
 0x54d   : > { %4000 = vst [vmem:[#allocation1] ss:$2 sm:$0xff] %v8539_v44  ;;  %v3956_v36 = vrot.slane %v3662_v0, 4  ;;  %4754 = vmatpush.bf16.msra.mxu3 %v4748_v46 }
 0x54e   : > { %4001 = vst [vmem:[#allocation1 + $0x1] ss:$2 sm:$0xff] %v8546_v27  ;;  %v8593_v12 = vld.sshfl [vmem:[#allocation1 + $0x20] sm:$0xff pattern:$0x75316420] }
 0x54f   : > { %4066 = vst [vmem:[#allocation1 + $0x21] ss:$2 sm:$0xff] %v3956_v36 }
 0x550   : > { %4065 = vst [vmem:[#allocation1 + $0x20] ss:$2 sm:$0xff] %v3954_v33  ;;  %4755 = vmatpush.bf16.msra.mxu2 %v4747_v62  ;;  %4229 = vmatpush.bf16.msra.mxu0 %v4747_v62 }
 0x551   : > { %4756 = vmatpush.bf16.msra.mxu3 %v4747_v62 }
 0x555   : > { %v8595_v51 = vld.sshfl [vmem:[#allocation1] sm:$0xff pattern:$0x75316420] }
 0x556   : > { %4012 = vst [vmem:[#allocation1] ss:$2 sm:$0xff] %v8552_v32 }
 0x557   : > { %4013 = vst [vmem:[#allocation1 + $0x1] ss:$2 sm:$0xff] %v8555_v8 }
 0x55a   : > { %v3188_v25 = vpop.xlane.xlu1 %3187 }
 0x55b   : > { %5105 = vrcp.f32 %v3188_v25 }
 0x55e   : > { %v8599_v26 = vld.sshfl [vmem:[#allocation1] sm:$0xff pattern:$0x75316420] }
 0x55f   : > { %4040 = vst [vmem:[#allocation1] ss:$2 sm:$0xff] %v3619_v48 }
 0x560   : > { %4042 = vst [vmem:[#allocation1 + $0x1] ss:$2 sm:$0xff] %v3659_v30 }
 0x561   : > { %v5106_v44 = vpop.eup %5105 }
 0x562   : > { %v3260_v7 = vmul.f32 %v5106_v44, %v8527_v21  ;;  %v4069_v21 = vld.sshfl [vmem:[#allocation1 + $0x20] sm:$0xff pattern:$0x75316420] }
 0x564   : > { %4687 = vmatmul.msk.f32.gmra.mxu3 %vm2912_vm8, %v3260_v7 }
 0x567   : > { %v4047_v56 = vld.sshfl [vmem:[#allocation1] sm:$0xff pattern:$0x75316420] }
 0x568   : > { %4059 = vst [vmem:[#allocation1] ss:$2 sm:$0xff] %v3622_v14  ;;  %v4746_v14 = vld [vmem:[#allocation11] sm:$0xff] }
 0x569   : > { %4060 = vst [vmem:[#allocation1 + $0x1] ss:$2 sm:$0xff] %v3662_v0  ;;  %v3739_v27 = vpop.f32.mrf.mxu1  ;;  %4757 = vmatpush.bf16.msra.mxu2 %v4746_v14  ;;  %4230 = vmatpush.bf16.msra.mxu0 %v4746_v14 }
 0x56a   : > { %v3959_v3 = vrot.slane %v3739_v27, 4  ;;  %4046 = vst [vmem:[#allocation1 + $0x11] ss:$2 sm:$0xff] %v3739_v27  ;;  %4758 = vmatpush.bf16.msra.mxu3 %v4746_v14 }
 0x56c   : > { %4056 = vst [vmem:[#allocation1 + $0x31] ss:$2 sm:$0xff] %v3959_v3 }
 0x570   : > { %v4063_v8 = vld.sshfl [vmem:[#allocation1] sm:$0xff pattern:$0x75316420] }
 0x571   : > { %v4048_v34 = vld.sshfl [vmem:[#allocation1 + $0x10] sm:$0xff pattern:$0x75316420] }
 0x572   : > { %4061 = vst [vmem:[#allocation1 + $0x10] ss:$2 sm:$0xff] %v3702_v47  ;;  %v4957_v11 = vpack.i.bf16 %v4048_v34, %v4047_v56 }
 0x573   : > { %v4058_v31 = vld.sshfl [vmem:[#allocation1 + $0x30] sm:$0xff pattern:$0x75316420] }
 0x574   : > { %4067 = vst [vmem:[#allocation1 + $0x30] ss:$2 sm:$0xff] %v3958_v63  ;;  %v4972_v53 = vpack.i.bf16 %v4058_v31, %v8593_v12 }
 0x577   : > { %v3779_v32 = vpop.f32.mrf.mxu2 }
 0x578   : > { %v3961_v58 = vrot.slane %v3779_v32, 4  ;;  %4071 = vst [vmem:[#allocation1] ss:$2 sm:$0xff] %v3779_v32 }
 0x57a   : > { %4077 = vst [vmem:[#allocation1 + $0x20] ss:$2 sm:$0xff] %v3961_v58 }
 0x57f   : > { %v3742_v37 = vpop.f32.mrf.mxu1 }
 0x580   : > { %v3960_v1 = vrot.slane %v3742_v37, 4  ;;  %4062 = vst [vmem:[#allocation1 + $0x11] ss:$2 sm:$0xff] %v3742_v37 }
 0x582   : > { %4068 = vst [vmem:[#allocation1 + $0x31] ss:$2 sm:$0xff] %v3960_v1 }
 0x587   : > { %v4064_v50 = vld.sshfl [vmem:[#allocation1 + $0x10] sm:$0xff pattern:$0x75316420] }
 0x588   : > { %v4937_v43 = vpack.i.bf16 %v4064_v50, %v4063_v8 }
 0x589   : > { %v4070_v60 = vld.sshfl [vmem:[#allocation1 + $0x30] sm:$0xff pattern:$0x75316420] }
 0x58a   : > { %v3859_v38 = vpop.f32.mrf.mxu0  ;;  %4938 = vrot.lane.b32.xlu0 %v4937_v43, %s5465_s16  ;;  %v4947_v18 = vpack.i.bf16 %v4070_v60, %v4069_v21 }
 0x58b   : > { %v3965_v57 = vrot.slane %v3859_v38, 4  ;;  %4073 = vst [vmem:[#allocation1 + $0x10] ss:$2 sm:$0xff] %v3859_v38 }
 0x58d   : > { %v3819_v15 = vpop.f32.mrf.mxu3  ;;  %4079 = vst [vmem:[#allocation1 + $0x30] ss:$2 sm:$0xff] %v3965_v57 }
 0x58e   : > { %v3963_v39 = vrot.slane %v3819_v15, 4  ;;  %4072 = vst [vmem:[#allocation1 + $0x1] ss:$2 sm:$0xff] %v3819_v15 }
 0x590   : > { %4078 = vst [vmem:[#allocation1 + $0x21] ss:$2 sm:$0xff] %v3963_v39 }
 0x592   : > { %4948 = vrot.lane.b32.xlu0 %v4947_v18, %s5465_s16 }
 0x595   : > { %v4075_v6 = vld.sshfl [vmem:[#allocation1] sm:$0xff pattern:$0x75316420] }
 0x597   : > { %v4081_v23 = vld.sshfl [vmem:[#allocation1 + $0x20] sm:$0xff pattern:$0x75316420] }
 0x599   : > { %v3862_v5 = vpop.f32.mrf.mxu0 }
 0x59a   : > { %4958 = vrot.lane.b32.xlu0 %v4957_v11, %s5465_s16  ;;  %v3966_v48 = vrot.slane %v3862_v5, 4 }
 0x5b9   : > { %v3899_v29 = vpop.f32.mrf.mxu1 }
 0x5ba   : > { %v3967_v52 = vrot.slane %v3899_v29, 4  ;;  %4074 = vst [vmem:[#allocation1 + $0x11] ss:$2 sm:$0xff] %v3899_v29 }
 0x5bc   : > { %4080 = vst [vmem:[#allocation1 + $0x31] ss:$2 sm:$0xff] %v3967_v52 }
 0x5c1   : > { %v3902_v59 = vpop.f32.mrf.mxu1  ;;  %v4076_v22 = vld.sshfl [vmem:[#allocation1 + $0x10] sm:$0xff pattern:$0x75316420] }
 0x5c2   : > { %v3968_v19 = vrot.slane %v3902_v59, 4  ;;  %v4962_v4 = vpack.i.bf16 %v4076_v22, %v4075_v6  ;;  %4085 = vst [vmem:[#allocation1 + $0x10] ss:$2 sm:$0xff] %v3862_v5 }
 0x5c3   : > { %4086 = vst [vmem:[#allocation1 + $0x11] ss:$2 sm:$0xff] %v3902_v59  ;;  %v4082_v28 = vld.sshfl [vmem:[#allocation1 + $0x30] sm:$0xff pattern:$0x75316420] }
 0x5c4   : > { %4963 = vrot.lane.b32.xlu0 %v4962_v4, %s5465_s16  ;;  %4091 = vst [vmem:[#allocation1 + $0x30] ss:$2 sm:$0xff] %v3966_v48  ;;  %v4942_v41 = vpack.i.bf16 %v4082_v28, %v4081_v23 }
 0x5c5   : > { %4092 = vst [vmem:[#allocation1 + $0x31] ss:$2 sm:$0xff] %v3968_v19 }
 0x5c6   : > { %4943 = vrot.lane.b32.xlu2 %v4942_v41, %s5465_s16 }
 0x5ca   : > { %v4088_v12 = vld.sshfl [vmem:[#allocation1 + $0x10] sm:$0xff pattern:$0x75316420] }
 0x5cc   : > { %4973 = vrot.lane.b32.xlu0 %v4972_v53, %s5465_s16  ;;  %v4094_v7 = vld.sshfl [vmem:[#allocation1 + $0x30] sm:$0xff pattern:$0x75316420] }
 0x5ce   : > { %v3782_v54 = vpop.f32.mrf.mxu2 }
 0x5cf   : > { %v3962_v30 = vrot.slane %v3782_v54, 4  ;;  %4083 = vst [vmem:[#allocation1] ss:$2 sm:$0xff] %v3782_v54 }
 0x5d1   : > { %4089 = vst [vmem:[#allocation1 + $0x20] ss:$2 sm:$0xff] %v3962_v30 }
 0x5e7   : > { %v3822_v0 = vpop.f32.mrf.mxu3 }
 0x5e8   : > { %v3964_v36 = vrot.slane %v3822_v0, 4  ;;  %4084 = vst [vmem:[#allocation1 + $0x1] ss:$2 sm:$0xff] %v3822_v0 }
 0x5ea   : > { %4090 = vst [vmem:[#allocation1 + $0x21] ss:$2 sm:$0xff] %v3964_v36 }
 0x5ef   : > { %v4087_v33 = vld.sshfl [vmem:[#allocation1] sm:$0xff pattern:$0x75316420] }
 0x5f0   : > { %v4952_v25 = vpack.i.bf16 %v4088_v12, %v4087_v33 }
 0x5f1   : > { %v4093_v44 = vld.sshfl [vmem:[#allocation1 + $0x20] sm:$0xff pattern:$0x75316420] }
 0x5f2   : > { %4953 = vrot.lane.b32.xlu1 %v4952_v25, %s5465_s16  ;;  %v4967_v56 = vpack.i.bf16 %v4094_v7, %v4093_v44 }
 0x5f4   : > { %4968 = vrot.lane.b32.xlu2 %v4967_v56, %s5465_s16 }
 0x5fc   : > { %v4939_v27 = vpop.permute.xlu0 %4938 }
 0x5fd   : > { %v4941_v3 = vunpack.i.h.bf16 %v4939_v27  ;;  %v4940_v47 = vunpack.i.l.bf16 %v4939_v27 }
 0x5ff   : > { %v4148_v34 = vsel %vm2085_vm7, %v8561_v35, %v4941_v3  ;;  %v4147_v63 = vsel %vm2085_vm7, %v8589_v24, %v4940_v47 }
 0x600   : > { %v4161_v31 = vpack.c.bf16 %v4148_v34, %v4147_v63 }
 0x602   : > { %4710 = vmatmul.msk.bf16.vlgmr.msra.gmra.mxu2 %vm595_vm1, %v4161_v31 }
 0x604   : > { %v4949_v32 = vpop.permute.xlu0 %4948 }
 0x605   : > { %v4951_v8 = vunpack.i.h.bf16 %v4949_v32  ;;  %v4950_v58 = vunpack.i.l.bf16 %v4949_v32 }
 0x607   : > { %v4150_v37 = vsel %vm2085_vm7, %v8563_v45, %v4951_v8  ;;  %v4149_v1 = vsel %vm2085_vm7, %v8542_v20, %v4950_v58 }
 0x608   : > { %v4162_v38 = vpack.c.bf16 %v4150_v37, %v4149_v1 }
 0x60c   : > { %v4959_v21 = vpop.permute.xlu0 %4958 }
 0x60d   : > { %v4961_v50 = vunpack.i.h.bf16 %v4959_v21  ;;  %v4960_v43 = vunpack.i.l.bf16 %v4959_v21 }
 0x60f   : > { %v4144_v35 = vsel %vm2085_vm7, %v8533_v2, %v4961_v50  ;;  %v4143_v24 = vsel %vm2085_vm7, %v8582_v55, %v4960_v43 }
 0x610   : > { %v4159_v57 = vpack.c.bf16 %v4144_v35, %v4143_v24 }
 0x612   : > { %4708 = vmatmul.msk.bf16.vlgmr.msra.gmra.mxu0 %vm595_vm1, %v4159_v57  ;;  %4711 = vmatmul.msk.bf16.gmra.mxu2 %vm595_vm1, %v4162_v38 }
 0x620   : > { %v4944_v60 = vpop.permute.xlu2 %4943 }
 0x621   : > { %v4946_v15 = vunpack.i.h.bf16 %v4944_v60  ;;  %v4945_v45 = vunpack.i.l.bf16 %v4944_v60 }
 0x623   : > { %v4154_v20 = vsel %vm2085_vm7, %v8569_v10, %v4946_v15  ;;  %v4153_v39 = vsel %vm2085_vm7, %v8559_v40, %v4945_v45 }
 0x624   : > { %v4164_v18 = vpack.c.bf16 %v4154_v20, %v4153_v39 }
 0x626   : > { %4713 = vmatmul.msk.bf16.vlgmr.msra.gmra.mxu3 %vm595_vm1, %v4164_v18 }
 0x636   : > { %v4964_v2 = vpop.permute.xlu0 %4963 }
 0x637   : > { %v4966_v55 = vunpack.i.h.bf16 %v4964_v2  ;;  %v4965_v11 = vunpack.i.l.bf16 %v4964_v2 }
 0x639   : > { %v4152_v29 = vsel %vm2085_vm7, %v8567_v61, %v4966_v55  ;;  %v4151_v52 = vsel %vm2085_vm7, %v8595_v51, %v4965_v11 }
 0x63a   : > { %v4163_v5 = vpack.c.bf16 %v4152_v29, %v4151_v52 }
 0x63c   : > { %4712 = vmatmul.msk.bf16.gmra.mxu2 %vm595_vm1, %v4163_v5 }
 0x63e   : > { %v4974_v48 = vpop.permute.xlu0 %4973 }
 0x63f   : > { %v4976_v10 = vunpack.i.h.bf16 %v4974_v48  ;;  %v4975_v59 = vunpack.i.l.bf16 %v4974_v48 }
 0x641   : > { %v4146_v40 = vsel %vm2085_vm7, %v8535_v13, %v4976_v10  ;;  %v4145_v6 = vsel %vm2085_vm7, %v8525_v49, %v4975_v59 }
 0x642   : > { %v4160_v22 = vpack.c.bf16 %v4146_v40, %v4145_v6 }
 0x644   : > { %4709 = vmatmul.msk.bf16.gmra.mxu0 %vm595_vm1, %v4160_v22 }
 0x64e   : > { %v4969_v13 = vpop.permute.xlu2 %4968 }
 0x64f   : > { %v4971_v41 = vunpack.i.h.bf16 %v4969_v13  ;;  %v4970_v53 = vunpack.i.l.bf16 %v4969_v13 }
 0x651   : > { %v4158_v49 = vsel %vm2085_vm7, %v8579_v17, %v4971_v41  ;;  %v4157_v54 = vsel %vm2085_vm7, %v8571_v42, %v4970_v53 }
 0x652   : > { %v4166_v30 = vpack.c.bf16 %v4158_v49, %v4157_v54 }
 0x664   : > { %v4954_v61 = vpop.permute.xlu1 %4953 }
 0x665   : > { %v4956_v19 = vunpack.i.h.bf16 %v4954_v61  ;;  %v4955_v4 = vunpack.i.l.bf16 %v4954_v61 }
 0x667   : > { %v4156_v51 = vsel %vm2085_vm7, %v8577_v16, %v4956_v19  ;;  %v4155_v23 = vsel %vm2085_vm7, %v8599_v26, %v4955_v4 }
 0x668   : > { %v4165_v28 = vpack.c.bf16 %v4156_v51, %v4155_v23 }
 0x66a   : > { %4714 = vmatmul.msk.bf16.gmra.mxu3 %vm595_vm1, %v4165_v28 }
 0x67a   : > { %4715 = vmatmul.msk.bf16.gmra.mxu3 %vm595_vm1, %v4166_v30 }
 0x685   : > { %v4242_v16 = vpop.f32.mrf.mxu2 }
 0x686   : > { %4276 = vst.msk [vmem:[%s8653_s30 + $0x20] sm:$0xff] %vm595_vm1, %v4242_v16 }
 0x68d   : > { %v4244_v17 = vpop.f32.mrf.mxu2 }
 0x68e   : > { %4277 = vst.msk [vmem:[%s8653_s30 + $0x28] sm:$0xff] %vm595_vm1, %v4244_v17 }
 0x68f   : > { %v4232_v42 = vpop.f32.mrf.mxu0 }
 0x690   : > { %4272 = vst.msk [vmem:[%s8653_s30] sm:$0xff] %vm595_vm1, %v4232_v42 }
 0x695   : > { %v4247_v26 = vpop.f32.mrf.mxu2 }
 0x696   : > { %4278 = vst.msk [vmem:[%s8653_s30 + $0x30] sm:$0xff] %vm595_vm1, %v4247_v26 }
 0x697   : > { %v4234_v9 = vpop.f32.mrf.mxu0 }
 0x698   : > { %4273 = vst.msk [vmem:[%s8653_s30 + $0x8] sm:$0xff] %vm595_vm1, %v4234_v9 }
 0x69d   : > { %v4249_v46 = vpop.f32.mrf.mxu2 }
 0x69e   : > { %4279 = vst.msk [vmem:[%s8653_s30 + $0x38] sm:$0xff] %vm595_vm1, %v4249_v46 }
 0x6a9   : > { %v4257_v62 = vpop.f32.mrf.mxu3 }
 0x6aa   : > { %4282 = vst.msk [vmem:[%s8653_s30 + $0x50] sm:$0xff] %vm595_vm1, %v4257_v62 }
 0x6b1   : > { %v4259_v14 = vpop.f32.mrf.mxu3 }
 0x6b2   : > { %4283 = vst.msk [vmem:[%s8653_s30 + $0x58] sm:$0xff] %vm595_vm1, %v4259_v14 }
 0x6bf   : > { %v4252_v0 = vpop.f32.mrf.mxu2 }
 0x6c0   : > { %4280 = vst.msk [vmem:[%s8653_s30 + $0x40] sm:$0xff] %vm595_vm1, %v4252_v0 }
 0x6c1   : > { %v4237_v36 = vpop.f32.mrf.mxu0 }
 0x6c2   : > { %4274 = vst.msk [vmem:[%s8653_s30 + $0x10] sm:$0xff] %vm595_vm1, %v4237_v36 }
 0x6c7   : > { %v4254_v33 = vpop.f32.mrf.mxu2 }
 0x6c8   : > { %4281 = vst.msk [vmem:[%s8653_s30 + $0x48] sm:$0xff] %vm595_vm1, %v4254_v33 }
 0x6c9   : > { %v4239_v12 = vpop.f32.mrf.mxu0 }
 0x6ca   : > { %4275 = vst.msk [vmem:[%s8653_s30 + $0x18] sm:$0xff] %vm595_vm1, %v4239_v12 }
 0x6ed   : > { %v4262_v25 = vpop.f32.mrf.mxu3 }
 0x6ee   : > { %4284 = vst.msk [vmem:[%s8653_s30 + $0x60] sm:$0xff] %vm595_vm1, %v4262_v25 }
 0x6f5   : > { %v4264_v44 = vpop.f32.mrf.mxu3 }
 0x6f6   : > { %4285 = vst.msk [vmem:[%s8653_s30 + $0x68] sm:$0xff] %vm595_vm1, %v4264_v44 }
 0x6fd   : > { %v4267_v7 = vpop.f32.mrf.mxu3 }
 0x6fe   : > { %4286 = vst.msk [vmem:[%s8653_s30 + $0x70] sm:$0xff] %vm595_vm1, %v4267_v7 }
 0x705   : > { %v4269_v56 = vpop.f32.mrf.mxu3 }
 0x706   : > { %4287 = vst.msk [vmem:[%s8653_s30 + $0x78] sm:$0xff] %vm595_vm1, %v4269_v56 }
 0x707   : > { %5317 = shalt.err (!%p5314_p13)
}
 0x708   : > { %s5466_s3 = smov 128   ;;  %s5467_s16 = smov 8  }
 0x709   : > { %4777 = dma.vmem_to_hbm [thread:$0]  (%p5701_p5), %s4305_s14, 2048, %s4307_s2, %s4289_s22, %s5466_s3, %s5466_s3, %s5467_s16  }
 0x70a PF: > { %p4810_p12 = scmp.ge.s32.totalorder %s5452_s10, 2  ;;  %s4321_s1 = sand.u32 1, %s5424_s27  }
 0x70b   : > { %s4322_s30 = scalar_lea.sflag [#allocation4], %s4321_s1 }
 0x70c   : > { %p4800_p7 = pnand %p4810_p12, %p5705_p11 }
 0x70e   : > { %p4801_p6 = pneg %p4800_p7 }
 0x710   : > { %5395 = dma.done.wait (%p4801_p6), %s4322_s30, 2048  }
 0x711   : > { %5397 = vsyncadd (%p4801_p6), %s4322_s30, 4294965248  ;;  %s27_s10 = sadd.s32 1, %s5452_s10   ;;  %s9265_s21 = sld [smem:[#allocation21_spill]] }
 0x712   : > { %p8709_p3 = scmp.ge.s32.totalorder %s27_s10, 6   ;;  %s9266_s24 = sld [smem:[#allocation22_spill]] }
 0x713   : > { %s9267_s25 = sld [smem:[#allocation23_spill]]  ;;  %s9275_s22 = smov %s5408_s23 }
 0x714   : > { %s9268_s26 = sld [smem:[#allocation34_spill]]  ;;  %s9276_s23 = smov %s5747_s17 }
 0x715   : > { %s9269_s7 = sld [smem:[#allocation35_spill]]  ;;  %s9277_s27 = smov %s5428_s28 }
 0x716   : > { %s9270_s30 = sld [smem:[#allocation26_spill]]  ;;  %s9278_s28 = smov %s5432_s29 }
 0x717   : > { %s9271_s0 = sld [smem:[#allocation27_spill]] }
 0x718   : > { %s9272_s8 = sld [smem:[#allocation29_spill]] }
 0x719   : > { %s9273_s15 = sld [smem:[#allocation30_spill]] }
 0x71b   : > { %s9279_s29 = smov %s9269_s7  ;;  %26 = sbr.rel (!%p8709_p3) target bundleno = 22 (0x16), region = 283 }
 0x71d   : > { %s9280_s7 = smov %s9271_s0 }
 0x71f   : > { %s9281_s9 = smov %s9273_s15 }
 0x720   :  { %4328 = vsyncpa [#allocation3], 1 }
 0x721   :  { %4330 = vsyncpa [#allocation3 + $0x1], 1 }
 0x722   :  { %4331 = vsyncpa [#allocation6], 1 }
 0x723   :  { %4333 = vsyncpa [#allocation6 + $0x1], 1 }
 0x724   :  { %4334 = vsyncpa [#allocation9], 1 }
 0x725   :  { %4335 = vsyncpa [#allocation12], 1 }
 0x726   :  { %4336 = vsyncpa [#allocation4], 1 }
 0x727   :  { %4338 = vsyncpa [#allocation4 + $0x1], 1 }

// kernel: tpu_custom_call.1
= control target key start
LH: loop header
LB: loop body
LE: loop exit
PB: predicated region body
PF: predicated region fallthrough
CT: control target
= control target key end

     0   :  { %s8756_s0 = inlined_call_operand.hbm [shape: bf16[2,16,16,64], index: 0, kind: input, shape index: {}]   ;;  %s8757_s1 = inlined_call_operand.hbm [shape: bf16[2,16,16,64], index: 1, kind: input, shape index: {}]   ;;  %s8758_s2 = inlined_call_operand.hbm [shape: bf16[2,16,16,64], index: 2, kind: input, shape index: {}]   ;;  %s8759_s3 = inlined_call_operand.hbm [shape: bf16[64,192], index: 3, kind: input, shape index: {}]   ;;  %s8760_s4 = inlined_call_operand.hbm [shape: f32[9,192], index: 4, kind: input, shape index: {}]   ;;  %s8761_s5 = inlined_call_operand.hbm [shape: bf16[64,64], index: 5, kind: input, shape index: {}]   ;;  %s8762_s6 = inlined_call_operand.hbm [shape: f32[2,16,16,64], index: 6, kind: output, shape index: {}]  }
   0x1   :  { %8918 = sst [smem:[#allocation87_spill]] %s8756_s0 }
   0x2   :  { %8919 = sst [smem:[#allocation88_spill]] %s8757_s1 }
   0x3   :  { %8920 = sst [smem:[#allocation89_spill]] %s8758_s2 }
   0x4   :  { %8921 = sst [smem:[#allocation90_spill]] %s8759_s3 }
   0x5   :  { %8922 = sst [smem:[#allocation91_spill]] %s8760_s4 }
   0x6   :  { %8923 = sst [smem:[#allocation92_spill]] %s8761_s5 }
   0x7   :  { %8924 = sst [smem:[#allocation93_spill]] %s8762_s6 }
   0x8   :  { %11 = vsyncpa [#allocation3], 0 }
   0x9   :  { %13 = vsyncpa [#allocation3 + $0x1], 0 }
   0xa   :  { %14 = vsyncpa [#allocation6], 0 }
   0xb   :  { %16 = vsyncpa [#allocation6 + $0x1], 0 }
   0xc   :  { %17 = vsyncpa [#allocation9], 0 }
   0xd   :  { %18 = vsyncpa [#allocation12], 0 }
   0xe   :  { %19 = vsyncpa [#allocation4], 0 }
   0xf   :  { %21 = vsyncpa [#allocation4 + $0x1], 0  ;;  %s5503_s21 = smov 0   ;;  %s5505_s22 = smov 0  }
  0x10   :  { %s5507_s23 = smov 0   ;;  %s5509_s24 = smov 0  }
  0x11   :  { %s5511_s25 = smov 0   ;;  %s5513_s26 = smov 0  }
  0x12   :  { %s5515_s27 = smov 0   ;;  %s5517_s28 = smov 0  }
  0x13   :  { %s5519_s29 = smov 0   ;;  %s5521_s30 = smov 0  }
  0x14   :  { %s5523_s7 = smov 0   ;;  %s5525_s8 = smov 0  }
  0x15   :  { %s5527_s9 = smov 0   ;;  %s5529_s10 = smov 0  }
  0x16 LB: > { %8925 = sst [smem:[#allocation20_spill]] %s5400_s21  ;;  %s5574_s11 = sadd.s32 4294967295, %s5452_s10   ;;  %s5452_s10 = sphi %s5529_s10, %s27_s10   ;;  %s5448_s9 = sphi %s5527_s9, %s9281_s9   ;;  %s5444_s8 = sphi %s5525_s8, %s9272_s8   ;;  %s5440_s7 = sphi %s5523_s7, %s9280_s7   ;;  %s5436_s30 = sphi %s5521_s30, %s9270_s30   ;;  %s5432_s29 = sphi %s5519_s29, %s9279_s29   ;;  %s5428_s28 = sphi %s5517_s28, %s9278_s28   ;;  %s5424_s27 = sphi %s5515_s27, %s9277_s27   ;;  %s5420_s26 = sphi %s5513_s26, %s9268_s26   ;;  %s5416_s25 = sphi %s5511_s25, %s9267_s25   ;;  %s5412_s24 = sphi %s5509_s24, %s9266_s24   ;;  %s5408_s23 = sphi %s5507_s23, %s9276_s23   ;;  %s5404_s22 = sphi %s5505_s22, %s9275_s22   ;;  %s5400_s21 = sphi %s5503_s21, %s9265_s21  }
  0x17   : > { %8926 = sst [smem:[#allocation21_spill]] %s5404_s22  ;;  %p4483_p0 = scmp.ge.s32.totalorder %s5452_s10, 1 }
  0x18   : > { %8927 = sst [smem:[#allocation22_spill]] %s5416_s25  ;;  %p62_p1 = scmp.eq.s32.totalorder %s5574_s11, 0 }
  0x19   : > { %8928 = sst [smem:[#allocation23_spill]] %s5420_s26  ;;  %p235_p2 = scmp.lt.s32.totalorder %s5452_s10, 5 }
  0x1a   : > { %8929 = sst [smem:[#allocation24_spill]] %s5436_s30  ;;  %s5454_s16 = smov [#allocation8]  }
  0x1b   : > { %8930 = sst [smem:[#allocation25_spill]] %s5440_s7  ;;  %p5582_p3 = pnand %p4483_p0, %p235_p2 }
  0x1c   : > { %8931 = sst [smem:[#allocation26_spill]] %s5444_s8  ;;  %s248_s17 = sshll.u32 %s5454_s16, 4  ;;  %s249_s17 = int_to_ptr.vmem [resolvable:$true] %s248_s17 }
  0x1d   : > { %8932 = sst [smem:[#allocation27_spill]] %s5448_s9  ;;  %p4779_p4 = pneg %p5582_p3 }
  0x1e   : > { %s8933_s3 = sld [smem:[#allocation90_spill]]  ;;  %s5455_s19 = smov 128  }
  0x1f   : > { %s8934_s15 = scalar_select %p5582_p3, 1, 0 }
  0x20   : > { %p5590_p5 = pnand %p4779_p4, %p62_p1  ;;  %s5456_s20 = smov 8  }
  0x21   : > { %8935 = sst [smem:[#allocation28_spill]] %s8934_s15  ;;  %s36_s12 = sadd.s32 1, %s5444_s8 }
  0x22   : > { %p37_p6 = scmp.ge.s32.totalorder %s36_s12, 2  ;;  %s39_s13 = sadd.s32 1, %s5448_s9 }
  0x23   : > { %p56_p7 = scmp.eq.s32.totalorder %s5452_s10, 0  ;;  %p91_p12 = scmp.ne.s32.totalorder %s5420_s26, %s5416_s25 }
  0x24   : > { %s246_s14 = sshll.u32 %s8933_s3, 4  ;;  %s4477_s3 = sshll.u32 %s5444_s8, 3  ;;  %s247_s14 = int_to_ptr.hbm [resolvable:$true] %s246_s14 }
  0x25   : > { %4782 = dma.hbm_to_vmem [thread:$0]  (!%p5590_p5), %s247_s14, 1024, %s249_s17, [#allocation9], %s5455_s19, %s5455_s19, %s5456_s20  }
  0x26   : > { %s9283_s12 = smov (%p37_p6, %s36_s12), 0  ;;  %s9285_s13 = smov (!%p37_p6, %s39_s13), %s5448_s9 }
  0x27   : > { %8937 = sst [smem:[#allocation29_spill]] %s9283_s12  ;;  %s44_s16 = ssub.s32 %s5444_s8, %s9283_s12 }
  0x28   : > { %s4478_s6 = sadd.s32 4294967295, %s4477_s3  ;;  %p41_p8 = scmp.ge.s32.totalorder %s9285_s13, 2 }
  0x29   : > { %p73_p9 = scmp.gt.s32.totalorder %s4478_s6, 0  ;;  %s4479_s14 = sshll.u32 %s9283_s12, 3 }
  0x2a   : > { %s84_s17 = sadd.s32 1, %s5420_s26  ;;  %s9287_s13 = smov (%p41_p8, %s9285_s13), 0 }
  0x2b   : > { %8938 = sst [smem:[#allocation30_spill]] %s9287_s13  ;;  %s9289_s6 = smov (!%p73_p9, %s4478_s6), 0 }
  0x2c   : > { %s5611_s19 = ssub.s32 %s5448_s9, %s9287_s13  ;;  %s4480_s20 = sadd.s32 4294967295, %s4479_s14 }
  0x2d   : > { %8939 = sst [smem:[#allocation31_spill]] %s5611_s19  ;;  %s5614_s7 = sor.u32 %s44_s16, %s5611_s19 }
  0x2e   : > { %p77_p10 = scmp.gt.s32.totalorder %s4480_s20, 0  ;;  %p46_p11 = scmp.eq.s32.totalorder %s5614_s7, 0 }
  0x2f   : > { %p5621_p13 = por %p91_p12, %p56_p7  ;;  %p97_p0 = scmp.ne.s32.totalorder %s5416_s25, %s5412_s24 }
  0x30   : > { %s9291_s20 = smov (!%p77_p10, %s4480_s20), 0  ;;  %s5627_s30 = sadd.s32 8, %s4477_s3 }
  0x31   : > { %s80_s13 = ssub.s32 %s9289_s6, %s9291_s20  ;;  %p5632_p2 = por %p97_p0, %p62_p1 }
  0x32   : > { %s81_s16 = sor.u32 %s80_s13, %s5611_s19  ;;  %p109_p6 = scmp.lt.s32.totalorder %s5627_s30, 15 }
  0x33   : > { %s8941_s15 = scalar_select %p5632_p2, 1, 0 }
  0x34   : > { %p82_p4 = scmp.eq.s32.totalorder %s81_s16, 0  ;;  %s5637_s2 = sadd.s32 8, %s4479_s14 }
  0x35   : > { %8942 = sst [smem:[#allocation32_spill]] %s8941_s15  ;;  %p8782_p9 = scmp.lt.s32.totalorder %s5452_s10, 4 }
  0x36   : > { %8943 = sst [smem:[#allocation33_spill]] %s5637_s2  ;;  %s5645_s3 = sshll.u32 %s5448_s9, 5 }
  0x37   : > { %s5640_s0 = scalar_select %p82_p4, %s5420_s26, %s84_s17  }
  0x38   : > { %s315_s24 = sand.u32 1, %s5452_s10   ;;  %s317_s13 = sand.u32 1, %s5420_s26  }
  0x39   : > { %8944 = sst [smem:[#allocation34_spill]] %s5640_s0  ;;  %s4493_s20 = sshll.u32 %s317_s13, 3 }
  0x3a   : > { %s4496_s25 = sshll.u32 %s9289_s6, 1  ;;  %s319_s15 = scalar_lea.vmem [#allocation5], %s4493_s20 }
  0x3b   : > { %s328_s19 = sadd.s32 %s4496_s25, %s5645_s3  ;;  %s333_s16 = sshll.u32 %s319_s15, 4  ;;  %s334_s16 = int_to_ptr.vmem [resolvable:$true] %s333_s16 }
  0x3c   : > { %s4498_s21 = sshll.u32 %s328_s19, 2  ;;  %s8945_s1 = sld [smem:[#allocation88_spill]] }
  0x3d   : > { %p4793_p10 = pnand %p8782_p9, %p5621_p13  ;;  %s8946_s4 = sld [smem:[#allocation91_spill]] }
  0x3e   : > { %s5660_s6 = scalar_lea.sflag [#allocation6], %s315_s24  ;;  %s8777_s25 = smov 64  }
  0x3f   : > { %s8779_s15 = smov 4   ;;  %s5459_s0 = smov [#allocation10]  }
  0x40   : > { %s262_s2 = sshll.u32 %s5459_s0, 4  ;;  %s5461_s22 = smov 16   ;;  %s263_s2 = int_to_ptr.vmem [resolvable:$true] %s262_s2 }
  0x41   : > { %s8947_s5 = sld [smem:[#allocation92_spill]]  ;;  %s5462_s24 = smov [#allocation11]  }
  0x42   : > { %s330_s17 = scalar_lea.hbm %s8945_s1, %s4498_s21  ;;  %s5460_s21 = smov 256  }
  0x43   : > { %s331_s9 = sshll.u32 %s330_s17, 4  ;;  %s260_s26 = sshll.u32 %s8946_s4, 4  ;;  %s332_s9 = int_to_ptr.hbm [resolvable:$true] %s331_s9  ;;  %s261_s26 = int_to_ptr.hbm [resolvable:$true] %s260_s26 }
  0x44   : > { %4795 = dma.hbm_to_vmem [thread:$0]  (!%p4793_p10), %s332_s9, 128, %s334_s16, %s5660_s6, %s8777_s25, %s8777_s25, %s8779_s15  }
  0x45   : > { %4785 = dma.hbm_to_vmem [thread:$0]  (!%p5590_p5), %s261_s26, 512, %s263_s2, [#allocation9], %s5460_s21, %s5460_s21, %s5461_s22  }
  0x46   : > { %s276_s13 = sshll.u32 %s5462_s24, 4  ;;  %s4476_s20 = sadd.s32 4294967294, %s5452_s10   ;;  %s277_s13 = int_to_ptr.vmem [resolvable:$true] %s276_s13 }
  0x47   : > { %s274_s9 = sshll.u32 %s8947_s5, 4  ;;  %s48_s16 = sadd.s32 1, %s5432_s29  ;;  %s275_s9 = int_to_ptr.hbm [resolvable:$true] %s274_s9 }
  0x48   : > { %4788 = dma.hbm_to_vmem [thread:$0]  (!%p5590_p5), %s275_s9, 512, %s277_s13, [#allocation12], %s8777_s25, %s8777_s25, %s8779_s15  }
  0x49   : > { %p55_p12 = scmp.ne.s32.totalorder %s5432_s29, %s5428_s28  ;;  %p61_p0 = scmp.ne.s32.totalorder %s5428_s28, %s5424_s27 }
  0x4a   : > { %s5683_s26 = scalar_select %p46_p11, %s5432_s29, %s48_s16  }
  0x4b   : > { %p5687_p13 = por %p56_p7, %p55_p12  ;;  %p222_p4 = scmp.eq.s32.totalorder %s5574_s11, 3 }
  0x4c   : > { %8948 = sst [smem:[#allocation35_spill]] %s5683_s26  ;;  %p228_p10 = scmp.eq.s32.totalorder %s4476_s20, 3 }
  0x4d   : > { %p5696_p8 = por %p62_p1, %p61_p0  ;;  %s290_s17 = sand.u32 1, %s5432_s29  }
  0x4e   : > { %p5701_p5 = por %p222_p4, %p55_p12  ;;  %p5705_p11 = por %p228_p10, %p61_p0 }
  0x4f   : > { %s8953_s2 = sld [smem:[#allocation33_spill]]  ;;  %s4488_s21 = sshll.u32 %s290_s17, 6 }
  0x50   : > { %s8954_s22 = sld [smem:[#allocation21_spill]]  ;;  %s4727_s12 = sshll.u32 %s5444_s8, 4 }
  0x51   : > { %s8955_s19 = sld [smem:[#allocation20_spill]]  ;;  %s300_s9 = sadd.s32 %s4727_s12, %s5645_s3 }
  0x52   : > { %s294_s24 = scalar_lea.vmem [#allocation2], %s4488_s21  ;;  %s8956_s20 = sld [smem:[#allocation31_spill]] }
  0x53   : > { %s305_s13 = sshll.u32 %s294_s24, 4  ;;  %s4492_s16 = sshll.u32 %s300_s9, 2  ;;  %s306_s13 = int_to_ptr.vmem [resolvable:$true] %s305_s13 }
  0x54   : > { %s8957_s1 = sld [smem:[#allocation87_spill]]  ;;  %p4790_p12 = pnand %p8782_p9, %p5687_p13 }
  0x55   : > { %s291_s8 = scalar_lea.sflag [#allocation3], %s290_s17  ;;  %s8958_s12 = smov 4  }
  0x56   : > { %s8959_s21 = smov 64   ;;  %s120_s9 = sadd.s32 1, %s5408_s23 }
  0x57   : > { %s9293_s30 = smov (!%p109_p6, %s5627_s30), 15  ;;  %p8960_p0 = scmp.lt.s32.totalorder %s8953_s2, 15 }
  0x58   : > { %p127_p4 = scmp.ne.s32.totalorder %s5408_s23, %s8954_s22  ;;  %p133_p10 = scmp.ne.s32.totalorder %s8954_s22, %s8955_s19 }
  0x59   : > { %s9295_s2 = smov (!%p8960_p0, %s8953_s2), 15  ;;  %s345_s25 = sand.u32 1, %s5408_s23  }
  0x5a   : > { %s302_s4 = scalar_lea.hbm %s8957_s1, %s4492_s16  ;;  %s116_s1 = ssub.s32 %s9293_s30, %s9295_s2 }
  0x5b   : > { %s303_s5 = sshll.u32 %s302_s4, 4  ;;  %s117_s15 = sor.u32 %s116_s1, %s8956_s20  ;;  %s304_s5 = int_to_ptr.hbm [resolvable:$true] %s303_s5 }
  0x5c   : > { %4792 = dma.hbm_to_vmem [thread:$0]  (!%p4790_p12), %s304_s5, 1024, %s306_s13, %s291_s8, %s8959_s21, %s8959_s21, %s8958_s12  }
  0x5d   : > { %p5736_p13 = por %p127_p4, %p56_p7  ;;  %p118_p9 = scmp.eq.s32.totalorder %s117_s15, 0 }
  0x5e   : > { %p5742_p12 = por %p133_p10, %p62_p1  ;;  %s4499_s8 = sshll.u32 %s345_s25, 3 }
  0x5f   : > { %s4501_s14 = sshll.u32 %s9293_s30, 1  ;;  %s347_s19 = scalar_lea.vmem [#allocation7], %s4499_s8 }
  0x60   : > { %s5747_s17 = scalar_select %p118_p9, %s5408_s23, %s120_s9  }
  0x61   : > { %s356_s2 = sadd.s32 %s4501_s14, %s5645_s3  ;;  %s361_s24 = sshll.u32 %s347_s19, 4  ;;  %s362_s24 = int_to_ptr.vmem [resolvable:$true] %s361_s24 }
  0x62   : > { %s4503_s22 = sshll.u32 %s356_s2, 2  ;;  %s8963_s16 = sld [smem:[#allocation89_spill]] }
  0x63   : > { %p8964_p7 = scmp.lt.s32.totalorder %s5452_s10, 4 }
  0x65   : > { %p4796_p6 = pnand %p8964_p7, %p5736_p13 }
  0x66   : > { %373 = sbr.rel (%p5582_p3) target bundleno = 1802 (0x70a), region = 44 }
  0x68   : > { %s358_s1 = scalar_lea.hbm %s8963_s16, %s4503_s22 }
  0x69   : > { %s359_s26 = sshll.u32 %s358_s1, 4  ;;  %s360_s26 = int_to_ptr.hbm [resolvable:$true] %s359_s26 }
  0x6a   : > { %4798 = dma.hbm_to_vmem [thread:$0]  (!%p4796_p6), %s360_s26, 128, %s362_s24, %s5660_s6, %s8959_s21, %s8959_s21, %s8958_s12  }
  0x6b   : > { %s5764_s3 = sand.u32 1, %s5428_s28  }
  0x6c   : > { %s4505_s9 = sshll.u32 %s5764_s3, 6  ;;  %s376_s25 = scalar_lea.sflag [#allocation3], %s5764_s3 }
  0x6d   : > { %s5768_s15 = scalar_lea.vmem [#allocation2], %s4505_s9 }
  0x6e   : > { %5375 = dma.done.wait (%p5696_p8), %s376_s25, 1024  }
  0x6f   : > { %5377 = vsyncadd (%p5696_p8), %s376_s25, 4294966272  ;;  %s8966_s6 = sld [smem:[#allocation22_spill]]  ;;  %s385_s12 = sand.u32 1, %s5574_s11  }
  0x70   : > { %s386_s8 = scalar_lea.sflag [#allocation6], %s385_s12 }
  0x75   : > { %s387_s21 = sand.u32 1, %s8966_s6  }
  0x76   : > { %s5776_s4 = sshll.u32 %s387_s21, 3 }
  0x77   : > { %s389_s14 = scalar_lea.vmem [#allocation5], %s5776_s4 }
  0x78   : > { %5379 = dma.done.wait (%p5632_p2), %s386_s8, 128  }
  0x79   : > { %5381 = vsyncadd (%p5632_p2), %s386_s8, 4294967168  ;;  %s8968_s2 = sld [smem:[#allocation21_spill]] }
  0x7f   : > { %s397_s22 = sand.u32 1, %s8968_s2  }
  0x80   : > { %s5784_s18 = sshll.u32 %s397_s22, 3 }
  0x81   : > { %s399_s19 = scalar_lea.vmem [#allocation7], %s5784_s18 }
  0x82   : > { %5383 = dma.done.wait (%p5742_p12), %s386_s8, 128  }
  0x83   : > { %5385 = vsyncadd (%p5742_p12), %s386_s8, 4294967168 }
  0x84   : > { %5387 = dma.done.wait (%p62_p1), [#allocation9], 1536  }
  0x85   : > { %5389 = vsyncadd (%p62_p1), [#allocation9], 4294965760 }
  0x86   : > { %5391 = dma.done.wait (%p62_p1), [#allocation12], 512  }
  0x87   : > { %5393 = vsyncadd (%p62_p1), [#allocation12], 4294966784  ;;  %s8969_s24 = sld [smem:[#allocation24_spill]]  ;;  %v4570_v0 = vld [vmem:[#allocation8 + $0x30] sm:$0xf]  ;;  %vm595_vm1 = vcmask 523264   ;;  %v744_v52 = vlaneseq }
  0x88   : > { %v4745_v1 = vld [vmem:[#allocation8 + $0x34] sm:$0xf0]  ;;  %v4744_v2 = vld [vmem:[#allocation8 + $0x34] sm:$0xf]  ;;  %v4572_v5 = vld [vmem:[#allocation8 + $0x38] sm:$0xf0] }
  0x89   : > { %v4571_v4 = vor.u32 %v4745_v1, %v4570_v0  ;;  %v4562_v6 = vld [vmem:[#allocation8 + $0x20] sm:$0xf]  ;;  %v4743_v7 = vld [vmem:[#allocation8 + $0x24] sm:$0xf0]  ;;  %v4575_v8 = vor.u32 %v4744_v2, %v4572_v5  ;;  %v4742_v9 = vld [vmem:[#allocation8 + $0x24] sm:$0xf] }
  0x8a   : > { %v4564_v10 = vld [vmem:[#allocation8 + $0x28] sm:$0xf0]  ;;  %v4563_v11 = vor.u32 %v4743_v7, %v4562_v6  ;;  %v4554_v14 = vld [vmem:[#allocation8 + $0x10] sm:$0xf]  ;;  %v4741_v15 = vld [vmem:[#allocation8 + $0x14] sm:$0xf0] }
  0x8b   : > { %630 = vmatpush.bf16.msra.mxu0 %v4571_v4  ;;  %689 = vmatpush.bf16.msra.mxu1 %v4575_v8  ;;  %v4567_v13 = vor.u32 %v4742_v9, %v4564_v10  ;;  %v4740_v16 = vld [vmem:[#allocation8 + $0x14] sm:$0xf]  ;;  %v4556_v17 = vld [vmem:[#allocation8 + $0x18] sm:$0xf0]  ;;  %v466_v18 = vld [vmem:[%s389_s14] sm:$0xf]  ;;  %v4555_v20 = vor.u32 %v4741_v15, %v4554_v14 }
  0x8c   : > { %v467_v19 = vld [vmem:[%s389_s14 + $0x4] sm:$0xf]  ;;  %v4559_v23 = vor.u32 %v4740_v16, %v4556_v17  ;;  %v4546_v24 = vld [vmem:[#allocation8] sm:$0xf]  ;;  %v4739_v25 = vld [vmem:[#allocation8 + $0x4] sm:$0xf0] }
  0x8d   : > { %p465_p3 = scmp.gt.s32.totalorder %s8969_s24, 0  ;;  %v4738_v26 = vld [vmem:[#allocation8 + $0x4] sm:$0xf]  ;;  %v4548_v27 = vld [vmem:[#allocation8 + $0x8] sm:$0xf0]  ;;  %v4547_v30 = vor.u32 %v4739_v25, %v4546_v24  ;;  %v4732_v35 = vld [vmem:[%s5768_s15 + $0x10] sm:$0xff] }
  0x8e   : > { %v4551_v31 = vor.u32 %v4738_v26, %v4548_v27  ;;  %v4730_v33 = vld [vmem:[%s5768_s15] sm:$0xff]  ;;  %v4731_v34 = vld [vmem:[%s5768_s15 + $0x8] sm:$0xff]  ;;  %v4733_v36 = vld [vmem:[%s5768_s15 + $0x18] sm:$0xff]  ;;  %p473_p1 = scmp.lt.s32.totalorder %s8969_s24, 1  ;;  %v5851_v54 = vshrl.u32 %v744_v52, 7  ;;  %vm829_vm3 = vcmask 1040384  }
  0x8f   : > { %s468_s13 = scalar_select %p465_p3, 1, 0  ;;  %631 = vmatpush.bf16.msra.mxu0 %v4563_v11  ;;  %690 = vmatpush.bf16.msra.mxu1 %v4567_v13  ;;  %v4734_v37 = vld [vmem:[%s5768_s15 + $0x20] sm:$0xff]  ;;  %v4735_v38 = vld [vmem:[%s5768_s15 + $0x28] sm:$0xff]  ;;  %v4736_v39 = vld [vmem:[%s5768_s15 + $0x30] sm:$0xff]  ;;  %vm976_vm4 = vcmask 1046528  }
  0x90   : > { %s476_s11 = scalar_select %p473_p1, 1, 0  ;;  %v4737_v40 = vld [vmem:[%s5768_s15 + $0x38] sm:$0xff]  ;;  %v5862_v60 = vadd.s32 8, %v5851_v54  ;;  %v5866_v62 = vld [vmem:[#allocation10 + $0x8] sm:$0xff]  ;;  %v5879_v4 = vld [vmem:[#allocation10] sm:$0xff] }
  0x91   : > { %v469_v3 = vstv %s468_s13  ;;  %v474_v44 = vld [vmem:[%s399_s19] sm:$0xf]  ;;  %v475_v45 = vld [vmem:[%s399_s19 + $0x4] sm:$0xf]  ;;  %v5870_v0 = vperm.slane %v5866_v62, 0  ;;  %v5882_v5 = vperm.slane %v5866_v62, 1 }
  0x92   : > { %vm5800_vm0 = vcmp.eq.s32.totalorder %v469_v3, 1  ;;  %v477_v43 = vstv %s476_s11  ;;  %vm975_vm5 = vcmp.lt.s32.totalorder %v5862_v60, 15  ;;  %vm747_vm6 = vcmp.gt.s32.totalorder %v5851_v54, 0  ;;  %s5463_s5 = smov 96   ;;  %s5464_s20 = smov 64  }
  0x93   : > { %v471_v21 = vsel %vm5800_vm0, %v466_v18, 0  ;;  %v472_v22 = vsel %vm5800_vm0, %v467_v19, 0  ;;  %632 = vmatpush.bf16.msra.mxu0 %v4555_v20  ;;  %691 = vmatpush.bf16.msra.mxu1 %v4559_v23  ;;  %vm478_vm2 = vcmp.eq.s32.totalorder %v477_v43, 1  ;;  %8972 = vst [vmem:[#allocation36_spill] sm:$0xff] %v5870_v0  ;;  %v5895_v9 = vperm.slane %v5879_v4, 0  ;;  %s5465_s16 = smov 32  }
  0x94   : > { %v525_v28 = vunpack.c.l.b16 %v471_v21  ;;  %v526_v29 = vunpack.c.l.b16 %v472_v22  ;;  %v479_v47 = vsel %vm478_vm2, %v474_v44, 0  ;;  %v480_v48 = vsel %vm478_vm2, %v475_v45, 0  ;;  %8973 = vst [vmem:[#allocation37_spill] sm:$0xff] %v5882_v5  ;;  %s4511_s1 = sshll.u32 %s5764_s3, 7  ;;  %s9262_s9 = sld [smem:[#allocation25_spill]] }
  0x95   : > { %v543_v50 = vunpack.c.l.b16 %v479_v47  ;;  %v544_v51 = vunpack.c.l.b16 %v480_v48  ;;  %8974 = vst [vmem:[#allocation38_spill] sm:$0xff] %v5895_v9  ;;  %v5903_v14 = vperm.slane %v5866_v62, 2  ;;  %v5911_v19 = vperm.slane %v5879_v4, 1  ;;  %s8653_s30 = scalar_lea.vmem [#allocation13], %s4511_s1  ;;  %s4750_s25 = sshll.u32 %s8969_s24, 4 }
  0x96   : > { %v545_v32 = vpack.c.b16 %v526_v29, %v525_v28  ;;  %v5914_v20 = vperm.slane %v5879_v4, 2  ;;  %v5923_v25 = vperm.slane %v5879_v4, 3  ;;  %v5926_v26 = vperm.slane %v5866_v62, 3  ;;  %s9263_s4 = sld [smem:[#allocation93_spill]]  ;;  %s4304_s14 = sshll.u32 %s8653_s30, 4  ;;  %s4305_s14 = int_to_ptr.vmem [resolvable:$true] %s4304_s14 }
  0x97   : > { %633 = vmatpush.bf16.msra.mxu0 %v4547_v30  ;;  %692 = vmatpush.bf16.msra.mxu1 %v4551_v31  ;;  %v554_v53 = vpack.c.b16 %v544_v51, %v543_v50  ;;  %8975 = vst [vmem:[#allocation39_spill] sm:$0xff] %v5903_v14  ;;  %vm2085_vm7 = vcmask 261120   ;;  %vm2912_vm8 = vcmask 130048   ;;  %s4289_s22 = scalar_lea.sflag [#allocation4], %s5764_s3 }
  0x98   : > { %8976 = vst [vmem:[#allocation40_spill] sm:$0xff] %v5911_v19 }
  0x99   : > { %8977 = vst [vmem:[#allocation41_spill] sm:$0xff] %v5914_v20 }
  0x9a   : > { %4576 = vmatmul.msk.bf16.vlgmr.msra.gmra.mxu0 %vm595_vm1, %v545_v32  ;;  %4586 = vmatmul.msk.bf16.vlgmr.msra.gmra.mxu1 %vm595_vm1, %v545_v32  ;;  %8978 = vst [vmem:[#allocation42_spill] sm:$0xff] %v5923_v25  ;;  %s4719_s15 = sshll.u32 %s9262_s9, 5 }
  0x9b   : > { %s4301_s6 = sadd.s32 %s4750_s25, %s4719_s15 }
  0x9c   : > { %s4720_s26 = sshll.u32 %s4301_s6, 3  ;;  %s5310_s11 = scalar_lea.hbm %s9263_s4, 512 }
  0x9d   : > { %s4303_s8 = scalar_lea.hbm %s9263_s4, %s4720_s26 }
  0x9e   : > { %s4306_s2 = sshll.u32 %s4303_s8, 4  ;;  %s4307_s2 = int_to_ptr.hbm [resolvable:$true] %s4306_s2 }
  0x9f   : > { %s5304_s18 = sshra.s32 %s4307_s2, 4  ;;  %s5305_s18 = int_to_ptr.hbm [resolvable:$true] %s5304_s18 }
  0xa0   : > { %s5306_s19 = scalar_lea.hbm %s5305_s18, 128  ;;  %p5311_p0 = scmp.lt.s32.totalorder %s5305_s18, %s9263_s4 }
  0xa1   : > { %p5307_p2 = scmp.ne.s32.totalorder %s5305_s18, %s5306_s19  ;;  %p5312_p4 = scmp.lt.s32.totalorder %s5310_s11, %s5306_s19 }
  0xa3   : > { %p5308_p8 = pnand %p5307_p2, %p5701_p5  ;;  %p5313_p10 = por %p5312_p4, %p5311_p0 }
  0xa5   : > { %p5309_p9 = pneg %p5308_p8 }
  0xa7   : > { %p5314_p13 = pnand %p5313_p10, %p5309_p9 }
  0xaa   : > { %4577 = vmatmul.msk.bf16.gmra.mxu0 %vm595_vm1, %v4730_v33  ;;  %4587 = vmatmul.msk.bf16.gmra.mxu1 %vm595_vm1, %v4730_v33 }
  0xba   : > { %4578 = vmatmul.msk.bf16.gmra.mxu0 %vm595_vm1, %v4731_v34  ;;  %4588 = vmatmul.msk.bf16.gmra.mxu1 %vm595_vm1, %v4731_v34 }
  0xca   : > { %4579 = vmatmul.msk.bf16.gmra.mxu0 %vm595_vm1, %v4732_v35  ;;  %4589 = vmatmul.msk.bf16.gmra.mxu1 %vm595_vm1, %v4732_v35 }
  0xda   : > { %4580 = vmatmul.msk.bf16.gmra.mxu0 %vm595_vm1, %v4733_v36  ;;  %4590 = vmatmul.msk.bf16.gmra.mxu1 %vm595_vm1, %v4733_v36 }
  0xea   : > { %4581 = vmatmul.msk.bf16.gmra.mxu0 %vm595_vm1, %v4734_v37  ;;  %4591 = vmatmul.msk.bf16.gmra.mxu1 %vm595_vm1, %v4734_v37 }
  0xfa   : > { %4582 = vmatmul.msk.bf16.gmra.mxu0 %vm595_vm1, %v4735_v38  ;;  %4592 = vmatmul.msk.bf16.gmra.mxu1 %vm595_vm1, %v4735_v38 }
 0x10a   : > { %4583 = vmatmul.msk.bf16.gmra.mxu0 %vm595_vm1, %v4736_v39  ;;  %4593 = vmatmul.msk.bf16.gmra.mxu1 %vm595_vm1, %v4736_v39 }
 0x117   : > { %v5837_v41 = vpop.f32.mrf.mxu0  ;;  %v5839_v42 = vpop.f32.mrf.mxu1 }
 0x118   : > { %v831_v57 = vrot.slane %v5839_v42, 7  ;;  %v8789_v59 = vrot.slane %v5839_v42, 1  ;;  %v830_v3 = vrot.slane %v5837_v41, 7  ;;  %v977_v8 = vrot.slane %v5837_v41, 1 }
 0x119   : > { %v1233_v45 = vmul.f32 %v5911_v19, %v5837_v41  ;;  %v5970_v41 = vperm.slane %v5879_v4, 4 }
 0x11a   : > { %4584 = vmatmul.msk.bf16.gmra.mxu0 %vm595_vm1, %v4737_v40  ;;  %4594 = vmatmul.msk.bf16.gmra.mxu1 %vm595_vm1, %v4737_v40  ;;  %v5951_v40 = vperm.slane %v5866_v62, 4 }
 0x11b   : > { %8980 = vst [vmem:[#allocation44_spill] sm:$0xff] %v5970_v41 }
 0x11c   : > { %8979 = vst [vmem:[#allocation43_spill] sm:$0xff] %v5951_v40 }
 0x11f   : > { %v5847_v46 = vpop.f32.mrf.mxu0  ;;  %v5849_v49 = vpop.f32.mrf.mxu1 }
 0x120   : > { %v770_v58 = vrot.slane %v5849_v49, 7  ;;  %v8790_v61 = vrot.slane %v5849_v49, 1  ;;  %v769_v63 = vrot.slane %v5847_v46, 7  ;;  %v978_v1 = vrot.slane %v5847_v46, 1 }
 0x121   : > { %v1236_v21 = vmul.f32 %v5882_v5, %v5849_v49  ;;  %v1235_v31 = vmul.f32 %v5911_v19, %v5847_v46 }
 0x122   : > { %v833_v2 = vsel %vm829_vm3, %v831_v57, %v770_v58  ;;  %v1098_v6 = vsel %vm976_vm4, %v8790_v61, %v8789_v59  ;;  %v832_v11 = vsel %vm829_vm3, %v830_v3, %v769_v63  ;;  %v910_v12 = vsel %vm829_vm3, %v769_v63, %v830_v3 }
 0x123   : > { %v1170_v13 = vmul.f32 %v5870_v0, %v833_v2  ;;  %v1097_v15 = vsel %vm976_vm4, %v978_v1, %v977_v8  ;;  %v1124_v16 = vsel %vm975_vm5, %v1098_v6, 0.0  ;;  %v934_v23 = vsel %vm747_vm6, %v910_v12, 0.0 }
 0x124   : > { %v1169_v24 = vmul.f32 %v5895_v9, %v832_v11  ;;  %v1123_v27 = vsel %vm975_vm5, %v1097_v15, 0.0  ;;  %v1302_v29 = vmul.f32 %v5903_v14, %v1124_v16  ;;  %v1167_v35 = vmul.f32 %v5895_v9, %v934_v23 }
 0x125   : > { %v1268_v28 = vadd.f32 %v1236_v21, %v1170_v13  ;;  %v1301_v39 = vmul.f32 %v5914_v20, %v1123_v27  ;;  %v979_v48 = vsel %vm976_vm4, %v977_v8, %v978_v1  ;;  %v5980_v8 = vperm.slane %v5866_v62, 5 }
 0x126   : > { %v1267_v38 = vadd.f32 %v1235_v31, %v1169_v24  ;;  %v1299_v11 = vmul.f32 %v5914_v20, %v979_v48  ;;  %v911_v12 = vsel %vm829_vm3, %v770_v58, %v831_v57  ;;  %v5989_v13 = vperm.slane %v5879_v4, 5 }
 0x127   : > { %v5853_v55 = vpop.f32.mrf.mxu0  ;;  %v5855_v56 = vpop.f32.mrf.mxu1  ;;  %v1334_v46 = vadd.f32 %v1302_v29, %v1268_v28  ;;  %8981 = vst [vmem:[#allocation45_spill] sm:$0xff] %v5980_v8  ;;  %v6003_v58 = vperm.slane %v5866_v62, 7 }
 0x128   : > { %v835_v17 = vrot.slane %v5855_v56, 7  ;;  %v834_v30 = vrot.slane %v5853_v55, 7  ;;  %v8785_v32 = vrot.slane %v5855_v56, 1  ;;  %v1333_v2 = vadd.f32 %v1301_v39, %v1267_v38 }
 0x129   : > { %v983_v3 = vrot.slane %v5853_v55, 1  ;;  %8982 = vst [vmem:[#allocation46_spill] sm:$0xff] %v6003_v58  ;;  %v6013_v38 = vperm.slane %v5866_v62, 6 }
 0x12a   : > { %4585 = vmatmul.msk.bf16.gmra.mxu0 %vm595_vm1, %v554_v53  ;;  %4595 = vmatmul.msk.bf16.gmra.mxu1 %vm595_vm1, %v554_v53  ;;  %v1265_v53 = vadd.f32 %v1233_v45, %v1167_v35 }
 0x12b   : > { %8983 = vst [vmem:[#allocation47_spill] sm:$0xff] %v6013_v38 }
 0x12c   : > { %v1331_v24 = vadd.f32 %v1299_v11, %v1265_v53 }
 0x12f   : > { %v5890_v7 = vpop.f32.mrf.mxu0  ;;  %v5897_v10 = vpop.f32.mrf.mxu1 }
 0x130   : > { %v772_v18 = vrot.slane %v5897_v10, 7  ;;  %v771_v22 = vrot.slane %v5890_v7, 7  ;;  %v8786_v34 = vrot.slane %v5897_v10, 1  ;;  %v984_v50 = vrot.slane %v5890_v7, 1 }
 0x131   : > { %v1434_v6 = vmul.f32 %v5951_v40, %v5897_v10  ;;  %v1433_v29 = vmul.f32 %v5970_v41, %v5890_v7 }
 0x132   : > { %v5940_v33 = vsel %vm829_vm3, %v835_v17, %v772_v18  ;;  %v5945_v36 = vsel %vm829_vm3, %v834_v30, %v771_v22  ;;  %v912_v43 = vsel %vm829_vm3, %v771_v22, %v834_v30  ;;  %v1100_v52 = vsel %vm976_vm4, %v8786_v34, %v8785_v32 }
 0x133   : > { %v1368_v47 = vmul.f32 %v5926_v26, %v5940_v33  ;;  %v1367_v51 = vmul.f32 %v5923_v25, %v5945_v36  ;;  %v5974_v63 = vsel %vm747_vm6, %v912_v43, 0.0  ;;  %v5993_v15 = vsel %vm975_vm5, %v1100_v52, 0.0 }
 0x134   : > { %v1099_v16 = vsel %vm976_vm4, %v984_v50, %v983_v3  ;;  %v1365_v21 = vmul.f32 %v5923_v25, %v5974_v63  ;;  %v1500_v35 = vmul.f32 %v5980_v8, %v5993_v15  ;;  %v935_v32 = vsel %vm747_vm6, %v911_v12, 0.0 }
 0x135   : > { %v1400_v1 = vadd.f32 %v1368_v47, %v1334_v46  ;;  %v1399_v22 = vadd.f32 %v1367_v51, %v1333_v2  ;;  %v6017_v39 = vsel %vm975_vm5, %v1099_v16, 0.0  ;;  %v6022_v46 = vperm.slane %v5879_v4, 6 }
 0x136   : > { %v1397_v47 = vadd.f32 %v1365_v21, %v1331_v24 }
 0x137   : > { %v5947_v37 = vpop.f32.mrf.mxu0  ;;  %v5954_v44 = vpop.f32.mrf.mxu1  ;;  %v1466_v23 = vadd.f32 %v1434_v6, %v1400_v1  ;;  %v1465_v48 = vadd.f32 %v1433_v29, %v1399_v22  ;;  %v1431_v22 = vmul.f32 %v5970_v41, %v5853_v55  ;;  %v6055_v29 = vld [vmem:[#allocation10 + $0x18] ss:$0 sm:$0xff] }
 0x138   : > { %v8788_v27 = vrot.slane %v5954_v44, 7  ;;  %v8783_v28 = vrot.slane %v5954_v44, 1  ;;  %v838_v51 = vrot.slane %v5947_v37, 7  ;;  %v989_v24 = vrot.slane %v5947_v37, 1 }
 0x139   : > { %v1532_v52 = vadd.f32 %v1500_v35, %v1466_v23  ;;  %v985_v23 = vsel %vm976_vm4, %v983_v3, %v984_v50  ;;  %v1499_v35 = vmul.f32 %v5989_v13, %v6017_v39 }
 0x13a   : > { %v1497_v12 = vmul.f32 %v5989_v13, %v985_v23 }
 0x13b   : > { %v1531_v3 = vadd.f32 %v1499_v35, %v1465_v48  ;;  %v6081_v48 = vld [vmem:[#allocation10 + $0x10] ss:$0 sm:$0xff] }
 0x13f   : > { %v6000_v57 = vpop.f32.mrf.mxu0  ;;  %v6008_v31 = vpop.f32.mrf.mxu1 }
 0x140   : > { %v773_v30 = vrot.slane %v6000_v57, 7  ;;  %v8787_v43 = vrot.slane %v6008_v31, 7  ;;  %v8784_v45 = vrot.slane %v6008_v31, 1  ;;  %v990_v53 = vrot.slane %v6000_v57, 1 }
 0x141   : > { %v1244_v62 = vmul.f32 %v5882_v5, %v6008_v31  ;;  %v1632_v61 = vmul.f32 %v6003_v58, %v6008_v31 }
 0x142   : > { %v6033_v1 = vsel %vm829_vm3, %v8788_v27, %v8787_v43  ;;  %v1102_v2 = vsel %vm976_vm4, %v8784_v45, %v8783_v28  ;;  %v6041_v6 = vsel %vm829_vm3, %v838_v51, %v773_v30  ;;  %v1101_v43 = vsel %vm976_vm4, %v990_v53, %v989_v24 }
 0x143   : > { %v6045_v11 = vsel %vm975_vm5, %v1102_v2, 0.0  ;;  %v1566_v16 = vmul.f32 %v6013_v38, %v6033_v1  ;;  %v1178_v21 = vmul.f32 %v5870_v0, %v6033_v1  ;;  %v1565_v50 = vmul.f32 %v6022_v46, %v6041_v6 }
 0x144   : > { %8984 = vst [vmem:[#allocation48_spill] sm:$0xff] %v6045_v11  ;;  %v1310_v2 = vmul.f32 %v5903_v14, %v6045_v11  ;;  %v914_v27 = vsel %vm829_vm3, %v773_v30, %v838_v51  ;;  %v6087_v35 = vsel %vm975_vm5, %v1101_v43, 0.0 }
 0x145   : > { %v1598_v28 = vadd.f32 %v1566_v16, %v1532_v52  ;;  %v1276_v45 = vadd.f32 %v1244_v62, %v1178_v21  ;;  %v1463_v52 = vadd.f32 %v1431_v22, %v1397_v47  ;;  %v1234_v62 = vmul.f32 %v5882_v5, %v5839_v42 }
 0x146   : > { %v6077_v16 = vperm.slane %v5879_v4, 7  ;;  %v1698_v21 = vmul.f32 %v6055_v29, %v6045_v11  ;;  %v1597_v47 = vadd.f32 %v1565_v50, %v1531_v3  ;;  %v1168_v22 = vmul.f32 %v5870_v0, %v935_v32 }
 0x147   : > { %v6063_v34 = vpop.f32.mrf.mxu0  ;;  %v6069_v59 = vpop.f32.mrf.mxu1  ;;  %v1664_v30 = vadd.f32 %v1632_v61, %v1598_v28  ;;  %v6083_v51 = vadd.f32 %v1310_v2, %v1276_v45  ;;  %v913_v4 = vsel %vm829_vm3, %v772_v18, %v835_v17  ;;  %v6099_v61 = vsel %vm747_vm6, %v914_v27, 0.0 }
 0x148   : > { %8985 = vst [vmem:[#allocation49_spill] sm:$0xff] %v6063_v34  ;;  %v1631_v11 = vmul.f32 %v6077_v16, %v6000_v57  ;;  %v1171_v28 = vmul.f32 %v5895_v9, %v5974_v63  ;;  %v1529_v45 = vadd.f32 %v1497_v12, %v1463_v52  ;;  %v1563_v32 = vmul.f32 %v6022_v46, %v6099_v61 }
 0x149   : > { %8986 = vst [vmem:[#allocation50_spill] sm:$0xff] %v6083_v51  ;;  %v6103_v43 = vadd.f32 %v1698_v21, %v1664_v30  ;;  %v8988_v2 = vrot.slane %v5849_v49, 1  ;;  %v8989_v17 = vrot.slane %v5839_v42, 1  ;;  %v1697_v27 = vmul.f32 %v6081_v48, %v6087_v35 }
 0x14a   : > { %v1663_v50 = vadd.f32 %v1631_v11, %v1597_v47  ;;  %v6115_v3 = vsel %vm976_vm4, %v989_v24, %v990_v53  ;;  %v1237_v63 = vmul.f32 %v5911_v19, %v5853_v55  ;;  %v939_v52 = vsel %vm747_vm6, %v913_v4, 0.0 }
 0x14b   : > { %8987 = vst [vmem:[#allocation51_spill] sm:$0xff] %v6103_v43  ;;  %v982_v18 = vsel %vm976_vm4, %v8989_v17, %v8988_v2  ;;  %v1629_v49 = vmul.f32 %v6077_v16, %v5947_v37  ;;  %2015 = vrot.lane.b32.xlu2 %v6103_v43, %s5463_s5  ;;  %v1595_v42 = vadd.f32 %v1563_v32, %v1529_v45 }
 0x14c   : > { %v1173_v11 = vmul.f32 %v5895_v9, %v5945_v36  ;;  %v6127_v12 = vadd.f32 %v1697_v27, %v1663_v50  ;;  %v1266_v24 = vadd.f32 %v1234_v62, %v1168_v22  ;;  %v1269_v55 = vadd.f32 %v1237_v63, %v1171_v28 }
 0x14d   : > { %v1661_v21 = vadd.f32 %v1629_v49, %v1595_v42  ;;  %v1695_v30 = vmul.f32 %v6081_v48, %v6115_v3  ;;  %v1300_v4 = vmul.f32 %v5903_v14, %v982_v18  ;;  %v1239_v45 = vmul.f32 %v5911_v19, %v5890_v7 }
 0x14e   : > { %8990 = vst [vmem:[#allocation52_spill] sm:$0xff] %v6127_v12  ;;  %v1303_v32 = vmul.f32 %v5914_v20, %v985_v23  ;;  %v1366_v36 = vmul.f32 %v5926_v26, %v939_v52  ;;  %1951 = vrot.lane.b32.xlu1 %v6127_v12, %s5463_s5  ;;  %v8794_v62 = vrot.slane %v6063_v34, 7  ;;  %v1369_v28 = vmul.f32 %v5923_v25, %v6099_v61 }
 0x14f   : > { %v6129_v53 = vpop.f32.mrf.mxu0  ;;  %v6133_v47 = vpop.f32.mrf.mxu1  ;;  %v6143_v22 = vadd.f32 %v1695_v30, %v1661_v21  ;;  %v1271_v17 = vadd.f32 %v1239_v45, %v1173_v11  ;;  %v1305_v7 = vmul.f32 %v5914_v20, %v6017_v39  ;;  %v1332_v18 = vadd.f32 %v1300_v4, %v1266_v24 }
 0x150   : > { %8991 = vst [vmem:[#allocation53_spill] sm:$0xff] %v6129_v53  ;;  %v8796_v2 = vrot.slane %v6129_v53, 7  ;;  %v1335_v23 = vadd.f32 %v1303_v32, %v1269_v55  ;;  %v8793_v50 = vrot.slane %v6069_v59, 7  ;;  %v1238_v27 = vmul.f32 %v5882_v5, %v5855_v56 }
 0x151   : > { %1935 = vrot.lane.b32.xlu0 %v6143_v22, %s5463_s5  ;;  %v1174_v63 = vmul.f32 %v5870_v0, %v5940_v33  ;;  %v8992_v49 = vrot.slane %v5954_v44, 7  ;;  %v8993_v42 = vrot.slane %v6008_v31, 7  ;;  %v8792_v55 = vrot.slane %v6133_v47, 7 }
 0x152   : > { %v1401_v39 = vadd.f32 %v1369_v28, %v1335_v23  ;;  %v916_v24 = vsel %vm829_vm3, %v8796_v2, %v8794_v62  ;;  %v1398_v21 = vadd.f32 %v1366_v36, %v1332_v18  ;;  %v1432_v30 = vmul.f32 %v5951_v40, %v5855_v56 }
 0x153   : > { %v915_v11 = vsel %vm829_vm3, %v8993_v42, %v8992_v49  ;;  %v1337_v33 = vadd.f32 %v1305_v7, %v1271_v17  ;;  %v1240_v4 = vmul.f32 %v5882_v5, %v5897_v10  ;;  %v8994_v45 = vrot.slane %v5897_v10, 1 }
 0x154   : > { %v8995_v32 = vrot.slane %v5855_v56, 1  ;;  %v1172_v23 = vmul.f32 %v5870_v0, %v939_v52  ;;  %v1435_v49 = vmul.f32 %v5970_v41, %v5947_v37  ;;  %v6185_v36 = vsel %vm829_vm3, %v8793_v50, %v8792_v55 }
 0x155   : > { %v6189_v17 = vsel %vm747_vm6, %v915_v11, 0.0  ;;  %v6193_v56 = vsel %vm747_vm6, %v916_v24, 0.0  ;;  %v1182_v10 = vmul.f32 %v5870_v0, %v6185_v36  ;;  %v1248_v52 = vmul.f32 %v5882_v5, %v6133_v47 }
 0x156   : > { %v988_v28 = vsel %vm976_vm4, %v8995_v32, %v8994_v45  ;;  %8996 = vst [vmem:[#allocation54_spill] sm:$0xff] %v6193_v56  ;;  %v8795_v7 = vrot.slane %v6143_v22, 4  ;;  %v1272_v42 = vadd.f32 %v1240_v4, %v1174_v63  ;;  %v1467_v45 = vadd.f32 %v1435_v49, %v1401_v39 }
 0x157   : > { %v6200_v18 = vpop.f32.mrf.mxu1  ;;  %v1464_v32 = vadd.f32 %v1432_v30, %v1398_v21  ;;  %v1498_v11 = vmul.f32 %v5980_v8, %v988_v28  ;;  %v1306_v55 = vmul.f32 %v5903_v14, %v5993_v15  ;;  %v995_v24 = vrot.slane %v6063_v34, 1 }
 0x158   : > { %v1501_v50 = vmul.f32 %v5989_v13, %v6115_v3  ;;  %v6208_v62 = vadd.f32 %v1248_v52, %v1182_v10  ;;  %1943 = vrot.lane.b32.xlu2 %v8795_v7, %s5463_s5  ;;  %v996_v63 = vrot.slane %v6129_v53, 1  ;;  %v1567_v39 = vmul.f32 %v6022_v46, %v6193_v56 }
 0x159   : > { %v1530_v21 = vadd.f32 %v1498_v11, %v1464_v32  ;;  %v1564_v15 = vmul.f32 %v6013_v38, %v6189_v17  ;;  %v1371_v30 = vmul.f32 %v5923_v25, %v6041_v6  ;;  %v8998_v4 = vrot.slane %v6008_v31, 1 }
 0x15a   : > { %8997 = vst [vmem:[#allocation55_spill] sm:$0xff] %v6208_v62  ;;  %v8999_v49 = vrot.slane %v5954_v44, 1  ;;  %v1630_v52 = vmul.f32 %v6003_v58, %v5954_v44  ;;  %v6230_v7 = vmul.f32 0.17677669, %v6127_v12  ;;  %v1633_v32 = vmul.f32 %v6077_v16, %v6063_v34 }
 0x15b   : > { %v1533_v11 = vadd.f32 %v1501_v50, %v1467_v45  ;;  %v6235_v2 = vsel %vm976_vm4, %v995_v24, %v996_v63  ;;  %v1596_v43 = vadd.f32 %v1564_v15, %v1530_v21  ;;  %v6237_v51 = vadd.f32 %v1238_v27, %v1172_v23 }
 0x15c   : > { %v6225_v10 = vsel %vm976_vm4, %v8999_v49, %v8998_v4  ;;  %v6239_v62 = vadd.f32 %v1306_v55, %v1272_v42  ;;  %v1241_v4 = vmul.f32 %v5911_v19, %v5947_v37  ;;  %v1177_v49 = vmul.f32 %v5895_v9, %v6041_v6  ;;  %1887 = vrot.lane.b32.xlu0 %v6230_v7, %s5463_s5  ;;  %v6256_v42 = vpop.f32.mrf.mxu0 }
 0x15d   : > { %v1662_v58 = vadd.f32 %v1630_v52, %v1596_v43  ;;  %v1696_v50 = vmul.f32 %v6055_v29, %v6225_v10  ;;  %v6250_v45 = vmul.f32 0.17677669, %v6143_v22  ;;  %v1599_v27 = vadd.f32 %v1567_v39, %v1533_v11 }
 0x15e   : > { %v1243_v55 = vmul.f32 %v5911_v19, %v6000_v57  ;;  %v1403_v23 = vadd.f32 %v1371_v30, %v1337_v33  ;;  %v1175_v37 = vmul.f32 %v5895_v9, %v6099_v61  ;;  %v1699_v6 = vmul.f32 %v6081_v48, %v6235_v2  ;;  %v9001_v9 = vld [vmem:[#allocation48_spill] sm:$0xff] }
 0x15f   : > { %v6262_v43 = vmul.f32 %v5951_v40, %v5954_v44  ;;  %v1304_v21 = vmul.f32 %v5903_v14, %v988_v28  ;;  %v6265_v15 = vadd.f32 %v1696_v50, %v1662_v58  ;;  %2063 = vst [vmem:[#allocation1] ss:$2 sm:$0xff] %v6250_v45  ;;  %v1665_v39 = vadd.f32 %v1633_v32, %v1599_v27  ;;  %v6276_v11 = vpop.f32.mrf.mxu1 }
 0x160   : > { %v1275_v33 = vadd.f32 %v1243_v55, %v1177_v49  ;;  %v1437_v61 = vmul.f32 %v5970_v41, %v6000_v57  ;;  %v6272_v30 = vmul.f32 %v5951_v40, %v6008_v31  ;;  %v1372_v52 = vmul.f32 %v5926_v26, %v6033_v1 }
 0x161   : > { %9000 = vst [vmem:[#allocation56_spill] sm:$0xff] %v6265_v15  ;;  %v6280_v58 = vmul.f32 %v5980_v8, %v9001_v9  ;;  %1999 = vrot.lane.b32.xlu1 %v6265_v15, %s5463_s5  ;;  %v8803_v57 = vrot.slane %v6265_v15, 4  ;;  %v6286_v32 = vadd.f32 %v1699_v6, %v1665_v39  ;;  %v1309_v49 = vmul.f32 %v5914_v20, %v6087_v35 }
 0x162   : > { %v1469_v31 = vadd.f32 %v1437_v61, %v1403_v23  ;;  %v1273_v1 = vadd.f32 %v1241_v4, %v1175_v37  ;;  %v8806_v50 = vrot.slane %v6127_v12, 4  ;;  %v6293_v9 = vmul.f32 %v5970_v41, %v6063_v34 }
 0x163   : > { %v1503_v27 = vmul.f32 %v5989_v13, %v6087_v35  ;;  %2007 = vrot.lane.b32.xlu2 %v8803_v57, %s5463_s5  ;;  %v6301_v55 = vmul.f32 0.17677669, %v6286_v32  ;;  %v998_v4 = vrot.slane %v6069_v59, 1  ;;  %v1307_v37 = vmul.f32 %v5914_v20, %v6115_v3 }
 0x164   : > { %v9002_v6 = vrot.slane %v6129_v53, 7  ;;  %v9003_v39 = vrot.slane %v6063_v34, 7  ;;  %1959 = vrot.lane.b32.xlu0 %v8806_v50, %s5463_s5  ;;  %v1252_v61 = vmul.f32 %v5882_v5, %v6276_v11  ;;  %v1103_v57 = vsel %vm976_vm4, %v996_v63, %v995_v24 }
 0x165   : > { %v9005_v28 = vrot.slane %v6069_v59, 7  ;;  %v9006_v3 = vrot.slane %v6133_v47, 7  ;;  %v999_v15 = vrot.slane %v6133_v47, 1  ;;  %2065 = vst [vmem:[#allocation1 + $0x1] ss:$2 sm:$0xff] %v6301_v55  ;;  %v1246_v24 = vmul.f32 %v5882_v5, %v6069_v59 }
 0x166   : > { %v6312_v35 = vsel %vm829_vm3, %v9003_v39, %v9002_v6  ;;  %v9007_v6 = vrot.slane %v6276_v11, 7  ;;  %v9008_v39 = vrot.slane %v6200_v18, 7  ;;  %v1339_v63 = vadd.f32 %v1307_v37, %v1273_v1 }
 0x167   : > { %9004 = vst [vmem:[#allocation48_spill] sm:$0xff] %v6312_v35  ;;  %v917_v23 = vsel %vm829_vm3, %v9006_v3, %v9005_v28  ;;  %v1341_v12 = vadd.f32 %v1309_v49, %v1275_v33  ;;  %v1441_v28 = vmul.f32 %v5970_v41, %v6129_v53  ;;  %v1635_v3 = vmul.f32 %v6077_v16, %v6129_v53  ;;  %v6350_v49 = vpop.f32.mrf.mxu0 }
 0x168   : > { %v6332_v50 = vsel %vm829_vm3, %v9008_v39, %v9007_v6  ;;  %v1535_v19 = vadd.f32 %v1503_v27, %v1469_v31  ;;  %v1569_v34 = vmul.f32 %v6022_v46, %v6312_v35  ;;  %v6346_v6 = vsel %vm975_vm5, %v1103_v57, 0.0 }
 0x169   : > { %9009 = vst [vmem:[#allocation57_spill] sm:$0xff] %v6332_v50  ;;  %v1186_v20 = vmul.f32 %v5870_v0, %v6332_v50  ;;  %v1370_v33 = vmul.f32 %v5926_v26, %v6189_v17  ;;  %v6356_v37 = vsel %vm747_vm6, %v917_v23, 0.0  ;;  %1871 = vrot.lane.b32.xlu1 %v6250_v45, %s5463_s5  ;;  %v8825_v27 = vrot.slane %v6230_v7, 4 }
 0x16a   : > { %v1601_v31 = vadd.f32 %v1569_v34, %v1535_v19  ;;  %v6362_v57 = vsel %vm976_vm4, %v998_v4, %v999_v15  ;;  %v1180_v39 = vmul.f32 %v5870_v0, %v6356_v37  ;;  %v1502_v23 = vmul.f32 %v5980_v8, %v6225_v10 }
 0x16b   : > { %v6352_v1 = vadd.f32 %v1252_v61, %v1186_v20  ;;  %v1373_v20 = vmul.f32 %v5923_v25, %v6193_v56  ;;  %v1375_v61 = vmul.f32 %v5923_v25, %v6312_v35  ;;  %v1336_v41 = vadd.f32 %v1304_v21, %v6237_v51  ;;  %1895 = vrot.lane.b32.xlu2 %v8825_v27, %s5463_s5 }
 0x16c   : > { %v846_v19 = vrot.slane %v6256_v42, 7  ;;  %v777_v34 = vrot.slane %v6350_v49, 7  ;;  %v1312_v53 = vmul.f32 %v5903_v14, %v6362_v57  ;;  %v6380_v50 = vld.sshfl [vmem:[#allocation1] sm:$0xff pattern:$0x75316420]  ;;  %v1701_v25 = vmul.f32 %v6081_v48, %v6346_v6 }
 0x16d   : > { %9010 = vst [vmem:[#allocation58_spill] sm:$0xff] %v6352_v1  ;;  %v1278_v1 = vadd.f32 %v1246_v24, %v1180_v39  ;;  %v1402_v35 = vadd.f32 %v1370_v33, %v1336_v41  ;;  %v1104_v51 = vsel %vm976_vm4, %v999_v15, %v998_v4  ;;  %v1404_v21 = vadd.f32 %v1372_v52, %v6239_v62 }
 0x16e   : > { %9011 = vst [vmem:[#allocation59_spill] sm:$0xff] %v6380_v50  ;;  %v1667_v56 = vadd.f32 %v1635_v3, %v1601_v31  ;;  %v1568_v24 = vmul.f32 %v6013_v38, %v6356_v37  ;;  %v6393_v39 = vsel %vm975_vm5, %v1104_v51, 0.0  ;;  %v1407_v52 = vadd.f32 %v1375_v61, %v1341_v12  ;;  %v9012_v31 = vld [vmem:[#allocation55_spill] sm:$0xff]  ;;  %v9014_v61 = vld [vmem:[#allocation46_spill] sm:$0xff] }
 0x16f   : > { %2072 = vst [vmem:[#allocation1] ss:$2 sm:$0xff] %v6143_v22  ;;  %v6387_v8 = vadd.f32 %v1312_v53, %v1278_v1  ;;  %v1468_v41 = vadd.f32 %v6262_v43, %v1402_v35  ;;  %v1314_v15 = vmul.f32 %v5903_v14, %v6393_v39  ;;  %v1470_v62 = vadd.f32 %v6272_v30, %v1404_v21 }
 0x170   : > { %2074 = vst [vmem:[#allocation1 + $0x1] ss:$2 sm:$0xff] %v6286_v32  ;;  %v1570_v53 = vmul.f32 %v6013_v38, %v6185_v36  ;;  %v1505_v4 = vmul.f32 %v5989_v13, %v6235_v2  ;;  %v918_v3 = vsel %vm829_vm3, %v777_v34, %v846_v19  ;;  %v1791_v33 = vrot.slane %v6250_v45, 4 }
 0x171   : > { %v1534_v1 = vadd.f32 %v1502_v23, %v1468_v41  ;;  %v6407_v51 = vadd.f32 %v1314_v15, %v9012_v31  ;;  %v1536_v43 = vadd.f32 %v6280_v58, %v1470_v62  ;;  %v1405_v35 = vadd.f32 %v1373_v20, %v1339_v63 }
 0x172   : > { %v1507_v30 = vmul.f32 %v5989_v13, %v6346_v6  ;;  %v6413_v21 = vsel %vm829_vm3, %v846_v19, %v777_v34  ;;  %1879 = vrot.lane.b32.xlu1 %v1791_v33, %s5463_s5  ;;  %v6416_v12 = vadd.f32 %v1701_v25, %v1667_v56  ;;  %v1634_v45 = vmul.f32 %v9014_v61, %v6069_v59 }
 0x173   : > { %9013 = vst [vmem:[#allocation55_spill] sm:$0xff] %v6407_v51  ;;  %v1600_v23 = vadd.f32 %v1568_v24, %v1534_v1  ;;  %v1602_v41 = vadd.f32 %v1570_v53, %v1536_v43  ;;  %v1636_v15 = vmul.f32 %v9014_v61, %v6133_v47  ;;  %v1471_v58 = vadd.f32 %v6293_v9, %v1405_v35 }
 0x174   : > { %v1473_v63 = vadd.f32 %v1441_v28, %v1407_v52  ;;  %v1001_v20 = vrot.slane %v6256_v42, 1  ;;  %v6426_v19 = vsel %vm747_vm6, %v918_v3, 0.0  ;;  %v1002_v25 = vrot.slane %v6350_v49, 1  ;;  %1953 = vrot.lane.b32.xlu2 %v6416_v12, %s5463_s5 }
 0x175   : > { %v1176_v56 = vmul.f32 %v5870_v0, %v6189_v17  ;;  %v1666_v34 = vadd.f32 %v1634_v45, %v1600_v23  ;;  %v1700_v24 = vmul.f32 %v6055_v29, %v6362_v57  ;;  %v1668_v9 = vadd.f32 %v1636_v15, %v1602_v41 }
 0x176   : > { %v9015_v28 = vrot.slane %v6200_v18, 7  ;;  %v9016_v62 = vrot.slane %v6276_v11, 7  ;;  %v1793_v52 = vrot.slane %v6301_v55, 4  ;;  %v1702_v1 = vmul.f32 %v6055_v29, %v6393_v39 }
 0x177   : > { %v6441_v3 = vld.sshfl [vmem:[#allocation1] sm:$0xff pattern:$0x75316420]  ;;  %v1573_v17 = vmul.f32 %v6022_v46, %v6413_v21  ;;  %v1637_v31 = vmul.f32 %v6077_v16, %v6256_v42  ;;  %v6449_v43 = vadd.f32 %v1700_v24, %v1666_v34  ;;  %v1537_v35 = vadd.f32 %v1505_v4, %v1471_v58  ;;  %v6466_v34 = vpop.f32.mrf.mxu0 }
 0x178   : > { %v919_v53 = vsel %vm829_vm3, %v9016_v62, %v9015_v28  ;;  %2117 = vst [vmem:[#allocation1] ss:$2 sm:$0xff] %v1791_v33  ;;  %v1571_v45 = vmul.f32 %v6022_v46, %v6426_v19  ;;  %v1242_v23 = vmul.f32 %v5882_v5, %v5954_v44  ;;  %v1539_v41 = vadd.f32 %v1507_v30, %v1473_v63  ;;  %v6468_v44 = vpop.f32.mrf.mxu1 }
 0x179   : > { %9017 = vst [vmem:[#allocation60_spill] sm:$0xff] %v6449_v43  ;;  %v1105_v15 = vsel %vm976_vm4, %v1002_v25, %v1001_v20  ;;  %v6456_v28 = vadd.f32 %v1702_v1, %v1668_v9  ;;  %2001 = vrot.lane.b32.xlu0 %v6449_v43, %s5463_s5  ;;  %v6462_v33 = vsel %vm747_vm6, %v919_v53, 0.0  ;;  %v1639_v58 = vmul.f32 %v6077_v16, %v6350_v49 }
 0x17a   : > { %2119 = vst [vmem:[#allocation1 + $0x1] ss:$2 sm:$0xff] %v1793_v52  ;;  %v1603_v62 = vadd.f32 %v1571_v45, %v1537_v35  ;;  %v1274_v4 = vadd.f32 %v1242_v23, %v1176_v56  ;;  %v1605_v30 = vadd.f32 %v1573_v17, %v1539_v41  ;;  %v6473_v63 = vsel %vm976_vm4, %v1001_v20, %v1002_v25 }
 0x17b   : > { %9018 = vst [vmem:[#allocation61_spill] sm:$0xff] %v6456_v28  ;;  %2017 = vrot.lane.b32.xlu1 %v6456_v28, %s5463_s5  ;;  %v6477_v24 = vsel %vm975_vm5, %v1105_v15, 0.0  ;;  %v1703_v56 = vmul.f32 %v6081_v48, %v6473_v63  ;;  %v1308_v53 = vmul.f32 %v5903_v14, %v6225_v10  ;;  %v1374_v1 = vmul.f32 %v5926_v26, %v6356_v37 }
 0x17c   : > { %v1669_v9 = vadd.f32 %v1637_v31, %v1603_v62  ;;  %1881 = vrot.lane.b32.xlu2 %v1793_v52, %s5463_s5  ;;  %v1378_v20 = vmul.f32 %v5926_v26, %v6462_v33  ;;  %v1444_v31 = vmul.f32 %v5951_v40, %v6200_v18  ;;  %v1671_v35 = vadd.f32 %v1639_v58, %v1605_v30 }
 0x17d   : > { %v1340_v17 = vadd.f32 %v1308_v53, %v1274_v4  ;;  %v1705_v45 = vmul.f32 %v6081_v48, %v6477_v24  ;;  %v1825_v10 = vrot.slane %v6286_v32, 4  ;;  %v9021_v52 = vrot.slane %v6143_v22, 4 }
 0x17e   : > { %v6488_v25 = vadd.f32 %v1703_v56, %v1669_v9  ;;  %v1410_v15 = vadd.f32 %v1378_v20, %v6387_v8  ;;  %v1376_v62 = vmul.f32 %v5926_v26, %v6185_v36  ;;  %v1440_v4 = vmul.f32 %v5951_v40, %v6069_v59  ;;  %v9025_v9 = vld [vmem:[#allocation50_spill] sm:$0xff]  ;;  %v9026_v59 = vld [vmem:[#allocation45_spill] sm:$0xff] }
 0x17f   : > { %v1406_v41 = vadd.f32 %v1374_v1, %v1340_v17  ;;  %v6508_v58 = vpop.f32.mrf.mxu0  ;;  %v6514_v22 = vadd.f32 %v1705_v45, %v1671_v35  ;;  %v1506_v53 = vmul.f32 %v9026_v59, %v6362_v57  ;;  %v1442_v17 = vmul.f32 %v5951_v40, %v6133_v47 }
 0x180   : > { %9019 = vst [vmem:[#allocation62_spill] sm:$0xff] %v6488_v25  ;;  %v6498_v37 = vmul.f32 0.17677669, %v6488_v25  ;;  %v6510_v30 = vpop.f32.mrf.mxu1  ;;  %v6517_v8 = vadd.f32 %v1444_v31, %v1410_v15  ;;  %v1408_v56 = vadd.f32 %v1376_v62, %v9025_v9  ;;  %v1004_v31 = vrot.slane %v6200_v18, 1  ;;  %v9029_v15 = vld [vmem:[#allocation40_spill] sm:$0xff]  ;;  %v9031_v9 = vld [vmem:[#allocation38_spill] sm:$0xff] }
 0x181   : > { %v6495_v23 = vld.sshfl [vmem:[#allocation1] sm:$0xff pattern:$0x75316420]  ;;  %1945 = vrot.lane.b32.xlu0 %v1825_v10, %s5463_s5  ;;  %9022 = vst [vmem:[#allocation64_spill] sm:$0xff] %v6510_v30  ;;  %v1472_v36 = vadd.f32 %v1440_v4, %v1406_v41  ;;  %v8829_v20 = vrot.slane %v6510_v30, 7  ;;  %v8826_v35 = vrot.slane %v6449_v43, 4  ;;  %v1256_v50 = vmul.f32 %v5882_v5, %v6510_v30 }
 0x182   : > { %9020 = vst [vmem:[#allocation63_spill] sm:$0xff] %v6495_v23  ;;  %v1005_v45 = vrot.slane %v6276_v11, 1  ;;  %v9028_v41 = vld [vmem:[#allocation49_spill] sm:$0xff]  ;;  %v9030_v4 = vld [vmem:[#allocation54_spill] sm:$0xff]  ;;  %v1474_v1 = vadd.f32 %v1442_v17, %v1408_v56  ;;  %v9032_v47 = vrot.slane %v6468_v44, 7  ;;  %v1638_v56 = vmul.f32 %v9014_v61, %v6200_v18 }
 0x183   : > { %2126 = vst [vmem:[#allocation1] ss:$2 sm:$0xff] %v9021_v52  ;;  %1937 = vrot.lane.b32.xlu1 %v6286_v32, %s5463_s5  ;;  %v1572_v32 = vmul.f32 %v6013_v38, %v6462_v33  ;;  %v1538_v52 = vadd.f32 %v1506_v53, %v1472_v36  ;;  %v1245_v62 = vmul.f32 %v9029_v15, %v9028_v41  ;;  %v9035_v43 = vld [vmem:[#allocation57_spill] sm:$0xff] }
 0x184   : > { %2128 = vst [vmem:[#allocation1 + $0x1] ss:$2 sm:$0xff] %v1825_v10  ;;  %1955 = vrot.lane.b32.xlu2 %v6514_v22, %s5463_s5  ;;  %v6534_v10 = vmul.f32 0.17677669, %v6416_v12  ;;  %v1179_v27 = vmul.f32 %v9031_v9, %v9030_v4  ;;  %v6552_v36 = vsel %vm829_vm3, %v9032_v47, %v8829_v20  ;;  %v1508_v17 = vmul.f32 %v9026_v59, %v6393_v39  ;;  %v9037_v23 = vld [vmem:[#allocation53_spill] sm:$0xff] }
 0x185   : > { %9023 = vst [vmem:[#allocation65_spill] sm:$0xff] %v6514_v22  ;;  %v1604_v41 = vadd.f32 %v1572_v32, %v1538_v52  ;;  %v1190_v4 = vmul.f32 %v5870_v0, %v6552_v36  ;;  %v1574_v47 = vmul.f32 %v6013_v38, %v9035_v43  ;;  %v6569_v20 = vsel %vm976_vm4, %v1004_v31, %v1005_v45  ;;  %v9036_v32 = vld [vmem:[#allocation48_spill] sm:$0xff] }
 0x186   : > { %2067 = vst [vmem:[#allocation1 + $0x10] ss:$2 sm:$0xff] %v6498_v37  ;;  %v1181_v52 = vmul.f32 %v9031_v9, %v9036_v32  ;;  %v1247_v39 = vmul.f32 %v9029_v15, %v9037_v23  ;;  %v1106_v28 = vsel %vm976_vm4, %v1005_v45, %v1004_v31  ;;  %v1540_v51 = vadd.f32 %v1508_v17, %v1474_v1  ;;  %v9040_v31 = vld [vmem:[#allocation42_spill] sm:$0xff] }
 0x187   : > { %9024 = vst [vmem:[#allocation66_spill] sm:$0xff] %v6517_v8  ;;  %v1277_v8 = vadd.f32 %v1245_v62, %v1179_v27  ;;  %v6584_v32 = vadd.f32 %v1256_v50, %v1190_v4  ;;  %v1670_v59 = vadd.f32 %v1638_v56, %v1604_v41  ;;  %v1704_v23 = vmul.f32 %v6055_v29, %v6569_v20  ;;  %v9042_v56 = vld [vmem:[#allocation52_spill] sm:$0xff] }
 0x188   : > { %9033 = vst [vmem:[#allocation49_spill] sm:$0xff] %v6552_v36  ;;  %v6554_v53 = vpop.f32.mrf.mxu1  ;;  %v1250_v36 = vmul.f32 %v5882_v5, %v6200_v18  ;;  %v1794_v30 = vrot.slane %v6534_v10, 4  ;;  %v1606_v27 = vadd.f32 %v1574_v47, %v1540_v51  ;;  %v1279_v1 = vadd.f32 %v1247_v39, %v1181_v52 }
 0x189   : > { %2009 = vrot.lane.b32.xlu0 %v8826_v35, %s5463_s5  ;;  %9034 = vst [vmem:[#allocation54_spill] sm:$0xff] %v6554_v53  ;;  %v6562_v35 = vpop.f32.mrf.mxu0  ;;  %v1184_v50 = vmul.f32 %v5870_v0, %v6462_v33  ;;  %v1377_v45 = vmul.f32 %v9040_v31, %v6426_v19  ;;  %v8841_v51 = vrot.slane %v6416_v12, 4  ;;  %v9044_v33 = vld [vmem:[#allocation58_spill] sm:$0xff]  ;;  %v6615_v52 = vadd.f32 %v1704_v23, %v1670_v59 }
 0x18a   : > { %9039 = vst [vmem:[#allocation38_spill] sm:$0xff] %v6584_v32  ;;  %v1183_v59 = vmul.f32 %v9031_v9, %v6426_v19  ;;  %v8844_v19 = vrot.slane %v6554_v53, 1  ;;  %v9055_v32 = vrot.slane %v6508_v58, 7 }
 0x18b   : > { %v6536_v57 = vld.sshfl [vmem:[#allocation1] sm:$0xff pattern:$0x75316420]  ;;  %1889 = vrot.lane.b32.xlu1 %v6534_v10, %s5463_s5  ;;  %v1282_v47 = vadd.f32 %v1250_v36, %v1184_v50  ;;  %9045 = vst [vmem:[#allocation53_spill] sm:$0xff] %v6615_v52  ;;  %v1185_v50 = vmul.f32 %v9031_v9, %v6413_v21 }
 0x18c   : > { %9027 = vst [vmem:[#allocation50_spill] sm:$0xff] %v6536_v57  ;;  %1939 = vrot.lane.b32.xlu2 %v6488_v25, %s5463_s5  ;;  %v9038_v57 = vld [vmem:[#allocation41_spill] sm:$0xff]  ;;  %v6591_v25 = vsel %vm975_vm5, %v1106_v28, 0.0 }
 0x18d   : > { %2170 = vst [vmem:[#allocation1] ss:$2 sm:$0xff] %v6230_v7  ;;  %v1311_v38 = vmul.f32 %v9038_v57, %v6235_v2  ;;  %v1640_v2 = vmul.f32 %v9014_v61, %v6276_v11  ;;  %v1318_v18 = vmul.f32 %v5903_v14, %v6591_v25  ;;  %v1313_v41 = vmul.f32 %v9038_v57, %v6346_v6 }
 0x18e   : > { %2172 = vst [vmem:[#allocation1 + $0x1] ss:$2 sm:$0xff] %v6534_v10  ;;  %v1706_v6 = vmul.f32 %v6055_v29, %v6591_v25  ;;  %v1249_v10 = vmul.f32 %v9029_v15, %v6256_v42  ;;  %v8845_v29 = vrot.slane %v6554_v53, 7  ;;  %v8858_v53 = vrot.slane %v6562_v35, 7 }
 0x18f   : > { %v6613_v4 = vadd.f32 %v1318_v18, %v9044_v33  ;;  %v1343_v39 = vadd.f32 %v1311_v38, %v1277_v8  ;;  %v1672_v28 = vadd.f32 %v1640_v2, %v1606_v27  ;;  %v9046_v18 = vld [vmem:[#allocation44_spill] sm:$0xff]  ;;  %v9047_v38 = vrot.slane %v6466_v34, 7 }
 0x190   : > { %v6610_v17 = vpop.f32.mrf.mxu1  ;;  %v1443_v33 = vmul.f32 %v9046_v18, %v6256_v42  ;;  %v9048_v8 = vrot.slane %v6508_v58, 7  ;;  %v1379_v42 = vmul.f32 %v9040_v31, %v6413_v21 }
 0x191   : > { %1897 = vrot.lane.b32.xlu0 %v1794_v30, %s5463_s5  ;;  %9043 = vst [vmem:[#allocation48_spill] sm:$0xff] %v6610_v17  ;;  %v6637_v23 = vpop.f32.mrf.mxu0  ;;  %v8843_v27 = vrot.slane %v6610_v17, 7  ;;  %v1409_v2 = vadd.f32 %v1377_v45, %v1343_v39  ;;  %v6646_v61 = vadd.f32 %v1706_v6, %v1672_v28  ;;  %v1281_v45 = vadd.f32 %v1249_v10, %v1183_v59 }
 0x192   : > { %v920_v36 = vsel %vm829_vm3, %v9048_v8, %v9047_v38  ;;  %9049 = vst [vmem:[#allocation41_spill] sm:$0xff] %v6637_v23  ;;  %v1445_v38 = vmul.f32 %v9046_v18, %v6350_v49  ;;  %v1315_v39 = vmul.f32 %v9038_v57, %v6473_v63  ;;  %v1007_v6 = vrot.slane %v6466_v34, 1 }
 0x193   : > { %1961 = vrot.lane.b32.xlu1 %v8841_v51, %s5463_s5  ;;  %v1345_v51 = vadd.f32 %v1313_v41, %v1279_v1  ;;  %9050 = vst [vmem:[#allocation52_spill] sm:$0xff] %v6646_v61  ;;  %v6652_v8 = vsel %vm747_vm6, %v920_v36, 0.0  ;;  %v6663_v1 = vsel %vm829_vm3, %v8845_v29, %v8843_v27  ;;  %v1475_v10 = vadd.f32 %v1443_v33, %v1409_v2 }
 0x194   : > { %2003 = vrot.lane.b32.xlu2 %v6615_v52, %s5463_s5  ;;  %v9052_v21 = vrot.slane %v6610_v17, 1  ;;  %v1260_v36 = vmul.f32 %v5882_v5, %v6610_v17  ;;  %v1008_v27 = vrot.slane %v6508_v58, 1  ;;  %v1316_v33 = vmul.f32 %v5903_v14, %v6569_v20 }
 0x195   : > { %v6601_v62 = vld.sshfl [vmem:[#allocation1] sm:$0xff pattern:$0x75316420]  ;;  %v1411_v28 = vadd.f32 %v1379_v42, %v1345_v51  ;;  %v1575_v2 = vmul.f32 %v6022_v46, %v6652_v8  ;;  %v1194_v42 = vmul.f32 %v5870_v0, %v6663_v1  ;;  %v8854_v17 = vrot.slane %v6646_v61, 4 }
 0x196   : > { %9041 = vst [vmem:[#allocation57_spill] sm:$0xff] %v6601_v62  ;;  %v1251_v62 = vmul.f32 %v9029_v15, %v6350_v49  ;;  %v1509_v49 = vmul.f32 %v5989_v13, %v6473_v63  ;;  %v1110_v59 = vsel %vm976_vm4, %v9052_v21, %v8844_v19  ;;  %v9053_v63 = vrot.slane %v6230_v7, 4 }
 0x197   : > { %2179 = vst [vmem:[#allocation1] ss:$2 sm:$0xff] %v9042_v56  ;;  %v6684_v51 = vsel %vm975_vm5, %v1110_v59, 0.0  ;;  %v1381_v7 = vmul.f32 %v9040_v31, %v6652_v8  ;;  %v1347_v59 = vadd.f32 %v1315_v39, %v1281_v45  ;;  %v1477_v29 = vadd.f32 %v1445_v38, %v1411_v28 }
 0x198   : > { %2181 = vst [vmem:[#allocation1 + $0x1] ss:$2 sm:$0xff] %v6416_v12  ;;  %v1326_v21 = vmul.f32 %v5903_v14, %v6684_v51  ;;  %v1541_v19 = vadd.f32 %v1509_v49, %v1475_v10  ;;  %v1292_v45 = vadd.f32 %v1260_v36, %v1194_v42  ;;  %v1447_v39 = vmul.f32 %v9046_v18, %v6466_v34 }
 0x199   : > { %2019 = vrot.lane.b32.xlu0 %v6646_v61, %s5463_s5  ;;  %9054 = vst [vmem:[#allocation67_spill] sm:$0xff] %v6684_v51  ;;  %v6711_v51 = vpop.f32.mrf.mxu0  ;;  %v6713_v0 = vadd.f32 %v1316_v33, %v1282_v47  ;;  %v9056_v49 = vrot.slane %v6466_v34, 7  ;;  %v1413_v28 = vadd.f32 %v1381_v7, %v1347_v59  ;;  %v6729_v47 = vmul.f32 0.17677669, %v6514_v22 }
 0x19a   : > { %v6721_v10 = vadd.f32 %v1326_v21, %v1292_v45  ;;  %v1283_v33 = vadd.f32 %v1251_v62, %v1185_v50  ;;  %v9059_v59 = vrot.slane %v9042_v56, 4  ;;  %v8855_v45 = vrot.slane %v6498_v37, 4 }
 0x19b   : > { %1873 = vrot.lane.b32.xlu1 %v6301_v55, %s5463_s5  ;;  %v1511_v55 = vmul.f32 %v5989_v13, %v6477_v24  ;;  %v852_v38 = vsel %vm829_vm3, %v9056_v49, %v9055_v32  ;;  %v1479_v50 = vadd.f32 %v1447_v39, %v1413_v28  ;;  %v9060_v56 = vrot.slane %v6416_v12, 4 }
 0x19c   : > { %2081 = vrot.lane.b32.xlu2 %v6441_v3, %s5464_s20  ;;  %v1607_v3 = vadd.f32 %v1575_v2, %v1541_v19  ;;  %9057 = vst [vmem:[#allocation68_spill] sm:$0xff] %v6721_v10  ;;  %v1317_v2 = vmul.f32 %v9038_v57, %v6477_v24  ;;  %v1577_v21 = vmul.f32 %v6022_v46, %v852_v38 }
 0x19d   : > { %v1543_v7 = vadd.f32 %v1511_v55, %v1477_v29  ;;  %v1107_v24 = vsel %vm976_vm4, %v1008_v27, %v1007_v6  ;;  %v8857_v29 = vrot.slane %v6562_v35, 1  ;;  %v6761_v49 = vmul.f32 %v5951_v40, %v6276_v11 }
 0x19e   : > { %v1643_v28 = vmul.f32 %v6077_v16, %v6508_v58  ;;  %v1143_v12 = vsel %vm975_vm5, %v1107_v24, 0.0  ;;  %v1645_v24 = vmul.f32 %v6077_v16, %v6562_v35 }
 0x19f   : > { %v6669_v41 = vld.sshfl [vmem:[#allocation1] sm:$0xff pattern:$0x75316420]  ;;  %v1609_v39 = vadd.f32 %v1577_v21, %v1543_v7  ;;  %v8862_v21 = vrot.slane %v6514_v22, 4  ;;  %v1255_v22 = vmul.f32 %v9029_v15, %v6508_v58 }
 0x1a0   : > { %9051 = vst [vmem:[#allocation58_spill] sm:$0xff] %v6669_v41  ;;  %v8859_v41 = vrot.slane %v6637_v23, 7 }
 0x1a1   : > { %2223 = vst [vmem:[#allocation1] ss:$2 sm:$0xff] %v9053_v63  ;;  %v1641_v63 = vmul.f32 %v6077_v16, %v6466_v34  ;;  %2027 = vrot.lane.b32.xlu0 %v8854_v17, %s5463_s5  ;;  %v6786_v7 = vpop.f32.mrf.mxu0 }
 0x1a2   : > { %2225 = vst [vmem:[#allocation1 + $0x1] ss:$2 sm:$0xff] %v1794_v30  ;;  %v6705_v30 = vsel %vm976_vm4, %v1007_v6, %v1008_v27  ;;  %v922_v32 = vsel %vm829_vm3, %v8859_v41, %v8858_v53  ;;  %v1349_v27 = vadd.f32 %v1317_v2, %v1283_v33  ;;  %v1380_v6 = vmul.f32 %v5926_v26, %v9035_v43  ;;  %v9062_v33 = vld [vmem:[#allocation64_spill] sm:$0xff] }
 0x1a3   : > { %v1707_v36 = vmul.f32 %v6081_v48, %v6705_v30  ;;  %v1673_v19 = vadd.f32 %v1641_v63, %v1607_v3  ;;  %1891 = vrot.lane.b32.xlu1 %v6729_v47, %s5463_s5  ;;  %v1513_v62 = vmul.f32 %v5989_v13, %v6705_v30  ;;  %v6754_v55 = vsel %vm747_vm6, %v922_v32, 0.0 }
 0x1a4   : > { %v8856_v3 = vrot.slane %v6637_v23, 1  ;;  %1883 = vrot.lane.b32.xlu2 %v8855_v45, %s5463_s5  ;;  %v1010_v32 = vrot.slane %v6468_v44, 1  ;;  %v1011_v2 = vrot.slane %v9062_v33, 1  ;;  %v9066_v45 = vld [vmem:[#allocation62_spill] sm:$0xff]  ;;  %v1383_v53 = vmul.f32 %v9040_v31, %v852_v38 }
 0x1a5   : > { %v6745_v63 = vadd.f32 %v1707_v36, %v1673_v19  ;;  %v1579_v36 = vmul.f32 %v6022_v46, %v6754_v55  ;;  %v1545_v19 = vadd.f32 %v1513_v62, %v1479_v50  ;;  %v9064_v62 = vrot.slane %v9062_v33, 7 }
 0x1a6   : > { %v6784_v43 = vsel %vm976_vm4, %v8857_v29, %v8856_v3  ;;  %v1253_v29 = vmul.f32 %v9029_v15, %v6466_v34  ;;  %v1675_v41 = vadd.f32 %v1643_v28, %v1609_v39  ;;  %v1108_v39 = vsel %vm976_vm4, %v1011_v2, %v1010_v32 }
 0x1a7   : > { %v6775_v11 = vmul.f32 0.17677669, %v6745_v63  ;;  %v1611_v61 = vadd.f32 %v1579_v36, %v1545_v19  ;;  %v1711_v3 = vmul.f32 %v6081_v48, %v6784_v43  ;;  %v1187_v19 = vmul.f32 %v9031_v9, %v6652_v8  ;;  %v6854_v8 = vpop.f32.mrf.mxu1 }
 0x1a8   : > { %v6842_v10 = vsel %vm975_vm5, %v1108_v39, 0.0 }
 0x1a9   : > { %v6738_v42 = vld.sshfl [vmem:[#allocation1] sm:$0xff pattern:$0x75316420]  ;;  %9061 = vst [vmem:[#allocation70_spill] sm:$0xff] %v6775_v11  ;;  %1875 = vrot.lane.b32.xlu0 %v6498_v37, %s5463_s5 }
 0x1aa   : > { %9058 = vst [vmem:[#allocation69_spill] sm:$0xff] %v6738_v42  ;;  %v9067_v42 = vld [vmem:[#allocation49_spill] sm:$0xff] }
 0x1ab   : > { %2232 = vst [vmem:[#allocation1] ss:$2 sm:$0xff] %v9059_v59  ;;  %v9063_v59 = vrot.slane %v6468_v44, 7  ;;  %1963 = vrot.lane.b32.xlu1 %v8862_v21, %s5463_s5  ;;  %v1384_v34 = vmul.f32 %v5926_v26, %v9067_v42  ;;  %v6824_v21 = vsel %vm976_vm4, %v1010_v32, %v1011_v2  ;;  %v1450_v32 = vmul.f32 %v5951_v40, %v9062_v33 }
 0x1ac   : > { %2234 = vst [vmem:[#allocation1 + $0x1] ss:$2 sm:$0xff] %v9060_v56  ;;  %v9065_v56 = vld [vmem:[#allocation45_spill] sm:$0xff]  ;;  %1941 = vrot.lane.b32.xlu2 %v6745_v63, %s5463_s5 }
 0x1ad   : > { %v921_v50 = vsel %vm829_vm3, %v9064_v62, %v9063_v59  ;;  %v6800_v17 = vmul.f32 %v9065_v56, %v6591_v25  ;;  %2069 = vst [vmem:[#allocation1 + $0x11] ss:$2 sm:$0xff] %v6775_v11  ;;  %v1709_v59 = vmul.f32 %v6081_v48, %v1143_v12  ;;  %v1448_v25 = vmul.f32 %v5951_v40, %v6468_v44 }
 0x1ae   : > { %v1189_v62 = vmul.f32 %v9031_v9, %v852_v38  ;;  %v6821_v28 = vsel %vm747_vm6, %v921_v50, 0.0  ;;  %v1449_v38 = vmul.f32 %v9046_v18, %v6508_v58  ;;  %v1677_v48 = vadd.f32 %v1645_v24, %v1611_v61 }
 0x1af   : > { %v1382_v36 = vmul.f32 %v5926_v26, %v6821_v28  ;;  %v1415_v50 = vadd.f32 %v1383_v53, %v1349_v27  ;;  %v6838_v2 = vadd.f32 %v1709_v59, %v1675_v41  ;;  %v1514_v61 = vmul.f32 %v9065_v56, %v6824_v21  ;;  %v9070_v27 = vld [vmem:[#allocation55_spill] sm:$0xff] }
 0x1b0   : > { %v6844_v58 = vadd.f32 %v1711_v3, %v1677_v48  ;;  %v9069_v53 = vrot.slane %v9066_v45, 4  ;;  %v8866_v41 = vrot.slane %v6615_v52, 4  ;;  %v1412_v59 = vadd.f32 %v1380_v6, %v9070_v27  ;;  %v6870_v6 = vpop.f32.mrf.mxu0 }
 0x1b1   : > { %v1414_v24 = vadd.f32 %v1382_v36, %v6713_v0  ;;  %v1516_v3 = vmul.f32 %v9065_v56, %v6842_v10  ;;  %v1416_v39 = vadd.f32 %v1384_v34, %v6613_v4  ;;  %v1287_v48 = vadd.f32 %v1255_v22, %v1189_v62 }
 0x1b2   : > { %1947 = vrot.lane.b32.xlu0 %v9069_v53, %s5463_s5  ;;  %v1321_v0 = vmul.f32 %v9038_v57, %v1143_v12  ;;  %v1319_v22 = vmul.f32 %v9038_v57, %v6705_v30  ;;  %v1285_v4 = vadd.f32 %v1253_v29, %v1187_v19  ;;  %v6878_v62 = vmul.f32 0.17677669, %v6844_v58 }
 0x1b3   : > { %v6862_v36 = vld.sshfl [vmem:[#allocation1] sm:$0xff pattern:$0x75316420]  ;;  %v1480_v53 = vadd.f32 %v1448_v25, %v1414_v24  ;;  %2011 = vrot.lane.b32.xlu1 %v8866_v41, %s5463_s5  ;;  %v1481_v34 = vadd.f32 %v1449_v38, %v1415_v50  ;;  %v1515_v27 = vmul.f32 %v5989_v13, %v1143_v12  ;;  %v6882_v25 = vmul.f32 0.17677669, %v6838_v2 }
 0x1b4   : > { %v6849_v15 = vld.sshfl [vmem:[#allocation1 + $0x10] sm:$0xff pattern:$0x75316420]  ;;  %9071 = vst [vmem:[#allocation62_spill] sm:$0xff] %v6862_v36  ;;  %v9074_v36 = vrot.slane %v6637_v23, 7  ;;  %v9075_v41 = vrot.slane %v6562_v35, 7  ;;  %v1478_v29 = vadd.f32 %v6761_v49, %v1412_v59  ;;  %v1254_v12 = vmul.f32 %v5882_v5, %v6468_v44  ;;  %v6941_v5 = vpop.f32.mrf.mxu1 }
 0x1b5   : > { %9068 = vst [vmem:[#allocation64_spill] sm:$0xff] %v6849_v15  ;;  %v6866_v15 = vmul.f32 %v9065_v56, %v6569_v20  ;;  %v1482_v20 = vadd.f32 %v1450_v32, %v1416_v39  ;;  %v6884_v24 = vadd.f32 %v1514_v61, %v1480_v53  ;;  %v8871_v30 = vrot.slane %v6729_v47, 4  ;;  %1893 = vrot.lane.b32.xlu2 %v6882_v25, %s5463_s5  ;;  %v6917_v53 = vpop.permute.xlu2 %2015  ;;  %v9082_v59 = vld [vmem:[#allocation48_spill] sm:$0xff] }
 0x1b6   : > { %2076 = vst [vmem:[#allocation1 + $0x10] ss:$2 sm:$0xff] %v9066_v45  ;;  %v6891_v52 = vsel %vm829_vm3, %v9075_v41, %v9074_v36  ;;  %v1353_v19 = vadd.f32 %v1321_v0, %v1287_v48  ;;  %v9078_v50 = vrot.slane %v6562_v35, 1  ;;  %v9079_v32 = vrot.slane %v6637_v23, 1 }
 0x1b7   : > { %2078 = vst [vmem:[#allocation1 + $0x11] ss:$2 sm:$0xff] %v6745_v63  ;;  %v6896_v38 = vadd.f32 %v1516_v3, %v1482_v20  ;;  %v1322_v49 = vmul.f32 %v5903_v14, %v6842_v10  ;;  %v1385_v41 = vmul.f32 %v9040_v31, %v6754_v55  ;;  %v1351_v39 = vadd.f32 %v1319_v22, %v1285_v4  ;;  %v9081_v4 = vld [vmem:[#allocation38_spill] sm:$0xff]  ;;  %v9089_v22 = vld [vmem:[#allocation47_spill] sm:$0xff] }
 0x1b8   : > { %9072 = vst [vmem:[#allocation49_spill] sm:$0xff] %v6878_v62  ;;  %v1109_v61 = vsel %vm976_vm4, %v9079_v32, %v9078_v50  ;;  %v1547_v48 = vadd.f32 %v1515_v27, %v1481_v34  ;;  %v1451_v0 = vmul.f32 %v9046_v18, %v6562_v35  ;;  %v1453_v36 = vmul.f32 %v9046_v18, %v6637_v23 }
 0x1b9   : > { %9073 = vst [vmem:[#allocation55_spill] sm:$0xff] %v6884_v24  ;;  %v1581_v20 = vmul.f32 %v6022_v46, %v6891_v52  ;;  %v1387_v50 = vmul.f32 %v9040_v31, %v6891_v52  ;;  %v1388_v32 = vmul.f32 %v5926_v26, %v6663_v1  ;;  %v1354_v34 = vadd.f32 %v1322_v49, %v9081_v4  ;;  %v6996_v31 = vld [vmem:[#allocation10 + $0x10] ss:$0 sm:$0xff] }
 0x1ba   : > { %9076 = vst [vmem:[#allocation71_spill] sm:$0xff] %v6891_v52  ;;  %1899 = vrot.lane.b32.xlu0 %v8871_v30, %s5463_s5  ;;  %v6932_v27 = vsel %vm975_vm5, %v1109_v61, 0.0  ;;  %v1647_v3 = vmul.f32 %v6077_v16, %v6637_v23  ;;  %v9085_v30 = vrot.slane %v6711_v51, 7  ;;  %v9086_v49 = vrot.slane %v6786_v7, 7 }
 0x1bb   : > { %2276 = vst [vmem:[#allocation1] ss:$2 sm:$0xff] %v6878_v62  ;;  %v9087_v61 = vrot.slane %v6498_v37, 4  ;;  %v1417_v52 = vadd.f32 %v1385_v41, %v1351_v39  ;;  %v1517_v62 = vmul.f32 %v5989_v13, %v6784_v43  ;;  %v9090_v18 = vrot.slane %v6775_v11, 4  ;;  %v6962_v41 = vpop.f32.mrf.mxu0 }
 0x1bc   : > { %9077 = vst [vmem:[#allocation72_spill] sm:$0xff] %v6896_v38  ;;  %v924_v4 = vsel %vm829_vm3, %v9086_v49, %v9085_v30  ;;  %v8883_v30 = vrot.slane %v6854_v8, 1  ;;  %v8881_v37 = vrot.slane %v6838_v2, 4  ;;  %v1613_v49 = vadd.f32 %v1581_v20, %v1547_v48  ;;  %v9092_v48 = vld [vmem:[#allocation36_spill] sm:$0xff] }
 0x1bd   : > { %9080 = vst [vmem:[#allocation73_spill] sm:$0xff] %v6917_v53  ;;  %v1454_v53 = vmul.f32 %v5951_v40, %v9082_v59  ;;  %v9088_v40 = vrot.slane %v6745_v63, 4  ;;  %v8884_v39 = vrot.slane %v6941_v5, 7  ;;  %v1544_v23 = vadd.f32 %v6800_v17, %v1478_v29 }
 0x1be   : > { %v6938_v24 = vld.sshfl [vmem:[#allocation1 + $0x10] sm:$0xff pattern:$0x75316420]  ;;  %9084 = vst [vmem:[#allocation48_spill] sm:$0xff] %v6941_v5  ;;  %1965 = vrot.lane.b32.xlu2 %v8881_v37, %s5463_s5  ;;  %v1188_v20 = vmul.f32 %v9092_v48, %v6821_v28  ;;  %v9093_v17 = vrot.slane %v6854_v8, 7  ;;  %v6994_v48 = vpop.permute.xlu2 %1943  ;;  %v1679_v38 = vadd.f32 %v1647_v3, %v1613_v49 }
 0x1bf   : > { %9083 = vst [vmem:[#allocation38_spill] sm:$0xff] %v6938_v24  ;;  %1949 = vrot.lane.b32.xlu1 %v9088_v40, %s5463_s5  ;;  %v1578_v24 = vmul.f32 %v9089_v22, %v9067_v42  ;;  %v1420_v40 = vadd.f32 %v1388_v32, %v1354_v34  ;;  %v6968_v42 = vsel %vm747_vm6, %v924_v4, 0.0  ;;  %v1483_v34 = vadd.f32 %v1451_v0, %v1417_v52  ;;  %v9094_v4 = vld [vmem:[#allocation67_spill] sm:$0xff] }
 0x1c0   : > { %2121 = vst [vmem:[#allocation1 + $0x10] ss:$2 sm:$0xff] %v9087_v61  ;;  %v1419_v61 = vadd.f32 %v1387_v50, %v1353_v19  ;;  %v6983_v29 = vsel %vm829_vm3, %v9093_v17, %v8884_v39  ;;  %v1520_v11 = vmul.f32 %v9065_v56, %v9094_v4  ;;  %v1519_v52 = vmul.f32 %v5989_v13, %v6932_v27  ;;  %v9098_v17 = vld [vmem:[#allocation50_spill] sm:$0xff] }
 0x1c1   : > { %2123 = vst [vmem:[#allocation1 + $0x11] ss:$2 sm:$0xff] %v9090_v18  ;;  %v9091_v18 = vld [vmem:[#allocation46_spill] sm:$0xff]  ;;  %v1486_v50 = vadd.f32 %v1454_v53, %v1420_v40  ;;  %v1610_v32 = vadd.f32 %v1578_v24, %v1544_v23  ;;  %v1713_v53 = vmul.f32 %v6996_v31, %v6932_v27  ;;  %v1019_v24 = vrot.slane %v6711_v51, 1 }
 0x1c2   : > { %v1644_v19 = vmul.f32 %v9091_v18, %v9062_v33  ;;  %v9095_v33 = vrot.slane %v6941_v5, 1  ;;  %v1485_v23 = vadd.f32 %v1453_v36, %v1419_v61  ;;  %1957 = vrot.lane.b32.xlu0 %v6838_v2, %s5463_s5  ;;  %v1286_v0 = vadd.f32 %v1254_v12, %v1188_v20 }
 0x1c3   : > { %v1020_v40 = vrot.slane %v6786_v7, 1  ;;  %v1583_v3 = vmul.f32 %v6022_v46, %v6968_v42  ;;  %v1586_v49 = vmul.f32 %v9089_v22, %v6983_v29  ;;  %v1320_v36 = vmul.f32 %v5903_v14, %v6824_v21 }
 0x1c4   : > { %v6992_v37 = vsel %vm976_vm4, %v9095_v33, %v8883_v30  ;;  %v1676_v33 = vadd.f32 %v1644_v19, %v1610_v32  ;;  %v7016_v30 = vld [vmem:[#allocation10 + $0x18] ss:$0 sm:$0xff]  ;;  %v1576_v20 = vmul.f32 %v9089_v22, %v6821_v28  ;;  %v1549_v39 = vadd.f32 %v1517_v62, %v1483_v34  ;;  %v9101_v19 = vld [vmem:[#allocation40_spill] sm:$0xff]  ;;  %v9103_v62 = vld [vmem:[#allocation66_spill] sm:$0xff] }
 0x1c5   : > { %9096 = vst [vmem:[#allocation47_spill] sm:$0xff] %v6992_v37  ;;  %v1710_v12 = vmul.f32 %v7016_v30, %v6842_v10  ;;  %v9100_v37 = vrot.slane %v9066_v45, 4  ;;  %v1552_v56 = vadd.f32 %v1520_v11, %v1486_v50  ;;  %v8890_v14 = vrot.slane %v6844_v58, 4 }
 0x1c6   : > { %9099 = vst [vmem:[#allocation67_spill] sm:$0xff] %v7016_v30  ;;  %v7027_v5 = vadd.f32 %v1713_v53, %v1679_v38  ;;  %v1257_v32 = vmul.f32 %v9101_v19, %v6562_v35  ;;  %v1191_v10 = vmul.f32 %v9031_v9, %v6754_v55  ;;  %v9102_v28 = vrot.slane %v6745_v63, 4 }
 0x1c7   : > { %2135 = vrot.lane.b32.xlu1 %v9098_v17, %s5464_s20  ;;  %v1551_v17 = vadd.f32 %v1519_v52, %v1485_v23  ;;  %v1542_v45 = vadd.f32 %v6866_v15, %v9103_v62  ;;  %v1649_v11 = vmul.f32 %v6077_v16, %v6711_v51  ;;  %v9105_v38 = vrot.slane %v6711_v51, 7  ;;  %1975 = vrot.lane.b32.xlu2 %v8890_v14, %s5463_s5  ;;  %v7054_v15 = vpop.f32.mrf.mxu0  ;;  %v7082_v62 = vpop.permute.xlu1 %1951 }
 0x1c8   : > { %v7012_v61 = vld.sshfl [vmem:[#allocation1 + $0x10] sm:$0xff pattern:$0x75316420]  ;;  %v7046_v35 = vadd.f32 %v1586_v49, %v1552_v56  ;;  %v1615_v63 = vadd.f32 %v1583_v3, %v1549_v39  ;;  %v7052_v55 = vsel %vm976_vm4, %v1019_v24, %v1020_v40  ;;  %v7056_v34 = vadd.f32 %v1710_v12, %v1676_v33 }
 0x1c9   : > { %9097 = vst [vmem:[#allocation46_spill] sm:$0xff] %v7012_v61  ;;  %v7025_v61 = vadd.f32 %v1320_v36, %v1286_v0  ;;  %v1608_v53 = vadd.f32 %v1576_v20, %v1542_v45  ;;  %v1642_v23 = vmul.f32 %v9091_v18, %v6468_v44  ;;  %v8892_v52 = vrot.slane %v6870_v6, 7  ;;  %v7073_v44 = vpop.permute.xlu2 %2007  ;;  %v9109_v20 = vld [vmem:[#allocation68_spill] sm:$0xff] }
 0x1ca   : > { %2130 = vst [vmem:[#allocation1 + $0x10] ss:$2 sm:$0xff] %v9100_v37  ;;  %v9104_v37 = vrot.slane %v6786_v7, 7  ;;  %v8894_v56 = vrot.slane %v6962_v41, 7  ;;  %v1392_v0 = vmul.f32 %v5926_v26, %v6983_v29  ;;  %v7065_v39 = vmul.f32 0.17677669, %v7027_v5  ;;  %2021 = vrot.lane.b32.xlu0 %v7056_v34, %s5463_s5 }
 0x1cb   : > { %2132 = vst [vmem:[#allocation1 + $0x11] ss:$2 sm:$0xff] %v9102_v28  ;;  %v1261_v3 = vmul.f32 %v9101_v19, %v6711_v51  ;;  %v1111_v49 = vsel %vm976_vm4, %v1020_v40, %v1019_v24  ;;  %v8891_v36 = vrot.slane %v6882_v25, 4  ;;  %v1195_v12 = vmul.f32 %v9031_v9, %v6968_v42 }
 0x1cc   : > { %v7044_v50 = vsel %vm829_vm3, %v9105_v38, %v9104_v37  ;;  %9106 = vst [vmem:[#allocation50_spill] sm:$0xff] %v7046_v35  ;;  %v7080_v28 = vadd.f32 %v1392_v0, %v9109_v20  ;;  %v1681_v45 = vadd.f32 %v1649_v11, %v1615_v63  ;;  %v1715_v24 = vmul.f32 %v6996_v31, %v7052_v55 }
 0x1cd   : > { %9107 = vst [vmem:[#allocation40_spill] sm:$0xff] %v7056_v34  ;;  %v1585_v33 = vmul.f32 %v6022_v46, %v7044_v50  ;;  %v1674_v40 = vadd.f32 %v1642_v23, %v1608_v53  ;;  %v1708_v37 = vmul.f32 %v7016_v30, %v6824_v21  ;;  %v7093_v38 = vsel %vm975_vm5, %v1111_v49, 0.0  ;;  %v7108_v23 = vpop.permute.xlu0 %1935 }
 0x1ce   : > { %9108 = vst [vmem:[#allocation66_spill] sm:$0xff] %v7073_v44  ;;  %v1651_v0 = vmul.f32 %v6077_v16, %v6786_v7  ;;  %v926_v11 = vsel %vm829_vm3, %v8894_v56, %v8892_v52  ;;  %v8893_v63 = vrot.slane %v7065_v39, 4  ;;  %v1289_v53 = vadd.f32 %v1257_v32, %v1191_v10 }
 0x1cf   : > { %9110 = vst [vmem:[#allocation68_spill] sm:$0xff] %v7080_v28  ;;  %1901 = vrot.lane.b32.xlu1 %v8891_v36, %s5463_s5  ;;  %v1323_v21 = vmul.f32 %v9038_v57, %v6784_v43  ;;  %v1617_v49 = vadd.f32 %v1585_v33, %v1551_v17  ;;  %v1327_v14 = vmul.f32 %v9038_v57, %v7052_v55  ;;  %v966_v43 = vsel %vm747_vm6, %v926_v11, 0.0  ;;  %v7133_v11 = vpop.f32.mrf.mxu0 }
 0x1d0   : > { %v1293_v36 = vadd.f32 %v1261_v3, %v1195_v12  ;;  %1927 = vrot.lane.b32.xlu2 %v8893_v63, %s5463_s5  ;;  %v7116_v52 = vadd.f32 %v1715_v24, %v1681_v45  ;;  %v7120_v32 = vadd.f32 %v1708_v37, %v1674_v40  ;;  %v1717_v10 = vmul.f32 %v6996_v31, %v7093_v38  ;;  %v9112_v24 = vld [vmem:[#allocation42_spill] sm:$0xff] }
 0x1d1   : > { %v1683_v17 = vadd.f32 %v1651_v0, %v1617_v49  ;;  %v1582_v3 = vmul.f32 %v9089_v22, %v6663_v1  ;;  %v1648_v12 = vmul.f32 %v9091_v18, %v9082_v59  ;;  %v1355_v45 = vadd.f32 %v1323_v21, %v1289_v53  ;;  %v7137_v40 = vpop.permute.xlu2 %1895  ;;  %v9114_v1 = vld [vmem:[#allocation72_spill] sm:$0xff] }
 0x1d2   : > { %v7097_v20 = vld.sshfl [vmem:[#allocation1 + $0x10] sm:$0xff pattern:$0x75316420]  ;;  %9111 = vst [vmem:[#allocation74_spill] sm:$0xff] %v7120_v32  ;;  %v7125_v33 = vmul.f32 0.17677669, %v7116_v52  ;;  %v1389_v63 = vmul.f32 %v9112_v24, %v6968_v42  ;;  %2005 = vrot.lane.b32.xlu0 %v7120_v32, %s5463_s5  ;;  %v1359_v37 = vadd.f32 %v1327_v14, %v1293_v36  ;;  %v1393_v0 = vmul.f32 %v9112_v24, %v966_v43 }
 0x1d3   : > { %2174 = vst [vmem:[#allocation1 + $0x10] ss:$2 sm:$0xff] %v6729_v47  ;;  %v1614_v49 = vadd.f32 %v1582_v3, %v9114_v1  ;;  %v1714_v42 = vmul.f32 %v7016_v30, %v9094_v4  ;;  %v8896_v21 = vrot.slane %v7054_v15, 7  ;;  %v7150_v36 = vpop.permute.xlu1 %1999  ;;  %v7152_v44 = vadd.f32 %v1717_v10, %v1683_v17  ;;  %v9116_v3 = vld [vmem:[#allocation44_spill] sm:$0xff] }
 0x1d4   : > { %2176 = vst [vmem:[#allocation1 + $0x11] ss:$2 sm:$0xff] %v6882_v25  ;;  %v1455_v1 = vmul.f32 %v9116_v3, %v6711_v51  ;;  %v1421_v53 = vadd.f32 %v1389_v63, %v1355_v45  ;;  %v1459_v28 = vmul.f32 %v9116_v3, %v6870_v6  ;;  %v1425_v4 = vadd.f32 %v1393_v0, %v1359_v37 }
 0x1d5   : > { %9113 = vst [vmem:[#allocation42_spill] sm:$0xff] %v7137_v40  ;;  %v1680_v35 = vadd.f32 %v1648_v12, %v1614_v49  ;;  %v9118_v40 = vld [vmem:[#allocation65_spill] sm:$0xff]  ;;  %v9120_v10 = vrot.slane %v6962_v41, 1  ;;  %v9121_v51 = vrot.slane %v6870_v6, 1  ;;  %v8895_v63 = vrot.slane %v7056_v34, 4  ;;  %v7172_v12 = vpop.permute.xlu0 %1887 }
 0x1d6   : > { %2278 = vst [vmem:[#allocation1 + $0x1] ss:$2 sm:$0xff] %v7125_v33  ;;  %v9122_v45 = vrot.slane %v7133_v11, 7  ;;  %v8897_v49 = vrot.slane %v7027_v5, 4  ;;  %v8904_v34 = vrot.slane %v7133_v11, 1 }
 0x1d7   : > { %1983 = vrot.lane.b32.xlu1 %v7027_v5, %s5463_s5  ;;  %9115 = vst [vmem:[#allocation72_spill] sm:$0xff] %v7150_v36  ;;  %v7163_v14 = vadd.f32 %v1714_v42, %v1680_v35  ;;  %v1027_v17 = vsel %vm976_vm4, %v9121_v51, %v9120_v10  ;;  %v1521_v35 = vmul.f32 %v5989_v13, %v7052_v55 }
 0x1d8   : > { %1985 = vrot.lane.b32.xlu2 %v7152_v44, %s5463_s5  ;;  %v928_v37 = vsel %vm829_vm3, %v9122_v45, %v8896_v21  ;;  %v1487_v10 = vadd.f32 %v1455_v1, %v1421_v53  ;;  %v1491_v51 = vadd.f32 %v1459_v28, %v1425_v4  ;;  %v1525_v36 = vmul.f32 %v5989_v13, %v1027_v17 }
 0x1d9   : > { %9119 = vst [vmem:[#allocation65_spill] sm:$0xff] %v7163_v14  ;;  %v7184_v0 = vpop.permute.xlu2 %1953  ;;  %v970_v45 = vsel %vm747_vm6, %v928_v37, 0.0  ;;  %v1587_v53 = vmul.f32 %v6022_v46, %v966_v43  ;;  %v9125_v37 = vrot.slane %v6729_v47, 4  ;;  %v9126_v14 = vrot.slane %v6882_v25, 4 }
 0x1da   : > { %2029 = vrot.lane.b32.xlu0 %v8895_v63, %s5463_s5  ;;  %9123 = vst [vmem:[#allocation75_spill] sm:$0xff] %v7184_v0  ;;  %v8901_v63 = vrot.slane %v7152_v44, 4  ;;  %v1553_v28 = vadd.f32 %v1521_v35, %v1487_v10  ;;  %v1557_v1 = vadd.f32 %v1525_v36, %v1491_v51  ;;  %v1591_v21 = vmul.f32 %v6022_v46, %v970_v45  ;;  %v9127_v35 = vld [vmem:[#allocation70_spill] sm:$0xff]  ;;  %v9129_v45 = vld [vmem:[#allocation49_spill] sm:$0xff] }
 0x1db   : > { %v7156_v56 = vld.sshfl [vmem:[#allocation1 + $0x10] sm:$0xff pattern:$0x75316420]  ;;  %v7197_v55 = vpop.permute.xlu1 %1871  ;;  %v1653_v36 = vmul.f32 %v6077_v16, %v6870_v6  ;;  %v1719_v30 = vmul.f32 %v6996_v31, %v1027_v17 }
 0x1dc   : > { %9117 = vst [vmem:[#allocation44_spill] sm:$0xff] %v7156_v56  ;;  %v1619_v47 = vadd.f32 %v1587_v53, %v1553_v28  ;;  %v1623_v25 = vadd.f32 %v1591_v21, %v1557_v1  ;;  %v9131_v28 = vld [vmem:[#allocation41_spill] sm:$0xff]  ;;  %v9132_v21 = vrot.slane %v7125_v33, 4 }
 0x1dd   : > { %2183 = vst [vmem:[#allocation1 + $0x10] ss:$2 sm:$0xff] %v9118_v40  ;;  %v7187_v42 = vld.sshfl [vmem:[#allocation1] sm:$0xff pattern:$0x75316420]  ;;  %v7220_v51 = vpop.permute.xlu0 %1959  ;;  %v1259_v56 = vmul.f32 %v9101_v19, %v9131_v28  ;;  %v1325_v28 = vmul.f32 %v9038_v57, %v6932_v27  ;;  %v9137_v27 = vld [vmem:[#allocation58_spill] sm:$0xff] }
 0x1de   : > { %2185 = vst [vmem:[#allocation1 + $0x11] ss:$2 sm:$0xff] %v6838_v2 }
 0x1df   : > { %9124 = vst [vmem:[#allocation76_spill] sm:$0xff] %v7187_v42  ;;  %1991 = vrot.lane.b32.xlu1 %v8897_v49, %s5463_s5  ;;  %v8905_v49 = vrot.slane %v7054_v15, 1  ;;  %v9130_v42 = vld [vmem:[#allocation71_spill] sm:$0xff] }
 0x1e0   : > { %2285 = vst [vmem:[#allocation1] ss:$2 sm:$0xff] %v6844_v58  ;;  %1993 = vrot.lane.b32.xlu2 %v8901_v63, %s5463_s5  ;;  %v1657_v63 = vmul.f32 %v6077_v16, %v7054_v15  ;;  %v1193_v53 = vmul.f32 %v9031_v9, %v9130_v42  ;;  %v8906_v42 = vrot.slane %v7120_v32, 4 }
 0x1e1   : > { %2287 = vst [vmem:[#allocation1 + $0x1] ss:$2 sm:$0xff] %v7116_v52  ;;  %v7218_v10 = vpop.permute.xlu2 %1881  ;;  %v1033_v43 = vsel %vm976_vm4, %v8905_v49, %v8904_v34 }
 0x1e2   : > { %1877 = vrot.lane.b32.xlu0 %v9127_v35, %s5463_s5  ;;  %9128 = vst [vmem:[#allocation70_spill] sm:$0xff] %v7220_v51  ;;  %v1685_v51 = vadd.f32 %v1653_v36, %v1619_v47  ;;  %v1689_v0 = vadd.f32 %v1657_v63, %v1623_v25  ;;  %v1723_v34 = vmul.f32 %v6996_v31, %v1033_v43  ;;  %v9135_v36 = vrot.slane %v6838_v2, 4 }
 0x1e3   : > { %v1291_v49 = vadd.f32 %v1259_v56, %v1193_v53  ;;  %v1391_v25 = vmul.f32 %v9112_v24, %v7044_v50  ;;  %v9139_v53 = vrot.slane %v6844_v58, 4 }
 0x1e4   : > { %v7240_v1 = vpop.permute.xlu1 %1879  ;;  %v7260_v63 = vadd.f32 %v1719_v30, %v1685_v51  ;;  %v7262_v43 = vadd.f32 %v1723_v34, %v1689_v0  ;;  %v1197_v34 = vmul.f32 %v9031_v9, %v7044_v50  ;;  %v1263_v0 = vmul.f32 %v9101_v19, %v6786_v7  ;;  %v9140_v51 = vld [vmem:[#allocation62_spill] sm:$0xff] }
 0x1e5   : > { %v7201_v4 = vld.sshfl [vmem:[#allocation1 + $0x10] sm:$0xff pattern:$0x75316420]  ;;  %v1357_v2 = vadd.f32 %v1325_v28, %v1291_v49  ;;  %v9142_v9 = vrot.slane %v9127_v35, 4 }
 0x1e6   : > { %2227 = vst [vmem:[#allocation1 + $0x10] ss:$2 sm:$0xff] %v9125_v37  ;;  %v1799_v37 = vrot.slane %v9129_v45, 4  ;;  %v7276_v30 = vmul.f32 0.17677669, %v7260_v63  ;;  %v1295_v50 = vadd.f32 %v1263_v0, %v1197_v34 }
 0x1e7   : > { %2229 = vst [vmem:[#allocation1 + $0x11] ss:$2 sm:$0xff] %v9126_v14  ;;  %1903 = vrot.lane.b32.xlu1 %v9129_v45, %s5463_s5  ;;  %v7285_v49 = vmul.f32 0.17677669, %v7262_v43  ;;  %v7315_v34 = vmul.f32 0.17677669, %v7152_v44 }
 0x1e8   : > { %v7225_v14 = vld.sshfl [vmem:[#allocation1] sm:$0xff pattern:$0x75316420]  ;;  %1905 = vrot.lane.b32.xlu2 %v7125_v33, %s5463_s5 }
 0x1e9   : > { %2329 = vst [vmem:[#allocation1] ss:$2 sm:$0xff] %v1799_v37  ;;  %v7258_v17 = vpop.permute.xlu2 %1955 }
 0x1ea   : > { %2331 = vst [vmem:[#allocation1 + $0x1] ss:$2 sm:$0xff] %v9132_v21  ;;  %v9134_v21 = vrot.slane %v9118_v40, 4  ;;  %2013 = vrot.lane.b32.xlu0 %v8906_v42, %s5463_s5  ;;  %v8907_v40 = vrot.slane %v7116_v52, 4 }
 0x1eb   : > { %v7264_v56 = vpop.permute.xlu0 %2001 }
 0x1ec   : > { %9136 = vst [vmem:[#allocation71_spill] sm:$0xff] %v7264_v56  ;;  %v9188_v56 = vrot.slane %v6854_v8, 1 }
 0x1ed   : > { %v7289_v28 = vpop.permute.xlu1 %2017 }
 0x1ee   : > { %v7246_v45 = vld.sshfl [vmem:[#allocation1 + $0x10] sm:$0xff pattern:$0x75316420]  ;;  %9141 = vst [vmem:[#allocation58_spill] sm:$0xff] %v7289_v28 }
 0x1ef   : > { %9133 = vst [vmem:[#allocation49_spill] sm:$0xff] %v7246_v45  ;;  %2188 = vrot.lane.b32.xlu1 %v9137_v27, %s5464_s20 }
 0x1f0   : > { %2236 = vst [vmem:[#allocation1 + $0x10] ss:$2 sm:$0xff] %v9134_v21  ;;  %2241 = vrot.lane.b32.xlu2 %v9140_v51, %s5464_s20  ;;  %v1423_v21 = vadd.f32 %v1391_v25, %v1357_v2  ;;  %v9143_v2 = vrot.slane %v6962_v41, 7 }
 0x1f1   : > { %2238 = vst [vmem:[#allocation1 + $0x11] ss:$2 sm:$0xff] %v9135_v36  ;;  %v7269_v47 = vld.sshfl [vmem:[#allocation1] sm:$0xff pattern:$0x75316420]  ;;  %v1457_v36 = vmul.f32 %v9116_v3, %v6786_v7  ;;  %v7299_v19 = vpop.permute.xlu2 %1939  ;;  %v9144_v7 = vrot.slane %v6870_v6, 7 }
 0x1f2   : > { %9138 = vst [vmem:[#allocation41_spill] sm:$0xff] %v7269_v47  ;;  %1885 = vrot.lane.b32.xlu0 %v9142_v9, %s5463_s5  ;;  %v1523_v9 = vmul.f32 %v5989_v13, %v7093_v38 }
 0x1f3   : > { %2338 = vst [vmem:[#allocation1] ss:$2 sm:$0xff] %v9139_v53  ;;  %v1329_v53 = vmul.f32 %v9038_v57, %v7093_v38  ;;  %v864_v25 = vsel %vm829_vm3, %v9144_v7, %v9143_v2  ;;  %v7309_v51 = vpop.permute.xlu0 %1945  ;;  %v1489_v35 = vadd.f32 %v1457_v36, %v1423_v21  ;;  %v9146_v21 = vrot.slane %v6962_v41, 1 }
 0x1f4   : > { %2340 = vst [vmem:[#allocation1 + $0x1] ss:$2 sm:$0xff] %v8907_v40  ;;  %v1395_v42 = vmul.f32 %v9112_v24, %v864_v25  ;;  %v1589_v2 = vmul.f32 %v6022_v46, %v864_v25 }
 0x1f5   : > { %v1361_v0 = vadd.f32 %v1329_v53, %v1295_v50  ;;  %v1555_v36 = vadd.f32 %v1523_v9, %v1489_v35  ;;  %v7334_v24 = vpop.permute.xlu1 %1937  ;;  %v1655_v35 = vmul.f32 %v6077_v16, %v6962_v41 }
 0x1f7   : > { %1911 = vrot.lane.b32.xlu1 %v1799_v37, %s5463_s5  ;;  %v9145_v37 = vrot.slane %v6870_v6, 1  ;;  %v1427_v53 = vadd.f32 %v1395_v42, %v1361_v0  ;;  %v1461_v6 = vmul.f32 %v9116_v3, %v6962_v41  ;;  %v9151_v0 = vrot.slane %v7125_v33, 4 }
 0x1f8   : > { %v7293_v27 = vld.sshfl [vmem:[#allocation1 + $0x10] sm:$0xff pattern:$0x75316420]  ;;  %2137 = vrot.lane.b32.xlu2 %v7097_v20, %s5464_s20 }
 0x1f9   : > { %2280 = vst [vmem:[#allocation1 + $0x10] ss:$2 sm:$0xff] %v7276_v30  ;;  %v1113_v38 = vsel %vm976_vm4, %v9146_v21, %v9145_v37  ;;  %v7336_v50 = vpop.permute.xlu2 %2003  ;;  %v1493_v9 = vadd.f32 %v1461_v6, %v1427_v53  ;;  %v9152_v37 = vrot.slane %v7133_v11, 7  ;;  %v9153_v21 = vrot.slane %v7054_v15, 7 }
 0x1fa   : > { %2282 = vst [vmem:[#allocation1 + $0x11] ss:$2 sm:$0xff] %v7285_v49  ;;  %1967 = vrot.lane.b32.xlu0 %v6844_v58, %s5463_s5  ;;  %v1155_v20 = vsel %vm975_vm5, %v1113_v38, 0.0  ;;  %v1621_v58 = vadd.f32 %v1589_v2, %v1555_v36  ;;  %v8908_v36 = vrot.slane %v7285_v49, 4 }
 0x1fb   : > { %v7317_v57 = vld.sshfl [vmem:[#allocation1] sm:$0xff pattern:$0x75316420]  ;;  %9148 = vst [vmem:[#allocation77_spill] sm:$0xff] %v7336_v50  ;;  %v7344_v25 = vpop.permute.xlu0 %2009  ;;  %v1527_v3 = vmul.f32 %v5989_v13, %v1155_v20  ;;  %v868_v38 = vsel %vm829_vm3, %v9153_v21, %v9152_v37  ;;  %v1721_v2 = vmul.f32 %v6996_v31, %v1155_v20  ;;  %v1803_v13 = vrot.slane %v7276_v30, 4 }
 0x1fc   : > { %2382 = vst [vmem:[#allocation1] ss:$2 sm:$0xff] %v7065_v39  ;;  %v1687_v41 = vadd.f32 %v1655_v35, %v1621_v58  ;;  %v9154_v20 = vrot.slane %v7054_v15, 1  ;;  %v9155_v58 = vrot.slane %v7133_v11, 1 }
 0x1fd   : > { %2384 = vst [vmem:[#allocation1 + $0x1] ss:$2 sm:$0xff] %v7315_v34  ;;  %v7368_v33 = vpop.permute.xlu1 %1889  ;;  %v1559_v6 = vadd.f32 %v1527_v3, %v1493_v9  ;;  %v1659_v9 = vmul.f32 %v6077_v16, %v7133_v11  ;;  %v1802_v3 = vrot.slane %v7315_v34, 4  ;;  %v8909_v11 = vrot.slane %v7260_v63, 4 }
 0x1fe   : > { %9149 = vst [vmem:[#allocation78_spill] sm:$0xff] %v7344_v25  ;;  %v1115_v35 = vsel %vm976_vm4, %v9155_v58, %v9154_v20  ;;  %v7386_v40 = vadd.f32 %v1721_v2, %v1687_v41  ;;  %v1837_v41 = vrot.slane %v7262_v43, 4  ;;  %v9157_v2 = vld [vmem:[#allocation38_spill] sm:$0xff] }
 0x1ff   : > { %1969 = vrot.lane.b32.xlu1 %v7116_v52, %s5463_s5  ;;  %v1159_v15 = vsel %vm975_vm5, %v1115_v35, 0.0  ;;  %v9161_v35 = vrot.slane %v7027_v5, 4 }
 0x200   : > { %1913 = vrot.lane.b32.xlu2 %v9151_v0, %s5463_s5  ;;  %v1593_v0 = vmul.f32 %v6022_v46, %v868_v38  ;;  %v7403_v16 = vmul.f32 0.17677669, %v7386_v40 }
 0x201   : > { %v7330_v7 = vld.sshfl [vmem:[#allocation1 + $0x10] sm:$0xff pattern:$0x75316420]  ;;  %v7370_v53 = vpop.permute.xlu2 %2081 }
 0x202   : > { %9147 = vst [vmem:[#allocation62_spill] sm:$0xff] %v7330_v7  ;;  %1919 = vrot.lane.b32.xlu0 %v7065_v39, %s5463_s5  ;;  %v1625_v46 = vadd.f32 %v1593_v0, %v1559_v6  ;;  %v1725_v6 = vmul.f32 %v6996_v31, %v1159_v15 }
 0x203   : > { %2291 = vst [vmem:[#allocation1 + $0x11] ss:$2 sm:$0xff] %v7262_v43  ;;  %v7375_v21 = vpop.permute.xlu0 %1897 }
 0x204   : > { %2289 = vst [vmem:[#allocation1 + $0x10] ss:$2 sm:$0xff] %v7260_v63  ;;  %v7350_v42 = vld.sshfl [vmem:[#allocation1] sm:$0xff pattern:$0x75316420] }
 0x205   : > { %9150 = vst [vmem:[#allocation79_spill] sm:$0xff] %v7350_v42  ;;  %v7407_v0 = vpop.permute.xlu1 %1961 }
 0x206   : > { %2391 = vst [vmem:[#allocation1] ss:$2 sm:$0xff] %v7027_v5 }
 0x207   : > { %2393 = vst [vmem:[#allocation1 + $0x1] ss:$2 sm:$0xff] %v7152_v44  ;;  %1921 = vrot.lane.b32.xlu1 %v7315_v34, %s5463_s5  ;;  %v1691_v34 = vadd.f32 %v1659_v9, %v1625_v46  ;;  %v9162_v46 = vrot.slane %v7152_v44, 4  ;;  %v9163_v9 = vrot.slane %v7116_v52, 4 }
 0x208   : > { %1987 = vrot.lane.b32.xlu2 %v7386_v40, %s5463_s5 }
 0x209   : > { %v7409_v20 = vpop.permute.xlu2 %1883  ;;  %v7419_v58 = vadd.f32 %v1725_v6, %v1691_v34 }
 0x20a   : > { %2083 = vrot.lane.b32.xlu0 %v9157_v2, %s5464_s20 }
 0x20b   : > { %v7373_v37 = vld.sshfl [vmem:[#allocation1 + $0x10] sm:$0xff pattern:$0x75316420]  ;;  %v1838_v15 = vrot.slane %v7419_v58, 4  ;;  %v1774_v2 = vmul.f32 0.17677669, %v7419_v58 }
 0x20c   : > { %2335 = vst [vmem:[#allocation1 + $0x11] ss:$2 sm:$0xff] %v8908_v36  ;;  %v9156_v36 = vrot.slane %v7065_v39, 4  ;;  %v7411_v39 = vpop.permute.xlu0 %2019 }
 0x20d   : > { %2333 = vst [vmem:[#allocation1 + $0x10] ss:$2 sm:$0xff] %v1803_v13  ;;  %v1874_v34 = vpop.permute.xlu1 %1873 }
 0x20e   : > { %v7391_v38 = vld.sshfl [vmem:[#allocation1] sm:$0xff pattern:$0x75316420]  ;;  %9158 = vst [vmem:[#allocation38_spill] sm:$0xff] %v7411_v39 }
 0x20f   : > { %2435 = vst [vmem:[#allocation1] ss:$2 sm:$0xff] %v9156_v36  ;;  %1923 = vrot.lane.b32.xlu1 %v7403_v16, %s5463_s5 }
 0x210   : > { %2437 = vst [vmem:[#allocation1 + $0x1] ss:$2 sm:$0xff] %v1802_v3  ;;  %1971 = vrot.lane.b32.xlu2 %v7260_v63, %s5463_s5 }
 0x211   : > { %v7435_v6 = vpop.permute.xlu2 %1941 }
 0x212   : > { %1977 = vrot.lane.b32.xlu0 %v9163_v9, %s5463_s5  ;;  %v1836_v9 = vrot.slane %v7386_v40, 4 }
 0x214   : > { %v7415_v36 = vld.sshfl [vmem:[#allocation1 + $0x10] sm:$0xff pattern:$0x75316420]  ;;  %v7439_v5 = vpop.permute.xlu0 %2027 }
 0x215   : > { %9159 = vst [vmem:[#allocation80_spill] sm:$0xff] %v7415_v36 }
 0x216   : > { %2344 = vst [vmem:[#allocation1 + $0x11] ss:$2 sm:$0xff] %v1837_v41 }
 0x217   : > { %2342 = vst [vmem:[#allocation1 + $0x10] ss:$2 sm:$0xff] %v8909_v11  ;;  %v7423_v31 = vld.sshfl [vmem:[#allocation1] sm:$0xff pattern:$0x75316420]  ;;  %1997 = vrot.lane.b32.xlu1 %v1838_v15, %s5463_s5 }
 0x218   : > { %9160 = vst [vmem:[#allocation81_spill] sm:$0xff] %v7423_v31  ;;  %1907 = vrot.lane.b32.xlu2 %v7276_v30, %s5463_s5  ;;  %v9192_v31 = vld [vmem:[#allocation67_spill] sm:$0xff] }
 0x219   : > { %2444 = vst [vmem:[#allocation1] ss:$2 sm:$0xff] %v9161_v35  ;;  %v7452_v35 = vpop.permute.xlu1 %1891 }
 0x21a   : > { %2446 = vst [vmem:[#allocation1 + $0x1] ss:$2 sm:$0xff] %v9162_v46  ;;  %1929 = vrot.lane.b32.xlu0 %v1802_v3, %s5463_s5  ;;  %v7454_v46 = vpop.permute.xlu2 %1893 }
 0x21b   : > { %9164 = vst [vmem:[#allocation82_spill] sm:$0xff] %v7439_v5 }
 0x21c   : > { %v1876_v30 = vpop.permute.xlu0 %1875 }
 0x21e   : > { %v7437_v11 = vld.sshfl [vmem:[#allocation1 + $0x10] sm:$0xff pattern:$0x75316420] }
 0x21f   : > { %2386 = vst [vmem:[#allocation1 + $0x10] ss:$2 sm:$0xff] %v7403_v16  ;;  %2243 = vrot.lane.b32.xlu1 %v7293_v27, %s5464_s20  ;;  %v1806_v27 = vrot.slane %v1774_v2, 4 }
 0x220   : > { %2388 = vst [vmem:[#allocation1 + $0x11] ss:$2 sm:$0xff] %v1774_v2  ;;  %1915 = vrot.lane.b32.xlu2 %v1803_v13, %s5463_s5  ;;  %v1804_v13 = vrot.slane %v7403_v16, 4 }
 0x221   : > { %v7444_v52 = vld.sshfl [vmem:[#allocation1] sm:$0xff pattern:$0x75316420]  ;;  %v7467_v3 = vpop.permute.xlu1 %1963 }
 0x222   : > { %2488 = vst [vmem:[#allocation1] ss:$2 sm:$0xff] %v7197_v55  ;;  %1995 = vrot.lane.b32.xlu0 %v1836_v9, %s5463_s5 }
 0x223   : > { %2490 = vst [vmem:[#allocation1 + $0x1] ss:$2 sm:$0xff] %v1874_v34  ;;  %v7469_v34 = vpop.permute.xlu2 %1965 }
 0x224   : > { %v7474_v5 = vpop.permute.xlu0 %1947 }
 0x227   : > { %v7450_v44 = vld.sshfl [vmem:[#allocation1 + $0x10] sm:$0xff pattern:$0x75316420]  ;;  %1981 = vrot.lane.b32.xlu1 %v1837_v41, %s5463_s5 }
 0x228   : > { %9165 = vst [vmem:[#allocation83_spill] sm:$0xff] %v7450_v44  ;;  %1925 = vrot.lane.b32.xlu2 %v1774_v2, %s5463_s5 }
 0x229   : > { %2397 = vst [vmem:[#allocation1 + $0x11] ss:$2 sm:$0xff] %v7419_v58  ;;  %v7483_v16 = vpop.permute.xlu1 %2011 }
 0x22a   : > { %2395 = vst [vmem:[#allocation1 + $0x10] ss:$2 sm:$0xff] %v7386_v40  ;;  %v7460_v55 = vld.sshfl [vmem:[#allocation1] sm:$0xff pattern:$0x75316420]  ;;  %2190 = vrot.lane.b32.xlu0 %v7201_v4, %s5464_s20 }
 0x22b   : > { %9166 = vst [vmem:[#allocation84_spill] sm:$0xff] %v7460_v55  ;;  %v7485_v2 = vpop.permute.xlu2 %1975 }
 0x22c   : > { %2497 = vst [vmem:[#allocation1] ss:$2 sm:$0xff] %v7108_v23  ;;  %v7490_v39 = vpop.permute.xlu0 %1899 }
 0x22d   : > { %2499 = vst [vmem:[#allocation1 + $0x1] ss:$2 sm:$0xff] %v7334_v24  ;;  %v9167_v24 = vld [vmem:[#allocation61_spill] sm:$0xff] }
 0x22e   : > { %v8910_v41 = vrot.slane %v9167_v24, 4  ;;  %9168 = vst [vmem:[#allocation85_spill] sm:$0xff] %v7483_v16  ;;  %v9173_v16 = vrot.slane %v7260_v63, 4  ;;  %v9193_v24 = vld [vmem:[#allocation55_spill] sm:$0xff] }
 0x22f   : > { %2347 = vrot.lane.b32.xlu1 %v7317_v57, %s5464_s20  ;;  %v9172_v57 = vrot.slane %v9082_v59, 7 }
 0x230   : > { %2025 = vrot.lane.b32.xlu2 %v8910_v41, %s5463_s5 }
 0x231   : > { %v7472_v40 = vld.sshfl [vmem:[#allocation1 + $0x10] sm:$0xff pattern:$0x75316420] }
 0x232   : > { %2439 = vst [vmem:[#allocation1 + $0x10] ss:$2 sm:$0xff] %v1804_v13  ;;  %1979 = vrot.lane.b32.xlu0 %v9173_v16, %s5463_s5 }
 0x233   : > { %2441 = vst [vmem:[#allocation1 + $0x11] ss:$2 sm:$0xff] %v1806_v27  ;;  %v7515_v63 = vpop.permute.xlu2 %1927 }
 0x234   : > { %v2504_v23 = vld.sshfl [vmem:[#allocation1] sm:$0xff pattern:$0x75316420] }
 0x235   : > { %2541 = vst [vmem:[#allocation1] ss:$2 sm:$0xff] %v7240_v1  ;;  %v9170_v1 = vld [vmem:[#allocation54_spill] sm:$0xff] }
 0x236   : > { %2543 = vst [vmem:[#allocation1 + $0x1] ss:$2 sm:$0xff] %v7218_v10  ;;  %v9171_v50 = vrot.slane %v9170_v1, 7 }
 0x237   : > { %1933 = vrot.lane.b32.xlu1 %v1806_v27, %s5463_s5 }
 0x238   : > { %v923_v10 = vsel %vm829_vm3, %v9172_v57, %v9171_v50  ;;  %v7513_v50 = vpop.permute.xlu1 %1949  ;;  %2400 = vrot.lane.b32.xlu2 %v7391_v38, %s5464_s20  ;;  %v9177_v57 = vld [vmem:[#allocation48_spill] sm:$0xff]  ;;  %v9179_v38 = vrot.slane %v9082_v59, 1 }
 0x239   : > { %v7504_v28 = vsel %vm747_vm6, %v923_v10, 0.0  ;;  %v9178_v10 = vrot.slane %v9177_v57, 7 }
 0x23a   : > { %v7492_v4 = vld.sshfl [vmem:[#allocation1 + $0x10] sm:$0xff pattern:$0x75316420]  ;;  %v1386_v32 = vmul.f32 %v5926_v26, %v7504_v28  ;;  %2294 = vrot.lane.b32.xlu0 %v7225_v14, %s5464_s20 }
 0x23b   : > { %9169 = vst [vmem:[#allocation86_spill] sm:$0xff] %v7492_v4  ;;  %v9181_v14 = vld [vmem:[#allocation45_spill] sm:$0xff] }
 0x23c   : > { %2450 = vst [vmem:[#allocation1 + $0x11] ss:$2 sm:$0xff] %v1838_v15  ;;  %v7519_v15 = vpop.permute.xlu0 %1957 }
 0x23d   : > { %2448 = vst [vmem:[#allocation1 + $0x10] ss:$2 sm:$0xff] %v1836_v9  ;;  %v7506_v41 = vld.sshfl [vmem:[#allocation1] sm:$0xff pattern:$0x75316420] }
 0x23e   : > { %9174 = vst [vmem:[#allocation54_spill] sm:$0xff] %v7506_v41  ;;  %v9175_v9 = vld [vmem:[#allocation43_spill] sm:$0xff]  ;;  %v9180_v41 = vrot.slane %v9170_v1, 1 }
 0x23f   : > { %2550 = vst [vmem:[#allocation1] ss:$2 sm:$0xff] %v6994_v48  ;;  %v1452_v16 = vmul.f32 %v9175_v9, %v9170_v1  ;;  %v1418_v48 = vadd.f32 %v1386_v32, %v7025_v61  ;;  %2296 = vrot.lane.b32.xlu1 %v7373_v37, %s5464_s20 }
 0x240   : > { %2552 = vst [vmem:[#allocation1 + $0x1] ss:$2 sm:$0xff] %v7309_v51  ;;  %v9176_v51 = vrot.slane %v6854_v8, 7  ;;  %v7536_v25 = vsel %vm976_vm4, %v9180_v41, %v9179_v38  ;;  %v7550_v59 = vpop.permute.xlu1 %2135  ;;  %v7552_v41 = vpop.permute.xlu2 %1985  ;;  %2349 = vrot.lane.b32.xlu2 %v7437_v11, %s5464_s20  ;;  %v1650_v11 = vmul.f32 %v9091_v18, %v6854_v8  ;;  %v9184_v38 = vld [vmem:[#allocation36_spill] sm:$0xff] }
 0x241   : > { %v1484_v32 = vadd.f32 %v1452_v16, %v1418_v48 }
 0x242   : > { %v925_v55 = vsel %vm829_vm3, %v9178_v10, %v9176_v51  ;;  %1931 = vrot.lane.b32.xlu0 %v1804_v13, %s5463_s5  ;;  %v7562_v10 = vpop.f32.mrf.mxu1  ;;  %v9187_v13 = vrot.slane %v9177_v57, 1 }
 0x243   : > { %v7547_v51 = vsel %vm747_vm6, %v925_v55, 0.0 }
 0x244   : > { %v2452_v27 = vld.sshfl [vmem:[#allocation1 + $0x10] sm:$0xff pattern:$0x75316420]  ;;  %v7556_v37 = vpop.permute.xlu0 %2021  ;;  %v1584_v48 = vmul.f32 %v9089_v22, %v7547_v51  ;;  %v7580_v42 = vsel %vm976_vm4, %v9188_v56, %v9187_v13 }
 0x245   : > { %2492 = vst [vmem:[#allocation1 + $0x10] ss:$2 sm:$0xff] %v1876_v30  ;;  %v1518_v30 = vmul.f32 %v9181_v14, %v7536_v25  ;;  %v1716_v56 = vmul.f32 %v9192_v31, %v7580_v42 }
 0x246   : > { %9182 = vst [vmem:[#allocation43_spill] sm:$0xff] %v7556_v37 }
 0x247   : > { %v7540_v61 = vld.sshfl [vmem:[#allocation1] sm:$0xff pattern:$0x75316420]  ;;  %v1550_v16 = vadd.f32 %v1518_v30, %v1484_v32  ;;  %v1198_v32 = vmul.f32 %v9184_v38, %v6983_v29  ;;  %v9185_v30 = vld [vmem:[#allocation37_spill] sm:$0xff] }
 0x248   : > { %2596 = vst [vmem:[#allocation1 + $0x1] ss:$2 sm:$0xff] %v7368_v33  ;;  %v9183_v33 = vld [vmem:[#allocation51_spill] sm:$0xff]  ;;  %v1264_v37 = vmul.f32 %v9185_v30, %v9177_v57  ;;  %2506 = vrot.lane.b32.xlu2 %v2504_v23, %s5464_s20 }
 0x249   : > { %2594 = vst [vmem:[#allocation1] ss:$2 sm:$0xff] %v7172_v12  ;;  %v8913_v55 = vrot.slane %v9183_v33, 4  ;;  %v1616_v12 = vadd.f32 %v1584_v48, %v1550_v16  ;;  %v1580_v16 = vmul.f32 %v9089_v22, %v7504_v28  ;;  %v7584_v48 = vpop.permute.xlu1 %1901  ;;  %v9194_v23 = vld [vmem:[#allocation47_spill] sm:$0xff] }
 0x24a   : > { %v1296_v13 = vadd.f32 %v1264_v37, %v1198_v32  ;;  %1989 = vrot.lane.b32.xlu0 %v7419_v58, %s5463_s5  ;;  %v7608_v37 = vpop.f32.mrf.mxu1  ;;  %v9195_v58 = vld [vmem:[#allocation39_spill] sm:$0xff] }
 0x24b   : > { %2023 = vrot.lane.b32.xlu1 %v8913_v55, %s5463_s5  ;;  %v9190_v55 = vld [vmem:[#allocation75_spill] sm:$0xff]  ;;  %v1682_v4 = vadd.f32 %v1650_v11, %v1616_v12  ;;  %v1612_v33 = vadd.f32 %v1580_v16, %v9193_v24  ;;  %v786_v24 = vrot.slane %v7608_v37, 7  ;;  %v8916_v32 = vrot.slane %v7608_v37, 1 }
 0x24c   : > { %v7588_v29 = vpop.permute.xlu0 %2005 }
 0x24d   : > { %9189 = vst [vmem:[#allocation45_spill] sm:$0xff] %v7588_v29  ;;  %v7603_v29 = vsel %vm975_vm5, %v9194_v23, 0.0  ;;  %v7614_v16 = vadd.f32 %v1716_v56, %v1682_v4 }
 0x24e   : > { %v1330_v11 = vmul.f32 %v9195_v58, %v7603_v29 }
 0x250   : > { %v7573_v44 = vld.sshfl [vmem:[#allocation1] sm:$0xff pattern:$0x75316420]  ;;  %v1362_v7 = vadd.f32 %v1330_v11, %v1296_v13  ;;  %2033 = vrot.lane.b32.xlu2 %v7614_v16, %s5463_s5 }
 0x251   : > { %9186 = vst [vmem:[#allocation48_spill] sm:$0xff] %v7573_v44  ;;  %v7591_v44 = vpop.permute.xlu2 %1993  ;;  %v7618_v36 = vpop.permute.xlu1 %1983 }
 0x252   : > { %2603 = vst [vmem:[#allocation1] ss:$2 sm:$0xff] %v7082_v62  ;;  %v1646_v62 = vmul.f32 %v9091_v18, %v9170_v1  ;;  %1973 = vrot.lane.b32.xlu0 %v7262_v43, %s5463_s5 }
 0x253   : > { %2605 = vst [vmem:[#allocation1 + $0x1] ss:$2 sm:$0xff] %v9190_v55  ;;  %2455 = vrot.lane.b32.xlu1 %v2452_v27, %s5464_s20  ;;  %v1712_v55 = vmul.f32 %v9192_v31, %v7536_v25  ;;  %v9196_v27 = vrot.slane %v7562_v10, 7 }
 0x254   : > { %9191 = vst [vmem:[#allocation36_spill] sm:$0xff] %v7591_v44  ;;  %v1678_v23 = vadd.f32 %v1646_v62, %v1612_v33  ;;  %v9197_v44 = vrot.slane %v7562_v10, 1  ;;  %v9198_v33 = vld [vmem:[#allocation42_spill] sm:$0xff]  ;;  %v7635_v56 = vpop.permute.xlu0 %2029  ;;  %v1462_v62 = vmul.f32 %v9175_v9, %v7608_v37 }
 0x255   : > { %v7623_v47 = vsel %vm829_vm3, %v9196_v27, %v786_v24  ;;  %9199 = vst [vmem:[#allocation37_spill] sm:$0xff] %v7635_v56 }
 0x256   : > { %v7630_v4 = vsel %vm976_vm4, %v8916_v32, %v9197_v44  ;;  %v1396_v13 = vmul.f32 %v5926_v26, %v7623_v47  ;;  %v7644_v11 = vadd.f32 %v1712_v55, %v1678_v23 }
 0x258   : > { %v1428_v44 = vadd.f32 %v1396_v13, %v1362_v7  ;;  %v9203_v13 = vrot.slane %v7285_v49, 4 }
 0x259   : > { %v1906_v27 = vpop.permute.xlu2 %1905  ;;  %v7653_v56 = vpop.permute.xlu1 %1991 }
 0x25a   : > { %v2610_v12 = vld.sshfl [vmem:[#allocation1] sm:$0xff pattern:$0x75316420]  ;;  %v7646_v32 = vadd.f32 %v1462_v62, %v1428_v44  ;;  %1909 = vrot.lane.b32.xlu0 %v7285_v49, %s5463_s5  ;;  %v1192_v62 = vmul.f32 %v9184_v38, %v7504_v28  ;;  %v1324_v44 = vmul.f32 %v9195_v58, %v7536_v25  ;;  %v1458_v49 = vmul.f32 %v9175_v9, %v9177_v57 }
 0x25b   : > { %2647 = vst [vmem:[#allocation1] ss:$2 sm:$0xff] %v9198_v33  ;;  %2031 = vrot.lane.b32.xlu1 %v7644_v11, %s5463_s5  ;;  %2612 = vrot.lane.b32.xlu2 %v2610_v12, %s5464_s20  ;;  %v1456_v28 = vmul.f32 %v9175_v9, %v6854_v8  ;;  %v1262_v25 = vmul.f32 %v9185_v30, %v6854_v8 }
 0x25c   : > { %2649 = vst [vmem:[#allocation1 + $0x1] ss:$2 sm:$0xff] %v7375_v21  ;;  %v1878_v45 = vpop.permute.xlu0 %1877  ;;  %v9201_v21 = vld [vmem:[#allocation70_spill] sm:$0xff]  ;;  %v1654_v8 = vmul.f32 %v9091_v18, %v7562_v10 }
 0x25d   : > { %2494 = vst [vmem:[#allocation1 + $0x11] ss:$2 sm:$0xff] %v1878_v45 }
 0x261   : > { %v7659_v43 = vpop.permute.xlu2 %2241  ;;  %v1904_v23 = vpop.permute.xlu1 %1903 }
 0x262   : > { %1917 = vrot.lane.b32.xlu0 %v9203_v13, %s5463_s5  ;;  %v9204_v13 = vld [vmem:[#allocation68_spill] sm:$0xff] }
 0x263   : > { %v7651_v33 = vld.sshfl [vmem:[#allocation1] sm:$0xff pattern:$0x75316420] }
 0x264   : > { %9200 = vst [vmem:[#allocation75_spill] sm:$0xff] %v7651_v33  ;;  %v7661_v7 = vpop.permute.xlu0 %2013  ;;  %v7665_v12 = vld.sshfl [vmem:[#allocation1 + $0x10] sm:$0xff pattern:$0x75316420] }
 0x265   : > { %2656 = vst [vmem:[#allocation1] ss:$2 sm:$0xff] %v9201_v21 }
 0x266   : > { %2658 = vst [vmem:[#allocation1 + $0x1] ss:$2 sm:$0xff] %v7407_v0  ;;  %v1258_v0 = vmul.f32 %v9185_v30, %v9170_v1  ;;  %v1524_v30 = vmul.f32 %v9181_v14, %v7603_v29 }
 0x267   : > { %9202 = vst [vmem:[#allocation67_spill] sm:$0xff] %v7661_v7  ;;  %v1490_v7 = vadd.f32 %v1458_v49, %v9204_v13 }
 0x268   : > { %2501 = vst [vmem:[#allocation1 + $0x10] ss:$2 sm:$0xff] %v7299_v19  ;;  %v1390_v19 = vmul.f32 %v5926_v26, %v7547_v51 }
 0x269   : > { %2503 = vst [vmem:[#allocation1 + $0x11] ss:$2 sm:$0xff] %v7435_v6  ;;  %v7672_v45 = vpop.permute.xlu2 %2137  ;;  %v1290_v6 = vadd.f32 %v1258_v0, %v1192_v62  ;;  %v1522_v0 = vmul.f32 %v9181_v14, %v7580_v42  ;;  %v7698_v62 = vpop.f32.mrf.mxu1 }
 0x26b   : > { %v1356_v1 = vadd.f32 %v1324_v44, %v1290_v6  ;;  %v1328_v6 = vmul.f32 %v9195_v58, %v7580_v42  ;;  %v1156_v42 = vsel %vm975_vm5, %v7630_v4, 0.0  ;;  %v867_v4 = vrot.slane %v7698_v62, 7 }
 0x26d   : > { %v7663_v55 = vld.sshfl [vmem:[#allocation1] sm:$0xff pattern:$0x75316420]  ;;  %v1422_v44 = vadd.f32 %v1390_v19, %v1356_v1 }
 0x26e   : > { %2702 = vst [vmem:[#allocation1 + $0x1] ss:$2 sm:$0xff] %v1906_v27  ;;  %v1886_v27 = vpop.permute.xlu0 %1885 }
 0x26f   : > { %2700 = vst [vmem:[#allocation1] ss:$2 sm:$0xff] %v1904_v23  ;;  %v1196_v23 = vmul.f32 %v9184_v38, %v7547_v51  ;;  %v1488_v51 = vadd.f32 %v1456_v28, %v1422_v44  ;;  %v8917_v38 = vrot.slane %v7614_v16, 4  ;;  %v1590_v44 = vmul.f32 %v9089_v22, %v7623_v47 }
 0x270   : > { %v2505_v21 = vld.sshfl [vmem:[#allocation1 + $0x10] sm:$0xff pattern:$0x75316420] }
 0x271   : > { %2545 = vst [vmem:[#allocation1 + $0x10] ss:$2 sm:$0xff] %v7409_v20  ;;  %2508 = vrot.lane.b32.xlu1 %v2505_v21, %s5464_s20  ;;  %v9205_v20 = vrot.slane %v7562_v10, 7  ;;  %v7702_v21 = vpop.permute.xlu2 %1913  ;;  %v1294_v49 = vadd.f32 %v1262_v25, %v1196_v23  ;;  %v1554_v13 = vadd.f32 %v1522_v0, %v1488_v51  ;;  %v9206_v23 = vrot.slane %v7608_v37, 1 }
 0x272   : > { %2547 = vst [vmem:[#allocation1 + $0x11] ss:$2 sm:$0xff] %v1886_v27  ;;  %v7700_v27 = vpop.permute.xlu1 %2188  ;;  %v9207_v0 = vrot.slane %v7562_v10, 1 }
 0x273   : > { %v927_v33 = vsel %vm829_vm3, %v786_v24, %v9205_v20  ;;  %v1656_v24 = vmul.f32 %v9091_v18, %v7608_v37  ;;  %v1556_v20 = vadd.f32 %v1524_v30, %v1490_v7  ;;  %v1360_v25 = vadd.f32 %v1328_v6, %v1294_v49 }
 0x274   : > { %v967_v19 = vsel %vm747_vm6, %v927_v33, 0.0  ;;  %v1030_v7 = vsel %vm976_vm4, %v9207_v0, %v9206_v23  ;;  %v1528_v49 = vmul.f32 %v9181_v14, %v1156_v42 }
 0x275   : > { %v1588_v28 = vmul.f32 %v9089_v22, %v967_v19  ;;  %v1622_v33 = vadd.f32 %v1590_v44, %v1556_v20  ;;  %v1720_v47 = vmul.f32 %v9192_v31, %v1030_v7  ;;  %v1394_v37 = vmul.f32 %v5926_v26, %v967_v19 }
 0x277   : > { %v1620_v58 = vadd.f32 %v1588_v28, %v1554_v13  ;;  %v1688_v30 = vadd.f32 %v1656_v24, %v1622_v33  ;;  %v7742_v28 = vld.sshfl [vmem:[#allocation1] sm:$0xff pattern:$0x75316420]  ;;  %v1426_v26 = vadd.f32 %v1394_v37, %v1360_v25  ;;  %v1863_v37 = vrot.slane %v7644_v11, 4 }
 0x279   : > { %v7715_v1 = vld.sshfl [vmem:[#allocation1 + $0x10] sm:$0xff pattern:$0x75316420]  ;;  %2041 = vrot.lane.b32.xlu1 %v8917_v38, %s5463_s5  ;;  %v1686_v51 = vadd.f32 %v1654_v8, %v1620_v58  ;;  %v1722_v38 = vmul.f32 %v9192_v31, %v1156_v42  ;;  %v1034_v8 = vrot.slane %v7698_v62, 1  ;;  %v7745_v44 = vpop.permute.xlu2 %1987  ;;  %v1968_v58 = vpop.permute.xlu0 %1967 }
 0x27a   : > { %2554 = vst [vmem:[#allocation1 + $0x10] ss:$2 sm:$0xff] %v7474_v5  ;;  %v1460_v5 = vmul.f32 %v9175_v9, %v7562_v10  ;;  %v1912_v13 = vpop.permute.xlu1 %1911  ;;  %v1560_v9 = vadd.f32 %v1528_v49, %v7646_v32  ;;  %v1526_v10 = vmul.f32 %v9181_v14, %v1030_v7  ;;  %v1658_v7 = vmul.f32 %v9091_v18, %v7698_v62 }
 0x27b   : > { %2556 = vst [vmem:[#allocation1 + $0x11] ss:$2 sm:$0xff] %v7513_v50  ;;  %v741_v50 = vpop.f32.mrf.mxu1  ;;  %v7740_v6 = vadd.f32 %v1720_v47, %v1686_v51  ;;  %v7747_v33 = vadd.f32 %v1722_v38, %v1688_v30 }
 0x27c   : > { %v788_v24 = vrot.slane %v741_v50, 7  ;;  %v1035_v20 = vrot.slane %v741_v50, 1  ;;  %2709 = vst [vmem:[#allocation1] ss:$2 sm:$0xff] %v1968_v58  ;;  %v1492_v32 = vadd.f32 %v1460_v5, %v1426_v26 }
 0x27d   : > { %2035 = vrot.lane.b32.xlu0 %v7740_v6, %s5463_s5 }
 0x27e   : > { %v869_v42 = vsel %vm829_vm3, %v867_v4, %v788_v24  ;;  %v929_v23 = vsel %vm829_vm3, %v788_v24, %v867_v4  ;;  %v1036_v14 = vsel %vm976_vm4, %v1034_v8, %v1035_v20  ;;  %v1558_v47 = vadd.f32 %v1526_v10, %v1492_v32 }
 0x27f   : > { %v971_v38 = vsel %vm747_vm6, %v929_v23, 0.0  ;;  %v1594_v0 = vmul.f32 %v9089_v22, %v869_v42  ;;  %v1724_v30 = vmul.f32 %v9192_v31, %v1036_v14  ;;  %v1116_v62 = vsel %vm976_vm4, %v1035_v20, %v1034_v8  ;;  %v9210_v42 = vld [vmem:[#allocation63_spill] sm:$0xff] }
 0x280   : > { %v1592_v25 = vmul.f32 %v9089_v22, %v971_v38 }
 0x281   : > { %v1626_v51 = vadd.f32 %v1594_v0, %v1560_v9  ;;  %v7767_v5 = vpop.permute.xlu2 %1971  ;;  %v1920_v49 = vpop.permute.xlu0 %1919  ;;  %v9211_v0 = vld [vmem:[#allocation69_spill] sm:$0xff] }
 0x282   : > { %v2558_v19 = vld.sshfl [vmem:[#allocation1 + $0x10] sm:$0xff pattern:$0x75316420]  ;;  %v1624_v54 = vadd.f32 %v1592_v25, %v1558_v47  ;;  %v1970_v4 = vpop.permute.xlu1 %1969  ;;  %v9212_v25 = vld [vmem:[#allocation46_spill] sm:$0xff] }
 0x283   : > { %2598 = vst [vmem:[#allocation1 + $0x10] ss:$2 sm:$0xff] %v7452_v35  ;;  %2561 = vrot.lane.b32.xlu2 %v2558_v19, %s5464_s20  ;;  %v1660_v35 = vmul.f32 %v9091_v18, %v741_v50  ;;  %v1160_v50 = vsel %vm975_vm5, %v1116_v62, 0.0  ;;  %v9220_v62 = vld [vmem:[#allocation80_spill] sm:$0xff] }
 0x284   : > { %2600 = vst [vmem:[#allocation1 + $0x11] ss:$2 sm:$0xff] %v7454_v46  ;;  %v1690_v46 = vadd.f32 %v1658_v7, %v1624_v54  ;;  %v1726_v9 = vmul.f32 %v9192_v31, %v1160_v50  ;;  %v9217_v54 = vld [vmem:[#allocation44_spill] sm:$0xff] }
 0x285   : > { %2711 = vst [vmem:[#allocation1 + $0x1] ss:$2 sm:$0xff] %v1970_v4  ;;  %v1692_v22 = vadd.f32 %v1660_v35, %v1626_v51  ;;  %v9214_v51 = vld [vmem:[#allocation57_spill] sm:$0xff] }
 0x286   : > { %v7772_v58 = vadd.f32 %v1724_v30, %v1690_v46  ;;  %v9219_v46 = vld [vmem:[#allocation56_spill] sm:$0xff] }
 0x287   : > { %v7787_v19 = vadd.f32 %v1726_v9, %v1692_v22  ;;  %v9221_v9 = vld [vmem:[#allocation76_spill] sm:$0xff] }
 0x288   : > { %2037 = vrot.lane.b32.xlu0 %v7772_v58, %s5463_s5  ;;  %v1869_v4 = vrot.slane %v7772_v58, 4 }
 0x289   : > { %v1908_v8 = vpop.permute.xlu2 %1907  ;;  %v2084_v20 = vpop.permute.xlu0 %2083 }
 0x28a   : > { %v1922_v26 = vpop.permute.xlu1 %1921  ;;  %4596 = vmatpush.xpose.msk.msrb.mxu1 %vm2085_vm7, %v2084_v20  ;;  %v9222_v20 = vld [vmem:[#allocation62_spill] sm:$0xff] }
 0x28b   : > { %v7770_v24 = vld.sshfl [vmem:[#allocation1 + $0x10] sm:$0xff pattern:$0x75316420]  ;;  %2039 = vrot.lane.b32.xlu2 %v1863_v37, %s5463_s5 }
 0x28c   : > { %2607 = vst [vmem:[#allocation1 + $0x10] ss:$2 sm:$0xff] %v7258_v17  ;;  %v7785_v10 = vld.sshfl [vmem:[#allocation1] sm:$0xff pattern:$0x75316420] }
 0x28d   : > { %2609 = vst [vmem:[#allocation1 + $0x11] ss:$2 sm:$0xff] %v7519_v15 }
 0x28e   : > { %2753 = vst [vmem:[#allocation1] ss:$2 sm:$0xff] %v1912_v13  ;;  %4597 = vmatpush.xpose.msk.msrb.mxu1 %vm2085_vm7, %v7370_v53 }
 0x28f   : > { %2755 = vst [vmem:[#allocation1 + $0x1] ss:$2 sm:$0xff] %v7702_v21  ;;  %v9208_v21 = vld [vmem:[#allocation59_spill] sm:$0xff] }
 0x290   : > { %2453 = vrot.lane.b32.xlu0 %v7444_v52, %s5464_s20 }
 0x291   : > { %v7803_v15 = vpop.permute.xlu2 %1915  ;;  %4598 = vmatmul.msk.f32.vlgmr.msrb.gmra.mxu1 %vm2085_vm7, %v9208_v21 }
 0x292   : > { %4600 = vmatpush.xpose.msk.msra.mxu1 %vm2085_vm7, %v7672_v45  ;;  %v7799_v17 = vpop.permute.xlu1 %1923  ;;  %v9209_v45 = vld [vmem:[#allocation64_spill] sm:$0xff] }
 0x294   : > { %v2611_v60 = vld.sshfl [vmem:[#allocation1 + $0x10] sm:$0xff pattern:$0x75316420] }
 0x295   : > { %2651 = vst [vmem:[#allocation1 + $0x10] ss:$2 sm:$0xff] %v7490_v39  ;;  %v1978_v39 = vpop.permute.xlu0 %1977 }
 0x296   : > { %2653 = vst [vmem:[#allocation1 + $0x11] ss:$2 sm:$0xff] %v7584_v48  ;;  %v7801_v31 = vld.sshfl [vmem:[#allocation1] sm:$0xff pattern:$0x75316420]  ;;  %4601 = vmatpush.xpose.msk.msra.mxu1 %vm2085_vm7, %v7550_v59  ;;  %v1867_v59 = vrot.slane %v7740_v6, 4 }
 0x297   : > { %2762 = vst [vmem:[#allocation1] ss:$2 sm:$0xff] %v7485_v2 }
 0x298   : > { %2764 = vst [vmem:[#allocation1 + $0x1] ss:$2 sm:$0xff] %v1978_v39  ;;  %2402 = vrot.lane.b32.xlu0 %v7472_v40, %s5464_s20 }
 0x299   : > { %v7818_v48 = vpop.permute.xlu2 %1925  ;;  %4599 = vmatmul.msk.f32.gmra.mxu1 %vm2085_vm7, %v9209_v45 }
 0x29a   : > { %v7816_v52 = vpop.permute.xlu1 %1997 }
 0x29d   : > { %v7810_v53 = vld.sshfl [vmem:[#allocation1 + $0x10] sm:$0xff pattern:$0x75316420]  ;;  %v1930_v2 = vpop.permute.xlu0 %1929 }
 0x29e   : > { %2662 = vst [vmem:[#allocation1 + $0x11] ss:$2 sm:$0xff] %v7469_v34 }
 0x29f   : > { %2660 = vst [vmem:[#allocation1 + $0x10] ss:$2 sm:$0xff] %v7467_v3  ;;  %v2769_v13 = vld.sshfl [vmem:[#allocation1] sm:$0xff pattern:$0x75316420] }
 0x2a0   : > { %2806 = vst [vmem:[#allocation1] ss:$2 sm:$0xff] %v1920_v49  ;;  %2043 = vrot.lane.b32.xlu0 %v1867_v59, %s5463_s5 }
 0x2a1   : > { %2808 = vst [vmem:[#allocation1 + $0x1] ss:$2 sm:$0xff] %v1922_v26  ;;  %v7827_v40 = vpop.permute.xlu2 %2025  ;;  %4602 = vmatmul.msk.f32.vlgmr.msra.gmra.mxu1 %vm2085_vm7, %v9210_v42 }
 0x2a2   : > { %v2244_v3 = vpop.permute.xlu1 %2243 }
 0x2a3   : > { %4608 = vmatpush.xpose.msk.msra.mxu3 %vm2085_vm7, %v2244_v3  ;;  %v9226_v3 = vld [vmem:[#allocation61_spill] sm:$0xff] }
 0x2a5   : > { %v7831_v23 = vpop.permute.xlu0 %1995 }
 0x2a6   : > { %v2664_v34 = vld.sshfl [vmem:[#allocation1 + $0x10] sm:$0xff pattern:$0x75316420] }
 0x2a7   : > { %2704 = vst [vmem:[#allocation1 + $0x10] ss:$2 sm:$0xff] %v1908_v8  ;;  %2667 = vrot.lane.b32.xlu1 %v2664_v34, %s5464_s20  ;;  %4609 = vmatpush.xpose.msk.msra.mxu3 %vm2085_vm7, %v7659_v43  ;;  %v9225_v34 = vld [vmem:[#allocation51_spill] sm:$0xff] }
 0x2a8   : > { %v7834_v38 = vld.sshfl [vmem:[#allocation1] sm:$0xff pattern:$0x75316420]  ;;  %2559 = vrot.lane.b32.xlu0 %v7540_v61, %s5464_s20  ;;  %v9213_v61 = vld [vmem:[#allocation49_spill] sm:$0xff] }
 0x2a9   : > { %2815 = vst [vmem:[#allocation1] ss:$2 sm:$0xff] %v7618_v36  ;;  %v7847_v14 = vpop.permute.xlu2 %2400  ;;  %4603 = vmatmul.msk.f32.gmra.mxu1 %vm2085_vm7, %v9212_v25  ;;  %v9227_v25 = vrot.slane %v9225_v34, 4 }
 0x2aa   : > { %2817 = vst [vmem:[#allocation1 + $0x1] ss:$2 sm:$0xff] %v7552_v41  ;;  %4610 = vmatmul.msk.f32.vlgmr.msra.gmra.mxu3 %vm2085_vm7, %v9211_v0  ;;  %v7844_v32 = vpop.permute.xlu1 %1981 }
 0x2ad   : > { %v2191_v36 = vpop.permute.xlu0 %2190 }
 0x2ae   : > { %4604 = vmatpush.xpose.msk.msra.mxu2 %vm2085_vm7, %v2191_v36 }
 0x2af   : > { %2771 = vrot.lane.b32.xlu1 %v2769_v13, %s5464_s20 }
 0x2b0   : > { %2665 = vrot.lane.b32.xlu0 %v7663_v55, %s5464_s20 }
 0x2b1   : > { %v7852_v41 = vld.sshfl [vmem:[#allocation1] sm:$0xff pattern:$0x75316420]  ;;  %v2350_v7 = vpop.permute.xlu2 %2349 }
 0x2b2   : > { %2859 = vst [vmem:[#allocation1] ss:$2 sm:$0xff] %v7515_v63  ;;  %4605 = vmatpush.xpose.msk.msra.mxu2 %vm2085_vm7, %v7700_v27  ;;  %4611 = vmatmul.msk.f32.gmra.mxu3 %vm2085_vm7, %v9213_v61  ;;  %v2348_v43 = vpop.permute.xlu1 %2347  ;;  %v9215_v63 = vld [vmem:[#allocation36_spill] sm:$0xff]  ;;  %v9216_v27 = vld [vmem:[#allocation41_spill] sm:$0xff]  ;;  %v9228_v61 = vrot.slane %v9226_v3, 4 }
 0x2b3   : > { %2861 = vst [vmem:[#allocation1 + $0x1] ss:$2 sm:$0xff] %v1930_v2  ;;  %4616 = vmatpush.xpose.msk.msrb.mxu3 %vm2085_vm7, %v2350_v7 }
 0x2b5   : > { %4606 = vmatmul.msk.f32.vlgmr.msra.gmra.mxu2 %vm2085_vm7, %v9214_v51  ;;  %v1980_v47 = vpop.permute.xlu0 %1979 }
 0x2b7   : > { %4617 = vmatpush.xpose.msk.msrb.mxu3 %vm2085_vm7, %v2348_v43 }
 0x2b8   : > { %2614 = vrot.lane.b32.xlu0 %v2611_v60, %s5464_s20 }
 0x2b9   : > { %v7918_v36 = vpop.permute.xlu2 %2506 }
 0x2ba   : > { %v7864_v35 = vld.sshfl [vmem:[#allocation1] sm:$0xff pattern:$0x75316420]  ;;  %v7870_v55 = vpop.permute.xlu1 %1933  ;;  %4618 = vmatmul.msk.f32.vlgmr.msrb.gmra.mxu3 %vm2085_vm7, %v9216_v27 }
 0x2bb   : > { %2868 = vst [vmem:[#allocation1] ss:$2 sm:$0xff] %v7653_v56  ;;  %v9218_v56 = vld [vmem:[#allocation60_spill] sm:$0xff] }
 0x2bc   : > { %2870 = vst [vmem:[#allocation1 + $0x1] ss:$2 sm:$0xff] %v9215_v63  ;;  %v9224_v45 = vrot.slane %v9218_v56, 4 }
 0x2bd   : > { %4607 = vmatmul.msk.f32.gmra.mxu2 %vm2085_vm7, %v9217_v54  ;;  %v2295_v30 = vpop.permute.xlu0 %2294  ;;  %v1652_v54 = vmul.f32 %v9091_v18, %v9177_v57 }
 0x2c0   : > { %2045 = vrot.lane.b32.xlu0 %v1869_v4, %s5463_s5 }
 0x2c2   : > { %v2297_v22 = vpop.permute.xlu1 %2296  ;;  %4619 = vmatmul.msk.f32.gmra.mxu3 %vm2085_vm7, %v9220_v62  ;;  %v9231_v62 = vld [vmem:[#allocation65_spill] sm:$0xff] }
 0x2c3   : > { %v7877_v49 = vld.sshfl [vmem:[#allocation1] sm:$0xff pattern:$0x75316420]  ;;  %4612 = vmatpush.xpose.msk.msrb.mxu2 %vm2085_vm7, %v2297_v22 }
 0x2c4   : > { %3267 = vst [vmem:[#allocation1 + $0x1] ss:$2 sm:$0xff] %v9218_v56  ;;  %v5109_v22 = vld [vmem:[#allocation10 + $0x18] ss:$0 sm:$0xff] }
 0x2c5   : > { %3265 = vst [vmem:[#allocation1] ss:$2 sm:$0xff] %v9219_v46  ;;  %v7886_v50 = vpop.permute.xlu0 %1931 }
 0x2c7   : > { %4613 = vmatpush.xpose.msk.msrb.mxu2 %vm2085_vm7, %v2295_v30  ;;  %v9229_v30 = vrot.slane %v7614_v16, 4 }
 0x2c8   : > { %2718 = vrot.lane.b32.xlu0 %v7785_v10, %s5464_s20  ;;  %v9223_v10 = vrot.slane %v9219_v46, 4 }
 0x2ca   : > { %4614 = vmatmul.msk.f32.vlgmr.msrb.gmra.mxu2 %vm2085_vm7, %v9221_v9  ;;  %v7894_v26 = vpop.permute.xlu1 %2023 }
 0x2cc   : > { %v7901_v39 = vld.sshfl [vmem:[#allocation1] sm:$0xff pattern:$0x75316420] }
 0x2cd   : > { %v1990_v8 = vpop.permute.xlu0 %1989  ;;  %3305 = vst [vmem:[#allocation1] ss:$2 sm:$0xff] %v9223_v10 }
 0x2ce   : > { %3307 = vst [vmem:[#allocation1 + $0x1] ss:$2 sm:$0xff] %v9224_v45 }
 0x2d0   : > { %2051 = vrot.lane.b32.xlu0 %v7747_v33, %s5463_s5 }
 0x2d2   : > { %4615 = vmatmul.msk.f32.gmra.mxu2 %vm2085_vm7, %v9222_v20  ;;  %v2456_v60 = vpop.permute.xlu1 %2455  ;;  %v1864_v20 = vrot.slane %v9231_v62, 4 }
 0x2d3   : > { %4624 = vmatpush.xpose.msk.msra.mxu3 %vm2085_vm7, %v2456_v60 }
 0x2d5   : > { %v1974_v21 = vpop.permute.xlu0 %1973  ;;  %v7907_v13 = vld.sshfl [vmem:[#allocation1] sm:$0xff pattern:$0x75316420] }
 0x2d6   : > { %3345 = vst [vmem:[#allocation1] ss:$2 sm:$0xff] %v9225_v34  ;;  %v9234_v34 = vld [vmem:[#allocation79_spill] sm:$0xff] }
 0x2d7   : > { %3347 = vst [vmem:[#allocation1 + $0x1] ss:$2 sm:$0xff] %v9226_v3 }
 0x2da   : > { %v7955_v18 = vpop.permute.xlu1 %2031 }
 0x2dd   : > { %v1910_v2 = vpop.permute.xlu0 %1909 }
 0x2de   : > { %2706 = vst [vmem:[#allocation1 + $0x11] ss:$2 sm:$0xff] %v1910_v2  ;;  %v7914_v0 = vld.sshfl [vmem:[#allocation1] sm:$0xff pattern:$0x75316420] }
 0x2df   : > { %3385 = vst [vmem:[#allocation1] ss:$2 sm:$0xff] %v9227_v25 }
 0x2e0   : > { %3387 = vst [vmem:[#allocation1 + $0x1] ss:$2 sm:$0xff] %v9228_v61 }
 0x2e5   : > { %v7911_v42 = vld.sshfl [vmem:[#allocation1 + $0x10] sm:$0xff pattern:$0x75316420]  ;;  %v1918_v43 = vpop.permute.xlu0 %1917 }
 0x2e6   : > { %2713 = vst [vmem:[#allocation1 + $0x10] ss:$2 sm:$0xff] %v7767_v5  ;;  %v7928_v5 = vpop.permute.xlu2 %2033 }
 0x2e7   : > { %2715 = vst [vmem:[#allocation1 + $0x11] ss:$2 sm:$0xff] %v1974_v21  ;;  %v7924_v51 = vld.sshfl [vmem:[#allocation1] sm:$0xff pattern:$0x75316420] }
 0x2e8   : > { %3425 = vst [vmem:[#allocation1] ss:$2 sm:$0xff] %v7644_v11 }
 0x2e9   : > { %3427 = vst [vmem:[#allocation1 + $0x1] ss:$2 sm:$0xff] %v7614_v16 }
 0x2ee   : > { %v2717_v7 = vld.sshfl [vmem:[#allocation1 + $0x10] sm:$0xff pattern:$0x75316420]  ;;  %v7947_v46 = vpop.permute.xlu2 %2612 }
 0x2ef   : > { %2757 = vst [vmem:[#allocation1 + $0x10] ss:$2 sm:$0xff] %v7803_v15  ;;  %2720 = vrot.lane.b32.xlu1 %v2717_v7, %s5464_s20  ;;  %v7930_v63 = vpop.permute.xlu0 %2035  ;;  %v9237_v7 = vld [vmem:[#allocation83_spill] sm:$0xff] }
 0x2f0   : > { %2759 = vst [vmem:[#allocation1 + $0x11] ss:$2 sm:$0xff] %v1918_v43  ;;  %v7937_v15 = vld.sshfl [vmem:[#allocation1] sm:$0xff pattern:$0x75316420] }
 0x2f1   : > { %3465 = vst [vmem:[#allocation1] ss:$2 sm:$0xff] %v1863_v37 }
 0x2f2   : > { %3467 = vst [vmem:[#allocation1 + $0x1] ss:$2 sm:$0xff] %v9229_v30  ;;  %v9239_v30 = vld [vmem:[#allocation78_spill] sm:$0xff] }
 0x2f6   : > { %v2562_v11 = vpop.permute.xlu2 %2561 }
 0x2f7   : > { %v7932_v27 = vld.sshfl [vmem:[#allocation1 + $0x10] sm:$0xff pattern:$0x75316420]  ;;  %2824 = vrot.lane.b32.xlu1 %v7852_v41, %s5464_s20  ;;  %v1718_v41 = vmul.f32 %v5109_v22, %v7603_v29  ;;  %v9240_v22 = vld [vmem:[#allocation54_spill] sm:$0xff] }
 0x2f8   : > { %2766 = vst [vmem:[#allocation1 + $0x10] ss:$2 sm:$0xff] %v1980_v47  ;;  %v9230_v47 = vld [vmem:[#allocation50_spill] sm:$0xff] }
 0x2f9   : > { %2768 = vst [vmem:[#allocation1 + $0x11] ss:$2 sm:$0xff] %v7844_v32  ;;  %v1684_v32 = vadd.f32 %v1652_v54, %v9230_v47  ;;  %v7960_v16 = vld.sshfl [vmem:[#allocation1] sm:$0xff pattern:$0x75316420]  ;;  %v9241_v47 = vld [vmem:[#allocation84_spill] sm:$0xff] }
 0x2fa   : > { %v7945_v56 = vpop.permute.xlu0 %2037  ;;  %3505 = vst [vmem:[#allocation1] ss:$2 sm:$0xff] %v9231_v62 }
 0x2fb   : > { %v7958_v57 = vadd.f32 %v1718_v41, %v1684_v32 }
 0x2fd   : > { %3507 = vst [vmem:[#allocation1 + $0x1] ss:$2 sm:$0xff] %v7958_v57  ;;  %v1866_v60 = vrot.slane %v7958_v57, 4 }
 0x2ff   : > { %2047 = vrot.lane.b32.xlu1 %v9231_v62, %s5463_s5 }
 0x300   : > { %v2770_v9 = vld.sshfl [vmem:[#allocation1 + $0x10] sm:$0xff pattern:$0x75316420] }
 0x301   : > { %2810 = vst [vmem:[#allocation1 + $0x10] ss:$2 sm:$0xff] %v7799_v17  ;;  %2773 = vrot.lane.b32.xlu2 %v2770_v9, %s5464_s20  ;;  %v9232_v17 = vld [vmem:[#allocation81_spill] sm:$0xff]  ;;  %v9243_v9 = vld [vmem:[#allocation74_spill] sm:$0xff] }
 0x302   : > { %2812 = vst [vmem:[#allocation1 + $0x11] ss:$2 sm:$0xff] %v7818_v48  ;;  %v2454_v29 = vpop.permute.xlu0 %2453  ;;  %v2509_v48 = vpop.permute.xlu1 %2508 }
 0x303   : > { %4625 = vmatpush.xpose.msk.msra.mxu3 %vm2085_vm7, %v2454_v29 }
 0x304   : > { %v7975_v21 = vld.sshfl [vmem:[#allocation1] sm:$0xff pattern:$0x75316420] }
 0x305   : > { %3545 = vst [vmem:[#allocation1] ss:$2 sm:$0xff] %v1864_v20 }
 0x306   : > { %4626 = vmatmul.msk.f32.vlgmr.msra.gmra.mxu3 %vm2085_vm7, %v9232_v17  ;;  %3547 = vst [vmem:[#allocation1 + $0x1] ss:$2 sm:$0xff] %v1866_v60  ;;  %v9244_v17 = vld [vmem:[#allocation73_spill] sm:$0xff] }
 0x307   : > { %4632 = vmatpush.xpose.msk.msrb.mxu3 %vm2085_vm7, %v2562_v11 }
 0x309   : > { %v7966_v37 = vld.sshfl [vmem:[#allocation1 + $0x10] sm:$0xff pattern:$0x75316420]  ;;  %2877 = vrot.lane.b32.xlu2 %v7877_v49, %s5464_s20  ;;  %v9233_v49 = vld [vmem:[#allocation86_spill] sm:$0xff] }
 0x30a   : > { %2819 = vst [vmem:[#allocation1 + $0x10] ss:$2 sm:$0xff] %v7745_v44  ;;  %v2403_v10 = vpop.permute.xlu0 %2402  ;;  %v7992_v45 = vpop.permute.xlu1 %2041 }
 0x30b   : > { %2821 = vst [vmem:[#allocation1 + $0x11] ss:$2 sm:$0xff] %v1990_v8  ;;  %4620 = vmatpush.xpose.msk.msra.mxu2 %vm2085_vm7, %v2403_v10 }
 0x30d   : > { %v7998_v3 = vld.sshfl [vmem:[#allocation1] sm:$0xff pattern:$0x75316420] }
 0x30e   : > { %4627 = vmatmul.msk.f32.gmra.mxu3 %vm2085_vm7, %v9233_v49  ;;  %v7986_v8 = vpop.f32.mrf.mxu1 }
 0x30f   : > { %4621 = vmatpush.xpose.msk.msra.mxu2 %vm2085_vm7, %v7847_v14  ;;  %v9235_v14 = vld [vmem:[#allocation72_spill] sm:$0xff] }
 0x310   : > { %3585 = vst [vmem:[#allocation1] ss:$2 sm:$0xff] %v9235_v14 }
 0x312   : > { %v2823_v44 = vld.sshfl [vmem:[#allocation1 + $0x10] sm:$0xff pattern:$0x75316420]  ;;  %v7994_v2 = vpop.permute.xlu0 %2043  ;;  %4622 = vmatmul.msk.f32.vlgmr.msra.gmra.mxu2 %vm2085_vm7, %v9234_v34 }
 0x313   : > { %2863 = vst [vmem:[#allocation1 + $0x10] ss:$2 sm:$0xff] %v7886_v50  ;;  %4628 = vmatpush.xpose.msk.msrb.mxu2 %vm2085_vm7, %v2509_v48  ;;  %2826 = vrot.lane.b32.xlu2 %v2823_v44, %s5464_s20  ;;  %v9236_v50 = vld [vmem:[#allocation71_spill] sm:$0xff]  ;;  %v9245_v48 = vld [vmem:[#allocation58_spill] sm:$0xff] }
 0x314   : > { %2865 = vst [vmem:[#allocation1 + $0x11] ss:$2 sm:$0xff] %v7870_v55 }
 0x315   : > { %3587 = vst [vmem:[#allocation1 + $0x1] ss:$2 sm:$0xff] %v9236_v50 }
 0x316   : > { %v8004_v25 = vpop.f32.mrf.mxu1 }
 0x317   : > { %4629 = vmatpush.xpose.msk.msrb.mxu2 %vm2085_vm7, %v7918_v36  ;;  %v9238_v36 = vld [vmem:[#allocation66_spill] sm:$0xff] }
 0x319   : > { %v2668_v55 = vpop.permute.xlu1 %2667 }
 0x31a   : > { %v2560_v43 = vpop.permute.xlu0 %2559  ;;  %4623 = vmatmul.msk.f32.gmra.mxu2 %vm2085_vm7, %v9237_v7 }
 0x31b   : > { %v8006_v61 = vld.sshfl [vmem:[#allocation1 + $0x10] sm:$0xff pattern:$0x75316420]  ;;  %4633 = vmatpush.xpose.msk.msrb.mxu3 %vm2085_vm7, %v2560_v43 }
 0x31c   : > { %2872 = vst [vmem:[#allocation1 + $0x10] ss:$2 sm:$0xff] %v7831_v23  ;;  %v8013_v54 = vld.sshfl [vmem:[#allocation1] sm:$0xff pattern:$0x75316420] }
 0x31d   : > { %2874 = vst [vmem:[#allocation1 + $0x11] ss:$2 sm:$0xff] %v7816_v52  ;;  %v9242_v52 = vld [vmem:[#allocation53_spill] sm:$0xff] }
 0x31e   : > { %3625 = vst [vmem:[#allocation1] ss:$2 sm:$0xff] %v9238_v36  ;;  %4634 = vmatmul.msk.f32.vlgmr.msrb.gmra.mxu3 %vm2085_vm7, %v9240_v22  ;;  %v8024_v32 = vpop.f32.mrf.mxu1  ;;  %v9248_v50 = vrot.slane %v9242_v52, 4  ;;  %v9251_v36 = vld [vmem:[#allocation40_spill] sm:$0xff] }
 0x31f   : > { %4640 = vmatpush.xpose.msk.msra.mxu3 %vm2085_vm7, %v2668_v55  ;;  %3627 = vst [vmem:[#allocation1 + $0x1] ss:$2 sm:$0xff] %v9239_v30  ;;  %v2919_v11 = vsel %vm2912_vm8, %v8024_v32, -inf  ;;  %v9249_v55 = vrot.slane %v9243_v9, 4 }
 0x322   : > { %v2666_v41 = vpop.permute.xlu0 %2665  ;;  %4630 = vmatmul.msk.f32.vlgmr.msrb.gmra.mxu2 %vm2085_vm7, %v9241_v47 }
 0x323   : > { %4641 = vmatpush.xpose.msk.msra.mxu3 %vm2085_vm7, %v2666_v41  ;;  %v9253_v41 = vrot.slane %v9251_v36, 4 }
 0x324   : > { %v2876_v23 = vld.sshfl [vmem:[#allocation1 + $0x10] sm:$0xff pattern:$0x75316420] }
 0x325   : > { %2879 = vrot.lane.b32.xlu0 %v2876_v23, %s5464_s20  ;;  %3269 = vst [vmem:[#allocation1 + $0x10] ss:$2 sm:$0xff] %v9242_v52 }
 0x326   : > { %3271 = vst [vmem:[#allocation1 + $0x11] ss:$2 sm:$0xff] %v9243_v9  ;;  %v8028_v29 = vld.sshfl [vmem:[#allocation1] sm:$0xff pattern:$0x75316420]  ;;  %4635 = vmatmul.msk.f32.gmra.mxu3 %vm2085_vm7, %v7715_v1  ;;  %v8075_v7 = vpop.f32.mrf.mxu1 }
 0x327   : > { %3665 = vst [vmem:[#allocation1] ss:$2 sm:$0xff] %v9244_v17  ;;  %v9246_v1 = vld [vmem:[#allocation75_spill] sm:$0xff]  ;;  %v2913_v17 = vsel %vm2912_vm8, %v7986_v8, -inf }
 0x328   : > { %3667 = vst [vmem:[#allocation1 + $0x1] ss:$2 sm:$0xff] %v9245_v48 }
 0x329   : > { %2920 = vmax.xlane.f32.xlu1 %v2919_v11 }
 0x32a   : > { %4631 = vmatmul.msk.f32.gmra.mxu2 %vm2085_vm7, %v7665_v12  ;;  %v2615_v10 = vpop.permute.xlu0 %2614  ;;  %v9247_v12 = vld [vmem:[#allocation48_spill] sm:$0xff] }
 0x32b   : > { %4636 = vmatpush.xpose.msk.msra.mxu2 %vm2085_vm7, %v2615_v10 }
 0x32d   : > { %2053 = vrot.lane.b32.xlu0 %v7787_v19, %s5463_s5  ;;  %v8041_v49 = vpop.f32.mrf.mxu3  ;;  %v8055_v14 = vld.sshfl [vmem:[#allocation1 + $0x10] sm:$0xff pattern:$0x75316420] }
 0x32e   : > { %v2931_v44 = vsel %vm2912_vm8, %v8041_v49, -inf  ;;  %4642 = vmatmul.msk.f32.vlgmr.msra.gmra.mxu3 %vm2085_vm7, %v9246_v1  ;;  %3309 = vst [vmem:[#allocation1 + $0x10] ss:$2 sm:$0xff] %v9248_v50 }
 0x32f   : > { %v8045_v34 = vld.sshfl [vmem:[#allocation1] sm:$0xff pattern:$0x75316420]  ;;  %4637 = vmatpush.xpose.msk.msra.mxu2 %vm2085_vm7, %v7947_v46  ;;  %3311 = vst [vmem:[#allocation1 + $0x11] ss:$2 sm:$0xff] %v9249_v55 }
 0x330   : > { %3705 = vst [vmem:[#allocation1] ss:$2 sm:$0xff] %v7894_v26 }
 0x331   : > { %2932 = vmax.xlane.f32.xlu1 %v2931_v44  ;;  %3707 = vst [vmem:[#allocation1 + $0x1] ss:$2 sm:$0xff] %v7827_v40  ;;  %v2916_v40 = vsel %vm2912_vm8, %v8004_v25, -inf  ;;  %v2772_v44 = vpop.permute.xlu1 %2771 }
 0x332   : > { %4638 = vmatmul.msk.f32.vlgmr.msra.gmra.mxu2 %vm2085_vm7, %v9247_v12  ;;  %v8112_v12 = vpop.permute.xlu0 %2045 }
 0x335   : > { %v8101_v11 = vpop.f32.mrf.mxu3 }
 0x336   : > { %4643 = vmatmul.msk.f32.gmra.mxu3 %vm2085_vm7, %v7810_v53  ;;  %v8073_v43 = vld.sshfl [vmem:[#allocation1 + $0x10] sm:$0xff pattern:$0x75316420]  ;;  %v9250_v53 = vld [vmem:[#allocation52_spill] sm:$0xff] }
 0x337   : > { %3349 = vst [vmem:[#allocation1 + $0x10] ss:$2 sm:$0xff] %v9250_v53  ;;  %v9252_v23 = vrot.slane %v9250_v53, 4 }
 0x338   : > { %v8063_v26 = vld.sshfl [vmem:[#allocation1] sm:$0xff pattern:$0x75316420]  ;;  %v8071_v46 = vpop.f32.mrf.mxu2  ;;  %3351 = vst [vmem:[#allocation1 + $0x11] ss:$2 sm:$0xff] %v9251_v36 }
 0x339   : > { %3745 = vst [vmem:[#allocation1] ss:$2 sm:$0xff] %v7955_v18  ;;  %v2040_v18 = vpop.permute.xlu2 %2039 }
 0x33a   : > { %3747 = vst [vmem:[#allocation1 + $0x1] ss:$2 sm:$0xff] %v7928_v5  ;;  %4639 = vmatmul.msk.f32.gmra.mxu2 %vm2085_vm7, %v7770_v24  ;;  %v2922_v5 = vsel %vm2912_vm8, %v8075_v7, -inf }
 0x33c   : > { %2917 = vmax.xlane.f32.xlu2 %v2916_v40  ;;  %v2925_v40 = vsel %vm2912_vm8, %v8071_v46, -inf }
 0x33d   : > { %v8119_v55 = vpop.f32.mrf.mxu3 }
 0x33e   : > { %v2943_v53 = vsel %vm2912_vm8, %v8119_v55, -inf }
 0x33f   : > { %v8086_v22 = vld.sshfl [vmem:[#allocation1 + $0x10] sm:$0xff pattern:$0x75316420] }
 0x340   : > { %v8084_v24 = vpop.f32.mrf.mxu2  ;;  %3389 = vst [vmem:[#allocation1 + $0x10] ss:$2 sm:$0xff] %v9252_v23  ;;  %v1870_v23 = vrot.slane %v7787_v19, 4 }
 0x341   : > { %v8079_v30 = vld.sshfl [vmem:[#allocation1] sm:$0xff pattern:$0x75316420]  ;;  %3391 = vst [vmem:[#allocation1 + $0x11] ss:$2 sm:$0xff] %v9253_v41  ;;  %v2928_v47 = vsel %vm2912_vm8, %v8084_v24, -inf }
 0x342   : > { %3785 = vst [vmem:[#allocation1] ss:$2 sm:$0xff] %v2040_v18 }
 0x343   : > { %3787 = vst [vmem:[#allocation1 + $0x1] ss:$2 sm:$0xff] %v7992_v45 }
 0x344   : > { %2923 = vmax.xlane.f32.xlu2 %v2922_v5  ;;  %v1868_v5 = vrot.slane %v7747_v33, 4 }
 0x348   : > { %v8098_v45 = vld.sshfl [vmem:[#allocation1 + $0x10] sm:$0xff pattern:$0x75316420] }
 0x349   : > { %3429 = vst [vmem:[#allocation1 + $0x10] ss:$2 sm:$0xff] %v7740_v6 }
 0x34a   : > { %3431 = vst [vmem:[#allocation1 + $0x11] ss:$2 sm:$0xff] %v7772_v58 }
 0x34c   : > { %2929 = vmax.xlane.f32.xlu2 %v2928_v47 }
 0x34d   : > { %v8094_v52 = vpop.f32.mrf.mxu2 }
 0x34e   : > { %v2937_v9 = vsel %vm2912_vm8, %v8094_v52, -inf }
 0x34f   : > { %2938 = vmax.xlane.f32.xlu1 %v2937_v9  ;;  %v8156_v9 = vld.sshfl [vmem:[#allocation1] sm:$0xff pattern:$0x75316420] }
 0x351   : > { %v8110_v1 = vld.sshfl [vmem:[#allocation1 + $0x10] sm:$0xff pattern:$0x75316420] }
 0x352   : > { %3469 = vst [vmem:[#allocation1 + $0x10] ss:$2 sm:$0xff] %v1867_v59  ;;  %v2719_v59 = vpop.permute.xlu0 %2718 }
 0x353   : > { %3471 = vst [vmem:[#allocation1 + $0x11] ss:$2 sm:$0xff] %v1869_v4  ;;  %v2934_v4 = vsel %vm2912_vm8, %v8101_v11, -inf }
 0x355   : > { %v8106_v48 = vpop.f32.mrf.mxu2 }
 0x356   : > { %v2940_v10 = vsel %vm2912_vm8, %v8106_v48, -inf }
 0x357   : > { %2914 = vmax.xlane.f32.xlu0 %v2913_v17  ;;  %2941 = vmax.xlane.f32.xlu2 %v2940_v10  ;;  %v9254_v10 = vld [vmem:[#allocation77_spill] sm:$0xff] }
 0x35a   : > { %v8127_v6 = vld.sshfl [vmem:[#allocation1 + $0x10] sm:$0xff pattern:$0x75316420] }
 0x35b   : > { %v2774_v50 = vpop.permute.xlu2 %2773  ;;  %3509 = vst [vmem:[#allocation1 + $0x10] ss:$2 sm:$0xff] %v7747_v33 }
 0x35c   : > { %4648 = vmatpush.xpose.msk.msrb.mxu3 %vm2085_vm7, %v2774_v50  ;;  %3511 = vst [vmem:[#allocation1 + $0x11] ss:$2 sm:$0xff] %v7787_v19  ;;  %v9258_v50 = vld [vmem:[#allocation38_spill] sm:$0xff] }
 0x35f   : > { %2926 = vmax.xlane.f32.xlu0 %v2925_v40  ;;  %2944 = vmax.xlane.f32.xlu2 %v2943_v53  ;;  %v9261_v53 = vld [vmem:[#allocation37_spill] sm:$0xff] }
 0x360   : > { %4649 = vmatpush.xpose.msk.msrb.mxu3 %vm2085_vm7, %v2772_v44  ;;  %v9255_v44 = vld [vmem:[#allocation45_spill] sm:$0xff] }
 0x361   : > { %v2721_v36 = vpop.permute.xlu1 %2720 }
 0x362   : > { %4644 = vmatpush.xpose.msk.msrb.mxu2 %vm2085_vm7, %v2721_v36 }
 0x363   : > { %4650 = vmatmul.msk.f32.vlgmr.msrb.gmra.mxu3 %vm2085_vm7, %v7801_v31  ;;  %v8131_v58 = vpop.permute.xlu2 %2877  ;;  %v8141_v31 = vpop.f32.mrf.mxu3  ;;  %v3513_v41 = vld.sshfl [vmem:[#allocation1 + $0x10] sm:$0xff pattern:$0x75316420] }
 0x364   : > { %3536 = vmatpush.msrb.mxu0 %v3513_v41  ;;  %3549 = vst [vmem:[#allocation1 + $0x10] ss:$2 sm:$0xff] %v1868_v5 }
 0x365   : > { %3551 = vst [vmem:[#allocation1 + $0x11] ss:$2 sm:$0xff] %v1870_v23 }
 0x366   : > { %4645 = vmatpush.xpose.msk.msrb.mxu2 %vm2085_vm7, %v2719_v59  ;;  %3537 = vmatpush.msrb.mxu0 %v7975_v21  ;;  %v9256_v21 = vld [vmem:[#allocation85_spill] sm:$0xff] }
 0x367   : > { %2935 = vmax.xlane.f32.xlu0 %v2934_v4 }
 0x369   : > { %4646 = vmatmul.msk.f32.vlgmr.msrb.gmra.mxu2 %vm2085_vm7, %v7742_v28  ;;  %v2825_v18 = vpop.permute.xlu1 %2824  ;;  %v2946_v28 = vsel %vm2912_vm8, %v8141_v31, -inf }
 0x36b   : > { %4651 = vmatmul.msk.f32.gmra.mxu3 %vm2085_vm7, %v7932_v27 }
 0x36c   : > { %v3553_v17 = vld.sshfl [vmem:[#allocation1 + $0x10] sm:$0xff pattern:$0x75316420] }
 0x36d   : > { %v2827_v47 = vpop.permute.xlu2 %2826  ;;  %3576 = vmatpush.msrb.mxu1 %v3553_v17  ;;  %3589 = vst [vmem:[#allocation1 + $0x10] ss:$2 sm:$0xff] %v9254_v10 }
 0x36e   : > { %4652 = vmatpush.xpose.msk.msra.mxu2 %vm2085_vm7, %v2827_v47  ;;  %3591 = vst [vmem:[#allocation1 + $0x11] ss:$2 sm:$0xff] %v9255_v44 }
 0x36f   : > { %2947 = vmax.xlane.f32.xlu0 %v2946_v28  ;;  %3577 = vmatpush.msrb.mxu1 %v7998_v3  ;;  %v9259_v3 = vld [vmem:[#allocation43_spill] sm:$0xff] }
 0x371   : > { %4647 = vmatmul.msk.f32.gmra.mxu2 %vm2085_vm7, %v7911_v42  ;;  %v2048_v27 = vpop.permute.xlu1 %2047 }
 0x372   : > { %4653 = vmatpush.xpose.msk.msra.mxu2 %vm2085_vm7, %v2825_v18  ;;  %3825 = vst [vmem:[#allocation1] ss:$2 sm:$0xff] %v2048_v27 }
 0x375   : > { %v8168_v42 = vld.sshfl [vmem:[#allocation1 + $0x10] sm:$0xff pattern:$0x75316420] }
 0x376   : > { %3296 = vmatpush.msrb.mxu2 %v8055_v14  ;;  %3629 = vst [vmem:[#allocation1 + $0x10] ss:$2 sm:$0xff] %v9256_v21  ;;  %v9257_v14 = vld [vmem:[#allocation67_spill] sm:$0xff] }
 0x377   : > { %3631 = vst [vmem:[#allocation1 + $0x11] ss:$2 sm:$0xff] %v9257_v14 }
 0x378   : > { %3297 = vmatpush.msrb.mxu2 %v7901_v39 }
 0x379   : > { %4654 = vmatmul.msk.f32.vlgmr.msra.gmra.mxu2 %vm2085_vm7, %v7834_v38 }
 0x37a   : > { %3376 = vmatpush.msra.mxu2 %v8086_v22  ;;  %v2052_v22 = vpop.permute.xlu0 %2051 }
 0x37c   : > { %3377 = vmatpush.msra.mxu2 %v7914_v0  ;;  %v9260_v0 = vld [vmem:[#allocation82_spill] sm:$0xff] }
 0x37e   : > { %v8174_v39 = vld.sshfl [vmem:[#allocation1 + $0x10] sm:$0xff pattern:$0x75316420] }
 0x37f   : > { %3669 = vst [vmem:[#allocation1 + $0x10] ss:$2 sm:$0xff] %v9258_v50 }
 0x380   : > { %3671 = vst [vmem:[#allocation1 + $0x11] ss:$2 sm:$0xff] %v9259_v3 }
 0x381   : > { %4655 = vmatmul.msk.f32.gmra.mxu2 %vm2085_vm7, %v7966_v37 }
 0x387   : > { %v3673_v40 = vld.sshfl [vmem:[#allocation1 + $0x10] sm:$0xff pattern:$0x75316420] }
 0x388   : > { %3696 = vmatpush.msra.mxu0 %v3673_v40  ;;  %3709 = vst [vmem:[#allocation1 + $0x10] ss:$2 sm:$0xff] %v9260_v0 }
 0x389   : > { %v8178_v38 = vpop.f32.mrf.mxu3  ;;  %3711 = vst [vmem:[#allocation1 + $0x11] ss:$2 sm:$0xff] %v9261_v53 }
 0x38a   : > { %3697 = vmatpush.msra.mxu0 %v8045_v34 }
 0x390   : > { %v3713_v18 = vld.sshfl [vmem:[#allocation1 + $0x10] sm:$0xff pattern:$0x75316420] }
 0x391   : > { %v8183_v36 = vpop.f32.mrf.mxu3  ;;  %3736 = vmatpush.msra.mxu1 %v3713_v18  ;;  %3749 = vst [vmem:[#allocation1 + $0x10] ss:$2 sm:$0xff] %v7930_v63 }
 0x392   : > { %v2958_v37 = vsel %vm2912_vm8, %v8183_v36, -inf  ;;  %3751 = vst [vmem:[#allocation1 + $0x11] ss:$2 sm:$0xff] %v7945_v56 }
 0x393   : > { %2959 = vmax.xlane.f32.xlu2 %v2958_v37  ;;  %3737 = vmatpush.msra.mxu1 %v8063_v26 }
 0x395   : > { %v8187_v4 = vpop.f32.mrf.mxu2 }
 0x396   : > { %v2949_v41 = vsel %vm2912_vm8, %v8187_v4, -inf }
 0x397   : > { %v2880_v59 = vpop.permute.xlu0 %2879  ;;  %2950 = vmax.xlane.f32.xlu0 %v2949_v41 }
 0x398   : > { %4656 = vmatpush.xpose.msk.msra.mxu3 %vm2085_vm7, %v2880_v59 }
 0x399   : > { %v8206_v56 = vld.sshfl [vmem:[#allocation1 + $0x10] sm:$0xff pattern:$0x75316420] }
 0x39a   : > { %3789 = vst [vmem:[#allocation1 + $0x10] ss:$2 sm:$0xff] %v7994_v2 }
 0x39b   : > { %3791 = vst [vmem:[#allocation1 + $0x11] ss:$2 sm:$0xff] %v8112_v12 }
 0x39c   : > { %4657 = vmatpush.xpose.msk.msra.mxu3 %vm2085_vm7, %v8131_v58  ;;  %v2921_v26 = vpop.xlane.xlu1 %2920 }
 0x39d   : > { %v8200_v34 = vpop.f32.mrf.mxu2 }
 0x39e   : > { %v2952_v63 = vsel %vm2912_vm8, %v8200_v34, -inf }
 0x39f   : > { %4658 = vmatmul.msk.f32.vlgmr.msra.gmra.mxu3 %vm2085_vm7, %v7864_v35  ;;  %2953 = vmax.xlane.f32.xlu1 %v2952_v63  ;;  %v3011_v35 = vsub.f32 %v8024_v32, %v2921_v26  ;;  %v2054_v58 = vpop.permute.xlu0 %2053 }
 0x3a0   : > { %3336 = vmatpush.msrb.mxu3 %v8073_v43  ;;  %v2955_v43 = vsel %vm2912_vm8, %v8178_v38, -inf }
 0x3a1   : > { %v3045_v2 = vmul.f32 1.442695, %v3011_v35  ;;  %v8222_v12 = vpop.f32.mrf.mxu3 }
 0x3a2   : > { %3337 = vmatpush.msrb.mxu3 %v7907_v13  ;;  %v2967_v47 = vsel %vm2912_vm8, %v8222_v12, -inf }
 0x3a3   : > { %4979 = vpow2.f32 %v3045_v2 }
 0x3a4   : > { %3416 = vmatpush.msra.mxu3 %v8098_v45  ;;  %v2933_v59 = vpop.xlane.xlu1 %2932 }
 0x3a5   : > { %v8214_v13 = vpop.f32.mrf.mxu2  ;;  %v3015_v41 = vsub.f32 %v8041_v49, %v2933_v59 }
 0x3a6   : > { %3417 = vmatpush.msra.mxu3 %v7924_v51  ;;  %v2961_v45 = vsel %vm2912_vm8, %v8214_v13, -inf  ;;  %v8220_v51 = vld.sshfl [vmem:[#allocation1 + $0x10] sm:$0xff pattern:$0x75316420] }
 0x3a7   : > { %4659 = vmatmul.msk.f32.gmra.mxu3 %vm2085_vm7, %v8006_v61  ;;  %2956 = vmax.xlane.f32.xlu1 %v2955_v43  ;;  %3829 = vst [vmem:[#allocation1 + $0x10] ss:$2 sm:$0xff] %v2052_v22  ;;  %v3053_v35 = vmul.f32 1.442695, %v3015_v41 }
 0x3a8   : > { %2962 = vmax.xlane.f32.xlu0 %v2961_v45  ;;  %3831 = vst [vmem:[#allocation1 + $0x11] ss:$2 sm:$0xff] %v2054_v58 }
 0x3a9   : > { %v8230_v27 = vpop.eup %4979  ;;  %v8232_v17 = vpop.f32.mrf.mxu3 }
 0x3aa   : > { %v2970_v21 = vsel %vm2912_vm8, %v8232_v17, -inf  ;;  %v3111_v14 = vsel %vm2912_vm8, %v8230_v27, 0.0 }
 0x3ad   : > { %v8224_v32 = vpop.f32.mrf.mxu2 }
 0x3ae   : > { %v2964_v28 = vsel %vm2912_vm8, %v8224_v32, -inf }
 0x3af   : > { %v2918_v61 = vpop.xlane.xlu2 %2917  ;;  %2968 = vmax.xlane.f32.xlu1 %v2967_v47 }
 0x3b0   : > { %2965 = vmax.xlane.f32.xlu0 %v2964_v28  ;;  %v3010_v45 = vsub.f32 %v8004_v25, %v2918_v61 }
 0x3b2   : > { %v3043_v49 = vmul.f32 1.442695, %v3010_v45 }
 0x3b5   : > { %v8239_v3 = vpop.f32.mrf.mxu2 }
 0x3b6   : > { %v2973_v0 = vsel %vm2912_vm8, %v8239_v3, -inf }
 0x3b7   : > { %v2924_v10 = vpop.xlane.xlu2 %2923  ;;  %2971 = vmax.xlane.f32.xlu1 %v2970_v21  ;;  %v8260_v21 = vpop.f32.mrf.mxu3 }
 0x3b8   : > { %v3012_v44 = vsub.f32 %v8075_v7, %v2924_v10  ;;  %3112 = vadd.xlane.f32.xlu0 %v3111_v14 }
 0x3ba   : > { %v3047_v50 = vmul.f32 1.442695, %v3012_v44 }
 0x3bc   : > { %4981 = vpow2.f32 %v3047_v50 }
 0x3bd   : > { %v8248_v18 = vpop.f32.mrf.mxu2 }
 0x3bf   : > { %v2930_v22 = vpop.xlane.xlu2 %2929  ;;  %2974 = vmax.xlane.f32.xlu1 %v2973_v0  ;;  %v8275_v0 = vpop.f32.mrf.mxu3 }
 0x3c0   : > { %v3014_v40 = vsub.f32 %v8084_v24, %v2930_v22  ;;  %v2976_v24 = vsel %vm2912_vm8, %v8248_v18, -inf }
 0x3c2   : > { %v8244_v53 = vpop.eup %4981  ;;  %v3051_v37 = vmul.f32 1.442695, %v3014_v40 }
 0x3c3   : > { %v3114_v7 = vsel %vm2912_vm8, %v8244_v53, 0.0 }
 0x3c4   : > { %3115 = vadd.xlane.f32.xlu0 %v3114_v7  ;;  %4983 = vpow2.f32 %v3051_v37  ;;  %v2939_v37 = vpop.xlane.xlu1 %2938 }
 0x3c5   : > { %v3017_v41 = vsub.f32 %v8094_v52, %v2939_v37 }
 0x3c7   : > { %2977 = vmax.xlane.f32.xlu1 %v2976_v24 }
 0x3ca   : > { %v2915_v63 = vpop.xlane.xlu0 %2914  ;;  %v2942_v43 = vpop.xlane.xlu2 %2941 }
 0x3cb   : > { %v3009_v26 = vsub.f32 %v7986_v8, %v2915_v63  ;;  %v8255_v2 = vpop.eup %4983  ;;  %v3018_v47 = vsub.f32 %v8106_v48, %v2942_v43 }
 0x3cc   : > { %v3120_v28 = vsel %vm2912_vm8, %v8255_v2, 0.0 }
 0x3cd   : > { %v3041_v58 = vmul.f32 1.442695, %v3009_v26  ;;  %v3059_v44 = vmul.f32 1.442695, %v3018_v47  ;;  %v2979_v47 = vsel %vm2912_vm8, %v8260_v21, -inf }
 0x3cf   : > { %4985 = vpow2.f32 %v3041_v58  ;;  %3121 = vadd.xlane.f32.xlu1 %v3120_v28 }
 0x3d0   : > { %4987 = vpow2.f32 %v3053_v35  ;;  %v3057_v35 = vmul.f32 1.442695, %v3017_v41 }
 0x3d1   : > { %4989 = vpow2.f32 %v3043_v49 }
 0x3d2   : > { %v2927_v10 = vpop.xlane.xlu0 %2926  ;;  %4991 = vpow2.f32 %v3059_v44 }
 0x3d3   : > { %v3013_v25 = vsub.f32 %v8071_v46, %v2927_v10 }
 0x3d5   : > { %v8262_v8 = vpop.eup %4985  ;;  %v3049_v14 = vmul.f32 1.442695, %v3013_v25  ;;  %v2945_v25 = vpop.xlane.xlu2 %2944 }
 0x3d6   : > { %v8265_v61 = vpop.eup %4987  ;;  %v3105_v48 = vsel %vm2912_vm8, %v8262_v8, 0.0 }
 0x3d7   : > { %3106 = vadd.xlane.f32.xlu2 %v3105_v48  ;;  %v3123_v50 = vsel %vm2912_vm8, %v8265_v61, 0.0  ;;  %v8271_v22 = vpop.eup %4989  ;;  %4993 = vpow2.f32 %v3049_v14  ;;  %v2982_v14 = vsel %vm2912_vm8, %v8275_v0, -inf }
 0x3d8   : > { %3124 = vadd.xlane.f32.xlu1 %v3123_v50  ;;  %v8273_v40 = vpop.eup %4991  ;;  %v3108_v46 = vsel %vm2912_vm8, %v8271_v22, 0.0  ;;  %4995 = vpow2.f32 %v3057_v35 }
 0x3d9   : > { %v3132_v7 = vsel %vm2912_vm8, %v8273_v40, 0.0 }
 0x3da   : > { %v2936_v43 = vpop.xlane.xlu0 %2935 }
 0x3db   : > { %v3016_v58 = vsub.f32 %v8101_v11, %v2936_v43  ;;  %v3019_v11 = vsub.f32 %v8119_v55, %v2945_v25 }
 0x3dd   : > { %v8281_v59 = vpop.eup %4993  ;;  %v3055_v10 = vmul.f32 1.442695, %v3016_v58 }
 0x3de   : > { %v3117_v24 = vsel %vm2912_vm8, %v8281_v59, 0.0  ;;  %v8301_v44 = vpop.eup %4995 }
 0x3df   : > { %3109 = vadd.xlane.f32.xlu2 %v3108_v46  ;;  %4997 = vpow2.f32 %v3055_v10  ;;  %v3129_v48 = vsel %vm2912_vm8, %v8301_v44, 0.0  ;;  %v3061_v46 = vmul.f32 1.442695, %v3019_v11 }
 0x3e0   : > { %3133 = vadd.xlane.f32.xlu1 %v3132_v7 }
 0x3e1   : > { %4999 = vpow2.f32 %v3061_v46 }
 0x3e2   : > { %v2948_v7 = vpop.xlane.xlu0 %2947 }
 0x3e3   : > { %v3020_v41 = vsub.f32 %v8141_v31, %v2948_v7 }
 0x3e5   : > { %v8310_v37 = vpop.eup %4997 }
 0x3e6   : > { %v8286_v63 = vpop.f32.mrf.mxu3 }
 0x3e7   : > { %3118 = vadd.xlane.f32.xlu2 %v3117_v24  ;;  %v2991_v26 = vsel %vm2912_vm8, %v8286_v63, -inf  ;;  %v3126_v24 = vsel %vm2912_vm8, %v8310_v37, 0.0  ;;  %v8319_v43 = vpop.eup %4999 }
 0x3e8   : > { %2992 = vmax.xlane.f32.xlu1 %v2991_v26  ;;  %v3063_v26 = vmul.f32 1.442695, %v3020_v41  ;;  %v3135_v31 = vsel %vm2912_vm8, %v8319_v43, 0.0 }
 0x3ea   : > { %5001 = vpow2.f32 %v3063_v26 }
 0x3ec   : > { %v8290_v45 = vpop.f32.mrf.mxu2 }
 0x3ed   : > { %v2985_v52 = vsel %vm2912_vm8, %v8290_v45, -inf }
 0x3ee   : > { %v8297_v49 = vpop.f32.mrf.mxu3  ;;  %2986 = vmax.xlane.f32.xlu0 %v2985_v52 }
 0x3ef   : > { %2980 = vmax.xlane.f32.xlu2 %v2979_v47  ;;  %v2994_v28 = vsel %vm2912_vm8, %v8297_v49, -inf }
 0x3f0   : > { %2995 = vmax.xlane.f32.xlu1 %v2994_v28  ;;  %v8325_v52 = vpop.eup %5001 }
 0x3f1   : > { %v3138_v10 = vsel %vm2912_vm8, %v8325_v52, 0.0 }
 0x3f4   : > { %v8308_v50 = vpop.f32.mrf.mxu2 }
 0x3f5   : > { %v2988_v55 = vsel %vm2912_vm8, %v8308_v50, -inf }
 0x3f6   : > { %3130 = vadd.xlane.f32.xlu0 %v3129_v48 }
 0x3f7   : > { %2983 = vmax.xlane.f32.xlu2 %v2982_v14 }
 0x3fc   : > { %v8317_v35 = vpop.f32.mrf.mxu2 }
 0x3fd   : > { %v2997_v58 = vsel %vm2912_vm8, %v8317_v35, -inf }
 0x3fe   : > { %2989 = vmax.xlane.f32.xlu0 %v2988_v55 }
 0x3ff   : > { %3127 = vadd.xlane.f32.xlu2 %v3126_v24 }
 0x406   : > { %2998 = vmax.xlane.f32.xlu0 %v2997_v58  ;;  %v2960_v24 = vpop.xlane.xlu2 %2959 }
 0x407   : > { %3136 = vadd.xlane.f32.xlu2 %v3135_v31  ;;  %v3024_v31 = vsub.f32 %v8183_v36, %v2960_v24 }
 0x40a   : > { %v2951_v47 = vpop.xlane.xlu0 %2950 }
 0x40b   : > { %v3021_v28 = vsub.f32 %v8187_v4, %v2951_v47  ;;  %v8335_v4 = vpop.f32.mrf.mxu2 }
 0x40c   : > { %v3000_v47 = vsel %vm2912_vm8, %v8335_v4, -inf }
 0x40d   : > { %v3065_v25 = vmul.f32 1.442695, %v3021_v28 }
 0x40f   : > { %3139 = vadd.xlane.f32.xlu2 %v3138_v10  ;;  %5003 = vpow2.f32 %v3065_v25  ;;  %v3071_v25 = vmul.f32 1.442695, %v3024_v31 }
 0x412   : > { %v2954_v11 = vpop.xlane.xlu1 %2953 }
 0x413   : > { %v3022_v14 = vsub.f32 %v8200_v34, %v2954_v11 }
 0x415   : > { %v8330_v48 = vpop.eup %5003  ;;  %v3067_v7 = vmul.f32 1.442695, %v3022_v14 }
 0x416   : > { %v3141_v46 = vsel %vm2912_vm8, %v8330_v48, 0.0 }
 0x417   : > { %3142 = vadd.xlane.f32.xlu0 %v3141_v46  ;;  %5005 = vpow2.f32 %v3067_v7 }
 0x41a   : > { %v2957_v41 = vpop.xlane.xlu1 %2956 }
 0x41b   : > { %v2963_v55 = vpop.xlane.xlu0 %2962  ;;  %v3023_v26 = vsub.f32 %v8178_v38, %v2957_v41 }
 0x41c   : > { %v3025_v34 = vsub.f32 %v8214_v13, %v2963_v55 }
 0x41d   : > { %v3069_v58 = vmul.f32 1.442695, %v3023_v26  ;;  %v8346_v14 = vpop.eup %5005 }
 0x41e   : > { %v3073_v46 = vmul.f32 1.442695, %v3025_v34  ;;  %v3144_v13 = vsel %vm2912_vm8, %v8346_v14, 0.0 }
 0x41f   : > { %5007 = vpow2.f32 %v3069_v58  ;;  %3001 = vmax.xlane.f32.xlu0 %v3000_v47 }
 0x420   : > { %5009 = vpow2.f32 %v3071_v25 }
 0x421   : > { %5011 = vpow2.f32 %v3073_v46 }
 0x422   : > { %v8342_v28 = vpop.f32.mrf.mxu3  ;;  %v2969_v11 = vpop.xlane.xlu1 %2968 }
 0x423   : > { %v3003_v10 = vsel %vm2912_vm8, %v8342_v28, -inf  ;;  %v2966_v38 = vpop.xlane.xlu0 %2965  ;;  %v3027_v25 = vsub.f32 %v8222_v12, %v2969_v11 }
 0x424   : > { %3004 = vmax.xlane.f32.xlu2 %v3003_v10  ;;  %v3026_v7 = vsub.f32 %v8224_v32, %v2966_v38 }
 0x425   : > { %v8348_v36 = vpop.eup %5007 }
 0x426   : > { %v3147_v24 = vsel %vm2912_vm8, %v8348_v36, 0.0  ;;  %v3075_v26 = vmul.f32 1.442695, %v3026_v7  ;;  %v8360_v47 = vpop.eup %5009 }
 0x427   : > { %3145 = vadd.xlane.f32.xlu0 %v3144_v13  ;;  %v8362_v34 = vpop.eup %5011  ;;  %v3150_v38 = vsel %vm2912_vm8, %v8360_v47, 0.0 }
 0x428   : > { %v3153_v46 = vsel %vm2912_vm8, %v8362_v34, 0.0 }
 0x42a   : > { %v8353_v41 = vpop.f32.mrf.mxu3  ;;  %v2972_v58 = vpop.xlane.xlu1 %2971 }
 0x42b   : > { %v3006_v55 = vsel %vm2912_vm8, %v8353_v41, -inf  ;;  %v3113_v31 = vpop.xlane.xlu0 %3112  ;;  %v3028_v32 = vsub.f32 %v8232_v17, %v2972_v58  ;;  %v3077_v17 = vmul.f32 1.442695, %v3027_v25 }
 0x42c   : > { %3007 = vmax.xlane.f32.xlu1 %v3006_v55  ;;  %3148 = vadd.xlane.f32.xlu2 %v3147_v24  ;;  %5013 = vrcp.f32 %v3113_v31 }
 0x42d   : > { %v3079_v10 = vmul.f32 1.442695, %v3028_v32  ;;  %5015 = vpow2.f32 %v3075_v26 }
 0x42f   : > { %5017 = vpow2.f32 %v3079_v10 }
 0x432   : > { %v5014_v7 = vpop.eup %5013  ;;  %v2975_v55 = vpop.xlane.xlu1 %2974 }
 0x433   : > { %v3235_v13 = vmul.f32 %v5014_v7, %v8230_v27  ;;  %v3029_v24 = vsub.f32 %v8239_v3, %v2975_v55  ;;  %v8371_v58 = vpop.eup %5015 }
 0x434   : > { %3151 = vadd.xlane.f32.xlu2 %v3150_v38  ;;  %3154 = vadd.xlane.f32.xlu1 %v3153_v46  ;;  %v3156_v3 = vsel %vm2912_vm8, %v8371_v58, 0.0 }
 0x435   : > { %4662 = vmatmul.msk.f32.vlgmr.msrb.gmra.mxu3 %vm2912_vm8, %v3235_v13  ;;  %v8374_v11 = vpop.eup %5017  ;;  %v3081_v26 = vmul.f32 1.442695, %v3029_v24 }
 0x436   : > { %3496 = vmatpush.msrb.mxu3 %v8127_v6  ;;  %v3162_v27 = vsel %vm2912_vm8, %v8374_v11, 0.0 }
 0x437   : > { %v3116_v12 = vpop.xlane.xlu0 %3115 }
 0x438   : > { %5019 = vrcp.f32 %v3116_v12  ;;  %3497 = vmatpush.msrb.mxu3 %v7960_v16 }
 0x439   : > { %5021 = vpow2.f32 %v3077_v17 }
 0x43a   : > { %5023 = vpow2.f32 %v3081_v26  ;;  %v2978_v31 = vpop.xlane.xlu1 %2977 }
 0x43b   : > { %v3030_v10 = vsub.f32 %v8248_v18, %v2978_v31 }
 0x43c   : > { %3163 = vadd.xlane.f32.xlu1 %v3162_v27  ;;  %3157 = vadd.xlane.f32.xlu2 %v3156_v3 }
 0x43d   : > { %v3083_v46 = vmul.f32 1.442695, %v3030_v10 }
 0x43e   : > { %v5020_v32 = vpop.eup %5019 }
 0x43f   : > { %v8383_v25 = vpop.eup %5021  ;;  %v3236_v6 = vmul.f32 %v5020_v32, %v8244_v53  ;;  %5025 = vpow2.f32 %v3083_v46 }
 0x440   : > { %v8386_v38 = vpop.eup %5023  ;;  %v3159_v7 = vsel %vm2912_vm8, %v8383_v25, 0.0 }
 0x441   : > { %v3165_v16 = vsel %vm2912_vm8, %v8386_v38, 0.0  ;;  %4663 = vmatmul.msk.f32.gmra.mxu3 %vm2912_vm8, %v3236_v6 }
 0x442   : > { %3166 = vadd.xlane.f32.xlu0 %v3165_v16  ;;  %v3122_v17 = vpop.xlane.xlu1 %3121 }
 0x444   : > { %3160 = vadd.xlane.f32.xlu2 %v3159_v7 }
 0x445   : > { %v8393_v18 = vpop.eup %5025 }
 0x446   : > { %v3168_v53 = vsel %vm2912_vm8, %v8393_v18, 0.0 }
 0x44a   : > { %3169 = vadd.xlane.f32.xlu0 %v3168_v53  ;;  %v3107_v13 = vpop.xlane.xlu2 %3106 }
 0x44b   : > { %5027 = vrcp.f32 %v3107_v13  ;;  %v3125_v55 = vpop.xlane.xlu1 %3124 }
 0x44c   : > { %5029 = vrcp.f32 %v3125_v55 }
 0x451   : > { %v5028_v24 = vpop.eup %5027 }
 0x452   : > { %v3233_v12 = vmul.f32 %v5028_v24, %v8262_v8  ;;  %v3110_v26 = vpop.xlane.xlu2 %3109  ;;  %v5030_v27 = vpop.eup %5029 }
 0x453   : > { %5031 = vrcp.f32 %v3110_v26  ;;  %v3239_v3 = vmul.f32 %v5030_v27, %v8265_v61 }
 0x454   : > { %4660 = vmatmul.msk.f32.vlgmr.msrb.gmra.mxu2 %vm2912_vm8, %v3233_v12 }
 0x455   : > { %3456 = vmatpush.msrb.mxu2 %v8110_v1  ;;  %4666 = vmatmul.msk.f32.vlgmr.msra.gmra.mxu3 %vm2912_vm8, %v3239_v3 }
 0x456   : > { %3656 = vmatpush.msra.mxu3 %v8174_v39 }
 0x457   : > { %3457 = vmatpush.msrb.mxu2 %v7937_v15 }
 0x458   : > { %3657 = vmatpush.msra.mxu3 %v8028_v29 }
 0x459   : > { %v5032_v31 = vpop.eup %5031 }
 0x45a   : > { %v3119_v32 = vpop.xlane.xlu2 %3118  ;;  %v3234_v8 = vmul.f32 %v5032_v31, %v8271_v22 }
 0x45b   : > { %5033 = vrcp.f32 %v3119_v32 }
 0x45c   : > { %2049 = vrot.lane.b32.xlu2 %v7958_v57, %s5463_s5  ;;  %4661 = vmatmul.msk.f32.gmra.mxu2 %vm2912_vm8, %v3234_v8  ;;  %5035 = vrcp.f32 %v3122_v17 }
 0x45e   : > { %2059 = vrot.lane.b32.xlu0 %v1868_v5, %s5463_s5 }
 0x461   : > { %v5034_v1 = vpop.eup %5033  ;;  %v2987_v15 = vpop.xlane.xlu0 %2986 }
 0x462   : > { %v3237_v39 = vmul.f32 %v5034_v1, %v8281_v59  ;;  %v2981_v61 = vpop.xlane.xlu2 %2980  ;;  %v3033_v10 = vsub.f32 %v8290_v45, %v2987_v15  ;;  %v5036_v33 = vpop.eup %5035 }
 0x463   : > { %v3031_v29 = vsub.f32 %v8260_v21, %v2981_v61  ;;  %v3238_v21 = vmul.f32 %v5036_v33, %v8255_v2 }
 0x464   : > { %4664 = vmatmul.msk.f32.vlgmr.msra.gmra.mxu2 %vm2912_vm8, %v3237_v39  ;;  %v3089_v5 = vmul.f32 1.442695, %v3033_v10  ;;  %v3833_v10 = vld.sshfl [vmem:[#allocation1 + $0x10] sm:$0xff pattern:$0x75316420] }
 0x465   : > { %v3085_v22 = vmul.f32 1.442695, %v3031_v29  ;;  %3616 = vmatpush.msra.mxu2 %v8168_v42  ;;  %v3134_v42 = vpop.xlane.xlu1 %3133 }
 0x466   : > { %2061 = vrot.lane.b32.xlu0 %v1870_v23, %s5463_s5 }
 0x467   : > { %5037 = vpow2.f32 %v3085_v22  ;;  %3617 = vmatpush.msra.mxu2 %v8013_v54 }
 0x469   : > { %v3131_v59 = vpop.xlane.xlu0 %3130 }
 0x46a   : > { %v2984_v6 = vpop.xlane.xlu2 %2983  ;;  %5039 = vrcp.f32 %v3131_v59 }
 0x46b   : > { %5041 = vpow2.f32 %v3089_v5  ;;  %v3032_v54 = vsub.f32 %v8275_v0, %v2984_v6 }
 0x46c   : > { %4665 = vmatmul.msk.f32.gmra.mxu2 %vm2912_vm8, %v3238_v21  ;;  %5043 = vrcp.f32 %v3134_v42 }
 0x46d   : > { %v8423_v46 = vpop.eup %5037  ;;  %v3087_v17 = vmul.f32 1.442695, %v3032_v54  ;;  %v2993_v55 = vpop.xlane.xlu1 %2992 }
 0x46e   : > { %v3171_v19 = vsel %vm2912_vm8, %v8423_v46, 0.0 }
 0x46f   : > { %3172 = vadd.xlane.f32.xlu1 %v3171_v19 }
 0x470   : > { %v5040_v23 = vpop.eup %5039 }
 0x471   : > { %v8427_v45 = vpop.xlane.xlu0 %2989  ;;  %v3241_v16 = vmul.f32 %v5040_v23, %v8301_v44  ;;  %v8431_v7 = vpop.eup %5041  ;;  %v3035_v44 = vsub.f32 %v8286_v63, %v2993_v55 }
 0x472   : > { %v3128_v2 = vpop.xlane.xlu2 %3127  ;;  %v3177_v53 = vsel %vm2912_vm8, %v8431_v7, 0.0  ;;  %v5044_v13 = vpop.eup %5043 }
 0x473   : > { %5045 = vrcp.f32 %v3128_v2  ;;  %v3242_v26 = vmul.f32 %v5044_v13, %v8273_v40  ;;  %v3093_v27 = vmul.f32 1.442695, %v3035_v44 }
 0x474   : > { %4668 = vmatmul.msk.f32.vlgmr.msrb.gmra.mxu2 %vm2912_vm8, %v3241_v16  ;;  %5047 = vpow2.f32 %v3087_v17 }
 0x475   : > { %3776 = vmatpush.msrb.mxu2 %v8206_v56  ;;  %v8464_v22 = vpop.xlane.xlu1 %2995 }
 0x477   : > { %3178 = vadd.xlane.f32.xlu1 %v3177_v53  ;;  %3777 = vmatpush.msrb.mxu2 %v8079_v30 }
 0x479   : > { %v5046_v0 = vpop.eup %5045  ;;  %v2999_v56 = vpop.xlane.xlu0 %2998 }
 0x47a   : > { %v3137_v24 = vpop.xlane.xlu2 %3136  ;;  %v3240_v12 = vmul.f32 %v5046_v0, %v8310_v37  ;;  %v3037_v3 = vsub.f32 %v8317_v35, %v2999_v56  ;;  %v8444_v31 = vpop.eup %5047 }
 0x47b   : > { %5049 = vrcp.f32 %v3137_v24  ;;  %v3174_v40 = vsel %vm2912_vm8, %v8444_v31, 0.0 }
 0x47c   : > { %4667 = vmatmul.msk.f32.gmra.mxu3 %vm2912_vm8, %v3240_v12  ;;  %4669 = vmatmul.msk.f32.gmra.mxu2 %vm2912_vm8, %v3242_v26  ;;  %5051 = vpow2.f32 %v3093_v27  ;;  %v3097_v32 = vmul.f32 1.442695, %v3037_v3 }
 0x481   : > { %v5050_v30 = vpop.eup %5049 }
 0x482   : > { %v3243_v63 = vmul.f32 %v5050_v30, %v8319_v43  ;;  %v3140_v8 = vpop.xlane.xlu2 %3139  ;;  %v8452_v37 = vpop.eup %5051 }
 0x483   : > { %5053 = vrcp.f32 %v3140_v8  ;;  %v3183_v15 = vsel %vm2912_vm8, %v8452_v37, 0.0 }
 0x484   : > { %4670 = vmatmul.msk.f32.vlgmr.msrb.gmra.mxu3 %vm2912_vm8, %v3243_v63  ;;  %5055 = vpow2.f32 %v3097_v32  ;;  %v3034_v63 = vsub.f32 %v8308_v50, %v8427_v45 }
 0x485   : > { %3816 = vmatpush.msrb.mxu3 %v8220_v51  ;;  %3175 = vadd.xlane.f32.xlu2 %v3174_v40 }
 0x487   : > { %3817 = vmatpush.msrb.mxu3 %v8156_v9 }
 0x489   : > { %v5054_v35 = vpop.eup %5053 }
 0x48a   : > { %v3244_v1 = vmul.f32 %v5054_v35, %v8325_v52  ;;  %v8455_v43 = vpop.eup %5055  ;;  %v3143_v39 = vpop.xlane.xlu0 %3142 }
 0x48b   : > { %5057 = vrcp.f32 %v3143_v39  ;;  %v3189_v51 = vsel %vm2912_vm8, %v8455_v43, 0.0 }
 0x48c   : > { %4671 = vmatmul.msk.f32.gmra.mxu3 %vm2912_vm8, %v3244_v1  ;;  %v3091_v1 = vmul.f32 1.442695, %v3034_v63 }
 0x48d   : > { %3184 = vadd.xlane.f32.xlu2 %v3183_v15 }
 0x490   : > { %3190 = vadd.xlane.f32.xlu0 %v3189_v51 }
 0x491   : > { %v5058_v9 = vpop.eup %5057 }
 0x492   : > { %v3002_v61 = vpop.xlane.xlu0 %3001  ;;  %v3245_v29 = vmul.f32 %v5058_v9, %v8330_v48 }
 0x493   : > { %v3038_v52 = vsub.f32 %v8335_v4, %v3002_v61 }
 0x494   : > { %4672 = vmatmul.msk.f32.vlgmr.msrb.gmra.mxu0 %vm2912_vm8, %v3245_v29 }
 0x495   : > { %v3099_v5 = vmul.f32 1.442695, %v3038_v52  ;;  %3856 = vmatpush.msrb.mxu0 %v3833_v10 }
 0x497   : > { %v3005_v33 = vpop.xlane.xlu2 %3004  ;;  %5059 = vpow2.f32 %v3099_v5 }
 0x498   : > { %v3039_v59 = vsub.f32 %v8342_v28, %v3005_v33 }
 0x49a   : > { %v3101_v6 = vmul.f32 1.442695, %v3039_v59  ;;  %v3146_v21 = vpop.xlane.xlu0 %3145 }
 0x49c   : > { %5061 = vpow2.f32 %v3101_v6 }
 0x49d   : > { %5063 = vrcp.f32 %v3146_v21  ;;  %v8468_v48 = vpop.eup %5059 }
 0x49e   : > { %v3192_v23 = vsel %vm2912_vm8, %v8468_v48, 0.0 }
 0x49f   : > { %v3008_v42 = vpop.xlane.xlu1 %3007  ;;  %v3149_v19 = vpop.xlane.xlu2 %3148  ;;  %3193 = vadd.xlane.f32.xlu0 %v3192_v23 }
 0x4a0   : > { %v3040_v4 = vsub.f32 %v8353_v41, %v3008_v42  ;;  %5065 = vrcp.f32 %v3149_v19 }
 0x4a2   : > { %v8473_v54 = vpop.eup %5061  ;;  %v3103_v16 = vmul.f32 1.442695, %v3040_v4 }
 0x4a3   : > { %v3195_v28 = vsel %vm2912_vm8, %v8473_v54, 0.0  ;;  %v5064_v2 = vpop.eup %5063 }
 0x4a4   : > { %5067 = vpow2.f32 %v3103_v16  ;;  %3196 = vadd.xlane.f32.xlu1 %v3195_v28  ;;  %v3246_v41 = vmul.f32 %v5064_v2, %v8346_v14 }
 0x4a5   : > { %2055 = vrot.lane.b32.xlu2 %v1864_v20, %s5463_s5 }
 0x4a6   : > { %v5066_v17 = vpop.eup %5065  ;;  %4673 = vmatmul.msk.f32.gmra.mxu0 %vm2912_vm8, %v3246_v41 }
 0x4a7   : > { %v3247_v53 = vmul.f32 %v5066_v17, %v8348_v36  ;;  %v3152_v13 = vpop.xlane.xlu2 %3151  ;;  %v3155_v55 = vpop.xlane.xlu1 %3154 }
 0x4a8   : > { %5069 = vrcp.f32 %v3152_v13 }
 0x4a9   : > { %5071 = vrcp.f32 %v3155_v55  ;;  %4674 = vmatmul.msk.f32.vlgmr.msrb.gmra.mxu1 %vm2912_vm8, %v3247_v53 }
 0x4aa   : > { %v8484_v0 = vpop.eup %5067 }
 0x4ab   : > { %v3198_v44 = vsel %vm2912_vm8, %v8484_v0, 0.0 }
 0x4ac   : > { %3199 = vadd.xlane.f32.xlu0 %v3198_v44 }
 0x4ae   : > { %v5070_v62 = vpop.eup %5069 }
 0x4af   : > { %v5072_v20 = vpop.eup %5071  ;;  %v3158_v14 = vpop.xlane.xlu2 %3157  ;;  %v3248_v24 = vmul.f32 %v5070_v62, %v8360_v47 }
 0x4b0   : > { %v3249_v36 = vmul.f32 %v5072_v20, %v8362_v34  ;;  %5073 = vrcp.f32 %v3158_v14  ;;  %v3164_v3 = vpop.xlane.xlu1 %3163 }
 0x4b1   : > { %4675 = vmatmul.msk.f32.gmra.mxu1 %vm2912_vm8, %v3248_v24 }
 0x4b2   : > { %4676 = vmatmul.msk.f32.vlgmr.msra.gmra.mxu2 %vm2912_vm8, %v3249_v36 }
 0x4b5   : > { %v3167_v12 = vpop.xlane.xlu0 %3166 }
 0x4b6   : > { %5075 = vrcp.f32 %v3167_v12  ;;  %v5074_v26 = vpop.eup %5073 }
 0x4b7   : > { %v3161_v56 = vpop.xlane.xlu2 %3160  ;;  %v3250_v27 = vmul.f32 %v5074_v26, %v8371_v58 }
 0x4b8   : > { %5077 = vrcp.f32 %v3161_v56  ;;  %v8493_v30 = vpop.f32.mrf.mxu3 }
 0x4b9   : > { %v3923_v47 = vrot.slane %v8493_v30, 4  ;;  %5079 = vrcp.f32 %v3164_v3 }
 0x4ba   : > { %4677 = vmatmul.msk.f32.gmra.mxu2 %vm2912_vm8, %v3250_v27 }
 0x4bb   : > { %3981 = vst [vmem:[#allocation1 + $0x21] ss:$2 sm:$0xff] %v3923_v47 }
 0x4bc   : > { %v5076_v34 = vpop.eup %5075 }
 0x4bd   : > { %v3253_v32 = vmul.f32 %v5076_v34, %v8386_v38  ;;  %v3170_v8 = vpop.xlane.xlu0 %3169  ;;  %2057 = vrot.lane.b32.xlu1 %v1866_v60, %s5463_s5 }
 0x4be   : > { %v5078_v58 = vpop.eup %5077  ;;  %5081 = vrcp.f32 %v3170_v8 }
 0x4bf   : > { %v3251_v40 = vmul.f32 %v5078_v58, %v8383_v25  ;;  %4680 = vmatmul.msk.f32.vlgmr.msra.gmra.mxu0 %vm2912_vm8, %v3253_v32  ;;  %v2050_v35 = vpop.permute.xlu2 %2049  ;;  %v5080_v50 = vpop.eup %5079  ;;  %5083 = vpow2.f32 %v3091_v1 }
 0x4c0   : > { %3827 = vst [vmem:[#allocation1 + $0x1] ss:$2 sm:$0xff] %v2050_v35  ;;  %v3252_v60 = vmul.f32 %v5080_v50, %v8374_v11 }
 0x4c1   : > { %4678 = vmatmul.msk.f32.vlgmr.msra.gmra.mxu3 %vm2912_vm8, %v3251_v40 }
 0x4c4   : > { %v5082_v45 = vpop.eup %5081  ;;  %v8514_v51 = vpop.f32.mrf.mxu3 }
 0x4c5   : > { %v3254_v38 = vmul.f32 %v5082_v45, %v8393_v18  ;;  %v8510_v25 = vpop.eup %5083  ;;  %v3036_v18 = vsub.f32 %v8297_v49, %v8464_v22  ;;  %v3924_v5 = vrot.slane %v8514_v51, 4 }
 0x4c6   : > { %v3180_v15 = vsel %vm2912_vm8, %v8510_v25, 0.0 }
 0x4c7   : > { %4681 = vmatmul.msk.f32.gmra.mxu0 %vm2912_vm8, %v3254_v38  ;;  %v3832_v57 = vld.sshfl [vmem:[#allocation1] sm:$0xff pattern:$0x75316420]  ;;  %v3095_v29 = vmul.f32 1.442695, %v3036_v18 }
 0x4c8   : > { %3857 = vmatpush.msrb.mxu0 %v3832_v57 }
 0x4c9   : > { %4679 = vmatmul.msk.f32.gmra.mxu3 %vm2912_vm8, %v3252_v60  ;;  %5085 = vpow2.f32 %v3095_v29 }
 0x4ce   : > { %3181 = vadd.xlane.f32.xlu2 %v3180_v15 }
 0x4cf   : > { %v8527_v21 = vpop.eup %5085 }
 0x4d0   : > { %v2060_v39 = vpop.permute.xlu0 %2059  ;;  %v3186_v42 = vsel %vm2912_vm8, %v8527_v21, 0.0 }
 0x4d1   : > { %3869 = vst [vmem:[#allocation1 + $0x10] ss:$2 sm:$0xff] %v2060_v39 }
 0x4d7   : > { %v8518_v9 = vpop.f32.mrf.mxu2 }
 0x4d8   : > { %v2062_v61 = vpop.permute.xlu0 %2061  ;;  %v3921_v11 = vrot.slane %v8518_v9, 4  ;;  %v3419_v52 = vpop.f32.mrf.mxu3 }
 0x4d9   : > { %3871 = vst [vmem:[#allocation1 + $0x11] ss:$2 sm:$0xff] %v2062_v61  ;;  %v3927_v10 = vrot.slane %v3419_v52, 4 }
 0x4da   : > { %3979 = vst [vmem:[#allocation1 + $0x20] ss:$2 sm:$0xff] %v3921_v11 }
 0x4db   : > { %3985 = vst [vmem:[#allocation1 + $0x31] ss:$2 sm:$0xff] %v3927_v10 }
 0x4df   : > { %v8521_v33 = vpop.f32.mrf.mxu2 }
 0x4e0   : > { %v3922_v59 = vrot.slane %v8521_v33, 4  ;;  %v3873_v6 = vld.sshfl [vmem:[#allocation1 + $0x10] sm:$0xff pattern:$0x75316420] }
 0x4e1   : > { %v8525_v49 = vld.sshfl [vmem:[#allocation1 + $0x20] sm:$0xff pattern:$0x75316420]  ;;  %3896 = vmatpush.msrb.mxu1 %v3873_v6  ;;  %3975 = vst [vmem:[#allocation1 + $0x11] ss:$2 sm:$0xff] %v3419_v52 }
 0x4e2   : > { %3995 = vst [vmem:[#allocation1 + $0x21] ss:$2 sm:$0xff] %v3924_v5  ;;  %v3173_v22 = vpop.xlane.xlu1 %3172 }
 0x4e3   : > { %3994 = vst [vmem:[#allocation1 + $0x20] ss:$2 sm:$0xff] %v3922_v59  ;;  %5087 = vrcp.f32 %v3173_v22 }
 0x4e7   : > { %3187 = vadd.xlane.f32.xlu1 %v3186_v42  ;;  %v3379_v19 = vpop.f32.mrf.mxu2 }
 0x4e8   : > { %v3925_v4 = vrot.slane %v3379_v19, 4  ;;  %3973 = vst [vmem:[#allocation1 + $0x10] ss:$2 sm:$0xff] %v3379_v19 }
 0x4e9   : > { %v5088_v23 = vpop.eup %5087 }
 0x4ea   : > { %v3255_v16 = vmul.f32 %v5088_v23, %v8423_v46  ;;  %3983 = vst [vmem:[#allocation1 + $0x30] ss:$2 sm:$0xff] %v3925_v4  ;;  %v3179_v28 = vpop.xlane.xlu1 %3178  ;;  %v8542_v20 = vld.sshfl [vmem:[#allocation1 + $0x20] sm:$0xff pattern:$0x75316420] }
 0x4eb   : > { %5089 = vrcp.f32 %v3179_v28 }
 0x4ec   : > { %4682 = vmatmul.msk.f32.vlgmr.msra.gmra.mxu1 %vm2912_vm8, %v3255_v16 }
 0x4ef   : > { %v8533_v2 = vld.sshfl [vmem:[#allocation1 + $0x10] sm:$0xff pattern:$0x75316420]  ;;  %v3382_v41 = vpop.f32.mrf.mxu2 }
 0x4f0   : > { %v3926_v17 = vrot.slane %v3382_v41, 4  ;;  %3990 = vst [vmem:[#allocation1 + $0x10] ss:$2 sm:$0xff] %v3382_v41 }
 0x4f1   : > { %v5090_v53 = vpop.eup %5089  ;;  %v8535_v13 = vld.sshfl [vmem:[#allocation1 + $0x30] sm:$0xff pattern:$0x75316420] }
 0x4f2   : > { %v3257_v55 = vmul.f32 %v5090_v53, %v8431_v7  ;;  %3996 = vst [vmem:[#allocation1 + $0x30] ss:$2 sm:$0xff] %v3926_v17 }
 0x4f4   : > { %4684 = vmatmul.msk.f32.vlgmr.msrb.gmra.mxu2 %vm2912_vm8, %v3257_v55 }
 0x4f7   : > { %v8539_v44 = vpop.f32.mrf.mxu2 }
 0x4f8   : > { %v3176_v46 = vpop.xlane.xlu2 %3175  ;;  %v3929_v62 = vrot.slane %v8539_v44, 4 }
 0x4f9   : > { %5091 = vrcp.f32 %v3176_v46 }
 0x4fa   : > { %4006 = vst [vmem:[#allocation1 + $0x20] ss:$2 sm:$0xff] %v3929_v62 }
 0x4ff   : > { %v5092_v14 = vpop.eup %5091  ;;  %v3422_v24 = vpop.f32.mrf.mxu3 }
 0x500   : > { %v3928_v36 = vrot.slane %v3422_v24, 4  ;;  %3991 = vst [vmem:[#allocation1 + $0x11] ss:$2 sm:$0xff] %v3422_v24  ;;  %v3185_v12 = vpop.xlane.xlu2 %3184  ;;  %v3256_v26 = vmul.f32 %v5092_v14, %v8444_v31  ;;  %v8552_v32 = vpop.f32.mrf.mxu2 }
 0x501   : > { %5093 = vrcp.f32 %v3185_v12  ;;  %v3930_v58 = vrot.slane %v8552_v32, 4 }
 0x502   : > { %3997 = vst [vmem:[#allocation1 + $0x31] ss:$2 sm:$0xff] %v3928_v36  ;;  %4683 = vmatmul.msk.f32.gmra.mxu1 %vm2912_vm8, %v3256_v26 }
 0x503   : > { %v3191_v7 = vpop.xlane.xlu0 %3190 }
 0x504   : > { %5095 = vrcp.f32 %v3191_v7 }
 0x507   : > { %v5094_v56 = vpop.eup %5093  ;;  %v8546_v27 = vpop.f32.mrf.mxu3  ;;  %v8561_v35 = vld.sshfl [vmem:[#allocation1 + $0x10] sm:$0xff pattern:$0x75316420] }
 0x508   : > { %v3259_v3 = vmul.f32 %v5094_v56, %v8452_v37  ;;  %v3931_v47 = vrot.slane %v8546_v27, 4  ;;  %v2056_v34 = vpop.permute.xlu2 %2055 }
 0x509   : > { %3865 = vst [vmem:[#allocation1] ss:$2 sm:$0xff] %v2056_v34  ;;  %v8563_v45 = vld.sshfl [vmem:[#allocation1 + $0x30] sm:$0xff pattern:$0x75316420] }
 0x50a   : > { %v5096_v63 = vpop.eup %5095  ;;  %4007 = vst [vmem:[#allocation1 + $0x21] ss:$2 sm:$0xff] %v3931_v47  ;;  %4686 = vmatmul.msk.f32.vlgmr.msrb.gmra.mxu3 %vm2912_vm8, %v3259_v3 }
 0x50b   : > { %v3261_v31 = vmul.f32 %v5096_v63, %v8455_v43 }
 0x50d   : > { %4688 = vmatmul.msk.f32.vlgmr.msrb.gmra.mxu0 %vm2912_vm8, %v3261_v31 }
 0x50f   : > { %v8555_v8 = vpop.f32.mrf.mxu3 }
 0x510   : > { %v3932_v37 = vrot.slane %v8555_v8, 4 }
 0x511   : > { %v8559_v40 = vld.sshfl [vmem:[#allocation1 + $0x20] sm:$0xff pattern:$0x75316420]  ;;  %v3539_v1 = vpop.f32.mrf.mxu0 }
 0x512   : > { %4018 = vst [vmem:[#allocation1 + $0x20] ss:$2 sm:$0xff] %v3930_v58  ;;  %v3933_v50 = vrot.slane %v3539_v1, 4  ;;  %v3194_v43 = vpop.xlane.xlu0 %3193 }
 0x513   : > { %4019 = vst [vmem:[#allocation1 + $0x21] ss:$2 sm:$0xff] %v3932_v37  ;;  %5097 = vrcp.f32 %v3194_v43 }
 0x514   : > { %4002 = vst [vmem:[#allocation1 + $0x10] ss:$2 sm:$0xff] %v3539_v1 }
 0x515   : > { %4008 = vst [vmem:[#allocation1 + $0x30] ss:$2 sm:$0xff] %v3933_v50 }
 0x517   : > { %v3197_v39 = vpop.xlane.xlu1 %3196 }
 0x518   : > { %5099 = vrcp.f32 %v3197_v39 }
 0x519   : > { %v5098_v38 = vpop.eup %5097 }
 0x51a   : > { %v3262_v57 = vmul.f32 %v5098_v38, %v8468_v48  ;;  %v8571_v42 = vld.sshfl [vmem:[#allocation1 + $0x20] sm:$0xff pattern:$0x75316420] }
 0x51c   : > { %4689 = vmatmul.msk.f32.gmra.mxu0 %vm2912_vm8, %v3262_v57 }
 0x51e   : > { %v5100_v22 = vpop.eup %5099 }
 0x51f   : > { %v3200_v59 = vpop.xlane.xlu0 %3199  ;;  %v3263_v19 = vmul.f32 %v5100_v22, %v8473_v54 }
 0x520   : > { %5101 = vrcp.f32 %v3200_v59 }
 0x523   : > { %v3542_v18 = vpop.f32.mrf.mxu0 }
 0x524   : > { %v3934_v29 = vrot.slane %v3542_v18, 4 }
 0x526   : > { %v3579_v60 = vpop.f32.mrf.mxu1  ;;  %v5102_v23 = vpop.eup %5101 }
 0x527   : > { %v3935_v15 = vrot.slane %v3579_v60, 4  ;;  %4003 = vst [vmem:[#allocation1 + $0x11] ss:$2 sm:$0xff] %v3579_v60  ;;  %v3264_v54 = vmul.f32 %v5102_v23, %v8484_v0 }
 0x529   : > { %4009 = vst [vmem:[#allocation1 + $0x31] ss:$2 sm:$0xff] %v3935_v15 }
 0x52e   : > { %v8567_v61 = vld.sshfl [vmem:[#allocation1 + $0x10] sm:$0xff pattern:$0x75316420]  ;;  %v3582_v11 = vpop.f32.mrf.mxu1 }
 0x52f   : > { %4014 = vst [vmem:[#allocation1 + $0x10] ss:$2 sm:$0xff] %v3542_v18  ;;  %v3936_v52 = vrot.slane %v3582_v11, 4  ;;  %v2058_v5 = vpop.permute.xlu1 %2057 }
 0x530   : > { %v8569_v10 = vld.sshfl [vmem:[#allocation1 + $0x30] sm:$0xff pattern:$0x75316420]  ;;  %4015 = vst [vmem:[#allocation1 + $0x11] ss:$2 sm:$0xff] %v3582_v11 }
 0x531   : > { %4020 = vst [vmem:[#allocation1 + $0x30] ss:$2 sm:$0xff] %v3934_v29 }
 0x532   : > { %4021 = vst [vmem:[#allocation1 + $0x31] ss:$2 sm:$0xff] %v3936_v52 }
 0x533   : > { %3867 = vst [vmem:[#allocation1 + $0x1] ss:$2 sm:$0xff] %v2058_v5 }
 0x535   : > { %v3619_v48 = vpop.f32.mrf.mxu2 }
 0x536   : > { %v3953_v6 = vrot.slane %v3619_v48, 4 }
 0x537   : > { %v8577_v16 = vld.sshfl [vmem:[#allocation1 + $0x10] sm:$0xff pattern:$0x75316420] }
 0x538   : > { %4050 = vst [vmem:[#allocation1 + $0x20] ss:$2 sm:$0xff] %v3953_v6 }
 0x539   : > { %v8579_v17 = vld.sshfl [vmem:[#allocation1 + $0x30] sm:$0xff pattern:$0x75316420] }
 0x53a   : > { %v3872_v4 = vld.sshfl [vmem:[#allocation1] sm:$0xff pattern:$0x75316420] }
 0x53b   : > { %3897 = vmatpush.msrb.mxu1 %v3872_v4  ;;  %3969 = vst [vmem:[#allocation1] ss:$2 sm:$0xff] %v8518_v9 }
 0x53c   : > { %3971 = vst [vmem:[#allocation1 + $0x1] ss:$2 sm:$0xff] %v8493_v30  ;;  %4690 = vmatmul.msk.f32.vlgmr.msrb.gmra.mxu1 %vm2912_vm8, %v3263_v19  ;;  %v3699_v28 = vpop.f32.mrf.mxu0 }
 0x53d   : > { %v3957_v41 = vrot.slane %v3699_v28, 4  ;;  %4044 = vst [vmem:[#allocation1 + $0x10] ss:$2 sm:$0xff] %v3699_v28  ;;  %v3622_v14 = vpop.f32.mrf.mxu2 }
 0x53f   : > { %4054 = vst [vmem:[#allocation1 + $0x30] ss:$2 sm:$0xff] %v3957_v41 }
 0x541   : > { %v3182_v53 = vpop.xlane.xlu2 %3181 }
 0x542   : > { %5103 = vrcp.f32 %v3182_v53 }
 0x543   : > { %v8582_v55 = vld.sshfl [vmem:[#allocation1] sm:$0xff pattern:$0x75316420] }
 0x544   : > { %3988 = vst [vmem:[#allocation1] ss:$2 sm:$0xff] %v8521_v33  ;;  %4691 = vmatmul.msk.f32.gmra.mxu1 %vm2912_vm8, %v3264_v54  ;;  %v3659_v30 = vpop.f32.mrf.mxu3  ;;  %v3954_v33 = vrot.slane %v3622_v14, 4  ;;  %v3702_v47 = vpop.f32.mrf.mxu0 }
 0x545   : > { %3989 = vst [vmem:[#allocation1 + $0x1] ss:$2 sm:$0xff] %v8514_v51  ;;  %v3955_v9 = vrot.slane %v3659_v30, 4  ;;  %v3958_v63 = vrot.slane %v3702_v47, 4 }
 0x547   : > { %4052 = vst [vmem:[#allocation1 + $0x21] ss:$2 sm:$0xff] %v3955_v9  ;;  %v4749_v9 = vld [vmem:[#allocation11 + $0x18] sm:$0xff] }
 0x548   : > { %v5104_v46 = vpop.eup %5103  ;;  %4751 = vmatpush.bf16.msra.mxu2 %v4749_v9  ;;  %4227 = vmatpush.bf16.msra.mxu0 %v4749_v9 }
 0x549   : > { %v3258_v62 = vmul.f32 %v5104_v46, %v8510_v25  ;;  %v4748_v46 = vld [vmem:[#allocation11 + $0x10] sm:$0xff]  ;;  %4752 = vmatpush.bf16.msra.mxu3 %v4749_v9 }
 0x54b   : > { %4685 = vmatmul.msk.f32.gmra.mxu2 %vm2912_vm8, %v3258_v62  ;;  %v4747_v62 = vld [vmem:[#allocation11 + $0x8] sm:$0xff] }
 0x54c   : > { %v8589_v24 = vld.sshfl [vmem:[#allocation1] sm:$0xff pattern:$0x75316420]  ;;  %v3662_v0 = vpop.f32.mrf.mxu3  ;;  %4753 = vmatpush.bf16.msra.mxu2 %v4748_v46  ;;  %4228 = vmatpush.bf16.msra.mxu0 %v4748_v46 }
 0x54d   : > { %4000 = vst [vmem:[#allocation1] ss:$2 sm:$0xff] %v8539_v44  ;;  %v3956_v36 = vrot.slane %v3662_v0, 4  ;;  %4754 = vmatpush.bf16.msra.mxu3 %v4748_v46 }
 0x54e   : > { %4001 = vst [vmem:[#allocation1 + $0x1] ss:$2 sm:$0xff] %v8546_v27  ;;  %v8593_v12 = vld.sshfl [vmem:[#allocation1 + $0x20] sm:$0xff pattern:$0x75316420] }
 0x54f   : > { %4066 = vst [vmem:[#allocation1 + $0x21] ss:$2 sm:$0xff] %v3956_v36 }
 0x550   : > { %4065 = vst [vmem:[#allocation1 + $0x20] ss:$2 sm:$0xff] %v3954_v33  ;;  %4755 = vmatpush.bf16.msra.mxu2 %v4747_v62  ;;  %4229 = vmatpush.bf16.msra.mxu0 %v4747_v62 }
 0x551   : > { %4756 = vmatpush.bf16.msra.mxu3 %v4747_v62 }
 0x555   : > { %v8595_v51 = vld.sshfl [vmem:[#allocation1] sm:$0xff pattern:$0x75316420] }
 0x556   : > { %4012 = vst [vmem:[#allocation1] ss:$2 sm:$0xff] %v8552_v32 }
 0x557   : > { %4013 = vst [vmem:[#allocation1 + $0x1] ss:$2 sm:$0xff] %v8555_v8 }
 0x55a   : > { %v3188_v25 = vpop.xlane.xlu1 %3187 }
 0x55b   : > { %5105 = vrcp.f32 %v3188_v25 }
 0x55e   : > { %v8599_v26 = vld.sshfl [vmem:[#allocation1] sm:$0xff pattern:$0x75316420] }
 0x55f   : > { %4040 = vst [vmem:[#allocation1] ss:$2 sm:$0xff] %v3619_v48 }
 0x560   : > { %4042 = vst [vmem:[#allocation1 + $0x1] ss:$2 sm:$0xff] %v3659_v30 }
 0x561   : > { %v5106_v44 = vpop.eup %5105 }
 0x562   : > { %v3260_v7 = vmul.f32 %v5106_v44, %v8527_v21  ;;  %v4069_v21 = vld.sshfl [vmem:[#allocation1 + $0x20] sm:$0xff pattern:$0x75316420] }
 0x564   : > { %4687 = vmatmul.msk.f32.gmra.mxu3 %vm2912_vm8, %v3260_v7 }
 0x567   : > { %v4047_v56 = vld.sshfl [vmem:[#allocation1] sm:$0xff pattern:$0x75316420] }
 0x568   : > { %4059 = vst [vmem:[#allocation1] ss:$2 sm:$0xff] %v3622_v14  ;;  %v4746_v14 = vld [vmem:[#allocation11] sm:$0xff] }
 0x569   : > { %4060 = vst [vmem:[#allocation1 + $0x1] ss:$2 sm:$0xff] %v3662_v0  ;;  %v3739_v27 = vpop.f32.mrf.mxu1  ;;  %4757 = vmatpush.bf16.msra.mxu2 %v4746_v14  ;;  %4230 = vmatpush.bf16.msra.mxu0 %v4746_v14 }
 0x56a   : > { %v3959_v3 = vrot.slane %v3739_v27, 4  ;;  %4046 = vst [vmem:[#allocation1 + $0x11] ss:$2 sm:$0xff] %v3739_v27  ;;  %4758 = vmatpush.bf16.msra.mxu3 %v4746_v14 }
 0x56c   : > { %4056 = vst [vmem:[#allocation1 + $0x31] ss:$2 sm:$0xff] %v3959_v3 }
 0x570   : > { %v4063_v8 = vld.sshfl [vmem:[#allocation1] sm:$0xff pattern:$0x75316420] }
 0x571   : > { %v4048_v34 = vld.sshfl [vmem:[#allocation1 + $0x10] sm:$0xff pattern:$0x75316420] }
 0x572   : > { %4061 = vst [vmem:[#allocation1 + $0x10] ss:$2 sm:$0xff] %v3702_v47  ;;  %v4957_v11 = vpack.i.bf16 %v4048_v34, %v4047_v56 }
 0x573   : > { %v4058_v31 = vld.sshfl [vmem:[#allocation1 + $0x30] sm:$0xff pattern:$0x75316420] }
 0x574   : > { %4067 = vst [vmem:[#allocation1 + $0x30] ss:$2 sm:$0xff] %v3958_v63  ;;  %v4972_v53 = vpack.i.bf16 %v4058_v31, %v8593_v12 }
 0x577   : > { %v3779_v32 = vpop.f32.mrf.mxu2 }
 0x578   : > { %v3961_v58 = vrot.slane %v3779_v32, 4  ;;  %4071 = vst [vmem:[#allocation1] ss:$2 sm:$0xff] %v3779_v32 }
 0x57a   : > { %4077 = vst [vmem:[#allocation1 + $0x20] ss:$2 sm:$0xff] %v3961_v58 }
 0x57f   : > { %v3742_v37 = vpop.f32.mrf.mxu1 }
 0x580   : > { %v3960_v1 = vrot.slane %v3742_v37, 4  ;;  %4062 = vst [vmem:[#allocation1 + $0x11] ss:$2 sm:$0xff] %v3742_v37 }
 0x582   : > { %4068 = vst [vmem:[#allocation1 + $0x31] ss:$2 sm:$0xff] %v3960_v1 }
 0x587   : > { %v4064_v50 = vld.sshfl [vmem:[#allocation1 + $0x10] sm:$0xff pattern:$0x75316420] }
 0x588   : > { %v4937_v43 = vpack.i.bf16 %v4064_v50, %v4063_v8 }
 0x589   : > { %v4070_v60 = vld.sshfl [vmem:[#allocation1 + $0x30] sm:$0xff pattern:$0x75316420] }
 0x58a   : > { %v3859_v38 = vpop.f32.mrf.mxu0  ;;  %4938 = vrot.lane.b32.xlu0 %v4937_v43, %s5465_s16  ;;  %v4947_v18 = vpack.i.bf16 %v4070_v60, %v4069_v21 }
 0x58b   : > { %v3965_v57 = vrot.slane %v3859_v38, 4  ;;  %4073 = vst [vmem:[#allocation1 + $0x10] ss:$2 sm:$0xff] %v3859_v38 }
 0x58d   : > { %v3819_v15 = vpop.f32.mrf.mxu3  ;;  %4079 = vst [vmem:[#allocation1 + $0x30] ss:$2 sm:$0xff] %v3965_v57 }
 0x58e   : > { %v3963_v39 = vrot.slane %v3819_v15, 4  ;;  %4072 = vst [vmem:[#allocation1 + $0x1] ss:$2 sm:$0xff] %v3819_v15 }
 0x590   : > { %4078 = vst [vmem:[#allocation1 + $0x21] ss:$2 sm:$0xff] %v3963_v39 }
 0x592   : > { %4948 = vrot.lane.b32.xlu0 %v4947_v18, %s5465_s16 }
 0x595   : > { %v4075_v6 = vld.sshfl [vmem:[#allocation1] sm:$0xff pattern:$0x75316420] }
 0x597   : > { %v4081_v23 = vld.sshfl [vmem:[#allocation1 + $0x20] sm:$0xff pattern:$0x75316420] }
 0x599   : > { %v3862_v5 = vpop.f32.mrf.mxu0 }
 0x59a   : > { %4958 = vrot.lane.b32.xlu0 %v4957_v11, %s5465_s16  ;;  %v3966_v48 = vrot.slane %v3862_v5, 4 }
 0x5b9   : > { %v3899_v29 = vpop.f32.mrf.mxu1 }
 0x5ba   : > { %v3967_v52 = vrot.slane %v3899_v29, 4  ;;  %4074 = vst [vmem:[#allocation1 + $0x11] ss:$2 sm:$0xff] %v3899_v29 }
 0x5bc   : > { %4080 = vst [vmem:[#allocation1 + $0x31] ss:$2 sm:$0xff] %v3967_v52 }
 0x5c1   : > { %v3902_v59 = vpop.f32.mrf.mxu1  ;;  %v4076_v22 = vld.sshfl [vmem:[#allocation1 + $0x10] sm:$0xff pattern:$0x75316420] }
 0x5c2   : > { %v3968_v19 = vrot.slane %v3902_v59, 4  ;;  %v4962_v4 = vpack.i.bf16 %v4076_v22, %v4075_v6  ;;  %4085 = vst [vmem:[#allocation1 + $0x10] ss:$2 sm:$0xff] %v3862_v5 }
 0x5c3   : > { %4086 = vst [vmem:[#allocation1 + $0x11] ss:$2 sm:$0xff] %v3902_v59  ;;  %v4082_v28 = vld.sshfl [vmem:[#allocation1 + $0x30] sm:$0xff pattern:$0x75316420] }
 0x5c4   : > { %4963 = vrot.lane.b32.xlu0 %v4962_v4, %s5465_s16  ;;  %4091 = vst [vmem:[#allocation1 + $0x30] ss:$2 sm:$0xff] %v3966_v48  ;;  %v4942_v41 = vpack.i.bf16 %v4082_v28, %v4081_v23 }
 0x5c5   : > { %4092 = vst [vmem:[#allocation1 + $0x31] ss:$2 sm:$0xff] %v3968_v19 }
 0x5c6   : > { %4943 = vrot.lane.b32.xlu2 %v4942_v41, %s5465_s16 }
 0x5ca   : > { %v4088_v12 = vld.sshfl [vmem:[#allocation1 + $0x10] sm:$0xff pattern:$0x75316420] }
 0x5cc   : > { %4973 = vrot.lane.b32.xlu0 %v4972_v53, %s5465_s16  ;;  %v4094_v7 = vld.sshfl [vmem:[#allocation1 + $0x30] sm:$0xff pattern:$0x75316420] }
 0x5ce   : > { %v3782_v54 = vpop.f32.mrf.mxu2 }
 0x5cf   : > { %v3962_v30 = vrot.slane %v3782_v54, 4  ;;  %4083 = vst [vmem:[#allocation1] ss:$2 sm:$0xff] %v3782_v54 }
 0x5d1   : > { %4089 = vst [vmem:[#allocation1 + $0x20] ss:$2 sm:$0xff] %v3962_v30 }
 0x5e7   : > { %v3822_v0 = vpop.f32.mrf.mxu3 }
 0x5e8   : > { %v3964_v36 = vrot.slane %v3822_v0, 4  ;;  %4084 = vst [vmem:[#allocation1 + $0x1] ss:$2 sm:$0xff] %v3822_v0 }
 0x5ea   : > { %4090 = vst [vmem:[#allocation1 + $0x21] ss:$2 sm:$0xff] %v3964_v36 }
 0x5ef   : > { %v4087_v33 = vld.sshfl [vmem:[#allocation1] sm:$0xff pattern:$0x75316420] }
 0x5f0   : > { %v4952_v25 = vpack.i.bf16 %v4088_v12, %v4087_v33 }
 0x5f1   : > { %v4093_v44 = vld.sshfl [vmem:[#allocation1 + $0x20] sm:$0xff pattern:$0x75316420] }
 0x5f2   : > { %4953 = vrot.lane.b32.xlu1 %v4952_v25, %s5465_s16  ;;  %v4967_v56 = vpack.i.bf16 %v4094_v7, %v4093_v44 }
 0x5f4   : > { %4968 = vrot.lane.b32.xlu2 %v4967_v56, %s5465_s16 }
 0x5fc   : > { %v4939_v27 = vpop.permute.xlu0 %4938 }
 0x5fd   : > { %v4941_v3 = vunpack.i.h.bf16 %v4939_v27  ;;  %v4940_v47 = vunpack.i.l.bf16 %v4939_v27 }
 0x5ff   : > { %v4148_v34 = vsel %vm2085_vm7, %v8561_v35, %v4941_v3  ;;  %v4147_v63 = vsel %vm2085_vm7, %v8589_v24, %v4940_v47 }
 0x600   : > { %v4161_v31 = vpack.c.bf16 %v4148_v34, %v4147_v63 }
 0x602   : > { %4710 = vmatmul.msk.bf16.vlgmr.msra.gmra.mxu2 %vm595_vm1, %v4161_v31 }
 0x604   : > { %v4949_v32 = vpop.permute.xlu0 %4948 }
 0x605   : > { %v4951_v8 = vunpack.i.h.bf16 %v4949_v32  ;;  %v4950_v58 = vunpack.i.l.bf16 %v4949_v32 }
 0x607   : > { %v4150_v37 = vsel %vm2085_vm7, %v8563_v45, %v4951_v8  ;;  %v4149_v1 = vsel %vm2085_vm7, %v8542_v20, %v4950_v58 }
 0x608   : > { %v4162_v38 = vpack.c.bf16 %v4150_v37, %v4149_v1 }
 0x60c   : > { %v4959_v21 = vpop.permute.xlu0 %4958 }
 0x60d   : > { %v4961_v50 = vunpack.i.h.bf16 %v4959_v21  ;;  %v4960_v43 = vunpack.i.l.bf16 %v4959_v21 }
 0x60f   : > { %v4144_v35 = vsel %vm2085_vm7, %v8533_v2, %v4961_v50  ;;  %v4143_v24 = vsel %vm2085_vm7, %v8582_v55, %v4960_v43 }
 0x610   : > { %v4159_v57 = vpack.c.bf16 %v4144_v35, %v4143_v24 }
 0x612   : > { %4708 = vmatmul.msk.bf16.vlgmr.msra.gmra.mxu0 %vm595_vm1, %v4159_v57  ;;  %4711 = vmatmul.msk.bf16.gmra.mxu2 %vm595_vm1, %v4162_v38 }
 0x620   : > { %v4944_v60 = vpop.permute.xlu2 %4943 }
 0x621   : > { %v4946_v15 = vunpack.i.h.bf16 %v4944_v60  ;;  %v4945_v45 = vunpack.i.l.bf16 %v4944_v60 }
 0x623   : > { %v4154_v20 = vsel %vm2085_vm7, %v8569_v10, %v4946_v15  ;;  %v4153_v39 = vsel %vm2085_vm7, %v8559_v40, %v4945_v45 }
 0x624   : > { %v4164_v18 = vpack.c.bf16 %v4154_v20, %v4153_v39 }
 0x626   : > { %4713 = vmatmul.msk.bf16.vlgmr.msra.gmra.mxu3 %vm595_vm1, %v4164_v18 }
 0x636   : > { %v4964_v2 = vpop.permute.xlu0 %4963 }
 0x637   : > { %v4966_v55 = vunpack.i.h.bf16 %v4964_v2  ;;  %v4965_v11 = vunpack.i.l.bf16 %v4964_v2 }
 0x639   : > { %v4152_v29 = vsel %vm2085_vm7, %v8567_v61, %v4966_v55  ;;  %v4151_v52 = vsel %vm2085_vm7, %v8595_v51, %v4965_v11 }
 0x63a   : > { %v4163_v5 = vpack.c.bf16 %v4152_v29, %v4151_v52 }
 0x63c   : > { %4712 = vmatmul.msk.bf16.gmra.mxu2 %vm595_vm1, %v4163_v5 }
 0x63e   : > { %v4974_v48 = vpop.permute.xlu0 %4973 }
 0x63f   : > { %v4976_v10 = vunpack.i.h.bf16 %v4974_v48  ;;  %v4975_v59 = vunpack.i.l.bf16 %v4974_v48 }
 0x641   : > { %v4146_v40 = vsel %vm2085_vm7, %v8535_v13, %v4976_v10  ;;  %v4145_v6 = vsel %vm2085_vm7, %v8525_v49, %v4975_v59 }
 0x642   : > { %v4160_v22 = vpack.c.bf16 %v4146_v40, %v4145_v6 }
 0x644   : > { %4709 = vmatmul.msk.bf16.gmra.mxu0 %vm595_vm1, %v4160_v22 }
 0x64e   : > { %v4969_v13 = vpop.permute.xlu2 %4968 }
 0x64f   : > { %v4971_v41 = vunpack.i.h.bf16 %v4969_v13  ;;  %v4970_v53 = vunpack.i.l.bf16 %v4969_v13 }
 0x651   : > { %v4158_v49 = vsel %vm2085_vm7, %v8579_v17, %v4971_v41  ;;  %v4157_v54 = vsel %vm2085_vm7, %v8571_v42, %v4970_v53 }
 0x652   : > { %v4166_v30 = vpack.c.bf16 %v4158_v49, %v4157_v54 }
 0x664   : > { %v4954_v61 = vpop.permute.xlu1 %4953 }
 0x665   : > { %v4956_v19 = vunpack.i.h.bf16 %v4954_v61  ;;  %v4955_v4 = vunpack.i.l.bf16 %v4954_v61 }
 0x667   : > { %v4156_v51 = vsel %vm2085_vm7, %v8577_v16, %v4956_v19  ;;  %v4155_v23 = vsel %vm2085_vm7, %v8599_v26, %v4955_v4 }
 0x668   : > { %v4165_v28 = vpack.c.bf16 %v4156_v51, %v4155_v23 }
 0x66a   : > { %4714 = vmatmul.msk.bf16.gmra.mxu3 %vm595_vm1, %v4165_v28 }
 0x67a   : > { %4715 = vmatmul.msk.bf16.gmra.mxu3 %vm595_vm1, %v4166_v30 }
 0x685   : > { %v4242_v16 = vpop.f32.mrf.mxu2 }
 0x686   : > { %4276 = vst.msk [vmem:[%s8653_s30 + $0x20] sm:$0xff] %vm595_vm1, %v4242_v16 }
 0x68d   : > { %v4244_v17 = vpop.f32.mrf.mxu2 }
 0x68e   : > { %4277 = vst.msk [vmem:[%s8653_s30 + $0x28] sm:$0xff] %vm595_vm1, %v4244_v17 }
 0x68f   : > { %v4232_v42 = vpop.f32.mrf.mxu0 }
 0x690   : > { %4272 = vst.msk [vmem:[%s8653_s30] sm:$0xff] %vm595_vm1, %v4232_v42 }
 0x695   : > { %v4247_v26 = vpop.f32.mrf.mxu2 }
 0x696   : > { %4278 = vst.msk [vmem:[%s8653_s30 + $0x30] sm:$0xff] %vm595_vm1, %v4247_v26 }
 0x697   : > { %v4234_v9 = vpop.f32.mrf.mxu0 }
 0x698   : > { %4273 = vst.msk [vmem:[%s8653_s30 + $0x8] sm:$0xff] %vm595_vm1, %v4234_v9 }
 0x69d   : > { %v4249_v46 = vpop.f32.mrf.mxu2 }
 0x69e   : > { %4279 = vst.msk [vmem:[%s8653_s30 + $0x38] sm:$0xff] %vm595_vm1, %v4249_v46 }
 0x6a9   : > { %v4257_v62 = vpop.f32.mrf.mxu3 }
 0x6aa   : > { %4282 = vst.msk [vmem:[%s8653_s30 + $0x50] sm:$0xff] %vm595_vm1, %v4257_v62 }
 0x6b1   : > { %v4259_v14 = vpop.f32.mrf.mxu3 }
 0x6b2   : > { %4283 = vst.msk [vmem:[%s8653_s30 + $0x58] sm:$0xff] %vm595_vm1, %v4259_v14 }
 0x6bf   : > { %v4252_v0 = vpop.f32.mrf.mxu2 }
 0x6c0   : > { %4280 = vst.msk [vmem:[%s8653_s30 + $0x40] sm:$0xff] %vm595_vm1, %v4252_v0 }
 0x6c1   : > { %v4237_v36 = vpop.f32.mrf.mxu0 }
 0x6c2   : > { %4274 = vst.msk [vmem:[%s8653_s30 + $0x10] sm:$0xff] %vm595_vm1, %v4237_v36 }
 0x6c7   : > { %v4254_v33 = vpop.f32.mrf.mxu2 }
 0x6c8   : > { %4281 = vst.msk [vmem:[%s8653_s30 + $0x48] sm:$0xff] %vm595_vm1, %v4254_v33 }
 0x6c9   : > { %v4239_v12 = vpop.f32.mrf.mxu0 }
 0x6ca   : > { %4275 = vst.msk [vmem:[%s8653_s30 + $0x18] sm:$0xff] %vm595_vm1, %v4239_v12 }
 0x6ed   : > { %v4262_v25 = vpop.f32.mrf.mxu3 }
 0x6ee   : > { %4284 = vst.msk [vmem:[%s8653_s30 + $0x60] sm:$0xff] %vm595_vm1, %v4262_v25 }
 0x6f5   : > { %v4264_v44 = vpop.f32.mrf.mxu3 }
 0x6f6   : > { %4285 = vst.msk [vmem:[%s8653_s30 + $0x68] sm:$0xff] %vm595_vm1, %v4264_v44 }
 0x6fd   : > { %v4267_v7 = vpop.f32.mrf.mxu3 }
 0x6fe   : > { %4286 = vst.msk [vmem:[%s8653_s30 + $0x70] sm:$0xff] %vm595_vm1, %v4267_v7 }
 0x705   : > { %v4269_v56 = vpop.f32.mrf.mxu3 }
 0x706   : > { %4287 = vst.msk [vmem:[%s8653_s30 + $0x78] sm:$0xff] %vm595_vm1, %v4269_v56 }
 0x707   : > { %5317 = shalt.err (!%p5314_p13)
}
 0x708   : > { %s5466_s3 = smov 128   ;;  %s5467_s16 = smov 8  }
 0x709   : > { %4777 = dma.vmem_to_hbm [thread:$0]  (%p5701_p5), %s4305_s14, 2048, %s4307_s2, %s4289_s22, %s5466_s3, %s5466_s3, %s5467_s16  }
 0x70a PF: > { %p4810_p12 = scmp.ge.s32.totalorder %s5452_s10, 2  ;;  %s4321_s1 = sand.u32 1, %s5424_s27  }
 0x70b   : > { %s4322_s30 = scalar_lea.sflag [#allocation4], %s4321_s1 }
 0x70c   : > { %p4800_p7 = pnand %p4810_p12, %p5705_p11 }
 0x70e   : > { %p4801_p6 = pneg %p4800_p7 }
 0x710   : > { %5395 = dma.done.wait (%p4801_p6), %s4322_s30, 2048  }
 0x711   : > { %5397 = vsyncadd (%p4801_p6), %s4322_s30, 4294965248  ;;  %s27_s10 = sadd.s32 1, %s5452_s10   ;;  %s9265_s21 = sld [smem:[#allocation21_spill]] }
 0x712   : > { %p8709_p3 = scmp.ge.s32.totalorder %s27_s10, 6   ;;  %s9266_s24 = sld [smem:[#allocation22_spill]] }
 0x713   : > { %s9267_s25 = sld [smem:[#allocation23_spill]]  ;;  %s9275_s22 = smov %s5408_s23 }
 0x714   : > { %s9268_s26 = sld [smem:[#allocation34_spill]]  ;;  %s9276_s23 = smov %s5747_s17 }
 0x715   : > { %s9269_s7 = sld [smem:[#allocation35_spill]]  ;;  %s9277_s27 = smov %s5428_s28 }
 0x716   : > { %s9270_s30 = sld [smem:[#allocation26_spill]]  ;;  %s9278_s28 = smov %s5432_s29 }
 0x717   : > { %s9271_s0 = sld [smem:[#allocation27_spill]] }
 0x718   : > { %s9272_s8 = sld [smem:[#allocation29_spill]] }
 0x719   : > { %s9273_s15 = sld [smem:[#allocation30_spill]] }
 0x71b   : > { %s9279_s29 = smov %s9269_s7  ;;  %26 = sbr.rel (!%p8709_p3) target bundleno = 22 (0x16), region = 283 }
 0x71d   : > { %s9280_s7 = smov %s9271_s0 }
 0x71f   : > { %s9281_s9 = smov %s9273_s15 }
 0x720   :  { %4328 = vsyncpa [#allocation3], 1 }
 0x721   :  { %4330 = vsyncpa [#allocation3 + $0x1], 1 }
 0x722   :  { %4331 = vsyncpa [#allocation6], 1 }
 0x723   :  { %4333 = vsyncpa [#allocation6 + $0x1], 1 }
 0x724   :  { %4334 = vsyncpa [#allocation9], 1 }
 0x725   :  { %4335 = vsyncpa [#allocation12], 1 }
 0x726   :  { %4336 = vsyncpa [#allocation4], 1 }
 0x727   :  { %4338 = vsyncpa [#allocation4 + $0x1], 1 }

</bundles_post_ra>
